<compile_context>
chip_gen: v7x
topology: tpu7x:2x2x1
jax: 0.10.0
libtpu: 0.0.40
codegen_flags: <defaults>
</compile_context>

<pallas_src>
import functools

import jax
import jax.numpy as jnp
from jax.experimental import pallas as pl
from jax.experimental.pallas import tpu as pltpu

BN_EPS = 1e-5


def _round_up(x, m):
    return (x + m - 1) // m * m


def _conv_out(d, k, stride, dilation, pad):
    return (d + 2 * pad - (dilation * (k - 1) + 1)) // stride + 1


def _conv_plan(dhw, k, stride, dilation, pad):
    """Output spatial dims + the statically-nonzero im2col taps.

    A tap is pruned when, along some axis, every output position reads from
    the zero padding -> its contribution is provably zero.  For the dilated
    3x3x3 convs of layers 3/4 on 2^3 feature maps only the centre tap
    survives, shrinking K (and the streamed weight) by 27x.
    """
    out_dhw = tuple(_conv_out(d, k, stride, dilation, pad) for d in dhw)
    taps = []
    for kd in range(k):
        for kh in range(k):
            for kw in range(k):
                keep = True
                for din, dout, ki in zip(dhw, out_dhw, (kd, kh, kw)):
                    coords = [o * stride + ki * dilation for o in range(dout)]
                    if all(c < pad or c >= pad + din for c in coords):
                        keep = False
                        break
                if keep:
                    taps.append((kd, kh, kw))
    return taps, out_dhw


# --------------------------------------------------------------------------
# Fused Pallas GEMM:  out_bf16 = act( (A @ B) + shift [+ residual] )
#   A: (Mp, Kp) bf16, B: (Kp, Np) bf16 (BN scale pre-folded), shift (1, Np)
#   f32.  f32 accumulation in VMEM scratch, epilogue in the last K step.
# --------------------------------------------------------------------------
def _gemm_kernel(a_ref, b_ref, t_ref, o_ref, acc_ref, *, relu):
    k = pl.program_id(2)

    @pl.when(k == 0)
    def _():
        acc_ref[...] = jnp.zeros_like(acc_ref)

    acc_ref[...] += jnp.dot(a_ref[...], b_ref[...],
                            preferred_element_type=jnp.float32)

    @pl.when(k == pl.num_programs(2) - 1)
    def _():
        y = acc_ref[...] + t_ref[...]
        if relu:
            y = jnp.maximum(y, 0.0)
        o_ref[...] = y.astype(o_ref.dtype)


def _gemm_res_kernel(a_ref, b_ref, t_ref, r_ref, o_ref, acc_ref, *, relu):
    k = pl.program_id(2)

    @pl.when(k == 0)
    def _():
        acc_ref[...] = jnp.zeros_like(acc_ref)

    acc_ref[...] += jnp.dot(a_ref[...], b_ref[...],
                            preferred_element_type=jnp.float32)

    @pl.when(k == pl.num_programs(2) - 1)
    def _():
        y = acc_ref[...] + t_ref[...] + r_ref[...].astype(jnp.float32)
        if relu:
            y = jnp.maximum(y, 0.0)
        o_ref[...] = y.astype(o_ref.dtype)


def _tiles(M, Kp, Np):
    """Tile choices: single M block for small M, >=2 parallel N blocks when
    Np >= 256 (v7x megacore), K split into 2..8 steps when Kp > 512 so the
    weight DMA double-buffers against compute."""
    tm = 256 if M >= 256 else _round_up(M, 8)
    Mp = _round_up(M, tm)
    tn = 256 if (Np > 256 and Np % 256 == 0) else 128
    tk = Kp
    if Kp > 512:
        for s in range(2, 9):
            if Kp % s == 0 and (Kp // s) % 128 == 0:
                tk = Kp // s
                break
    return tm, Mp, tn, tk


def fused_gemm(a, b_pk, shift_pk, n_out, residual=None, relu=False):
    """a: (M, K) bf16 activations; b_pk: (Kp, Np) bf16 pre-packed weight;
    shift_pk: (1, Np) f32; residual: (M, n_out) bf16 optional."""
    M, K = a.shape
    Kp, Np = b_pk.shape
    assert 0 <= Kp - K < 128, (K, Kp)
    tm, Mp, tn, tk = _tiles(M, Kp, Np)

    a_p = jnp.pad(a.astype(jnp.bfloat16), ((0, Mp - M), (0, Kp - K)))

    grid = (Mp // tm, Np // tn, Kp // tk)
    a_spec = pl.BlockSpec((tm, tk), lambda i, j, kk: (i, kk))
    b_spec = pl.BlockSpec((tk, tn), lambda i, j, kk: (kk, j))
    t_spec = pl.BlockSpec((1, tn), lambda i, j, kk: (0, j))
    o_spec = pl.BlockSpec((tm, tn), lambda i, j, kk: (i, j))

    if residual is None:
        kern = functools.partial(_gemm_kernel, relu=relu)
        args = (a_p, b_pk, shift_pk)
        in_specs = [a_spec, b_spec, t_spec]
    else:
        Nr = residual.shape[1]
        r_p = jnp.pad(residual.astype(jnp.bfloat16),
                      ((0, Mp - M), (0, Np - Nr)))
        kern = functools.partial(_gemm_res_kernel, relu=relu)
        args = (a_p, b_pk, shift_pk, r_p)
        in_specs = [a_spec, b_spec, t_spec, o_spec]

    out = pl.pallas_call(
        kern,
        out_shape=jax.ShapeDtypeStruct((Mp, Np), jnp.bfloat16),
        grid=grid,
        in_specs=in_specs,
        out_specs=o_spec,
        scratch_shapes=[pltpu.VMEM((tm, tn), jnp.float32)],
        compiler_params=pltpu.CompilerParams(
            dimension_semantics=("parallel", "parallel", "arbitrary")),
    )(*args)
    return out[:M, :n_out]


# --------------------------------------------------------------------------
# Conv3d (+ fused BN / residual / ReLU) via (pruned) im2col + fused GEMM.
# --------------------------------------------------------------------------
def _im2col(x, taps, stride, dilation, pad, out_dhw):
    N, D, H, W, C = x.shape
    Do, Ho, Wo = out_dhw
    xp = jnp.pad(x, ((0, 0), (pad, pad), (pad, pad), (pad, pad), (0, 0)))
    cols = []
    for (kd, kh, kw) in taps:
        d0, h0, w0 = kd * dilation, kh * dilation, kw * dilation
        cols.append(xp[:, d0:d0 + stride * (Do - 1) + 1:stride,
                       h0:h0 + stride * (Ho - 1) + 1:stride,
                       w0:w0 + stride * (Wo - 1) + 1:stride, :])
    patches = cols[0] if len(cols) == 1 else jnp.stack(cols, axis=-2)
    return patches.reshape(N * Do * Ho * Wo, len(taps) * C)


def conv_apply(x, pk, *, k, stride, dilation, pad, out_ch, relu,
               residual=None, extra_a=None):
    """x: (N, D, H, W, C) bf16.  `extra_a` appends extra K columns (used for
    the merged downsample 1x1 branch); `residual` is an identity shortcut."""
    N, D, H, W, C = x.shape
    taps, (Do, Ho, Wo) = _conv_plan((D, H, W), k, stride, dilation, pad)
    a = _im2col(x, taps, stride, dilation, pad, (Do, Ho, Wo))
    if extra_a is not None:
        a = jnp.concatenate([a, extra_a], axis=1)
    out2d = fused_gemm(a, pk['w'], pk['shift'], out_ch,
                       residual=residual, relu=relu)
    return out2d.reshape(N, Do, Ho, Wo, out_ch)


# --------------------------------------------------------------------------
# MaxPool3d: running max over 27 shifted views (XLA fuses; no 27x HBM blow-up).
# --------------------------------------------------------------------------
def maxpool3d(x, k=3, stride=2, pad=1):
    N, D, H, W, C = x.shape
    xp = jnp.pad(x, ((0, 0), (pad, pad), (pad, pad), (pad, pad), (0, 0)),
                 constant_values=-jnp.inf)
    Do = (D + 2 * pad - k) // stride + 1
    Ho = (H + 2 * pad - k) // stride + 1
    Wo = (W + 2 * pad - k) // stride + 1
    out = None
    for kd in range(k):
        for kh in range(k):
            for kw in range(k):
                v = xp[:, kd:kd + stride * (Do - 1) + 1:stride,
                       kh:kh + stride * (Ho - 1) + 1:stride,
                       kw:kw + stride * (Wo - 1) + 1:stride, :]
                out = v if out is None else jnp.maximum(out, v)
    return out


# --------------------------------------------------------------------------
# ResNet-10 (3D): layers = [1, 1, 2, 1], BasicBlock, shortcut 'B'.
# --------------------------------------------------------------------------
BLOCK_CFG = [
    # (inplanes, planes, stride, dilation, has_downsample)
    (64, 64, 1, 1, False),    # layer1.0
    (64, 128, 2, 1, True),    # layer2.0
    (128, 256, 1, 2, True),   # layer3.0
    (256, 256, 1, 2, False),  # layer3.1
    (256, 512, 1, 4, True),   # layer4.0
]


def model_forward(packed, x_ncdhw, doctor_label):
    x = jnp.transpose(x_ncdhw, (0, 2, 3, 4, 1)).astype(jnp.bfloat16)  # NDHWC
    y = conv_apply(x, packed['conv1'], k=7, stride=2, dilation=1, pad=3,
                   out_ch=64, relu=True)
    y = maxpool3d(y, k=3, stride=2, pad=1)

    for (inpl, planes, stride, dilation, has_ds), bp in zip(BLOCK_CFG,
                                                            packed['blocks']):
        out = conv_apply(y, bp['c1'], k=3, stride=stride, dilation=dilation,
                         pad=dilation, out_ch=planes, relu=True)
        if has_ds:
            # downsample 1x1 conv (stride s) is merged into conv2's GEMM as
            # extra K columns; its BN scale/shift were folded at pack time.
            xs = y[:, ::stride, ::stride, ::stride, :] if stride > 1 else y
            y = conv_apply(out, bp['c2'], k=3, stride=1, dilation=dilation,
                           pad=dilation, out_ch=planes, relu=True,
                           extra_a=xs.reshape(-1, inpl))
        else:
            # identity shortcut (stride==1 and inplanes==planes here)
            y = conv_apply(out, bp['c2'], k=3, stride=1, dilation=dilation,
                           pad=dilation, out_ch=planes, relu=True,
                           residual=y.reshape(-1, planes))

    feat = jnp.mean(y.astype(jnp.float32), axis=(1, 2, 3))       # (N, 512)

    # Heads: tiny GEMMs, launch-bound -> plain jnp (XLA fuses with avg-pool).
    h_out = feat @ packed['out_w1'] + packed['out_b1']
    h_dia = feat @ packed['dia_w1'] + packed['dia_b1']
    out = jax.nn.sigmoid(h_out @ packed['out_w2'] + packed['out_b2'])
    out_c = jnp.where(out < 0.5, 0.0, 1.0)                 # torch: >=0.5 -> 1
    comper = h_dia @ packed['dia_w2'] + packed['dia_b2']

    pre_in = jnp.concatenate([out_c, comper, out_c], axis=1)        # (N, 34)
    pre_os = jax.nn.sigmoid(pre_in @ packed['os_w'] + packed['os_b'])
    doc_in = jnp.concatenate([doctor_label, comper, doctor_label], axis=1)
    doc_os = jax.nn.sigmoid(doc_in @ packed['os_w'] + packed['os_b'])
    return out, out_c, pre_os, doc_os


# --------------------------------------------------------------------------
# Deterministic parameter init (kaiming fan_out for convs, uniform for FCs).
# --------------------------------------------------------------------------
def init_params(key):
    keys = iter(jax.random.split(key, 64))

    def conv_w(k, cout, cin, ksz):
        fan_out = cout * ksz ** 3
        std = (2.0 / fan_out) ** 0.5
        w = std * jax.random.normal(k, (cout, cin, ksz, ksz, ksz), jnp.float32)
        # (Cout, Cin, kd, kh, kw) -> (kd, kh, kw, Cin, Cout) -> (k^3*Cin, Cout)
        return jnp.transpose(w, (2, 3, 4, 1, 0)).reshape(ksz ** 3 * cin, cout)

    def bn(c):
        # eval-mode BN with running_mean=0, running_var=1, gamma=1, beta=0
        scale = jnp.full((c,), 1.0 / (1.0 + BN_EPS) ** 0.5, jnp.float32)
        shift = jnp.zeros((c,), jnp.float32)
        return scale, shift

    def linear(k, fin, fout):
        k1, k2 = jax.random.split(k)
        bound = 1.0 / (fin ** 0.5)
        w = jax.random.uniform(k1, (fin, fout), jnp.float32, -bound, bound)
        b = jax.random.uniform(k2, (fout,), jnp.float32, -bound, bound)
        return w, b

    p = {}
    p['conv1_w'] = conv_w(next(keys), 64, 2, 7)
    p['bn1_scale'], p['bn1_shift'] = bn(64)

    blocks = []
    for inpl, planes, stride, dilation, has_ds in BLOCK_CFG:
        bp = {
            'conv1_w': conv_w(next(keys), planes, inpl, 3),
            'conv2_w': conv_w(next(keys), planes, planes, 3),
        }
        bp['bn1_scale'], bp['bn1_shift'] = bn(planes)
        bp['bn2_scale'], bp['bn2_shift'] = bn(planes)
        if has_ds:
            bp['ds_w'] = conv_w(next(keys), planes, inpl, 1)
            bp['ds_bn_scale'], bp['ds_bn_shift'] = bn(planes)
        blocks.append(bp)
    p['blocks'] = blocks

    p['out_w1'], p['out_b1'] = linear(next(keys), 512, 128)
    p['out_w2'], p['out_b2'] = linear(next(keys), 128, 1)
    p['dia_w1'], p['dia_b1'] = linear(next(keys), 512, 128)
    p['dia_w2'], p['dia_b2'] = linear(next(keys), 128, 32)
    p['os_w'], p['os_b'] = linear(next(keys), 34, 1)
    return p


# --------------------------------------------------------------------------
# One-time (outside jit) weight packing:
#   * keep only statically-nonzero im2col taps,
#   * fold eval-mode BN scale into the weight columns,
#   * merge the downsample 1x1 conv into conv2's weight (extra K rows) and
#     sum the two BN shifts,
#   * pad K, N to multiples of 128, cast to bf16.
# --------------------------------------------------------------------------
def pack_params(params, in_spatial):

    def pack(w_mat, cin, k, taps, scale, shift,
             extra_w=None, extra_scale=None, extra_shift=None):
        if len(taps) == k ** 3:
            w_sel = w_mat
        else:
            rows = []
            for (kd, kh, kw) in taps:
                t = (kd * k + kh) * k + kw
                rows.append(w_mat[t * cin:(t + 1) * cin])
            w_sel = rows[0] if len(rows) == 1 else jnp.concatenate(rows, 0)
        w_sel = w_sel * scale[None, :]
        sh = shift
        if extra_w is not None:
            w_sel = jnp.concatenate([w_sel, extra_w * extra_scale[None, :]], 0)
            sh = shift + extra_shift
        K, N = w_sel.shape
        Kp, Np = _round_up(K, 128), _round_up(N, 128)
        w_p = jnp.pad(w_sel, ((0, Kp - K), (0, Np - N))).astype(jnp.bfloat16)
        sh_p = jnp.pad(sh.reshape(1, N).astype(jnp.float32),
                       ((0, 0), (0, Np - N)))
        return {'w': w_p, 'shift': sh_p}

    packed = {}
    dhw = tuple(in_spatial)

    taps, dhw = _conv_plan(dhw, 7, 2, 1, 3)
    packed['conv1'] = pack(params['conv1_w'], 2, 7, taps,
                           params['bn1_scale'], params['bn1_shift'])
    dhw = tuple(_conv_out(d, 3, 2, 1, 1) for d in dhw)           # maxpool

    blocks = []
    for (inpl, planes, stride, dilation, has_ds), bp in zip(BLOCK_CFG,
                                                            params['blocks']):
        taps1, dhw1 = _conv_plan(dhw, 3, stride, dilation, dilation)
        c1 = pack(bp['conv1_w'], inpl, 3, taps1,
                  bp['bn1_scale'], bp['bn1_shift'])
        taps2, dhw2 = _conv_plan(dhw1, 3, 1, dilation, dilation)
        if has_ds:
            c2 = pack(bp['conv2_w'], planes, 3, taps2,
                      bp['bn2_scale'], bp['bn2_shift'],
                      extra_w=bp['ds_w'], extra_scale=bp['ds_bn_scale'],
                      extra_shift=bp['ds_bn_shift'])
        else:
            c2 = pack(bp['conv2_w'], planes, 3, taps2,
                      bp['bn2_scale'], bp['bn2_shift'])
        blocks.append({'c1': c1, 'c2': c2})
        dhw = dhw2
    packed['blocks'] = blocks

    for name in ('out_w1', 'out_b1', 'out_w2', 'out_b2',
                 'dia_w1', 'dia_b1', 'dia_w2', 'dia_b2', 'os_w', 'os_b'):
        packed[name] = params[name]
    return packed


if __name__ == "__main__":
    key = jax.random.PRNGKey(0)
    kp, kx, kd = jax.random.split(key, 3)

    params = init_params(kp)
    # PyTorch-convention input: (N=2, C=2, D=16, H=16, W=16)
    x = jax.random.normal(kx, (2, 2, 16, 16, 16), jnp.float32)
    doctor_label = (jax.random.uniform(kd, (2, 1)) > 0.5).astype(jnp.float32)

    packed = pack_params(params, (16, 16, 16))      # one-time weight packing

    fwd = jax.jit(model_forward)
    out, out_c, pre_os, doc_os = fwd(packed, x, doctor_label)
    jax.block_until_ready((out, out_c, pre_os, doc_os))
    assert out.shape == (2, 1) and out_c.shape == (2, 1)
    assert pre_os.shape == (2, 1) and doc_os.shape == (2, 1)
    print("KERNEL_OK")
</pallas_src>

<mosaic_0001>
module attributes {stable_mosaic.version = 11 : i64} {
  func.func @_gemm_kernel(%arg0: i32, %arg1: i32, %arg2: i32, %arg3: memref<256x384xbf16, #tpu.memory_space<vmem>>, %arg4: memref<384x128xbf16, #tpu.memory_space<vmem>>, %arg5: memref<1x128xf32, #tpu.memory_space<vmem>>, %arg6: memref<256x128xbf16, #tpu.memory_space<vmem>>, %arg7: memref<256x128xf32, #tpu.memory_space<vmem>>) attributes {dimension_semantics = [#tpu.dimension_semantics<parallel>, #tpu.dimension_semantics<parallel>, #tpu.dimension_semantics<arbitrary>], iteration_bounds = array<i64: 4, 1, 2>, scalar_prefetch = 0 : i64, scratch_operands = 1 : i64, tpu.core_type = #tpu.core_type<tc>, window_params = [{transform_indices = @transform_0, window_bounds = array<i64: 256, 384>}, {transform_indices = @transform_1, window_bounds = array<i64: 384, 128>}, {transform_indices = @transform_2, window_bounds = array<i64: 1, 128>}, {transform_indices = @transform_3, window_bounds = array<i64: 256, 128>}]} {
    %c0_i32 = arith.constant 0 : i32
    %0 = arith.cmpi eq, %arg2, %c0_i32 : i32
    %1 = arith.extui %0 : i1 to i32
    %c0_i32_0 = arith.constant 0 : i32
    %2 = arith.cmpi ne, %1, %c0_i32_0 : i32
    scf.if %2 {
      %cst_9 = arith.constant 0.000000e+00 : f32
      %12 = vector.broadcast %cst_9 : f32 to vector<256x128xf32>
      %c0_10 = arith.constant 0 : index
      %c0_11 = arith.constant 0 : index
      %13 = vector.load %arg7[%c0_10, %c0_11] : memref<256x128xf32, #tpu.memory_space<vmem>>, vector<256x128xf32>
      tpu.vector_store %arg7[%c0_10, %c0_11], %12 {strides = array<i32>} : memref<256x128xf32, #tpu.memory_space<vmem>>, vector<256x128xf32>,
    } else {
    }
    %c0 = arith.constant 0 : index
    %c0_1 = arith.constant 0 : index
    %3 = vector.load %arg7[%c0, %c0_1] : memref<256x128xf32, #tpu.memory_space<vmem>>, vector<256x128xf32>
    %c0_2 = arith.constant 0 : index
    %c0_3 = arith.constant 0 : index
    %4 = vector.load %arg3[%c0_2, %c0_3] : memref<256x384xbf16, #tpu.memory_space<vmem>>, vector<256x384xbf16>
    %c0_4 = arith.constant 0 : index
    %c0_5 = arith.constant 0 : index
    %5 = vector.load %arg4[%c0_4, %c0_5] : memref<384x128xbf16, #tpu.memory_space<vmem>>, vector<384x128xbf16>
    %cst = arith.constant dense<0.000000e+00> : vector<256x128xf32>
    %6 = tpu.matmul %4, %5, %cst {dimension_numbers = #tpu.dot_dimension_numbers<[1], [0], [0], [1], [0, 0, 1, 1], [], []>} : vector<256x384xbf16>, vector<384x128xbf16>, vector<256x128xf32> -> vector<256x128xf32>
    %7 = arith.addf %3, %6 : vector<256x128xf32>
    %c0_6 = arith.constant 0 : index
    %c0_7 = arith.constant 0 : index
    %8 = vector.load %arg7[%c0_6, %c0_7] : memref<256x128xf32, #tpu.memory_space<vmem>>, vector<256x128xf32>
    tpu.vector_store %arg7[%c0_6, %c0_7], %7 {strides = array<i32>} : memref<256x128xf32, #tpu.memory_space<vmem>>, vector<256x128xf32>,
    %c1_i32 = arith.constant 1 : i32
    %9 = arith.cmpi eq, %arg2, %c1_i32 : i32
    %10 = arith.extui %9 : i1 to i32
    %c0_i32_8 = arith.constant 0 : i32
    %11 = arith.cmpi ne, %10, %c0_i32_8 : i32
    scf.if %11 {
      %c0_9 = arith.constant 0 : index
      %c0_10 = arith.constant 0 : index
      %12 = vector.load %arg7[%c0_9, %c0_10] : memref<256x128xf32, #tpu.memory_space<vmem>>, vector<256x128xf32>
      %c0_11 = arith.constant 0 : index
      %c0_12 = arith.constant 0 : index
      %13 = vector.load %arg5[%c0_11, %c0_12] : memref<1x128xf32, #tpu.memory_space<vmem>>, vector<1x128xf32>
      %14 = vector.broadcast %13 : vector<1x128xf32> to vector<256x128xf32>
      %15 = arith.addf %12, %14 : vector<256x128xf32>
      %cst_13 = arith.constant 0.000000e+00 : f32
      %16 = vector.broadcast %cst_13 : f32 to vector<256x128xf32>
      %17 = arith.maximumf %15, %16 : vector<256x128xf32>
      %18 = arith.truncf %17 : vector<256x128xf32> to vector<256x128xbf16>
      %c0_14 = arith.constant 0 : index
      %c0_15 = arith.constant 0 : index
      %19 = vector.load %arg6[%c0_14, %c0_15] : memref<256x128xbf16, #tpu.memory_space<vmem>>, vector<256x128xbf16>
      tpu.vector_store %arg6[%c0_14, %c0_15], %18 {strides = array<i32>} : memref<256x128xbf16, #tpu.memory_space<vmem>>, vector<256x128xbf16>,
    } else {
    }
    return
  }
  func.func @transform_0(%arg0: i32, %arg1: i32, %arg2: i32) -> (i32, i32) {
    %c0_i32 = arith.constant 0 : i32
    return %arg0, %arg2 : i32, i32
  }
  func.func @transform_1(%arg0: i32, %arg1: i32, %arg2: i32) -> (i32, i32) {
    %c0_i32 = arith.constant 0 : i32
    return %arg2, %arg1 : i32, i32
  }
  func.func @transform_2(%arg0: i32, %arg1: i32, %arg2: i32) -> (i32, i32) {
    %c0_i32 = arith.constant 0 : i32
    %c0_i32_0 = arith.constant 0 : i32
    return %c0_i32, %arg1 : i32, i32
  }
  func.func @transform_3(%arg0: i32, %arg1: i32, %arg2: i32) -> (i32, i32) {
    %c0_i32 = arith.constant 0 : i32
    return %arg0, %arg1 : i32, i32
  }
}

module attributes {stable_mosaic.version = 11 : i64} {
  func.func @_gemm_kernel(%arg0: i32, %arg1: i32, %arg2: i32, %arg3: memref<128x896xbf16, #tpu.memory_space<vmem>>, %arg4: memref<896x128xbf16, #tpu.memory_space<vmem>>, %arg5: memref<1x128xf32, #tpu.memory_space<vmem>>, %arg6: memref<128x128xbf16, #tpu.memory_space<vmem>>, %arg7: memref<128x128xf32, #tpu.memory_space<vmem>>) attributes {dimension_semantics = [#tpu.dimension_semantics<parallel>, #tpu.dimension_semantics<parallel>, #tpu.dimension_semantics<arbitrary>], iteration_bounds = array<i64: 1, 1, 2>, scalar_prefetch = 0 : i64, scratch_operands = 1 : i64, tpu.core_type = #tpu.core_type<tc>, window_params = [{transform_indices = @transform_0, window_bounds = array<i64: 128, 896>}, {transform_indices = @transform_1, window_bounds = array<i64: 896, 128>}, {transform_indices = @transform_2, window_bounds = array<i64: 1, 128>}, {transform_indices = @transform_3, window_bounds = array<i64: 128, 128>}]} {
    %c0_i32 = arith.constant 0 : i32
    %0 = arith.cmpi eq, %arg2, %c0_i32 : i32
    %1 = arith.extui %0 : i1 to i32
    %c0_i32_0 = arith.constant 0 : i32
    %2 = arith.cmpi ne, %1, %c0_i32_0 : i32
    scf.if %2 {
      %cst_9 = arith.constant 0.000000e+00 : f32
      %12 = vector.broadcast %cst_9 : f32 to vector<128x128xf32>
      %c0_10 = arith.constant 0 : index
      %c0_11 = arith.constant 0 : index
      %13 = vector.load %arg7[%c0_10, %c0_11] : memref<128x128xf32, #tpu.memory_space<vmem>>, vector<128x128xf32>
      tpu.vector_store %arg7[%c0_10, %c0_11], %12 {strides = array<i32>} : memref<128x128xf32, #tpu.memory_space<vmem>>, vector<128x128xf32>,
    } else {
    }
    %c0 = arith.constant 0 : index
    %c0_1 = arith.constant 0 : index
    %3 = vector.load %arg7[%c0, %c0_1] : memref<128x128xf32, #tpu.memory_space<vmem>>, vector<128x128xf32>
    %c0_2 = arith.constant 0 : index
    %c0_3 = arith.constant 0 : index
    %4 = vector.load %arg3[%c0_2, %c0_3] : memref<128x896xbf16, #tpu.memory_space<vmem>>, vector<128x896xbf16>
    %c0_4 = arith.constant 0 : index
    %c0_5 = arith.constant 0 : index
    %5 = vector.load %arg4[%c0_4, %c0_5] : memref<896x128xbf16, #tpu.memory_space<vmem>>, vector<896x128xbf16>
    %cst = arith.constant dense<0.000000e+00> : vector<128x128xf32>
    %6 = tpu.matmul %4, %5, %cst {dimension_numbers = #tpu.dot_dimension_numbers<[1], [0], [0], [1], [0, 0, 1, 1], [], []>} : vector<128x896xbf16>, vector<896x128xbf16>, vector<128x128xf32> -> vector<128x128xf32>
    %7 = arith.addf %3, %6 : vector<128x128xf32>
    %c0_6 = arith.constant 0 : index
    %c0_7 = arith.constant 0 : index
    %8 = vector.load %arg7[%c0_6, %c0_7] : memref<128x128xf32, #tpu.memory_space<vmem>>, vector<128x128xf32>
    tpu.vector_store %arg7[%c0_6, %c0_7], %7 {strides = array<i32>} : memref<128x128xf32, #tpu.memory_space<vmem>>, vector<128x128xf32>,
    %c1_i32 = arith.constant 1 : i32
    %9 = arith.cmpi eq, %arg2, %c1_i32 : i32
    %10 = arith.extui %9 : i1 to i32
    %c0_i32_8 = arith.constant 0 : i32
    %11 = arith.cmpi ne, %10, %c0_i32_8 : i32
    scf.if %11 {
      %c0_9 = arith.constant 0 : index
      %c0_10 = arith.constant 0 : index
      %12 = vector.load %arg7[%c0_9, %c0_10] : memref<128x128xf32, #tpu.memory_space<vmem>>, vector<128x128xf32>
      %c0_11 = arith.constant 0 : index
      %c0_12 = arith.constant 0 : index
      %13 = vector.load %arg5[%c0_11, %c0_12] : memref<1x128xf32, #tpu.memory_space<vmem>>, vector<1x128xf32>
      %14 = vector.broadcast %13 : vector<1x128xf32> to vector<128x128xf32>
      %15 = arith.addf %12, %14 : vector<128x128xf32>
      %cst_13 = arith.constant 0.000000e+00 : f32
      %16 = vector.broadcast %cst_13 : f32 to vector<128x128xf32>
      %17 = arith.maximumf %15, %16 : vector<128x128xf32>
      %18 = arith.truncf %17 : vector<128x128xf32> to vector<128x128xbf16>
      %c0_14 = arith.constant 0 : index
      %c0_15 = arith.constant 0 : index
      %19 = vector.load %arg6[%c0_14, %c0_15] : memref<128x128xbf16, #tpu.memory_space<vmem>>, vector<128x128xbf16>
      tpu.vector_store %arg6[%c0_14, %c0_15], %18 {strides = array<i32>} : memref<128x128xbf16, #tpu.memory_space<vmem>>, vector<128x128xbf16>,
    } else {
    }
    return
  }
  func.func @transform_0(%arg0: i32, %arg1: i32, %arg2: i32) -> (i32, i32) {
    %c0_i32 = arith.constant 0 : i32
    return %arg0, %arg2 : i32, i32
  }
  func.func @transform_1(%arg0: i32, %arg1: i32, %arg2: i32) -> (i32, i32) {
    %c0_i32 = arith.constant 0 : i32
    return %arg2, %arg1 : i32, i32
  }
  func.func @transform_2(%arg0: i32, %arg1: i32, %arg2: i32) -> (i32, i32) {
    %c0_i32 = arith.constant 0 : i32
    %c0_i32_0 = arith.constant 0 : i32
    return %c0_i32, %arg1 : i32, i32
  }
  func.func @transform_3(%arg0: i32, %arg1: i32, %arg2: i32) -> (i32, i32) {
    %c0_i32 = arith.constant 0 : i32
    return %arg0, %arg1 : i32, i32
  }
}

module attributes {stable_mosaic.version = 11 : i64} {
  func.func @_gemm_res_kernel(%arg0: i32, %arg1: i32, %arg2: i32, %arg3: memref<128x896xbf16, #tpu.memory_space<vmem>>, %arg4: memref<896x128xbf16, #tpu.memory_space<vmem>>, %arg5: memref<1x128xf32, #tpu.memory_space<vmem>>, %arg6: memref<128x128xbf16, #tpu.memory_space<vmem>>, %arg7: memref<128x128xbf16, #tpu.memory_space<vmem>>, %arg8: memref<128x128xf32, #tpu.memory_space<vmem>>) attributes {dimension_semantics = [#tpu.dimension_semantics<parallel>, #tpu.dimension_semantics<parallel>, #tpu.dimension_semantics<arbitrary>], iteration_bounds = array<i64: 1, 1, 2>, scalar_prefetch = 0 : i64, scratch_operands = 1 : i64, tpu.core_type = #tpu.core_type<tc>, window_params = [{transform_indices = @transform_0, window_bounds = array<i64: 128, 896>}, {transform_indices = @transform_1, window_bounds = array<i64: 896, 128>}, {transform_indices = @transform_2, window_bounds = array<i64: 1, 128>}, {transform_indices = @transform_3, window_bounds = array<i64: 128, 128>}, {transform_indices = @transform_4, window_bounds = array<i64: 128, 128>}]} {
    %c0_i32 = arith.constant 0 : i32
    %0 = arith.cmpi eq, %arg2, %c0_i32 : i32
    %1 = arith.extui %0 : i1 to i32
    %c0_i32_0 = arith.constant 0 : i32
    %2 = arith.cmpi ne, %1, %c0_i32_0 : i32
    scf.if %2 {
      %cst_9 = arith.constant 0.000000e+00 : f32
      %12 = vector.broadcast %cst_9 : f32 to vector<128x128xf32>
      %c0_10 = arith.constant 0 : index
      %c0_11 = arith.constant 0 : index
      %13 = vector.load %arg8[%c0_10, %c0_11] : memref<128x128xf32, #tpu.memory_space<vmem>>, vector<128x128xf32>
      tpu.vector_store %arg8[%c0_10, %c0_11], %12 {strides = array<i32>} : memref<128x128xf32, #tpu.memory_space<vmem>>, vector<128x128xf32>,
    } else {
    }
    %c0 = arith.constant 0 : index
    %c0_1 = arith.constant 0 : index
    %3 = vector.load %arg8[%c0, %c0_1] : memref<128x128xf32, #tpu.memory_space<vmem>>, vector<128x128xf32>
    %c0_2 = arith.constant 0 : index
    %c0_3 = arith.constant 0 : index
    %4 = vector.load %arg3[%c0_2, %c0_3] : memref<128x896xbf16, #tpu.memory_space<vmem>>, vector<128x896xbf16>
    %c0_4 = arith.constant 0 : index
    %c0_5 = arith.constant 0 : index
    %5 = vector.load %arg4[%c0_4, %c0_5] : memref<896x128xbf16, #tpu.memory_space<vmem>>, vector<896x128xbf16>
    %cst = arith.constant dense<0.000000e+00> : vector<128x128xf32>
    %6 = tpu.matmul %4, %5, %cst {dimension_numbers = #tpu.dot_dimension_numbers<[1], [0], [0], [1], [0, 0, 1, 1], [], []>} : vector<128x896xbf16>, vector<896x128xbf16>, vector<128x128xf32> -> vector<128x128xf32>
    %7 = arith.addf %3, %6 : vector<128x128xf32>
    %c0_6 = arith.constant 0 : index
    %c0_7 = arith.constant 0 : index
    %8 = vector.load %arg8[%c0_6, %c0_7] : memref<128x128xf32, #tpu.memory_space<vmem>>, vector<128x128xf32>
    tpu.vector_store %arg8[%c0_6, %c0_7], %7 {strides = array<i32>} : memref<128x128xf32, #tpu.memory_space<vmem>>, vector<128x128xf32>,
    %c1_i32 = arith.constant 1 : i32
    %9 = arith.cmpi eq, %arg2, %c1_i32 : i32
    %10 = arith.extui %9 : i1 to i32
    %c0_i32_8 = arith.constant 0 : i32
    %11 = arith.cmpi ne, %10, %c0_i32_8 : i32
    scf.if %11 {
      %c0_9 = arith.constant 0 : index
      %c0_10 = arith.constant 0 : index
      %12 = vector.load %arg8[%c0_9, %c0_10] : memref<128x128xf32, #tpu.memory_space<vmem>>, vector<128x128xf32>
      %c0_11 = arith.constant 0 : index
      %c0_12 = arith.constant 0 : index
      %13 = vector.load %arg5[%c0_11, %c0_12] : memref<1x128xf32, #tpu.memory_space<vmem>>, vector<1x128xf32>
      %14 = vector.broadcast %13 : vector<1x128xf32> to vector<128x128xf32>
      %15 = arith.addf %12, %14 : vector<128x128xf32>
      %c0_13 = arith.constant 0 : index
      %c0_14 = arith.constant 0 : index
      %16 = vector.load %arg6[%c0_13, %c0_14] : memref<128x128xbf16, #tpu.memory_space<vmem>>, vector<128x128xbf16>
      %17 = arith.extf %16 : vector<128x128xbf16> to vector<128x128xf32>
      %18 = arith.addf %15, %17 : vector<128x128xf32>
      %cst_15 = arith.constant 0.000000e+00 : f32
      %19 = vector.broadcast %cst_15 : f32 to vector<128x128xf32>
      %20 = arith.maximumf %18, %19 : vector<128x128xf32>
      %21 = arith.truncf %20 : vector<128x128xf32> to vector<128x128xbf16>
      %c0_16 = arith.constant 0 : index
      %c0_17 = arith.constant 0 : index
      %22 = vector.load %arg7[%c0_16, %c0_17] : memref<128x128xbf16, #tpu.memory_space<vmem>>, vector<128x128xbf16>
      tpu.vector_store %arg7[%c0_16, %c0_17], %21 {strides = array<i32>} : memref<128x128xbf16, #tpu.memory_space<vmem>>, vector<128x128xbf16>,
    } else {
    }
    return
  }
  func.func @transform_0(%arg0: i32, %arg1: i32, %arg2: i32) -> (i32, i32) {
    %c0_i32 = arith.constant 0 : i32
    return %arg0, %arg2 : i32, i32
  }
  func.func @transform_1(%arg0: i32, %arg1: i32, %arg2: i32) -> (i32, i32) {
    %c0_i32 = arith.constant 0 : i32
    return %arg2, %arg1 : i32, i32
  }
  func.func @transform_2(%arg0: i32, %arg1: i32, %arg2: i32) -> (i32, i32) {
    %c0_i32 = arith.constant 0 : i32
    %c0_i32_0 = arith.constant 0 : i32
    return %c0_i32, %arg1 : i32, i32
  }
  func.func @transform_3(%arg0: i32, %arg1: i32, %arg2: i32) -> (i32, i32) {
    %c0_i32 = arith.constant 0 : i32
    return %arg0, %arg1 : i32, i32
  }
  func.func @transform_4(%arg0: i32, %arg1: i32, %arg2: i32) -> (i32, i32) {
    %c0_i32 = arith.constant 0 : i32
    return %arg0, %arg1 : i32, i32
  }
}

module attributes {stable_mosaic.version = 11 : i64} {
  func.func @_gemm_kernel(%arg0: i32, %arg1: i32, %arg2: i32, %arg3: memref<16x896xbf16, #tpu.memory_space<vmem>>, %arg4: memref<896x128xbf16, #tpu.memory_space<vmem>>, %arg5: memref<1x128xf32, #tpu.memory_space<vmem>>, %arg6: memref<16x128xbf16, #tpu.memory_space<vmem>>, %arg7: memref<16x128xf32, #tpu.memory_space<vmem>>) attributes {dimension_semantics = [#tpu.dimension_semantics<parallel>, #tpu.dimension_semantics<parallel>, #tpu.dimension_semantics<arbitrary>], iteration_bounds = array<i64: 1, 1, 2>, scalar_prefetch = 0 : i64, scratch_operands = 1 : i64, tpu.core_type = #tpu.core_type<tc>, window_params = [{transform_indices = @transform_0, window_bounds = array<i64: 16, 896>}, {transform_indices = @transform_1, window_bounds = array<i64: 896, 128>}, {transform_indices = @transform_2, window_bounds = array<i64: 1, 128>}, {transform_indices = @transform_3, window_bounds = array<i64: 16, 128>}]} {
    %c0_i32 = arith.constant 0 : i32
    %0 = arith.cmpi eq, %arg2, %c0_i32 : i32
    %1 = arith.extui %0 : i1 to i32
    %c0_i32_0 = arith.constant 0 : i32
    %2 = arith.cmpi ne, %1, %c0_i32_0 : i32
    scf.if %2 {
      %cst_9 = arith.constant 0.000000e+00 : f32
      %12 = vector.broadcast %cst_9 : f32 to vector<16x128xf32>
      %c0_10 = arith.constant 0 : index
      %c0_11 = arith.constant 0 : index
      %13 = vector.load %arg7[%c0_10, %c0_11] : memref<16x128xf32, #tpu.memory_space<vmem>>, vector<16x128xf32>
      tpu.vector_store %arg7[%c0_10, %c0_11], %12 {strides = array<i32>} : memref<16x128xf32, #tpu.memory_space<vmem>>, vector<16x128xf32>,
    } else {
    }
    %c0 = arith.constant 0 : index
    %c0_1 = arith.constant 0 : index
    %3 = vector.load %arg7[%c0, %c0_1] : memref<16x128xf32, #tpu.memory_space<vmem>>, vector<16x128xf32>
    %c0_2 = arith.constant 0 : index
    %c0_3 = arith.constant 0 : index
    %4 = vector.load %arg3[%c0_2, %c0_3] : memref<16x896xbf16, #tpu.memory_space<vmem>>, vector<16x896xbf16>
    %c0_4 = arith.constant 0 : index
    %c0_5 = arith.constant 0 : index
    %5 = vector.load %arg4[%c0_4, %c0_5] : memref<896x128xbf16, #tpu.memory_space<vmem>>, vector<896x128xbf16>
    %cst = arith.constant dense<0.000000e+00> : vector<16x128xf32>
    %6 = tpu.matmul %4, %5, %cst {dimension_numbers = #tpu.dot_dimension_numbers<[1], [0], [0], [1], [0, 0, 1, 1], [], []>} : vector<16x896xbf16>, vector<896x128xbf16>, vector<16x128xf32> -> vector<16x128xf32>
    %7 = arith.addf %3, %6 : vector<16x128xf32>
    %c0_6 = arith.constant 0 : index
    %c0_7 = arith.constant 0 : index
    %8 = vector.load %arg7[%c0_6, %c0_7] : memref<16x128xf32, #tpu.memory_space<vmem>>, vector<16x128xf32>
    tpu.vector_store %arg7[%c0_6, %c0_7], %7 {strides = array<i32>} : memref<16x128xf32, #tpu.memory_space<vmem>>, vector<16x128xf32>,
    %c1_i32 = arith.constant 1 : i32
    %9 = arith.cmpi eq, %arg2, %c1_i32 : i32
    %10 = arith.extui %9 : i1 to i32
    %c0_i32_8 = arith.constant 0 : i32
    %11 = arith.cmpi ne, %10, %c0_i32_8 : i32
    scf.if %11 {
      %c0_9 = arith.constant 0 : index
      %c0_10 = arith.constant 0 : index
      %12 = vector.load %arg7[%c0_9, %c0_10] : memref<16x128xf32, #tpu.memory_space<vmem>>, vector<16x128xf32>
      %c0_11 = arith.constant 0 : index
      %c0_12 = arith.constant 0 : index
      %13 = vector.load %arg5[%c0_11, %c0_12] : memref<1x128xf32, #tpu.memory_space<vmem>>, vector<1x128xf32>
      %14 = vector.broadcast %13 : vector<1x128xf32> to vector<16x128xf32>
      %15 = arith.addf %12, %14 : vector<16x128xf32>
      %cst_13 = arith.constant 0.000000e+00 : f32
      %16 = vector.broadcast %cst_13 : f32 to vector<16x128xf32>
      %17 = arith.maximumf %15, %16 : vector<16x128xf32>
      %18 = arith.truncf %17 : vector<16x128xf32> to vector<16x128xbf16>
      %c0_14 = arith.constant 0 : index
      %c0_15 = arith.constant 0 : index
      %19 = vector.load %arg6[%c0_14, %c0_15] : memref<16x128xbf16, #tpu.memory_space<vmem>>, vector<16x128xbf16>
      tpu.vector_store %arg6[%c0_14, %c0_15], %18 {strides = array<i32>} : memref<16x128xbf16, #tpu.memory_space<vmem>>, vector<16x128xbf16>,
    } else {
    }
    return
  }
  func.func @transform_0(%arg0: i32, %arg1: i32, %arg2: i32) -> (i32, i32) {
    %c0_i32 = arith.constant 0 : i32
    return %arg0, %arg2 : i32, i32
  }
  func.func @transform_1(%arg0: i32, %arg1: i32, %arg2: i32) -> (i32, i32) {
    %c0_i32 = arith.constant 0 : i32
    return %arg2, %arg1 : i32, i32
  }
  func.func @transform_2(%arg0: i32, %arg1: i32, %arg2: i32) -> (i32, i32) {
    %c0_i32 = arith.constant 0 : i32
    %c0_i32_0 = arith.constant 0 : i32
    return %c0_i32, %arg1 : i32, i32
  }
  func.func @transform_3(%arg0: i32, %arg1: i32, %arg2: i32) -> (i32, i32) {
    %c0_i32 = arith.constant 0 : i32
    return %arg0, %arg1 : i32, i32
  }
}

module attributes {stable_mosaic.version = 11 : i64} {
  func.func @_gemm_kernel(%arg0: i32, %arg1: i32, %arg2: i32, %arg3: memref<16x1792xbf16, #tpu.memory_space<vmem>>, %arg4: memref<1792x128xbf16, #tpu.memory_space<vmem>>, %arg5: memref<1x128xf32, #tpu.memory_space<vmem>>, %arg6: memref<16x128xbf16, #tpu.memory_space<vmem>>, %arg7: memref<16x128xf32, #tpu.memory_space<vmem>>) attributes {dimension_semantics = [#tpu.dimension_semantics<parallel>, #tpu.dimension_semantics<parallel>, #tpu.dimension_semantics<arbitrary>], iteration_bounds = array<i64: 1, 1, 2>, scalar_prefetch = 0 : i64, scratch_operands = 1 : i64, tpu.core_type = #tpu.core_type<tc>, window_params = [{transform_indices = @transform_0, window_bounds = array<i64: 16, 1792>}, {transform_indices = @transform_1, window_bounds = array<i64: 1792, 128>}, {transform_indices = @transform_2, window_bounds = array<i64: 1, 128>}, {transform_indices = @transform_3, window_bounds = array<i64: 16, 128>}]} {
    %c0_i32 = arith.constant 0 : i32
    %0 = arith.cmpi eq, %arg2, %c0_i32 : i32
    %1 = arith.extui %0 : i1 to i32
    %c0_i32_0 = arith.constant 0 : i32
    %2 = arith.cmpi ne, %1, %c0_i32_0 : i32
    scf.if %2 {
      %cst_9 = arith.constant 0.000000e+00 : f32
      %12 = vector.broadcast %cst_9 : f32 to vector<16x128xf32>
      %c0_10 = arith.constant 0 : index
      %c0_11 = arith.constant 0 : index
      %13 = vector.load %arg7[%c0_10, %c0_11] : memref<16x128xf32, #tpu.memory_space<vmem>>, vector<16x128xf32>
      tpu.vector_store %arg7[%c0_10, %c0_11], %12 {strides = array<i32>} : memref<16x128xf32, #tpu.memory_space<vmem>>, vector<16x128xf32>,
    } else {
    }
    %c0 = arith.constant 0 : index
    %c0_1 = arith.constant 0 : index
    %3 = vector.load %arg7[%c0, %c0_1] : memref<16x128xf32, #tpu.memory_space<vmem>>, vector<16x128xf32>
    %c0_2 = arith.constant 0 : index
    %c0_3 = arith.constant 0 : index
    %4 = vector.load %arg3[%c0_2, %c0_3] : memref<16x1792xbf16, #tpu.memory_space<vmem>>, vector<16x1792xbf16>
    %c0_4 = arith.constant 0 : index
    %c0_5 = arith.constant 0 : index
    %5 = vector.load %arg4[%c0_4, %c0_5] : memref<1792x128xbf16, #tpu.memory_space<vmem>>, vector<1792x128xbf16>
    %cst = arith.constant dense<0.000000e+00> : vector<16x128xf32>
    %6 = tpu.matmul %4, %5, %cst {dimension_numbers = #tpu.dot_dimension_numbers<[1], [0], [0], [1], [0, 0, 1, 1], [], []>} : vector<16x1792xbf16>, vector<1792x128xbf16>, vector<16x128xf32> -> vector<16x128xf32>
    %7 = arith.addf %3, %6 : vector<16x128xf32>
    %c0_6 = arith.constant 0 : index
    %c0_7 = arith.constant 0 : index
    %8 = vector.load %arg7[%c0_6, %c0_7] : memref<16x128xf32, #tpu.memory_space<vmem>>, vector<16x128xf32>
    tpu.vector_store %arg7[%c0_6, %c0_7], %7 {strides = array<i32>} : memref<16x128xf32, #tpu.memory_space<vmem>>, vector<16x128xf32>,
    %c1_i32 = arith.constant 1 : i32
    %9 = arith.cmpi eq, %arg2, %c1_i32 : i32
    %10 = arith.extui %9 : i1 to i32
    %c0_i32_8 = arith.constant 0 : i32
    %11 = arith.cmpi ne, %10, %c0_i32_8 : i32
    scf.if %11 {
      %c0_9 = arith.constant 0 : index
      %c0_10 = arith.constant 0 : index
      %12 = vector.load %arg7[%c0_9, %c0_10] : memref<16x128xf32, #tpu.memory_space<vmem>>, vector<16x128xf32>
      %c0_11 = arith.constant 0 : index
      %c0_12 = arith.constant 0 : index
      %13 = vector.load %arg5[%c0_11, %c0_12] : memref<1x128xf32, #tpu.memory_space<vmem>>, vector<1x128xf32>
      %14 = vector.broadcast %13 : vector<1x128xf32> to vector<16x128xf32>
      %15 = arith.addf %12, %14 : vector<16x128xf32>
      %cst_13 = arith.constant 0.000000e+00 : f32
      %16 = vector.broadcast %cst_13 : f32 to vector<16x128xf32>
      %17 = arith.maximumf %15, %16 : vector<16x128xf32>
      %18 = arith.truncf %17 : vector<16x128xf32> to vector<16x128xbf16>
      %c0_14 = arith.constant 0 : index
      %c0_15 = arith.constant 0 : index
      %19 = vector.load %arg6[%c0_14, %c0_15] : memref<16x128xbf16, #tpu.memory_space<vmem>>, vector<16x128xbf16>
      tpu.vector_store %arg6[%c0_14, %c0_15], %18 {strides = array<i32>} : memref<16x128xbf16, #tpu.memory_space<vmem>>, vector<16x128xbf16>,
    } else {
    }
    return
  }
  func.func @transform_0(%arg0: i32, %arg1: i32, %arg2: i32) -> (i32, i32) {
    %c0_i32 = arith.constant 0 : i32
    return %arg0, %arg2 : i32, i32
  }
  func.func @transform_1(%arg0: i32, %arg1: i32, %arg2: i32) -> (i32, i32) {
    %c0_i32 = arith.constant 0 : i32
    return %arg2, %arg1 : i32, i32
  }
  func.func @transform_2(%arg0: i32, %arg1: i32, %arg2: i32) -> (i32, i32) {
    %c0_i32 = arith.constant 0 : i32
    %c0_i32_0 = arith.constant 0 : i32
    return %c0_i32, %arg1 : i32, i32
  }
  func.func @transform_3(%arg0: i32, %arg1: i32, %arg2: i32) -> (i32, i32) {
    %c0_i32 = arith.constant 0 : i32
    return %arg0, %arg1 : i32, i32
  }
}

module attributes {stable_mosaic.version = 11 : i64} {
  func.func @_gemm_kernel(%arg0: i32, %arg1: i32, %arg2: i32, %arg3: memref<16x384xbf16, #tpu.memory_space<vmem>>, %arg4: memref<384x128xbf16, #tpu.memory_space<vmem>>, %arg5: memref<1x128xf32, #tpu.memory_space<vmem>>, %arg6: memref<16x128xbf16, #tpu.memory_space<vmem>>, %arg7: memref<16x128xf32, #tpu.memory_space<vmem>>) attributes {dimension_semantics = [#tpu.dimension_semantics<parallel>, #tpu.dimension_semantics<parallel>, #tpu.dimension_semantics<arbitrary>], iteration_bounds = array<i64: 1, 2, 1>, scalar_prefetch = 0 : i64, scratch_operands = 1 : i64, tpu.core_type = #tpu.core_type<tc>, window_params = [{transform_indices = @transform_0, window_bounds = array<i64: 16, 384>}, {transform_indices = @transform_1, window_bounds = array<i64: 384, 128>}, {transform_indices = @transform_2, window_bounds = array<i64: 1, 128>}, {transform_indices = @transform_3, window_bounds = array<i64: 16, 128>}]} {
    %c0_i32 = arith.constant 0 : i32
    %0 = arith.cmpi eq, %arg2, %c0_i32 : i32
    %1 = arith.extui %0 : i1 to i32
    %c0_i32_0 = arith.constant 0 : i32
    %2 = arith.cmpi ne, %1, %c0_i32_0 : i32
    scf.if %2 {
      %cst_10 = arith.constant 0.000000e+00 : f32
      %12 = vector.broadcast %cst_10 : f32 to vector<16x128xf32>
      %c0_11 = arith.constant 0 : index
      %c0_12 = arith.constant 0 : index
      %13 = vector.load %arg7[%c0_11, %c0_12] : memref<16x128xf32, #tpu.memory_space<vmem>>, vector<16x128xf32>
      tpu.vector_store %arg7[%c0_11, %c0_12], %12 {strides = array<i32>} : memref<16x128xf32, #tpu.memory_space<vmem>>, vector<16x128xf32>,
    } else {
    }
    %c0 = arith.constant 0 : index
    %c0_1 = arith.constant 0 : index
    %3 = vector.load %arg7[%c0, %c0_1] : memref<16x128xf32, #tpu.memory_space<vmem>>, vector<16x128xf32>
    %c0_2 = arith.constant 0 : index
    %c0_3 = arith.constant 0 : index
    %4 = vector.load %arg3[%c0_2, %c0_3] : memref<16x384xbf16, #tpu.memory_space<vmem>>, vector<16x384xbf16>
    %c0_4 = arith.constant 0 : index
    %c0_5 = arith.constant 0 : index
    %5 = vector.load %arg4[%c0_4, %c0_5] : memref<384x128xbf16, #tpu.memory_space<vmem>>, vector<384x128xbf16>
    %cst = arith.constant dense<0.000000e+00> : vector<16x128xf32>
    %6 = tpu.matmul %4, %5, %cst {dimension_numbers = #tpu.dot_dimension_numbers<[1], [0], [0], [1], [0, 0, 1, 1], [], []>} : vector<16x384xbf16>, vector<384x128xbf16>, vector<16x128xf32> -> vector<16x128xf32>
    %7 = arith.addf %3, %6 : vector<16x128xf32>
    %c0_6 = arith.constant 0 : index
    %c0_7 = arith.constant 0 : index
    %8 = vector.load %arg7[%c0_6, %c0_7] : memref<16x128xf32, #tpu.memory_space<vmem>>, vector<16x128xf32>
    tpu.vector_store %arg7[%c0_6, %c0_7], %7 {strides = array<i32>} : memref<16x128xf32, #tpu.memory_space<vmem>>, vector<16x128xf32>,
    %c0_i32_8 = arith.constant 0 : i32
    %9 = arith.cmpi eq, %arg2, %c0_i32_8 : i32
    %10 = arith.extui %9 : i1 to i32
    %c0_i32_9 = arith.constant 0 : i32
    %11 = arith.cmpi ne, %10, %c0_i32_9 : i32
    scf.if %11 {
      %c0_10 = arith.constant 0 : index
      %c0_11 = arith.constant 0 : index
      %12 = vector.load %arg7[%c0_10, %c0_11] : memref<16x128xf32, #tpu.memory_space<vmem>>, vector<16x128xf32>
      %c0_12 = arith.constant 0 : index
      %c0_13 = arith.constant 0 : index
      %13 = vector.load %arg5[%c0_12, %c0_13] : memref<1x128xf32, #tpu.memory_space<vmem>>, vector<1x128xf32>
      %14 = vector.broadcast %13 : vector<1x128xf32> to vector<16x128xf32>
      %15 = arith.addf %12, %14 : vector<16x128xf32>
      %cst_14 = arith.constant 0.000000e+00 : f32
      %16 = vector.broadcast %cst_14 : f32 to vector<16x128xf32>
      %17 = arith.maximumf %15, %16 : vector<16x128xf32>
      %18 = arith.truncf %17 : vector<16x128xf32> to vector<16x128xbf16>
      %c0_15 = arith.constant 0 : index
      %c0_16 = arith.constant 0 : index
      %19 = vector.load %arg6[%c0_15, %c0_16] : memref<16x128xbf16, #tpu.memory_space<vmem>>, vector<16x128xbf16>
      tpu.vector_store %arg6[%c0_15, %c0_16], %18 {strides = array<i32>} : memref<16x128xbf16, #tpu.memory_space<vmem>>, vector<16x128xbf16>,
    } else {
    }
    return
  }
  func.func @transform_0(%arg0: i32, %arg1: i32, %arg2: i32) -> (i32, i32) {
    %c0_i32 = arith.constant 0 : i32
    return %arg0, %arg2 : i32, i32
  }
  func.func @transform_1(%arg0: i32, %arg1: i32, %arg2: i32) -> (i32, i32) {
    %c0_i32 = arith.constant 0 : i32
    return %arg2, %arg1 : i32, i32
  }
  func.func @transform_2(%arg0: i32, %arg1: i32, %arg2: i32) -> (i32, i32) {
    %c0_i32 = arith.constant 0 : i32
    %c0_i32_0 = arith.constant 0 : i32
    return %c0_i32, %arg1 : i32, i32
  }
  func.func @transform_3(%arg0: i32, %arg1: i32, %arg2: i32) -> (i32, i32) {
    %c0_i32 = arith.constant 0 : i32
    return %arg0, %arg1 : i32, i32
  }
}

module attributes {stable_mosaic.version = 11 : i64} {
  func.func @_gemm_kernel(%arg0: i32, %arg1: i32, %arg2: i32, %arg3: memref<16x128xbf16, #tpu.memory_space<vmem>>, %arg4: memref<128x128xbf16, #tpu.memory_space<vmem>>, %arg5: memref<1x128xf32, #tpu.memory_space<vmem>>, %arg6: memref<16x128xbf16, #tpu.memory_space<vmem>>, %arg7: memref<16x128xf32, #tpu.memory_space<vmem>>) attributes {dimension_semantics = [#tpu.dimension_semantics<parallel>, #tpu.dimension_semantics<parallel>, #tpu.dimension_semantics<arbitrary>], iteration_bounds = array<i64: 1, 2, 1>, scalar_prefetch = 0 : i64, scratch_operands = 1 : i64, tpu.core_type = #tpu.core_type<tc>, window_params = [{transform_indices = @transform_0, window_bounds = array<i64: 16, 128>}, {transform_indices = @transform_1, window_bounds = array<i64: 128, 128>}, {transform_indices = @transform_2, window_bounds = array<i64: 1, 128>}, {transform_indices = @transform_3, window_bounds = array<i64: 16, 128>}]} {
    %c0_i32 = arith.constant 0 : i32
    %0 = arith.cmpi eq, %arg2, %c0_i32 : i32
    %1 = arith.extui %0 : i1 to i32
    %c0_i32_0 = arith.constant 0 : i32
    %2 = arith.cmpi ne, %1, %c0_i32_0 : i32
    scf.if %2 {
      %cst_10 = arith.constant 0.000000e+00 : f32
      %12 = vector.broadcast %cst_10 : f32 to vector<16x128xf32>
      %c0_11 = arith.constant 0 : index
      %c0_12 = arith.constant 0 : index
      %13 = vector.load %arg7[%c0_11, %c0_12] : memref<16x128xf32, #tpu.memory_space<vmem>>, vector<16x128xf32>
      tpu.vector_store %arg7[%c0_11, %c0_12], %12 {strides = array<i32>} : memref<16x128xf32, #tpu.memory_space<vmem>>, vector<16x128xf32>,
    } else {
    }
    %c0 = arith.constant 0 : index
    %c0_1 = arith.constant 0 : index
    %3 = vector.load %arg7[%c0, %c0_1] : memref<16x128xf32, #tpu.memory_space<vmem>>, vector<16x128xf32>
    %c0_2 = arith.constant 0 : index
    %c0_3 = arith.constant 0 : index
    %4 = vector.load %arg3[%c0_2, %c0_3] : memref<16x128xbf16, #tpu.memory_space<vmem>>, vector<16x128xbf16>
    %c0_4 = arith.constant 0 : index
    %c0_5 = arith.constant 0 : index
    %5 = vector.load %arg4[%c0_4, %c0_5] : memref<128x128xbf16, #tpu.memory_space<vmem>>, vector<128x128xbf16>
    %cst = arith.constant dense<0.000000e+00> : vector<16x128xf32>
    %6 = tpu.matmul %4, %5, %cst {dimension_numbers = #tpu.dot_dimension_numbers<[1], [0], [0], [1], [0, 0, 1, 1], [], []>} : vector<16x128xbf16>, vector<128x128xbf16>, vector<16x128xf32> -> vector<16x128xf32>
    %7 = arith.addf %3, %6 : vector<16x128xf32>
    %c0_6 = arith.constant 0 : index
    %c0_7 = arith.constant 0 : index
    %8 = vector.load %arg7[%c0_6, %c0_7] : memref<16x128xf32, #tpu.memory_space<vmem>>, vector<16x128xf32>
    tpu.vector_store %arg7[%c0_6, %c0_7], %7 {strides = array<i32>} : memref<16x128xf32, #tpu.memory_space<vmem>>, vector<16x128xf32>,
    %c0_i32_8 = arith.constant 0 : i32
    %9 = arith.cmpi eq, %arg2, %c0_i32_8 : i32
    %10 = arith.extui %9 : i1 to i32
    %c0_i32_9 = arith.constant 0 : i32
    %11 = arith.cmpi ne, %10, %c0_i32_9 : i32
    scf.if %11 {
      %c0_10 = arith.constant 0 : index
      %c0_11 = arith.constant 0 : index
      %12 = vector.load %arg7[%c0_10, %c0_11] : memref<16x128xf32, #tpu.memory_space<vmem>>, vector<16x128xf32>
      %c0_12 = arith.constant 0 : index
      %c0_13 = arith.constant 0 : index
      %13 = vector.load %arg5[%c0_12, %c0_13] : memref<1x128xf32, #tpu.memory_space<vmem>>, vector<1x128xf32>
      %14 = vector.broadcast %13 : vector<1x128xf32> to vector<16x128xf32>
      %15 = arith.addf %12, %14 : vector<16x128xf32>
      %cst_14 = arith.constant 0.000000e+00 : f32
      %16 = vector.broadcast %cst_14 : f32 to vector<16x128xf32>
      %17 = arith.maximumf %15, %16 : vector<16x128xf32>
      %18 = arith.truncf %17 : vector<16x128xf32> to vector<16x128xbf16>
      %c0_15 = arith.constant 0 : index
      %c0_16 = arith.constant 0 : index
      %19 = vector.load %arg6[%c0_15, %c0_16] : memref<16x128xbf16, #tpu.memory_space<vmem>>, vector<16x128xbf16>
      tpu.vector_store %arg6[%c0_15, %c0_16], %18 {strides = array<i32>} : memref<16x128xbf16, #tpu.memory_space<vmem>>, vector<16x128xbf16>,
    } else {
    }
    return
  }
  func.func @transform_0(%arg0: i32, %arg1: i32, %arg2: i32) -> (i32, i32) {
    %c0_i32 = arith.constant 0 : i32
    return %arg0, %arg2 : i32, i32
  }
  func.func @transform_1(%arg0: i32, %arg1: i32, %arg2: i32) -> (i32, i32) {
    %c0_i32 = arith.constant 0 : i32
    return %arg2, %arg1 : i32, i32
  }
  func.func @transform_2(%arg0: i32, %arg1: i32, %arg2: i32) -> (i32, i32) {
    %c0_i32 = arith.constant 0 : i32
    %c0_i32_0 = arith.constant 0 : i32
    return %c0_i32, %arg1 : i32, i32
  }
  func.func @transform_3(%arg0: i32, %arg1: i32, %arg2: i32) -> (i32, i32) {
    %c0_i32 = arith.constant 0 : i32
    return %arg0, %arg1 : i32, i32
  }
}

module attributes {stable_mosaic.version = 11 : i64} {
  func.func @_gemm_kernel(%arg0: i32, %arg1: i32, %arg2: i32, %arg3: memref<16x256xbf16, #tpu.memory_space<vmem>>, %arg4: memref<256x128xbf16, #tpu.memory_space<vmem>>, %arg5: memref<1x128xf32, #tpu.memory_space<vmem>>, %arg6: memref<16x128xbf16, #tpu.memory_space<vmem>>, %arg7: memref<16x128xf32, #tpu.memory_space<vmem>>) attributes {dimension_semantics = [#tpu.dimension_semantics<parallel>, #tpu.dimension_semantics<parallel>, #tpu.dimension_semantics<arbitrary>], iteration_bounds = array<i64: 1, 2, 1>, scalar_prefetch = 0 : i64, scratch_operands = 1 : i64, tpu.core_type = #tpu.core_type<tc>, window_params = [{transform_indices = @transform_0, window_bounds = array<i64: 16, 256>}, {transform_indices = @transform_1, window_bounds = array<i64: 256, 128>}, {transform_indices = @transform_2, window_bounds = array<i64: 1, 128>}, {transform_indices = @transform_3, window_bounds = array<i64: 16, 128>}]} {
    %c0_i32 = arith.constant 0 : i32
    %0 = arith.cmpi eq, %arg2, %c0_i32 : i32
    %1 = arith.extui %0 : i1 to i32
    %c0_i32_0 = arith.constant 0 : i32
    %2 = arith.cmpi ne, %1, %c0_i32_0 : i32
    scf.if %2 {
      %cst_10 = arith.constant 0.000000e+00 : f32
      %12 = vector.broadcast %cst_10 : f32 to vector<16x128xf32>
      %c0_11 = arith.constant 0 : index
      %c0_12 = arith.constant 0 : index
      %13 = vector.load %arg7[%c0_11, %c0_12] : memref<16x128xf32, #tpu.memory_space<vmem>>, vector<16x128xf32>
      tpu.vector_store %arg7[%c0_11, %c0_12], %12 {strides = array<i32>} : memref<16x128xf32, #tpu.memory_space<vmem>>, vector<16x128xf32>,
    } else {
    }
    %c0 = arith.constant 0 : index
    %c0_1 = arith.constant 0 : index
    %3 = vector.load %arg7[%c0, %c0_1] : memref<16x128xf32, #tpu.memory_space<vmem>>, vector<16x128xf32>
    %c0_2 = arith.constant 0 : index
    %c0_3 = arith.constant 0 : index
    %4 = vector.load %arg3[%c0_2, %c0_3] : memref<16x256xbf16, #tpu.memory_space<vmem>>, vector<16x256xbf16>
    %c0_4 = arith.constant 0 : index
    %c0_5 = arith.constant 0 : index
    %5 = vector.load %arg4[%c0_4, %c0_5] : memref<256x128xbf16, #tpu.memory_space<vmem>>, vector<256x128xbf16>
    %cst = arith.constant dense<0.000000e+00> : vector<16x128xf32>
    %6 = tpu.matmul %4, %5, %cst {dimension_numbers = #tpu.dot_dimension_numbers<[1], [0], [0], [1], [0, 0, 1, 1], [], []>} : vector<16x256xbf16>, vector<256x128xbf16>, vector<16x128xf32> -> vector<16x128xf32>
    %7 = arith.addf %3, %6 : vector<16x128xf32>
    %c0_6 = arith.constant 0 : index
    %c0_7 = arith.constant 0 : index
    %8 = vector.load %arg7[%c0_6, %c0_7] : memref<16x128xf32, #tpu.memory_space<vmem>>, vector<16x128xf32>
    tpu.vector_store %arg7[%c0_6, %c0_7], %7 {strides = array<i32>} : memref<16x128xf32, #tpu.memory_space<vmem>>, vector<16x128xf32>,
    %c0_i32_8 = arith.constant 0 : i32
    %9 = arith.cmpi eq, %arg2, %c0_i32_8 : i32
    %10 = arith.extui %9 : i1 to i32
    %c0_i32_9 = arith.constant 0 : i32
    %11 = arith.cmpi ne, %10, %c0_i32_9 : i32
    scf.if %11 {
      %c0_10 = arith.constant 0 : index
      %c0_11 = arith.constant 0 : index
      %12 = vector.load %arg7[%c0_10, %c0_11] : memref<16x128xf32, #tpu.memory_space<vmem>>, vector<16x128xf32>
      %c0_12 = arith.constant 0 : index
      %c0_13 = arith.constant 0 : index
      %13 = vector.load %arg5[%c0_12, %c0_13] : memref<1x128xf32, #tpu.memory_space<vmem>>, vector<1x128xf32>
      %14 = vector.broadcast %13 : vector<1x128xf32> to vector<16x128xf32>
      %15 = arith.addf %12, %14 : vector<16x128xf32>
      %cst_14 = arith.constant 0.000000e+00 : f32
      %16 = vector.broadcast %cst_14 : f32 to vector<16x128xf32>
      %17 = arith.maximumf %15, %16 : vector<16x128xf32>
      %18 = arith.truncf %17 : vector<16x128xf32> to vector<16x128xbf16>
      %c0_15 = arith.constant 0 : index
      %c0_16 = arith.constant 0 : index
      %19 = vector.load %arg6[%c0_15, %c0_16] : memref<16x128xbf16, #tpu.memory_space<vmem>>, vector<16x128xbf16>
      tpu.vector_store %arg6[%c0_15, %c0_16], %18 {strides = array<i32>} : memref<16x128xbf16, #tpu.memory_space<vmem>>, vector<16x128xbf16>,
    } else {
    }
    return
  }
  func.func @transform_0(%arg0: i32, %arg1: i32, %arg2: i32) -> (i32, i32) {
    %c0_i32 = arith.constant 0 : i32
    return %arg0, %arg2 : i32, i32
  }
  func.func @transform_1(%arg0: i32, %arg1: i32, %arg2: i32) -> (i32, i32) {
    %c0_i32 = arith.constant 0 : i32
    return %arg2, %arg1 : i32, i32
  }
  func.func @transform_2(%arg0: i32, %arg1: i32, %arg2: i32) -> (i32, i32) {
    %c0_i32 = arith.constant 0 : i32
    %c0_i32_0 = arith.constant 0 : i32
    return %c0_i32, %arg1 : i32, i32
  }
  func.func @transform_3(%arg0: i32, %arg1: i32, %arg2: i32) -> (i32, i32) {
    %c0_i32 = arith.constant 0 : i32
    return %arg0, %arg1 : i32, i32
  }
}

module attributes {stable_mosaic.version = 11 : i64} {
  func.func @_gemm_res_kernel(%arg0: i32, %arg1: i32, %arg2: i32, %arg3: memref<16x256xbf16, #tpu.memory_space<vmem>>, %arg4: memref<256x128xbf16, #tpu.memory_space<vmem>>, %arg5: memref<1x128xf32, #tpu.memory_space<vmem>>, %arg6: memref<16x128xbf16, #tpu.memory_space<vmem>>, %arg7: memref<16x128xbf16, #tpu.memory_space<vmem>>, %arg8: memref<16x128xf32, #tpu.memory_space<vmem>>) attributes {dimension_semantics = [#tpu.dimension_semantics<parallel>, #tpu.dimension_semantics<parallel>, #tpu.dimension_semantics<arbitrary>], iteration_bounds = array<i64: 1, 2, 1>, scalar_prefetch = 0 : i64, scratch_operands = 1 : i64, tpu.core_type = #tpu.core_type<tc>, window_params = [{transform_indices = @transform_0, window_bounds = array<i64: 16, 256>}, {transform_indices = @transform_1, window_bounds = array<i64: 256, 128>}, {transform_indices = @transform_2, window_bounds = array<i64: 1, 128>}, {transform_indices = @transform_3, window_bounds = array<i64: 16, 128>}, {transform_indices = @transform_4, window_bounds = array<i64: 16, 128>}]} {
    %c0_i32 = arith.constant 0 : i32
    %0 = arith.cmpi eq, %arg2, %c0_i32 : i32
    %1 = arith.extui %0 : i1 to i32
    %c0_i32_0 = arith.constant 0 : i32
    %2 = arith.cmpi ne, %1, %c0_i32_0 : i32
    scf.if %2 {
      %cst_10 = arith.constant 0.000000e+00 : f32
      %12 = vector.broadcast %cst_10 : f32 to vector<16x128xf32>
      %c0_11 = arith.constant 0 : index
      %c0_12 = arith.constant 0 : index
      %13 = vector.load %arg8[%c0_11, %c0_12] : memref<16x128xf32, #tpu.memory_space<vmem>>, vector<16x128xf32>
      tpu.vector_store %arg8[%c0_11, %c0_12], %12 {strides = array<i32>} : memref<16x128xf32, #tpu.memory_space<vmem>>, vector<16x128xf32>,
    } else {
    }
    %c0 = arith.constant 0 : index
    %c0_1 = arith.constant 0 : index
    %3 = vector.load %arg8[%c0, %c0_1] : memref<16x128xf32, #tpu.memory_space<vmem>>, vector<16x128xf32>
    %c0_2 = arith.constant 0 : index
    %c0_3 = arith.constant 0 : index
    %4 = vector.load %arg3[%c0_2, %c0_3] : memref<16x256xbf16, #tpu.memory_space<vmem>>, vector<16x256xbf16>
    %c0_4 = arith.constant 0 : index
    %c0_5 = arith.constant 0 : index
    %5 = vector.load %arg4[%c0_4, %c0_5] : memref<256x128xbf16, #tpu.memory_space<vmem>>, vector<256x128xbf16>
    %cst = arith.constant dense<0.000000e+00> : vector<16x128xf32>
    %6 = tpu.matmul %4, %5, %cst {dimension_numbers = #tpu.dot_dimension_numbers<[1], [0], [0], [1], [0, 0, 1, 1], [], []>} : vector<16x256xbf16>, vector<256x128xbf16>, vector<16x128xf32> -> vector<16x128xf32>
    %7 = arith.addf %3, %6 : vector<16x128xf32>
    %c0_6 = arith.constant 0 : index
    %c0_7 = arith.constant 0 : index
    %8 = vector.load %arg8[%c0_6, %c0_7] : memref<16x128xf32, #tpu.memory_space<vmem>>, vector<16x128xf32>
    tpu.vector_store %arg8[%c0_6, %c0_7], %7 {strides = array<i32>} : memref<16x128xf32, #tpu.memory_space<vmem>>, vector<16x128xf32>,
    %c0_i32_8 = arith.constant 0 : i32
    %9 = arith.cmpi eq, %arg2, %c0_i32_8 : i32
    %10 = arith.extui %9 : i1 to i32
    %c0_i32_9 = arith.constant 0 : i32
    %11 = arith.cmpi ne, %10, %c0_i32_9 : i32
    scf.if %11 {
      %c0_10 = arith.constant 0 : index
      %c0_11 = arith.constant 0 : index
      %12 = vector.load %arg8[%c0_10, %c0_11] : memref<16x128xf32, #tpu.memory_space<vmem>>, vector<16x128xf32>
      %c0_12 = arith.constant 0 : index
      %c0_13 = arith.constant 0 : index
      %13 = vector.load %arg5[%c0_12, %c0_13] : memref<1x128xf32, #tpu.memory_space<vmem>>, vector<1x128xf32>
      %14 = vector.broadcast %13 : vector<1x128xf32> to vector<16x128xf32>
      %15 = arith.addf %12, %14 : vector<16x128xf32>
      %c0_14 = arith.constant 0 : index
      %c0_15 = arith.constant 0 : index
      %16 = vector.load %arg6[%c0_14, %c0_15] : memref<16x128xbf16, #tpu.memory_space<vmem>>, vector<16x128xbf16>
      %17 = arith.extf %16 : vector<16x128xbf16> to vector<16x128xf32>
      %18 = arith.addf %15, %17 : vector<16x128xf32>
      %cst_16 = arith.constant 0.000000e+00 : f32
      %19 = vector.broadcast %cst_16 : f32 to vector<16x128xf32>
      %20 = arith.maximumf %18, %19 : vector<16x128xf32>
      %21 = arith.truncf %20 : vector<16x128xf32> to vector<16x128xbf16>
      %c0_17 = arith.constant 0 : index
      %c0_18 = arith.constant 0 : index
      %22 = vector.load %arg7[%c0_17, %c0_18] : memref<16x128xbf16, #tpu.memory_space<vmem>>, vector<16x128xbf16>
      tpu.vector_store %arg7[%c0_17, %c0_18], %21 {strides = array<i32>} : memref<16x128xbf16, #tpu.memory_space<vmem>>, vector<16x128xbf16>,
    } else {
    }
    return
  }
  func.func @transform_0(%arg0: i32, %arg1: i32, %arg2: i32) -> (i32, i32) {
    %c0_i32 = arith.constant 0 : i32
    return %arg0, %arg2 : i32, i32
  }
  func.func @transform_1(%arg0: i32, %arg1: i32, %arg2: i32) -> (i32, i32) {
    %c0_i32 = arith.constant 0 : i32
    return %arg2, %arg1 : i32, i32
  }
  func.func @transform_2(%arg0: i32, %arg1: i32, %arg2: i32) -> (i32, i32) {
    %c0_i32 = arith.constant 0 : i32
    %c0_i32_0 = arith.constant 0 : i32
    return %c0_i32, %arg1 : i32, i32
  }
  func.func @transform_3(%arg0: i32, %arg1: i32, %arg2: i32) -> (i32, i32) {
    %c0_i32 = arith.constant 0 : i32
    return %arg0, %arg1 : i32, i32
  }
  func.func @transform_4(%arg0: i32, %arg1: i32, %arg2: i32) -> (i32, i32) {
    %c0_i32 = arith.constant 0 : i32
    return %arg0, %arg1 : i32, i32
  }
}

module attributes {stable_mosaic.version = 11 : i64} {
  func.func @_gemm_kernel(%arg0: i32, %arg1: i32, %arg2: i32, %arg3: memref<16x256xbf16, #tpu.memory_space<vmem>>, %arg4: memref<256x256xbf16, #tpu.memory_space<vmem>>, %arg5: memref<1x256xf32, #tpu.memory_space<vmem>>, %arg6: memref<16x256xbf16, #tpu.memory_space<vmem>>, %arg7: memref<16x256xf32, #tpu.memory_space<vmem>>) attributes {dimension_semantics = [#tpu.dimension_semantics<parallel>, #tpu.dimension_semantics<parallel>, #tpu.dimension_semantics<arbitrary>], iteration_bounds = array<i64: 1, 2, 1>, scalar_prefetch = 0 : i64, scratch_operands = 1 : i64, tpu.core_type = #tpu.core_type<tc>, window_params = [{transform_indices = @transform_0, window_bounds = array<i64: 16, 256>}, {transform_indices = @transform_1, window_bounds = array<i64: 256, 256>}, {transform_indices = @transform_2, window_bounds = array<i64: 1, 256>}, {transform_indices = @transform_3, window_bounds = array<i64: 16, 256>}]} {
    %c0_i32 = arith.constant 0 : i32
    %0 = arith.cmpi eq, %arg2, %c0_i32 : i32
    %1 = arith.extui %0 : i1 to i32
    %c0_i32_0 = arith.constant 0 : i32
    %2 = arith.cmpi ne, %1, %c0_i32_0 : i32
    scf.if %2 {
      %cst_10 = arith.constant 0.000000e+00 : f32
      %12 = vector.broadcast %cst_10 : f32 to vector<16x256xf32>
      %c0_11 = arith.constant 0 : index
      %c0_12 = arith.constant 0 : index
      %13 = vector.load %arg7[%c0_11, %c0_12] : memref<16x256xf32, #tpu.memory_space<vmem>>, vector<16x256xf32>
      tpu.vector_store %arg7[%c0_11, %c0_12], %12 {strides = array<i32>} : memref<16x256xf32, #tpu.memory_space<vmem>>, vector<16x256xf32>,
    } else {
    }
    %c0 = arith.constant 0 : index
    %c0_1 = arith.constant 0 : index
    %3 = vector.load %arg7[%c0, %c0_1] : memref<16x256xf32, #tpu.memory_space<vmem>>, vector<16x256xf32>
    %c0_2 = arith.constant 0 : index
    %c0_3 = arith.constant 0 : index
    %4 = vector.load %arg3[%c0_2, %c0_3] : memref<16x256xbf16, #tpu.memory_space<vmem>>, vector<16x256xbf16>
    %c0_4 = arith.constant 0 : index
    %c0_5 = arith.constant 0 : index
    %5 = vector.load %arg4[%c0_4, %c0_5] : memref<256x256xbf16, #tpu.memory_space<vmem>>, vector<256x256xbf16>
    %cst = arith.constant dense<0.000000e+00> : vector<16x256xf32>
    %6 = tpu.matmul %4, %5, %cst {dimension_numbers = #tpu.dot_dimension_numbers<[1], [0], [0], [1], [0, 0, 1, 1], [], []>} : vector<16x256xbf16>, vector<256x256xbf16>, vector<16x256xf32> -> vector<16x256xf32>
    %7 = arith.addf %3, %6 : vector<16x256xf32>
    %c0_6 = arith.constant 0 : index
    %c0_7 = arith.constant 0 : index
    %8 = vector.load %arg7[%c0_6, %c0_7] : memref<16x256xf32, #tpu.memory_space<vmem>>, vector<16x256xf32>
    tpu.vector_store %arg7[%c0_6, %c0_7], %7 {strides = array<i32>} : memref<16x256xf32, #tpu.memory_space<vmem>>, vector<16x256xf32>,
    %c0_i32_8 = arith.constant 0 : i32
    %9 = arith.cmpi eq, %arg2, %c0_i32_8 : i32
    %10 = arith.extui %9 : i1 to i32
    %c0_i32_9 = arith.constant 0 : i32
    %11 = arith.cmpi ne, %10, %c0_i32_9 : i32
    scf.if %11 {
      %c0_10 = arith.constant 0 : index
      %c0_11 = arith.constant 0 : index
      %12 = vector.load %arg7[%c0_10, %c0_11] : memref<16x256xf32, #tpu.memory_space<vmem>>, vector<16x256xf32>
      %c0_12 = arith.constant 0 : index
      %c0_13 = arith.constant 0 : index
      %13 = vector.load %arg5[%c0_12, %c0_13] : memref<1x256xf32, #tpu.memory_space<vmem>>, vector<1x256xf32>
      %14 = vector.broadcast %13 : vector<1x256xf32> to vector<16x256xf32>
      %15 = arith.addf %12, %14 : vector<16x256xf32>
      %cst_14 = arith.constant 0.000000e+00 : f32
      %16 = vector.broadcast %cst_14 : f32 to vector<16x256xf32>
      %17 = arith.maximumf %15, %16 : vector<16x256xf32>
      %18 = arith.truncf %17 : vector<16x256xf32> to vector<16x256xbf16>
      %c0_15 = arith.constant 0 : index
      %c0_16 = arith.constant 0 : index
      %19 = vector.load %arg6[%c0_15, %c0_16] : memref<16x256xbf16, #tpu.memory_space<vmem>>, vector<16x256xbf16>
      tpu.vector_store %arg6[%c0_15, %c0_16], %18 {strides = array<i32>} : memref<16x256xbf16, #tpu.memory_space<vmem>>, vector<16x256xbf16>,
    } else {
    }
    return
  }
  func.func @transform_0(%arg0: i32, %arg1: i32, %arg2: i32) -> (i32, i32) {
    %c0_i32 = arith.constant 0 : i32
    return %arg0, %arg2 : i32, i32
  }
  func.func @transform_1(%arg0: i32, %arg1: i32, %arg2: i32) -> (i32, i32) {
    %c0_i32 = arith.constant 0 : i32
    return %arg2, %arg1 : i32, i32
  }
  func.func @transform_2(%arg0: i32, %arg1: i32, %arg2: i32) -> (i32, i32) {
    %c0_i32 = arith.constant 0 : i32
    %c0_i32_0 = arith.constant 0 : i32
    return %c0_i32, %arg1 : i32, i32
  }
  func.func @transform_3(%arg0: i32, %arg1: i32, %arg2: i32) -> (i32, i32) {
    %c0_i32 = arith.constant 0 : i32
    return %arg0, %arg1 : i32, i32
  }
}

module attributes {stable_mosaic.version = 11 : i64} {
  func.func @_gemm_kernel(%arg0: i32, %arg1: i32, %arg2: i32, %arg3: memref<16x384xbf16, #tpu.memory_space<vmem>>, %arg4: memref<384x256xbf16, #tpu.memory_space<vmem>>, %arg5: memref<1x256xf32, #tpu.memory_space<vmem>>, %arg6: memref<16x256xbf16, #tpu.memory_space<vmem>>, %arg7: memref<16x256xf32, #tpu.memory_space<vmem>>) attributes {dimension_semantics = [#tpu.dimension_semantics<parallel>, #tpu.dimension_semantics<parallel>, #tpu.dimension_semantics<arbitrary>], iteration_bounds = array<i64: 1, 2, 2>, scalar_prefetch = 0 : i64, scratch_operands = 1 : i64, tpu.core_type = #tpu.core_type<tc>, window_params = [{transform_indices = @transform_0, window_bounds = array<i64: 16, 384>}, {transform_indices = @transform_1, window_bounds = array<i64: 384, 256>}, {transform_indices = @transform_2, window_bounds = array<i64: 1, 256>}, {transform_indices = @transform_3, window_bounds = array<i64: 16, 256>}]} {
    %c0_i32 = arith.constant 0 : i32
    %0 = arith.cmpi eq, %arg2, %c0_i32 : i32
    %1 = arith.extui %0 : i1 to i32
    %c0_i32_0 = arith.constant 0 : i32
    %2 = arith.cmpi ne, %1, %c0_i32_0 : i32
    scf.if %2 {
      %cst_9 = arith.constant 0.000000e+00 : f32
      %12 = vector.broadcast %cst_9 : f32 to vector<16x256xf32>
      %c0_10 = arith.constant 0 : index
      %c0_11 = arith.constant 0 : index
      %13 = vector.load %arg7[%c0_10, %c0_11] : memref<16x256xf32, #tpu.memory_space<vmem>>, vector<16x256xf32>
      tpu.vector_store %arg7[%c0_10, %c0_11], %12 {strides = array<i32>} : memref<16x256xf32, #tpu.memory_space<vmem>>, vector<16x256xf32>,
    } else {
    }
    %c0 = arith.constant 0 : index
    %c0_1 = arith.constant 0 : index
    %3 = vector.load %arg7[%c0, %c0_1] : memref<16x256xf32, #tpu.memory_space<vmem>>, vector<16x256xf32>
    %c0_2 = arith.constant 0 : index
    %c0_3 = arith.constant 0 : index
    %4 = vector.load %arg3[%c0_2, %c0_3] : memref<16x384xbf16, #tpu.memory_space<vmem>>, vector<16x384xbf16>
    %c0_4 = arith.constant 0 : index
    %c0_5 = arith.constant 0 : index
    %5 = vector.load %arg4[%c0_4, %c0_5] : memref<384x256xbf16, #tpu.memory_space<vmem>>, vector<384x256xbf16>
    %cst = arith.constant dense<0.000000e+00> : vector<16x256xf32>
    %6 = tpu.matmul %4, %5, %cst {dimension_numbers = #tpu.dot_dimension_numbers<[1], [0], [0], [1], [0, 0, 1, 1], [], []>} : vector<16x384xbf16>, vector<384x256xbf16>, vector<16x256xf32> -> vector<16x256xf32>
    %7 = arith.addf %3, %6 : vector<16x256xf32>
    %c0_6 = arith.constant 0 : index
    %c0_7 = arith.constant 0 : index
    %8 = vector.load %arg7[%c0_6, %c0_7] : memref<16x256xf32, #tpu.memory_space<vmem>>, vector<16x256xf32>
    tpu.vector_store %arg7[%c0_6, %c0_7], %7 {strides = array<i32>} : memref<16x256xf32, #tpu.memory_space<vmem>>, vector<16x256xf32>,
    %c1_i32 = arith.constant 1 : i32
    %9 = arith.cmpi eq, %arg2, %c1_i32 : i32
    %10 = arith.extui %9 : i1 to i32
    %c0_i32_8 = arith.constant 0 : i32
    %11 = arith.cmpi ne, %10, %c0_i32_8 : i32
    scf.if %11 {
      %c0_9 = arith.constant 0 : index
      %c0_10 = arith.constant 0 : index
      %12 = vector.load %arg7[%c0_9, %c0_10] : memref<16x256xf32, #tpu.memory_space<vmem>>, vector<16x256xf32>
      %c0_11 = arith.constant 0 : index
      %c0_12 = arith.constant 0 : index
      %13 = vector.load %arg5[%c0_11, %c0_12] : memref<1x256xf32, #tpu.memory_space<vmem>>, vector<1x256xf32>
      %14 = vector.broadcast %13 : vector<1x256xf32> to vector<16x256xf32>
      %15 = arith.addf %12, %14 : vector<16x256xf32>
      %cst_13 = arith.constant 0.000000e+00 : f32
      %16 = vector.broadcast %cst_13 : f32 to vector<16x256xf32>
      %17 = arith.maximumf %15, %16 : vector<16x256xf32>
      %18 = arith.truncf %17 : vector<16x256xf32> to vector<16x256xbf16>
      %c0_14 = arith.constant 0 : index
      %c0_15 = arith.constant 0 : index
      %19 = vector.load %arg6[%c0_14, %c0_15] : memref<16x256xbf16, #tpu.memory_space<vmem>>, vector<16x256xbf16>
      tpu.vector_store %arg6[%c0_14, %c0_15], %18 {strides = array<i32>} : memref<16x256xbf16, #tpu.memory_space<vmem>>, vector<16x256xbf16>,
    } else {
    }
    return
  }
  func.func @transform_0(%arg0: i32, %arg1: i32, %arg2: i32) -> (i32, i32) {
    %c0_i32 = arith.constant 0 : i32
    return %arg0, %arg2 : i32, i32
  }
  func.func @transform_1(%arg0: i32, %arg1: i32, %arg2: i32) -> (i32, i32) {
    %c0_i32 = arith.constant 0 : i32
    return %arg2, %arg1 : i32, i32
  }
  func.func @transform_2(%arg0: i32, %arg1: i32, %arg2: i32) -> (i32, i32) {
    %c0_i32 = arith.constant 0 : i32
    %c0_i32_0 = arith.constant 0 : i32
    return %c0_i32, %arg1 : i32, i32
  }
  func.func @transform_3(%arg0: i32, %arg1: i32, %arg2: i32) -> (i32, i32) {
    %c0_i32 = arith.constant 0 : i32
    return %arg0, %arg1 : i32, i32
  }
}

</mosaic_0001>

<bundles_post_ra>
// kernel: model_forward.11
= control target key start
LH: loop header
LB: loop body
LE: loop exit
PB: predicated region body
PF: predicated region fallthrough
CT: control target
= control target key end

     0   :  { %s2500_s12 = smov 0   ;;  %s2502_s13 = smov 0   ;;  %s2887_s0 = inlined_call_operand.vmem [shape: bf16[1024,768], index: 0, kind: input, shape index: {}]   ;;  %s2888_s1 = inlined_call_operand.vmem [shape: bf16[768,128], index: 1, kind: input, shape index: {}]   ;;  %s2889_s2 = inlined_call_operand.vmem [shape: f32[1,128], index: 2, kind: input, shape index: {}]   ;;  %s2890_s3 = inlined_call_operand.vmem [shape: bf16[1024,128], index: 3, kind: output, shape index: {}]  }
   0x1   :  { %s2504_s14 = smov 0   ;;  %s2506_s15 = smov 0  }
   0x2   :  { %s2508_s16 = smov 0   ;;  %s2510_s17 = smov 0  }
   0x3   :  { %s2512_s18 = smov 0  }
   0x4 LB: > { %s25_s19 = sadd.s32 1, %s2469_s16  ;;  %s32_s20 = sadd.s32 1, %s2473_s17  ;;  %s2477_s18 = sphi %s2512_s18, %s13_s18   ;;  %s2473_s17 = sphi %s2510_s17, %s2896_s17   ;;  %s2469_s16 = sphi %s2508_s16, %s2895_s16   ;;  %s2465_s15 = sphi %s2506_s15, %s2894_s15   ;;  %s2461_s14 = sphi %s2504_s14, %s2893_s14   ;;  %s2457_s13 = sphi %s2502_s13, %s2892_s13   ;;  %s2453_s12 = sphi %s2500_s12, %s2891_s12  }
   0x5   : > { %p26_p0 = scmp.ge.s32.totalorder %s25_s19, 2  ;;  %p48_p1 = scmp.ne.s32.totalorder %s2457_s13, %s2453_s12 }
   0x6   : > { %p49_p2 = scmp.eq.s32.totalorder %s2477_s18, 0  ;;  %s41_s24 = sadd.s32 1, %s2457_s13 }
   0x7   : > { %s2898_s19 = smov (%p26_p0, %s25_s19), 0  ;;  %s2900_s20 = smov (!%p26_p0, %s32_s20), %s2473_s17 }
   0x8   : > { %p50_p3 = por %p49_p2, %p48_p1  ;;  %p34_p4 = scmp.ge.s32.totalorder %s2900_s20, 4 }
   0x9   : > { %s37_s21 = ssub.s32 %s2469_s16, %s2898_s19  ;;  %p1767_p6 = scmp.ge.s32.totalorder %s2477_s18, 8 }
   0xa   : > { %s2902_s20 = smov (%p34_p4, %s2900_s20), 0 }
   0xb   : > { %s36_s22 = ssub.s32 %s2473_s17, %s2902_s20  ;;  %162 = sbr.rel (%p1767_p6) target bundleno = 64 (0x40), region = 20 }
   0xc   : > { %s38_s23 = sor.u32 %s37_s21, %s36_s22 }
   0xd   : > { %p39_p5 = scmp.eq.s32.totalorder %s38_s23, 0 }
   0xf   : > { %s2551_s25 = scalar_select %p39_p5, %s2457_s13, %s41_s24  }
  0x12   : > { %165 = sbr.rel (!%p50_p3) target bundleno = 64 (0x40), region = 24  ;;  %s167_s26 = sand.u32 (%p50_p3), 1, %s2457_s13  }
  0x13   : > { %s171_s27 = smul.u32 (%p50_p3), 3, %s2469_s16 }
  0x14   : > { %s2275_s28 = smul.u32 (%p50_p3), 384, %s167_s26 }
  0x15   : > { %s2276_s29 = smul.u32 (%p50_p3), 192, %s2473_s17 }
  0x16   : > { %s2565_s8 = scalar_lea.vmem (%p50_p3), [#allocation3], %s2275_s28 }
  0x17   : > { %s173_s30 = sadd.s32 (%p50_p3), %s2276_s29, %s171_s27 }
  0x18   : > { %s1770_s4 = sshll.u32 (%p50_p3), %s173_s30, 2 }
  0x19   : > { %s2560_s7 = scalar_lea.vmem %s2887_s0, %s1770_s4 }
  0x1a   : > { %v190_v0 = vld [vmem:[%s2560_s7] sm:$0xff]  ;;  %v192_v1 = vld [vmem:[%s2560_s7 + $0x18] sm:$0xff]  ;;  %v194_v2 = vld [vmem:[%s2560_s7 + $0x30] sm:$0xff] }
  0x1b   : > { %191 = vst [vmem:[%s2565_s8] sm:$0xff] %v190_v0  ;;  %193 = vst [vmem:[%s2565_s8 + $0xc] sm:$0xff] %v192_v1  ;;  %v196_v3 = vld [vmem:[%s2560_s7 + $0x48] sm:$0xff]  ;;  %v198_v4 = vld [vmem:[%s2560_s7 + $0x60] sm:$0xff] }
  0x1c   : > { %195 = vst [vmem:[%s2565_s8 + $0x18] sm:$0xff] %v194_v2  ;;  %v200_v5 = vld [vmem:[%s2560_s7 + $0x78] sm:$0xff]  ;;  %197 = vst [vmem:[%s2565_s8 + $0x24] sm:$0xff] %v196_v3  ;;  %v202_v6 = vld [vmem:[%s2560_s7 + $0x90] sm:$0xff] }
  0x1d   : > { %199 = vst [vmem:[%s2565_s8 + $0x30] sm:$0xff] %v198_v4  ;;  %201 = vst [vmem:[%s2565_s8 + $0x3c] sm:$0xff] %v200_v5  ;;  %v204_v7 = vld [vmem:[%s2560_s7 + $0xa8] sm:$0xff]  ;;  %v206_v8 = vld [vmem:[%s2560_s7 + $0xc0] sm:$0xff] }
  0x1e   : > { %203 = vst [vmem:[%s2565_s8 + $0x48] sm:$0xff] %v202_v6  ;;  %205 = vst [vmem:[%s2565_s8 + $0x54] sm:$0xff] %v204_v7  ;;  %v208_v9 = vld [vmem:[%s2560_s7 + $0xd8] sm:$0xff]  ;;  %v210_v10 = vld [vmem:[%s2560_s7 + $0xf0] sm:$0xff] }
  0x1f   : > { %207 = vst [vmem:[%s2565_s8 + $0x60] sm:$0xff] %v206_v8  ;;  %v212_v11 = vld [vmem:[%s2560_s7 + $0x108] sm:$0xff]  ;;  %209 = vst [vmem:[%s2565_s8 + $0x6c] sm:$0xff] %v208_v9  ;;  %v214_v12 = vld [vmem:[%s2560_s7 + $0x120] sm:$0xff] }
  0x20   : > { %211 = vst [vmem:[%s2565_s8 + $0x78] sm:$0xff] %v210_v10  ;;  %213 = vst [vmem:[%s2565_s8 + $0x84] sm:$0xff] %v212_v11  ;;  %v216_v13 = vld [vmem:[%s2560_s7 + $0x138] sm:$0xff]  ;;  %v218_v14 = vld [vmem:[%s2560_s7 + $0x150] sm:$0xff] }
  0x21   : > { %215 = vst [vmem:[%s2565_s8 + $0x90] sm:$0xff] %v214_v12  ;;  %217 = vst [vmem:[%s2565_s8 + $0x9c] sm:$0xff] %v216_v13  ;;  %v220_v15 = vld [vmem:[%s2560_s7 + $0x168] sm:$0xff]  ;;  %v222_v16 = vld [vmem:[%s2560_s7 + $0x180] sm:$0xff] }
  0x22   : > { %219 = vst [vmem:[%s2565_s8 + $0xa8] sm:$0xff] %v218_v14  ;;  %v224_v17 = vld [vmem:[%s2560_s7 + $0x198] sm:$0xff]  ;;  %221 = vst [vmem:[%s2565_s8 + $0xb4] sm:$0xff] %v220_v15  ;;  %v226_v18 = vld [vmem:[%s2560_s7 + $0x1b0] sm:$0xff] }
  0x23   : > { %223 = vst [vmem:[%s2565_s8 + $0xc0] sm:$0xff] %v222_v16  ;;  %225 = vst [vmem:[%s2565_s8 + $0xcc] sm:$0xff] %v224_v17  ;;  %v228_v19 = vld [vmem:[%s2560_s7 + $0x1c8] sm:$0xff]  ;;  %v230_v20 = vld [vmem:[%s2560_s7 + $0x1e0] sm:$0xff] }
  0x24   : > { %227 = vst [vmem:[%s2565_s8 + $0xd8] sm:$0xff] %v226_v18  ;;  %229 = vst [vmem:[%s2565_s8 + $0xe4] sm:$0xff] %v228_v19  ;;  %v232_v21 = vld [vmem:[%s2560_s7 + $0x1f8] sm:$0xff]  ;;  %v234_v22 = vld [vmem:[%s2560_s7 + $0x210] sm:$0xff] }
  0x25   : > { %231 = vst [vmem:[%s2565_s8 + $0xf0] sm:$0xff] %v230_v20  ;;  %v236_v23 = vld [vmem:[%s2560_s7 + $0x228] sm:$0xff]  ;;  %233 = vst [vmem:[%s2565_s8 + $0xfc] sm:$0xff] %v232_v21  ;;  %v238_v24 = vld [vmem:[%s2560_s7 + $0x240] sm:$0xff] }
  0x26   : > { %235 = vst [vmem:[%s2565_s8 + $0x108] sm:$0xff] %v234_v22  ;;  %237 = vst [vmem:[%s2565_s8 + $0x114] sm:$0xff] %v236_v23  ;;  %v240_v25 = vld [vmem:[%s2560_s7 + $0x258] sm:$0xff]  ;;  %v242_v26 = vld [vmem:[%s2560_s7 + $0x270] sm:$0xff] }
  0x27   : > { %239 = vst [vmem:[%s2565_s8 + $0x120] sm:$0xff] %v238_v24  ;;  %241 = vst [vmem:[%s2565_s8 + $0x12c] sm:$0xff] %v240_v25  ;;  %v244_v27 = vld [vmem:[%s2560_s7 + $0x288] sm:$0xff]  ;;  %v246_v28 = vld [vmem:[%s2560_s7 + $0x2a0] sm:$0xff] }
  0x28   : > { %243 = vst [vmem:[%s2565_s8 + $0x138] sm:$0xff] %v242_v26  ;;  %v248_v29 = vld [vmem:[%s2560_s7 + $0x2b8] sm:$0xff]  ;;  %245 = vst [vmem:[%s2565_s8 + $0x144] sm:$0xff] %v244_v27  ;;  %v250_v30 = vld [vmem:[%s2560_s7 + $0x2d0] sm:$0xff] }
  0x29   : > { %247 = vst [vmem:[%s2565_s8 + $0x150] sm:$0xff] %v246_v28  ;;  %249 = vst [vmem:[%s2565_s8 + $0x15c] sm:$0xff] %v248_v29  ;;  %v252_v31 = vld [vmem:[%s2560_s7 + $0x2e8] sm:$0xff]  ;;  %v1773_v33 = vld [vmem:[%s2560_s7 + $0x20] sm:$0xf] }
  0x2a   : > { %v1771_v32 = vld [vmem:[%s2560_s7 + $0x8] sm:$0xf]  ;;  %251 = vst [vmem:[%s2565_s8 + $0x168] sm:$0xff] %v250_v30  ;;  %253 = vst [vmem:[%s2565_s8 + $0x174] sm:$0xff] %v252_v31  ;;  %v1775_v34 = vld [vmem:[%s2560_s7 + $0x38] sm:$0xf] }
  0x2b   : > { %1772 = vst [vmem:[%s2565_s8 + $0x8] sm:$0xf] %v1771_v32  ;;  %v1777_v35 = vld [vmem:[%s2560_s7 + $0x50] sm:$0xf]  ;;  %1774 = vst [vmem:[%s2565_s8 + $0x14] sm:$0xf] %v1773_v33 }
  0x2c   : > { %1776 = vst [vmem:[%s2565_s8 + $0x20] sm:$0xf] %v1775_v34  ;;  %1778 = vst [vmem:[%s2565_s8 + $0x2c] sm:$0xf] %v1777_v35  ;;  %v1779_v36 = vld [vmem:[%s2560_s7 + $0x68] sm:$0xf] }
  0x2d   : > { %v1781_v37 = vld [vmem:[%s2560_s7 + $0x80] sm:$0xf]  ;;  %v1783_v38 = vld [vmem:[%s2560_s7 + $0x98] sm:$0xf]  ;;  %1780 = vst [vmem:[%s2565_s8 + $0x38] sm:$0xf] %v1779_v36 }
  0x2e   : > { %1782 = vst [vmem:[%s2565_s8 + $0x44] sm:$0xf] %v1781_v37  ;;  %1784 = vst [vmem:[%s2565_s8 + $0x50] sm:$0xf] %v1783_v38  ;;  %v1785_v39 = vld [vmem:[%s2560_s7 + $0xb0] sm:$0xf] }
  0x2f   : > { %v1787_v40 = vld [vmem:[%s2560_s7 + $0xc8] sm:$0xf]  ;;  %v1789_v41 = vld [vmem:[%s2560_s7 + $0xe0] sm:$0xf]  ;;  %1786 = vst [vmem:[%s2565_s8 + $0x5c] sm:$0xf] %v1785_v39 }
  0x30   : > { %1788 = vst [vmem:[%s2565_s8 + $0x68] sm:$0xf] %v1787_v40  ;;  %1790 = vst [vmem:[%s2565_s8 + $0x74] sm:$0xf] %v1789_v41  ;;  %v1791_v42 = vld [vmem:[%s2560_s7 + $0xf8] sm:$0xf] }
  0x31   : > { %v1793_v43 = vld [vmem:[%s2560_s7 + $0x110] sm:$0xf]  ;;  %v1795_v44 = vld [vmem:[%s2560_s7 + $0x128] sm:$0xf]  ;;  %1792 = vst [vmem:[%s2565_s8 + $0x80] sm:$0xf] %v1791_v42 }
  0x32   : > { %1794 = vst [vmem:[%s2565_s8 + $0x8c] sm:$0xf] %v1793_v43  ;;  %1796 = vst [vmem:[%s2565_s8 + $0x98] sm:$0xf] %v1795_v44  ;;  %v1797_v45 = vld [vmem:[%s2560_s7 + $0x140] sm:$0xf] }
  0x33   : > { %v1799_v46 = vld [vmem:[%s2560_s7 + $0x158] sm:$0xf]  ;;  %v1801_v47 = vld [vmem:[%s2560_s7 + $0x170] sm:$0xf]  ;;  %1798 = vst [vmem:[%s2565_s8 + $0xa4] sm:$0xf] %v1797_v45 }
  0x34   : > { %1800 = vst [vmem:[%s2565_s8 + $0xb0] sm:$0xf] %v1799_v46  ;;  %1802 = vst [vmem:[%s2565_s8 + $0xbc] sm:$0xf] %v1801_v47  ;;  %v1803_v48 = vld [vmem:[%s2560_s7 + $0x188] sm:$0xf] }
  0x35   : > { %v1805_v49 = vld [vmem:[%s2560_s7 + $0x1a0] sm:$0xf]  ;;  %v1807_v50 = vld [vmem:[%s2560_s7 + $0x1b8] sm:$0xf]  ;;  %1804 = vst [vmem:[%s2565_s8 + $0xc8] sm:$0xf] %v1803_v48 }
  0x36   : > { %1806 = vst [vmem:[%s2565_s8 + $0xd4] sm:$0xf] %v1805_v49  ;;  %1808 = vst [vmem:[%s2565_s8 + $0xe0] sm:$0xf] %v1807_v50  ;;  %v1809_v51 = vld [vmem:[%s2560_s7 + $0x1d0] sm:$0xf] }
  0x37   : > { %v1811_v52 = vld [vmem:[%s2560_s7 + $0x1e8] sm:$0xf]  ;;  %v1813_v53 = vld [vmem:[%s2560_s7 + $0x200] sm:$0xf]  ;;  %1810 = vst [vmem:[%s2565_s8 + $0xec] sm:$0xf] %v1809_v51 }
  0x38   : > { %1812 = vst [vmem:[%s2565_s8 + $0xf8] sm:$0xf] %v1811_v52  ;;  %1814 = vst [vmem:[%s2565_s8 + $0x104] sm:$0xf] %v1813_v53  ;;  %v1815_v54 = vld [vmem:[%s2560_s7 + $0x218] sm:$0xf] }
  0x39   : > { %v1817_v55 = vld [vmem:[%s2560_s7 + $0x230] sm:$0xf]  ;;  %v1819_v56 = vld [vmem:[%s2560_s7 + $0x248] sm:$0xf]  ;;  %1816 = vst [vmem:[%s2565_s8 + $0x110] sm:$0xf] %v1815_v54 }
  0x3a   : > { %1818 = vst [vmem:[%s2565_s8 + $0x11c] sm:$0xf] %v1817_v55  ;;  %1820 = vst [vmem:[%s2565_s8 + $0x128] sm:$0xf] %v1819_v56  ;;  %v1821_v57 = vld [vmem:[%s2560_s7 + $0x260] sm:$0xf] }
  0x3b   : > { %v1823_v58 = vld [vmem:[%s2560_s7 + $0x278] sm:$0xf]  ;;  %v1825_v59 = vld [vmem:[%s2560_s7 + $0x290] sm:$0xf]  ;;  %1822 = vst [vmem:[%s2565_s8 + $0x134] sm:$0xf] %v1821_v57 }
  0x3c   : > { %1824 = vst [vmem:[%s2565_s8 + $0x140] sm:$0xf] %v1823_v58  ;;  %1826 = vst [vmem:[%s2565_s8 + $0x14c] sm:$0xf] %v1825_v59  ;;  %v1827_v60 = vld [vmem:[%s2560_s7 + $0x2a8] sm:$0xf] }
  0x3d   : > { %v1829_v61 = vld [vmem:[%s2560_s7 + $0x2c0] sm:$0xf]  ;;  %v1831_v62 = vld [vmem:[%s2560_s7 + $0x2d8] sm:$0xf]  ;;  %1828 = vst [vmem:[%s2565_s8 + $0x158] sm:$0xf] %v1827_v60 }
  0x3e   : > { %1830 = vst [vmem:[%s2565_s8 + $0x164] sm:$0xf] %v1829_v61  ;;  %1832 = vst [vmem:[%s2565_s8 + $0x170] sm:$0xf] %v1831_v62  ;;  %v1833_v63 = vld [vmem:[%s2560_s7 + $0x2f0] sm:$0xf] }
  0x3f   : > { %1834 = vst [vmem:[%s2565_s8 + $0x17c] sm:$0xf] %v1833_v63 }
  0x40 PF: > { %p1835_p7 = scmp.ge.s32.totalorder %s2477_s18, 1  ;;  %p341_p8 = scmp.lt.s32.totalorder %s2477_s18, 9 }
  0x42   : > { %p342_p9 = pnand %p1835_p7, %p341_p8 }
  0x43   : > { %s348_s9 = sand.u32 (!%p342_p9), 1, %s2453_s12   ;;  %s387_s10 = smul.u32 (!%p342_p9), 48, %s2461_s14 }
  0x44   : > { %345 = sbr.rel (%p342_p9) target bundleno = 456 (0x1c8), region = 54  ;;  %s1837_s21 = sshll.u32 (!%p342_p9), %s2465_s15, 5 }
  0x45   : > { %s2277_s11 = smul.u32 (!%p342_p9), 384, %s348_s9  ;;  %p388_p10 = scmp.lt.s32.totalorder (!%p342_p9), %s387_s10, 95 }
  0x46   : > { %p400_p11 = scmp.lt.s32.totalorder (!%p342_p9), %s1837_s21, 127  ;;  %p1839_p12 = scmp.ne.s32.totalorder (!%p342_p9), %s2461_s14, 0 }
  0x47   : > { %s2707_s12 = scalar_lea.vmem (!%p342_p9), [#allocation3], %s2277_s11 }
  0x4b   : > { %s2904_s10 = smov (!%p388_p10, %s387_s10), 95  ;;  %s2906_s21 = smov (!%p400_p11, %s1837_s21), 127 }
  0x4c   : > { %s1836_s22 = sshll.u32 %s2904_s10, 2  ;;  %s1838_s27 = sshll.u32 %s2906_s21, 2  ;;  %v2479_v0 = vmov (!%p1839_p12), 0.0  }
  0x4d   : > { %s2700_s26 = scalar_lea.vmem %s2888_s1, %s1836_s22  ;;  %s2705_s30 = scalar_lea.vmem %s2890_s3, %s1838_s27  ;;  %413 = vst [vmem:[#allocation2] sm:$0xff] (!%p1839_p12), %v2479_v0  ;;  %414 = vst [vmem:[#allocation2 + $0x8] sm:$0xff] (!%p1839_p12), %v2479_v0 }
  0x4e   : > { %412 = sbr.rel (%p1839_p12) target bundleno = 93 (0x5d), region = 62  ;;  %415 = vst [vmem:[#allocation2 + $0x10] sm:$0xff] (!%p1839_p12), %v2479_v0  ;;  %416 = vst [vmem:[#allocation2 + $0x18] sm:$0xff] (!%p1839_p12), %v2479_v0 }
  0x4f   : > { %417 = vst [vmem:[#allocation2 + $0x20] sm:$0xff] (!%p1839_p12), %v2479_v0  ;;  %418 = vst [vmem:[#allocation2 + $0x28] sm:$0xff] (!%p1839_p12), %v2479_v0 }
  0x50   : > { %419 = vst [vmem:[#allocation2 + $0x30] sm:$0xff] (!%p1839_p12), %v2479_v0  ;;  %420 = vst [vmem:[#allocation2 + $0x38] sm:$0xff] (!%p1839_p12), %v2479_v0 }
  0x51   : > { %421 = vst [vmem:[#allocation2 + $0x40] sm:$0xff] (!%p1839_p12), %v2479_v0  ;;  %422 = vst [vmem:[#allocation2 + $0x48] sm:$0xff] (!%p1839_p12), %v2479_v0 }
  0x52   : > { %423 = vst [vmem:[#allocation2 + $0x50] sm:$0xff] (!%p1839_p12), %v2479_v0  ;;  %424 = vst [vmem:[#allocation2 + $0x58] sm:$0xff] (!%p1839_p12), %v2479_v0 }
  0x53   : > { %425 = vst [vmem:[#allocation2 + $0x60] sm:$0xff] (!%p1839_p12), %v2479_v0  ;;  %426 = vst [vmem:[#allocation2 + $0x68] sm:$0xff] (!%p1839_p12), %v2479_v0 }
  0x54   : > { %427 = vst [vmem:[#allocation2 + $0x70] sm:$0xff] (!%p1839_p12), %v2479_v0  ;;  %428 = vst [vmem:[#allocation2 + $0x78] sm:$0xff] (!%p1839_p12), %v2479_v0 }
  0x55   : > { %429 = vst [vmem:[#allocation2 + $0x80] sm:$0xff] %v2479_v0  ;;  %430 = vst [vmem:[#allocation2 + $0x88] sm:$0xff] %v2479_v0 }
  0x56   : > { %431 = vst [vmem:[#allocation2 + $0x90] sm:$0xff] %v2479_v0  ;;  %432 = vst [vmem:[#allocation2 + $0x98] sm:$0xff] %v2479_v0 }
  0x57   : > { %433 = vst [vmem:[#allocation2 + $0xa0] sm:$0xff] %v2479_v0  ;;  %434 = vst [vmem:[#allocation2 + $0xa8] sm:$0xff] %v2479_v0 }
  0x58   : > { %435 = vst [vmem:[#allocation2 + $0xb0] sm:$0xff] %v2479_v0  ;;  %436 = vst [vmem:[#allocation2 + $0xb8] sm:$0xff] %v2479_v0 }
  0x59   : > { %437 = vst [vmem:[#allocation2 + $0xc0] sm:$0xff] %v2479_v0  ;;  %438 = vst [vmem:[#allocation2 + $0xc8] sm:$0xff] %v2479_v0 }
  0x5a   : > { %439 = vst [vmem:[#allocation2 + $0xd0] sm:$0xff] %v2479_v0  ;;  %440 = vst [vmem:[#allocation2 + $0xd8] sm:$0xff] %v2479_v0 }
  0x5b   : > { %441 = vst [vmem:[#allocation2 + $0xe0] sm:$0xff] %v2479_v0  ;;  %442 = vst [vmem:[#allocation2 + $0xe8] sm:$0xff] %v2479_v0 }
  0x5c   : > { %443 = vst [vmem:[#allocation2 + $0xf0] sm:$0xff] %v2479_v0  ;;  %444 = vst [vmem:[#allocation2 + $0xf8] sm:$0xff] %v2479_v0 }
  0x5d PF: > { %v2335_v1 = vld [vmem:[%s2700_s26 + $0x40] sm:$0xff]   ;;  %v2337_v3 = vld [vmem:[%s2700_s26 + $0x48] sm:$0xff]   ;;  %v2339_v5 = vld [vmem:[%s2700_s26 + $0x50] sm:$0xff]   ;;  %p1912_p13 = scmp.ne.s32.totalorder %s2461_s14, 1 }
  0x5e   : > { %v2336_v2 = vld [vmem:[%s2700_s26] sm:$0xff]   ;;  %2075 = vmatprep.subr.bf16.mxu0 %v2335_v1  ;;  %2259 = vmatprep.subr.bf16.mxu1 %v2335_v1  ;;  %v2338_v4 = vld [vmem:[%s2700_s26 + $0x8] sm:$0xff]   ;;  %v2340_v6 = vld [vmem:[%s2700_s26 + $0x10] sm:$0xff]  }
  0x5f   : > { %2076 = vmatpush3.bf16.msra.mxu0 %v2336_v2  ;;  %2267 = vmatpush3.bf16.msra.mxu1 %v2336_v2  ;;  %v2341_v7 = vld [vmem:[%s2700_s26 + $0x58] sm:$0xff]   ;;  %v2343_v9 = vld [vmem:[%s2700_s26 + $0x60] sm:$0xff]   ;;  %v2345_v11 = vld [vmem:[%s2700_s26 + $0x68] sm:$0xff]  }
  0x60   : > { %2077 = vmatprep.subr.bf16.mxu0 %v2337_v3  ;;  %2260 = vmatprep.subr.bf16.mxu1 %v2337_v3  ;;  %v2342_v8 = vld [vmem:[%s2700_s26 + $0x18] sm:$0xff]   ;;  %v2344_v10 = vld [vmem:[%s2700_s26 + $0x20] sm:$0xff]   ;;  %v2346_v14 = vld [vmem:[%s2700_s26 + $0x28] sm:$0xff]  }
  0x61   : > { %v2353_v12 = vld [vmem:[%s2707_s12 + $0x4] ss:$12 sps:$4 sm:$0xff]   ;;  %v2349_v17 = vld [vmem:[%s2700_s26 + $0x78] sm:$0xff]   ;;  %v2351_v20 = vld [vmem:[%s2707_s12] ss:$12 sps:$4 sm:$0xff]  }
  0x62   : > { %v2356_v13 = vld [vmem:[%s2707_s12 + $0x124] ss:$12 sps:$4 sm:$0xff]   ;;  %1021 = vmatprep.mubr.bf16.mxu0 %v2353_v12  ;;  %v2350_v18 = vld [vmem:[%s2700_s26 + $0x38] sm:$0xff]   ;;  %v2354_v21 = vld [vmem:[%s2707_s12 + $0x120] ss:$12 sps:$4 sm:$0xff]  }
  0x63   : > { %2078 = vmatpush3.bf16.msra.mxu0 %v2338_v4  ;;  %2268 = vmatpush3.bf16.msra.mxu1 %v2338_v4  ;;  %v2347_v15 = vld [vmem:[%s2700_s26 + $0x70] sm:$0xff]   ;;  %v2357_v19 = vld [vmem:[%s2700_s26 + $0x80] sm:$0xff]   ;;  %v2359_v22 = vld [vmem:[%s2707_s12 + $0x1c] ss:$12 sps:$4 sm:$0xff]  }
  0x64   : > { %2079 = vmatprep.subr.bf16.mxu0 %v2339_v5  ;;  %2261 = vmatprep.subr.bf16.mxu1 %v2339_v5  ;;  %v2348_v16 = vld [vmem:[%s2700_s26 + $0x30] sm:$0xff]   ;;  %v2358_v23 = vld [vmem:[%s2700_s26 + $0x88] sm:$0xff]   ;;  %v2363_v25 = vld [vmem:[%s2707_s12 + $0x18] ss:$12 sps:$4 sm:$0xff]  }
  0x65   : > { %1117 = vmatprep.mubr.bf16.mxu1 %v2356_v13  ;;  %v2361_v24 = vld [vmem:[%s2707_s12 + $0x13c] ss:$12 sps:$4 sm:$0xff]   ;;  %v2365_v26 = vld [vmem:[%s2700_s26 + $0x90] sm:$0xff]   ;;  %v2364_v27 = vld [vmem:[%s2707_s12 + $0x138] ss:$12 sps:$4 sm:$0xff]  }
  0x66   : > { %v2366_v28 = vld [vmem:[%s2700_s26 + $0x98] sm:$0xff]   ;;  %v2367_v29 = vld [vmem:[%s2707_s12 + $0x34] ss:$12 sps:$4 sm:$0xff]   ;;  %v2374_v34 = vld [vmem:[%s2700_s26 + $0xa8] sm:$0xff]  }
  0x67   : > { %2080 = vmatpush3.bf16.msra.mxu0 %v2340_v6  ;;  %2269 = vmatpush3.bf16.msra.mxu1 %v2340_v6  ;;  %v2369_v30 = vld [vmem:[%s2707_s12 + $0x154] ss:$12 sps:$4 sm:$0xff]   ;;  %v2371_v32 = vld [vmem:[%s2707_s12 + $0x30] ss:$12 sps:$4 sm:$0xff]   ;;  %v2375_v35 = vld [vmem:[%s2707_s12 + $0x4c] ss:$12 sps:$4 sm:$0xff]  }
  0x68   : > { %2081 = vmatprep.subr.bf16.mxu0 %v2341_v7  ;;  %2262 = vmatprep.subr.bf16.mxu1 %v2341_v7  ;;  %v2373_v31 = vld [vmem:[%s2700_s26 + $0xa0] sm:$0xff]   ;;  %v2372_v33 = vld [vmem:[%s2707_s12 + $0x150] ss:$12 sps:$4 sm:$0xff]   ;;  %v2377_v36 = vld [vmem:[%s2707_s12 + $0x16c] ss:$12 sps:$4 sm:$0xff]  }
  0x69   : > { %v2381_v37 = vld [vmem:[%s2700_s26 + $0xb0] sm:$0xff]   ;;  %v2382_v41 = vld [vmem:[%s2700_s26 + $0xb8] sm:$0xff]   ;;  %v2386_v43 = vld [vmem:[%s2707_s12 + $0x60] ss:$12 sps:$4 sm:$0xff]  }
  0x6a   : > { %v2379_v38 = vld [vmem:[%s2707_s12 + $0x48] ss:$12 sps:$4 sm:$0xff]   ;;  %v2383_v40 = vld [vmem:[%s2707_s12 + $0x64] ss:$12 sps:$4 sm:$0xff]   ;;  %v2387_v44 = vld [vmem:[%s2707_s12 + $0x20] ss:$12 sps:$4 sm:$0xff]  }
  0x6b   : > { %2082 = vmatpush3.bf16.msra.mxu0 %v2342_v8  ;;  %2270 = vmatpush3.bf16.msra.mxu1 %v2342_v8  ;;  %v2380_v39 = vld [vmem:[%s2707_s12 + $0x168] ss:$12 sps:$4 sm:$0xff]   ;;  %v2390_v46 = vld [vmem:[%s2707_s12 + $0x38] ss:$12 sps:$4 sm:$0xff]   ;;  %v2392_v48 = vld [vmem:[%s2707_s12 + $0x50] ss:$12 sps:$4 sm:$0xff]  }
  0x6c   : > { %2083 = vmatprep.subr.bf16.mxu0 %v2343_v9  ;;  %2263 = vmatprep.subr.bf16.mxu1 %v2343_v9  ;;  %v2385_v42 = vld [vmem:[%s2707_s12 + $0x8] ss:$12 sps:$4 sm:$0xff]   ;;  %v2391_v47 = vld [vmem:[%s2707_s12 + $0x78] ss:$12 sps:$4 sm:$0xff]   ;;  %v2396_v51 = vld [vmem:[%s2707_s12 + $0x90] ss:$12 sps:$4 sm:$0xff]  }
  0x6d   : > { %v2388_v45 = vld [vmem:[%s2707_s12 + $0x7c] ss:$12 sps:$4 sm:$0xff]   ;;  %v2393_v49 = vld [vmem:[%s2707_s12 + $0x94] ss:$12 sps:$4 sm:$0xff]   ;;  %v2398_v53 = vld [vmem:[%s2707_s12 + $0xac] ss:$12 sps:$4 sm:$0xff]  }
  0x6e   : > { %v2395_v50 = vld [vmem:[%s2707_s12 + $0x68] ss:$12 sps:$4 sm:$0xff]   ;;  %v2397_v52 = vld [vmem:[%s2707_s12 + $0x80] ss:$12 sps:$4 sm:$0xff]   ;;  %v2400_v54 = vld [vmem:[%s2707_s12 + $0x98] ss:$12 sps:$4 sm:$0xff]  }
  0x6f   : > { %2084 = vmatpush3.bf16.msra.mxu0 %v2344_v10  ;;  %2271 = vmatpush3.bf16.msra.mxu1 %v2344_v10  ;;  %v2401_v55 = vld [vmem:[%s2707_s12 + $0xa8] ss:$12 sps:$4 sm:$0xff]   ;;  %v2402_v56 = vld [vmem:[%s2707_s12 + $0xb0] ss:$12 sps:$4 sm:$0xff]   ;;  %v2406_v59 = vld [vmem:[%s2707_s12 + $0xc0] ss:$12 sps:$4 sm:$0xff]  }
  0x70   : > { %2085 = vmatprep.subr.bf16.mxu0 %v2345_v11  ;;  %2264 = vmatprep.subr.bf16.mxu1 %v2345_v11  ;;  %v2403_v57 = vld [vmem:[%s2707_s12 + $0xc4] ss:$12 sps:$4 sm:$0xff]   ;;  %v2405_v58 = vld [vmem:[%s2707_s12 + $0xc8] ss:$12 sps:$4 sm:$0xff]   ;;  %v2407_v60 = vld [vmem:[%s2707_s12 + $0xe0] ss:$12 sps:$4 sm:$0xff]  }
  0x71   : > { %v2408_v61 = vld [vmem:[%s2707_s12 + $0xdc] ss:$12 sps:$4 sm:$0xff]   ;;  %v2410_v62 = vld [vmem:[%s2707_s12 + $0xf8] ss:$12 sps:$4 sm:$0xff]   ;;  %v2413_v1 = vld [vmem:[%s2707_s12 + $0xf4] ss:$12 sps:$4 sm:$0xff]  }
  0x72   : > { %v2411_v63 = vld [vmem:[%s2707_s12 + $0xd8] ss:$12 sps:$4 sm:$0xff]   ;;  %v2412_v0 = vld [vmem:[%s2707_s12 + $0x110] ss:$12 sps:$4 sm:$0xff]   ;;  %v2415_v2 = vld [vmem:[%s2707_s12 + $0x128] ss:$12 sps:$4 sm:$0xff]  }
  0x73   : > { %2086 = vmatpush3.bf16.msra.mxu0 %v2346_v14  ;;  %2272 = vmatpush3.bf16.msra.mxu1 %v2346_v14  ;;  %v2416_v3 = vld [vmem:[%s2707_s12 + $0xf0] ss:$12 sps:$4 sm:$0xff]   ;;  %v2417_v4 = vld [vmem:[%s2707_s12 + $0x140] ss:$12 sps:$4 sm:$0xff]   ;;  %v2420_v6 = vld [vmem:[%s2707_s12 + $0x158] ss:$12 sps:$4 sm:$0xff]  }
  0x74   : > { %2087 = vmatprep.subr.bf16.mxu0 %v2347_v15  ;;  %2265 = vmatprep.subr.bf16.mxu1 %v2347_v15  ;;  %v2418_v5 = vld [vmem:[%s2707_s12 + $0x10c] ss:$12 sps:$4 sm:$0xff]   ;;  %v2421_v7 = vld [vmem:[%s2707_s12 + $0x108] ss:$12 sps:$4 sm:$0xff]   ;;  %v2422_v8 = vld [vmem:[%s2707_s12 + $0x170] ss:$12 sps:$4 sm:$0xff]  }
  0x77   : > { %2088 = vmatpush3.bf16.msra.mxu0 %v2348_v16  ;;  %2273 = vmatpush3.bf16.msra.mxu1 %v2348_v16 }
  0x78   : > { %2089 = vmatprep.subr.bf16.mxu0 %v2349_v17  ;;  %2266 = vmatprep.subr.bf16.mxu1 %v2349_v17 }
  0x7b   : > { %2090 = vmatpush3.bf16.msra.mxu0 %v2350_v18  ;;  %2274 = vmatpush3.bf16.msra.mxu1 %v2350_v18 }
  0x7c   : > { %2211 = vmatprep.subr.bf16.mxu1 %v2357_v19 }
  0x7e   : > { %1022 = vmatmul.mubr.bf16.vlgmr.msra.gmra.mrb[0].mxu0 %v2351_v20  ;;  %1118 = vmatmul.mubr.bf16.vlgmr.msra.gmra.mrb[0].mxu1 %v2354_v21 }
  0x7f   : > { %2212 = vmatpush3.bf16.msra.mxu1 %v2357_v19  ;;  %1029 = vmatprep.mubr.bf16.mxu0 %v2359_v22 }
  0x80   : > { %2213 = vmatprep.subr.bf16.mxu1 %v2358_v23  ;;  %1125 = vmatprep.mubr.bf16.mxu1 %v2361_v24 }
  0x83   : > { %2214 = vmatpush3.bf16.msra.mxu1 %v2358_v23 }
  0x84   : > { %2215 = vmatprep.subr.bf16.mxu1 %v2365_v26 }
  0x86   : > { %1030 = vmatmul.mubr.bf16.gmra.mrb[4].mxu0 %v2363_v25  ;;  %1126 = vmatmul.mubr.bf16.gmra.mrb[4].mxu1 %v2364_v27 }
  0x87   : > { %2216 = vmatpush3.bf16.msra.mxu1 %v2365_v26  ;;  %1037 = vmatprep.mubr.bf16.mxu0 %v2367_v29 }
  0x88   : > { %2217 = vmatprep.subr.bf16.mxu1 %v2366_v28  ;;  %1133 = vmatprep.mubr.bf16.mxu1 %v2369_v30 }
  0x8b   : > { %2218 = vmatpush3.bf16.msra.mxu1 %v2366_v28 }
  0x8c   : > { %2219 = vmatprep.subr.bf16.mxu1 %v2373_v31 }
  0x8e   : > { %1038 = vmatmul.mubr.bf16.gmra.mrb[8].mxu0 %v2371_v32  ;;  %1134 = vmatmul.mubr.bf16.gmra.mrb[8].mxu1 %v2372_v33 }
  0x8f   : > { %2220 = vmatpush3.bf16.msra.mxu1 %v2373_v31  ;;  %1045 = vmatprep.mubr.bf16.mxu0 %v2375_v35 }
  0x90   : > { %2221 = vmatprep.subr.bf16.mxu1 %v2374_v34  ;;  %1141 = vmatprep.mubr.bf16.mxu1 %v2377_v36 }
  0x93   : > { %2222 = vmatpush3.bf16.msra.mxu1 %v2374_v34 }
  0x94   : > { %2223 = vmatprep.subr.bf16.mxu1 %v2381_v37 }
  0x96   : > { %1046 = vmatmul.mubr.bf16.gmra.mrb[12].mxu0 %v2379_v38  ;;  %1142 = vmatmul.mubr.bf16.gmra.mrb[12].mxu1 %v2380_v39 }
  0x97   : > { %2224 = vmatpush3.bf16.msra.mxu1 %v2381_v37  ;;  %1053 = vmatprep.mubr.bf16.mxu0 %v2383_v40 }
  0x98   : > { %2225 = vmatprep.subr.bf16.mxu1 %v2382_v41  ;;  %2227 = vmatprep.mubr.bf16.mxu1 %v2385_v42 }
  0x9b   : > { %2226 = vmatpush3.bf16.msra.mxu1 %v2382_v41 }
  0x9e   : > { %1054 = vmatmul.mubr.bf16.gmra.mrb[16].mxu0 %v2386_v43  ;;  %2228 = vmatmul.mubr.bf16.vlgmr.msra.gmra.mrb[16].mxu1 %v2387_v44 }
  0x9f   : > { %1061 = vmatprep.mubr.bf16.mxu0 %v2388_v45  ;;  %2231 = vmatprep.mubr.bf16.mxu1 %v2390_v46 }
  0xa6   : > { %1062 = vmatmul.mubr.bf16.gmra.mrb[20].mxu0 %v2391_v47  ;;  %2232 = vmatmul.mubr.bf16.gmra.mrb[20].mxu1 %v2392_v48 }
  0xa7   : > { %1069 = vmatprep.mubr.bf16.mxu0 %v2393_v49  ;;  %2235 = vmatprep.mubr.bf16.mxu1 %v2395_v50 }
  0xae   : > { %1070 = vmatmul.mubr.bf16.gmra.mrb[24].mxu0 %v2396_v51  ;;  %2236 = vmatmul.mubr.bf16.gmra.mrb[24].mxu1 %v2397_v52 }
  0xaf   : > { %1077 = vmatprep.mubr.bf16.mxu0 %v2398_v53  ;;  %2239 = vmatprep.mubr.bf16.mxu1 %v2400_v54 }
  0xb6   : > { %1078 = vmatmul.mubr.bf16.gmra.mrb[28].mxu0 %v2401_v55  ;;  %2240 = vmatmul.mubr.bf16.gmra.mrb[28].mxu1 %v2402_v56 }
  0xb7   : > { %1085 = vmatprep.mubr.bf16.mxu0 %v2403_v57  ;;  %2243 = vmatprep.mubr.bf16.mxu1 %v2405_v58  ;;  %v447_v58 = vld [vmem:[#allocation2 + $0x10] sm:$0xff] }
  0xbe   : > { %1086 = vmatmul.mubr.bf16.gmra.mrb[32].mxu0 %v2406_v59  ;;  %2244 = vmatmul.mubr.bf16.gmra.mrb[32].mxu1 %v2407_v60 }
  0xbf   : > { %1093 = vmatprep.mubr.bf16.mxu0 %v2408_v61  ;;  %2247 = vmatprep.mubr.bf16.mxu1 %v2410_v62  ;;  %v445_v62 = vld [vmem:[#allocation2] sm:$0xff] }
  0xc6   : > { %1094 = vmatmul.mubr.bf16.gmra.mrb[36].mxu0 %v2411_v63  ;;  %2248 = vmatmul.mubr.bf16.gmra.mrb[36].mxu1 %v2412_v0 }
  0xc7   : > { %1101 = vmatprep.mubr.bf16.mxu0 %v2413_v1  ;;  %2251 = vmatprep.mubr.bf16.mxu1 %v2415_v2 }
  0xce   : > { %1102 = vmatmul.mubr.bf16.gmra.mrb[40].mxu0 %v2416_v3  ;;  %2252 = vmatmul.mubr.bf16.gmra.mrb[40].mxu1 %v2417_v4  ;;  %v448_v3 = vld [vmem:[#allocation2 + $0x18] sm:$0xff] }
  0xcf   : > { %1109 = vmatprep.mubr.bf16.mxu0 %v2418_v5  ;;  %2255 = vmatprep.mubr.bf16.mxu1 %v2420_v6 }
  0xd6   : > { %1110 = vmatmul.mubr.bf16.gmra.mrb[44].mxu0 %v2421_v7  ;;  %2256 = vmatmul.mubr.bf16.gmra.mrb[44].mxu1 %v2422_v8  ;;  %v446_v8 = vld [vmem:[#allocation2 + $0x8] sm:$0xff] }
 0x151   : > { %v2091_v9 = vpop.f32.mrb[0].mxu0  ;;  %v2163_v10 = vpop.f32.mrb[0].mxu1 }
 0x152   : > { %v2092_v11 = vpop.f32.mrb[1].mxu0  ;;  %v2164_v12 = vpop.f32.mrb[1].mxu1 }
 0x153   : > { %v2093_v13 = vadd.f32 %v2092_v11, %v2091_v9  ;;  %v2782_v14 = vadd.f32 %v2164_v12, %v2163_v10  ;;  %v2094_v15 = vpop.f32.mrb[2].mxu0  ;;  %v2166_v16 = vpop.f32.mrb[2].mxu1 }
 0x154   : > { %v2095_v17 = vpop.f32.mrb[3].mxu0  ;;  %v2167_v18 = vpop.f32.mrb[3].mxu1 }
 0x155   : > { %v2096_v19 = vadd.f32 %v2095_v17, %v2094_v15  ;;  %v2784_v20 = vadd.f32 %v2167_v18, %v2166_v16  ;;  %v451_v18 = vld [vmem:[#allocation2 + $0x30] sm:$0xff] }
 0x159   : > { %v2097_v21 = vpop.f32.mrb[4].mxu0  ;;  %v2169_v22 = vpop.f32.mrb[4].mxu1 }
 0x15a   : > { %v2098_v23 = vpop.f32.mrb[5].mxu0  ;;  %v2170_v24 = vpop.f32.mrb[5].mxu1 }
 0x15b   : > { %v2099_v25 = vadd.f32 %v2098_v23, %v2097_v21  ;;  %v2786_v26 = vadd.f32 %v2170_v24, %v2169_v22  ;;  %v2100_v27 = vpop.f32.mrb[6].mxu0  ;;  %v2172_v28 = vpop.f32.mrb[6].mxu1  ;;  %v449_v23 = vld [vmem:[#allocation2 + $0x20] sm:$0xff] }
 0x15c   : > { %v2101_v29 = vpop.f32.mrb[7].mxu0  ;;  %v2173_v30 = vpop.f32.mrb[7].mxu1 }
 0x15d   : > { %v2102_v31 = vadd.f32 %v2101_v29, %v2100_v27  ;;  %v2788_v32 = vadd.f32 %v2173_v30, %v2172_v28  ;;  %v452_v29 = vld [vmem:[#allocation2 + $0x38] sm:$0xff] }
 0x161   : > { %v2103_v33 = vpop.f32.mrb[8].mxu0  ;;  %v2175_v34 = vpop.f32.mrb[8].mxu1 }
 0x162   : > { %v2104_v35 = vpop.f32.mrb[9].mxu0  ;;  %v2176_v36 = vpop.f32.mrb[9].mxu1 }
 0x163   : > { %v2105_v37 = vadd.f32 %v2104_v35, %v2103_v33  ;;  %v2790_v38 = vadd.f32 %v2176_v36, %v2175_v34  ;;  %v2106_v39 = vpop.f32.mrb[10].mxu0  ;;  %v2178_v40 = vpop.f32.mrb[10].mxu1  ;;  %v450_v34 = vld [vmem:[#allocation2 + $0x28] sm:$0xff] }
 0x164   : > { %v2107_v41 = vpop.f32.mrb[11].mxu0  ;;  %v2179_v42 = vpop.f32.mrb[11].mxu1 }
 0x165   : > { %v2108_v43 = vadd.f32 %v2107_v41, %v2106_v39  ;;  %v2792_v44 = vadd.f32 %v2179_v42, %v2178_v40 }
 0x169   : > { %v2109_v45 = vpop.f32.mrb[12].mxu0  ;;  %v2181_v46 = vpop.f32.mrb[12].mxu1 }
 0x16a   : > { %v2110_v47 = vpop.f32.mrb[13].mxu0  ;;  %v2182_v48 = vpop.f32.mrb[13].mxu1 }
 0x16b   : > { %v2111_v49 = vadd.f32 %v2110_v47, %v2109_v45  ;;  %v2794_v50 = vadd.f32 %v2182_v48, %v2181_v46  ;;  %v2112_v51 = vpop.f32.mrb[14].mxu0  ;;  %v2184_v52 = vpop.f32.mrb[14].mxu1  ;;  %v455_v46 = vld [vmem:[#allocation2 + $0x50] sm:$0xff] }
 0x16c   : > { %v2113_v53 = vpop.f32.mrb[15].mxu0  ;;  %v2185_v54 = vpop.f32.mrb[15].mxu1 }
 0x16d   : > { %v2114_v55 = vadd.f32 %v2113_v53, %v2112_v51  ;;  %v2796_v56 = vadd.f32 %v2185_v54, %v2184_v52 }
 0x171   : > { %v2115_v57 = vpop.f32.mrb[16].mxu0  ;;  %v2229_v59 = vpop.f32.mrb[16].mxu1 }
 0x172   : > { %v1193_v60 = vadd.f32 %v2229_v59, %v2099_v25  ;;  %v2116_v61 = vpop.f32.mrb[17].mxu0  ;;  %v1184_v63 = vpop.f32.mrb[17].mxu1 }
 0x173   : > { %v2117_v0 = vadd.f32 %v2116_v61, %v2115_v57  ;;  %v1185_v1 = vadd.f32 %v2093_v13, %v1184_v63  ;;  %v2118_v2 = vpop.f32.mrb[18].mxu0  ;;  %v2230_v4 = vpop.f32.mrb[18].mxu1 }
 0x174   : > { %v1313_v5 = vadd.f32 %v1193_v60, %v447_v58  ;;  %v1196_v6 = vadd.f32 %v2230_v4, %v2102_v31  ;;  %v2119_v7 = vpop.f32.mrb[19].mxu0  ;;  %v1187_v9 = vpop.f32.mrb[19].mxu1  ;;  %v454_v60 = vld [vmem:[#allocation2 + $0x48] sm:$0xff] }
 0x175   : > { %v1311_v10 = vadd.f32 %v1185_v1, %v445_v62  ;;  %v2120_v11 = vadd.f32 %v2119_v7, %v2118_v2  ;;  %v1188_v12 = vadd.f32 %v2096_v19, %v1187_v9 }
 0x176   : > { %1345 = vst [vmem:[#allocation2 + $0x10] sm:$0xff] %v1313_v5  ;;  %v1314_v15 = vadd.f32 %v1196_v6, %v448_v3  ;;  %v457_v6 = vld [vmem:[#allocation2 + $0x60] sm:$0xff] }
 0x177   : > { %1343 = vst [vmem:[#allocation2] sm:$0xff] %v1311_v10  ;;  %v1312_v16 = vadd.f32 %v1188_v12, %v446_v8 }
 0x178   : > { %1346 = vst [vmem:[#allocation2 + $0x18] sm:$0xff] %v1314_v15  ;;  %v459_v15 = vld [vmem:[#allocation2 + $0x70] sm:$0xff] }
 0x179   : > { %1344 = vst [vmem:[#allocation2 + $0x8] sm:$0xff] %v1312_v16  ;;  %v2121_v17 = vpop.f32.mrb[20].mxu0  ;;  %v2233_v13 = vpop.f32.mrb[20].mxu1 }
 0x17a   : > { %v1209_v21 = vadd.f32 %v2233_v13, %v2111_v49  ;;  %v2122_v22 = vpop.f32.mrb[21].mxu0  ;;  %v1200_v24 = vpop.f32.mrb[21].mxu1  ;;  %v453_v49 = vld [vmem:[#allocation2 + $0x40] sm:$0xff] }
 0x17b   : > { %v2123_v25 = vadd.f32 %v2122_v22, %v2121_v17  ;;  %v1201_v27 = vadd.f32 %v2105_v37, %v1200_v24  ;;  %v2124_v28 = vpop.f32.mrb[22].mxu0  ;;  %v2234_v30 = vpop.f32.mrb[22].mxu1  ;;  %v458_v17 = vld [vmem:[#allocation2 + $0x68] sm:$0xff] }
 0x17c   : > { %v1317_v31 = vadd.f32 %v1209_v21, %v451_v18  ;;  %v1212_v19 = vadd.f32 %v2234_v30, %v2114_v55  ;;  %v2125_v33 = vpop.f32.mrb[23].mxu0  ;;  %v1203_v35 = vpop.f32.mrb[23].mxu1  ;;  %v456_v55 = vld [vmem:[#allocation2 + $0x58] sm:$0xff] }
 0x17d   : > { %v1315_v36 = vadd.f32 %v1201_v27, %v449_v23  ;;  %v2126_v39 = vadd.f32 %v2125_v33, %v2124_v28  ;;  %v1204_v40 = vadd.f32 %v2108_v43, %v1203_v35  ;;  %v460_v23 = vld [vmem:[#allocation2 + $0x78] sm:$0xff] }
 0x17e   : > { %1349 = vst [vmem:[#allocation2 + $0x30] sm:$0xff] %v1317_v31  ;;  %v1318_v41 = vadd.f32 %v1212_v19, %v452_v29 }
 0x17f   : > { %1347 = vst [vmem:[#allocation2 + $0x20] sm:$0xff] %v1315_v36  ;;  %v1316_v42 = vadd.f32 %v1204_v40, %v450_v34  ;;  %v461_v36 = vld [vmem:[#allocation2 + $0x80] sm:$0xff] }
 0x180   : > { %1350 = vst [vmem:[#allocation2 + $0x38] sm:$0xff] %v1318_v41 }
 0x181   : > { %1348 = vst [vmem:[#allocation2 + $0x28] sm:$0xff] %v1316_v42  ;;  %v2127_v45 = vpop.f32.mrb[24].mxu0  ;;  %v2237_v37 = vpop.f32.mrb[24].mxu1 }
 0x182   : > { %v1225_v47 = vadd.f32 %v2237_v37, %v2123_v25  ;;  %v2128_v48 = vpop.f32.mrb[25].mxu0  ;;  %v1216_v51 = vpop.f32.mrb[25].mxu1 }
 0x183   : > { %v2129_v52 = vadd.f32 %v2128_v48, %v2127_v45  ;;  %v1217_v53 = vadd.f32 %v2117_v0, %v1216_v51  ;;  %v2130_v54 = vpop.f32.mrb[26].mxu0  ;;  %v2238_v57 = vpop.f32.mrb[26].mxu1  ;;  %v462_v45 = vld [vmem:[#allocation2 + $0x88] sm:$0xff] }
 0x184   : > { %v1321_v58 = vadd.f32 %v1225_v47, %v455_v46  ;;  %v1228_v43 = vadd.f32 %v2238_v57, %v2126_v39  ;;  %v2131_v59 = vpop.f32.mrb[27].mxu0  ;;  %v1219_v61 = vpop.f32.mrb[27].mxu1  ;;  %v463_v57 = vld [vmem:[#allocation2 + $0x90] sm:$0xff] }
 0x185   : > { %v1319_v62 = vadd.f32 %v1217_v53, %v453_v49  ;;  %v2132_v63 = vadd.f32 %v2131_v59, %v2130_v54  ;;  %v1220_v1 = vadd.f32 %v2120_v11, %v1219_v61  ;;  %v464_v61 = vld [vmem:[#allocation2 + $0x98] sm:$0xff] }
 0x186   : > { %1353 = vst [vmem:[#allocation2 + $0x50] sm:$0xff] %v1321_v58  ;;  %v1322_v2 = vadd.f32 %v1228_v43, %v456_v55 }
 0x187   : > { %1351 = vst [vmem:[#allocation2 + $0x40] sm:$0xff] %v1319_v62  ;;  %v1320_v3 = vadd.f32 %v1220_v1, %v454_v60 }
 0x188   : > { %1354 = vst [vmem:[#allocation2 + $0x58] sm:$0xff] %v1322_v2 }
 0x189   : > { %1352 = vst [vmem:[#allocation2 + $0x48] sm:$0xff] %v1320_v3  ;;  %v2133_v4 = vpop.f32.mrb[28].mxu0  ;;  %v2241_v5 = vpop.f32.mrb[28].mxu1  ;;  %v471_v3 = vld [vmem:[#allocation2 + $0xd0] sm:$0xff] }
 0x18a   : > { %v2134_v0 = vpop.f32.mrb[29].mxu0  ;;  %v1232_v7 = vpop.f32.mrb[29].mxu1 }
 0x18b   : > { %v2135_v8 = vadd.f32 %v2134_v0, %v2133_v4  ;;  %v1233_v9 = vadd.f32 %v2129_v52, %v1232_v7  ;;  %v2136_v10 = vpop.f32.mrb[30].mxu0  ;;  %v2242_v12 = vpop.f32.mrb[30].mxu1 }
 0x18c   : > { %v2137_v16 = vpop.f32.mrb[31].mxu0  ;;  %v1235_v18 = vpop.f32.mrb[31].mxu1 }
 0x18d   : > { %v1241_v11 = vadd.f32 %v2241_v5, %v2135_v8  ;;  %v1323_v13 = vadd.f32 %v1233_v9, %v457_v6  ;;  %v2138_v21 = vadd.f32 %v2137_v16, %v2136_v10  ;;  %v1236_v22 = vadd.f32 %v2132_v63, %v1235_v18  ;;  %v469_v6 = vld [vmem:[#allocation2 + $0xc0] sm:$0xff] }
 0x18f   : > { %v1325_v24 = vadd.f32 %v1241_v11, %v459_v15  ;;  %1355 = vst [vmem:[#allocation2 + $0x60] sm:$0xff] %v1323_v13  ;;  %v1244_v25 = vadd.f32 %v2242_v12, %v2138_v21  ;;  %v1324_v27 = vadd.f32 %v1236_v22, %v458_v17  ;;  %v472_v12 = vld [vmem:[#allocation2 + $0xd8] sm:$0xff]  ;;  %v465_v17 = vld [vmem:[#allocation2 + $0xa0] sm:$0xff]  ;;  %v470_v13 = vld [vmem:[#allocation2 + $0xc8] sm:$0xff] }
 0x191   : > { %1357 = vst [vmem:[#allocation2 + $0x70] sm:$0xff] %v1325_v24  ;;  %v1326_v28 = vadd.f32 %v1244_v25, %v460_v23  ;;  %1356 = vst [vmem:[#allocation2 + $0x68] sm:$0xff] %v1324_v27  ;;  %v2139_v29 = vpop.f32.mrb[32].mxu0  ;;  %v2245_v30 = vpop.f32.mrb[32].mxu1  ;;  %v466_v27 = vld [vmem:[#allocation2 + $0xa8] sm:$0xff] }
 0x192   : > { %v2140_v31 = vpop.f32.mrb[33].mxu0  ;;  %v1248_v19 = vpop.f32.mrb[33].mxu1 }
 0x193   : > { %1358 = vst [vmem:[#allocation2 + $0x78] sm:$0xff] %v1326_v28  ;;  %v2141_v33 = vadd.f32 %v2140_v31, %v2139_v29  ;;  %v2142_v34 = vpop.f32.mrb[34].mxu0  ;;  %v2246_v35 = vpop.f32.mrb[34].mxu1  ;;  %v475_v31 = vld [vmem:[#allocation2 + $0xf0] sm:$0xff] }
 0x194   : > { %v2143_v39 = vpop.f32.mrb[35].mxu0  ;;  %v1251_v40 = vpop.f32.mrb[35].mxu1 }
 0x195   : > { %v1249_v41 = vadd.f32 %v2141_v33, %v1248_v19  ;;  %v2144_v42 = vadd.f32 %v2143_v39, %v2142_v34 }
 0x197   : > { %v1327_v46 = vadd.f32 %v1249_v41, %v461_v36  ;;  %v1252_v37 = vadd.f32 %v2144_v42, %v1251_v40  ;;  %v476_v41 = vld [vmem:[#allocation2 + $0xf8] sm:$0xff] }
 0x199   : > { %1359 = vst [vmem:[#allocation2 + $0x80] sm:$0xff] %v1327_v46  ;;  %v1328_v47 = vadd.f32 %v1252_v37, %v462_v45  ;;  %v2145_v48 = vpop.f32.mrb[36].mxu0  ;;  %v2798_v49 = vpop.f32.mrb[36].mxu1  ;;  %v467_v46 = vld [vmem:[#allocation2 + $0xb0] sm:$0xff] }
 0x19a   : > { %v2146_v51 = vpop.f32.mrb[37].mxu0  ;;  %v1264_v52 = vpop.f32.mrb[37].mxu1 }
 0x19b   : > { %1360 = vst [vmem:[#allocation2 + $0x88] sm:$0xff] %v1328_v47  ;;  %v2147_v53 = vadd.f32 %v2146_v51, %v2145_v48  ;;  %v2148_v54 = vpop.f32.mrb[38].mxu0  ;;  %v2800_v55 = vpop.f32.mrb[38].mxu1  ;;  %v474_v48 = vld [vmem:[#allocation2 + $0xe8] sm:$0xff] }
 0x19c   : > { %v2149_v58 = vpop.f32.mrb[39].mxu0  ;;  %v1267_v43 = vpop.f32.mrb[39].mxu1 }
 0x19d   : > { %v1257_v59 = vadd.f32 %v2245_v30, %v2147_v53  ;;  %v2150_v60 = vadd.f32 %v2149_v58, %v2148_v54  ;;  %v468_v58 = vld [vmem:[#allocation2 + $0xb8] sm:$0xff] }
 0x19f   : > { %v1329_v62 = vadd.f32 %v1257_v59, %v463_v57  ;;  %v1260_v63 = vadd.f32 %v2246_v35, %v2150_v60  ;;  %v473_v35 = vld [vmem:[#allocation2 + $0xe0] sm:$0xff]  ;;  %v1380_v60 = vld [vmem:[#allocation2 + $0x8] sm:$0xff] (!%p1912_p13) }
 0x1a1   : > { %1361 = vst [vmem:[#allocation2 + $0x90] sm:$0xff] %v1329_v62  ;;  %v1330_v1 = vadd.f32 %v1260_v63, %v464_v61  ;;  %v2151_v2 = vpop.f32.mrb[40].mxu0  ;;  %v2253_v4 = vpop.f32.mrb[40].mxu1  ;;  %v1381_v62 = vld [vmem:[#allocation2 + $0x10] sm:$0xff] (!%p1912_p13)  ;;  %v1382_v63 = vld [vmem:[#allocation2 + $0x18] sm:$0xff] (!%p1912_p13) }
 0x1a2   : > { %v1289_v5 = vadd.f32 %v2253_v4, %v2786_v26  ;;  %v2152_v0 = vpop.f32.mrb[41].mxu0  ;;  %v1280_v7 = vpop.f32.mrb[41].mxu1  ;;  %v1384_v4 = vld [vmem:[#allocation2 + $0x28] sm:$0xff] (!%p1912_p13) }
 0x1a3   : > { %1362 = vst [vmem:[#allocation2 + $0x98] sm:$0xff] %v1330_v1  ;;  %v2153_v8 = vadd.f32 %v2152_v0, %v2151_v2  ;;  %v1281_v9 = vadd.f32 %v2782_v14, %v1280_v7  ;;  %v2154_v10 = vpop.f32.mrb[42].mxu0  ;;  %v2254_v15 = vpop.f32.mrb[42].mxu1  ;;  %v1383_v1 = vld [vmem:[#allocation2 + $0x20] sm:$0xff] (!%p1912_p13)  ;;  %v1385_v0 = vld [vmem:[#allocation2 + $0x30] sm:$0xff] (!%p1912_p13) }
 0x1a4   : > { %v1337_v16 = vadd.f32 %v1289_v5, %v471_v3  ;;  %v1292_v18 = vadd.f32 %v2254_v15, %v2788_v32  ;;  %v2155_v11 = vpop.f32.mrb[43].mxu0  ;;  %v1283_v21 = vpop.f32.mrb[43].mxu1  ;;  %v1388_v15 = vld [vmem:[#allocation2 + $0x48] sm:$0xff] (!%p1912_p13) }
 0x1a5   : > { %v1265_v22 = vadd.f32 %v2153_v8, %v1264_v52  ;;  %v1335_v23 = vadd.f32 %v1281_v9, %v469_v6  ;;  %v2156_v26 = vadd.f32 %v2155_v11, %v2154_v10  ;;  %v1284_v24 = vadd.f32 %v2784_v20, %v1283_v21  ;;  %v1386_v6 = vld [vmem:[#allocation2 + $0x38] sm:$0xff] (!%p1912_p13) }
 0x1a6   : > { %1369 = vst [vmem:[#allocation2 + $0xd0] sm:$0xff] %v1337_v16  ;;  %v1338_v25 = vadd.f32 %v1292_v18, %v472_v12  ;;  %v1387_v12 = vld [vmem:[#allocation2 + $0x40] sm:$0xff] (!%p1912_p13)  ;;  %v1389_v16 = vld [vmem:[#allocation2 + $0x50] sm:$0xff] (!%p1912_p13)  ;;  %v1390_v21 = vld [vmem:[#allocation2 + $0x58] sm:$0xff] (!%p1912_p13) }
 0x1a7   : > { %v1331_v28 = vadd.f32 %v1265_v22, %v465_v17  ;;  %1367 = vst [vmem:[#allocation2 + $0xc0] sm:$0xff] %v1335_v23  ;;  %v1268_v14 = vadd.f32 %v2156_v26, %v1267_v43  ;;  %v1336_v29 = vadd.f32 %v1284_v24, %v470_v13  ;;  %v1391_v22 = vld [vmem:[#allocation2 + $0x60] sm:$0xff] (!%p1912_p13) }
 0x1a8   : > { %1370 = vst [vmem:[#allocation2 + $0xd8] sm:$0xff] %v1338_v25 }
 0x1a9   : > { %1363 = vst [vmem:[#allocation2 + $0xa0] sm:$0xff] %v1331_v28  ;;  %v1332_v30 = vadd.f32 %v1268_v14, %v466_v27  ;;  %1368 = vst [vmem:[#allocation2 + $0xc8] sm:$0xff] %v1336_v29  ;;  %v2157_v32 = vpop.f32.mrb[44].mxu0  ;;  %v2257_v19 = vpop.f32.mrb[44].mxu1  ;;  %v1392_v27 = vld [vmem:[#allocation2 + $0x68] sm:$0xff] (!%p1912_p13) }
 0x1aa   : > { %v1305_v33 = vadd.f32 %v2257_v19, %v2794_v50  ;;  %v2158_v34 = vpop.f32.mrb[45].mxu0  ;;  %v1296_v36 = vpop.f32.mrb[45].mxu1 }
 0x1ab   : > { %1364 = vst [vmem:[#allocation2 + $0xa8] sm:$0xff] %v1332_v30  ;;  %v2159_v20 = vadd.f32 %v2158_v34, %v2157_v32  ;;  %v1297_v39 = vadd.f32 %v2790_v38, %v1296_v36  ;;  %v2160_v40 = vpop.f32.mrb[46].mxu0  ;;  %v2258_v42 = vpop.f32.mrb[46].mxu1  ;;  %v1393_v32 = vld [vmem:[#allocation2 + $0x70] sm:$0xff] (!%p1912_p13)  ;;  %v1395_v36 = vld [vmem:[#allocation2 + $0x80] sm:$0xff] (!%p1912_p13) }
 0x1ac   : > { %v1341_v45 = vadd.f32 %v1305_v33, %v475_v31  ;;  %v1308_v37 = vadd.f32 %v2258_v42, %v2796_v56  ;;  %v2161_v47 = vpop.f32.mrb[47].mxu0  ;;  %v1299_v51 = vpop.f32.mrb[47].mxu1  ;;  %v1394_v31 = vld [vmem:[#allocation2 + $0x78] sm:$0xff] (!%p1912_p13) }
 0x1ad   : > { %v1273_v52 = vadd.f32 %v2798_v49, %v2159_v20  ;;  %v1339_v50 = vadd.f32 %v1297_v39, %v473_v35  ;;  %v2162_v53 = vadd.f32 %v2161_v47, %v2160_v40  ;;  %v1300_v54 = vadd.f32 %v2792_v44, %v1299_v51  ;;  %1378 = sbr.rel (%p1912_p13) target bundleno = 456 (0x1c8), region = 66  ;;  %v1379_v49 = vld [vmem:[#allocation2] sm:$0xff] (!%p1912_p13)  ;;  %v1396_v20 = vld [vmem:[#allocation2 + $0x88] sm:$0xff] (!%p1912_p13)  ;;  %v1398_v51 = vld [vmem:[#allocation2 + $0x98] sm:$0xff] (!%p1912_p13) }
 0x1ae   : > { %1373 = vst [vmem:[#allocation2 + $0xf0] sm:$0xff] %v1341_v45  ;;  %v1342_v57 = vadd.f32 %v1308_v37, %v476_v41  ;;  %v2816_v44 = vld [vmem:[%s2889_s2] ss:$0 sm:$0xff] (!%p1912_p13)  ;;  %v1397_v45 = vld [vmem:[#allocation2 + $0x90] sm:$0xff] (!%p1912_p13) }
 0x1af   : > { %v1333_v38 = vadd.f32 %v1273_v52, %v467_v46  ;;  %1371 = vst [vmem:[#allocation2 + $0xe0] sm:$0xff] %v1339_v50  ;;  %v1276_v43 = vadd.f32 %v2800_v55, %v2162_v53  ;;  %v1340_v59 = vadd.f32 %v1300_v54, %v474_v48  ;;  %v1418_v61 = vadd.f32 (!%p1912_p13), %v2816_v44, %v1379_v49 }
 0x1b0   : > { %1374 = vst [vmem:[#allocation2 + $0xf8] sm:$0xff] %v1342_v57  ;;  %v1419_v55 = vadd.f32 (!%p1912_p13), %v2816_v44, %v1380_v60  ;;  %v1420_v2 = vadd.f32 (!%p1912_p13), %v2816_v44, %v1381_v62  ;;  %v1421_v3 = vadd.f32 (!%p1912_p13), %v2816_v44, %v1382_v63  ;;  %v1422_v5 = vadd.f32 (!%p1912_p13), %v2816_v44, %v1383_v1  ;;  %v1399_v57 = vld [vmem:[#allocation2 + $0xa0] sm:$0xff] (!%p1912_p13) }
 0x1b1   : > { %1365 = vst [vmem:[#allocation2 + $0xb0] sm:$0xff] %v1333_v38  ;;  %v1334_v56 = vadd.f32 %v1276_v43, %v468_v58  ;;  %1372 = vst [vmem:[#allocation2 + $0xe8] sm:$0xff] %v1340_v59  ;;  %v1450_v7 = vmax.f32 (!%p1912_p13), %v1418_v61, 0.0  ;;  %v1423_v9 = vadd.f32 (!%p1912_p13), %v2816_v44, %v1384_v4  ;;  %v1424_v10 = vadd.f32 (!%p1912_p13), %v2816_v44, %v1385_v0  ;;  %v1403_v1 = vld [vmem:[#allocation2 + $0xc0] sm:$0xff] (!%p1912_p13) }
 0x1b2   : > { %v1451_v8 = vmax.f32 (!%p1912_p13), %v1419_v55, 0.0  ;;  %v1452_v17 = vmax.f32 (!%p1912_p13), %v1420_v2, 0.0  ;;  %v1453_v18 = vmax.f32 (!%p1912_p13), %v1421_v3, 0.0  ;;  %v1454_v11 = vmax.f32 (!%p1912_p13), %v1422_v5, 0.0  ;;  %v1400_v58 = vld [vmem:[#allocation2 + $0xa8] sm:$0xff] (!%p1912_p13) }
 0x1b3   : > { %1366 = vst [vmem:[#allocation2 + $0xb8] sm:$0xff] %v1334_v56  ;;  %v1425_v13 = vadd.f32 (!%p1912_p13), %v2816_v44, %v1386_v6  ;;  %v1455_v26 = vmax.f32 (!%p1912_p13), %v1423_v9, 0.0  ;;  %v1456_v24 = vmax.f32 (!%p1912_p13), %v1424_v10, 0.0  ;;  %v1426_v25 = vadd.f32 (!%p1912_p13), %v2816_v44, %v1387_v12  ;;  %v1404_v2 = vld [vmem:[#allocation2 + $0xc8] sm:$0xff] (!%p1912_p13)  ;;  %v1405_v6 = vld [vmem:[#allocation2 + $0xd0] sm:$0xff] (!%p1912_p13)  ;;  %v1406_v12 = vld [vmem:[#allocation2 + $0xd8] sm:$0xff] (!%p1912_p13) }
 0x1b4   : > { %v1983_v23 = vpack.c.bf16 %v1451_v8, %v1450_v7  ;;  %v1988_v28 = vpack.c.bf16 %v1453_v18, %v1452_v17  ;;  %v1427_v29 = vadd.f32 %v2816_v44, %v1388_v15  ;;  %v1428_v30 = vadd.f32 %v2816_v44, %v1389_v16 }
 0x1b5   : > { %v1457_v14 = vmax.f32 %v1425_v13, 0.0  ;;  %v1993_v19 = vpack.c.bf16 %v1455_v26, %v1454_v11  ;;  %v1458_v33 = vmax.f32 %v1426_v25, 0.0  ;;  %v1429_v34 = vadd.f32 %v2816_v44, %v1390_v21 }
 0x1b6   : > { %1984 = vst [vmem:[%s2705_s30] sm:$0xff] %v1983_v23   ;;  %v1430_v35 = vadd.f32 %v2816_v44, %v1391_v22  ;;  %2060 = vst [vmem:[%s2705_s30 + $0x8] sm:$0xff] %v1988_v28   ;;  %v1459_v40 = vmax.f32 %v1427_v29, 0.0  ;;  %v1460_v41 = vmax.f32 %v1428_v30, 0.0  ;;  %v1431_v42 = vadd.f32 %v2816_v44, %v1392_v27  ;;  %v1407_v11 = vld [vmem:[#allocation2 + $0xe0] sm:$0xff] }
 0x1b7   : > { %v1998_v39 = vpack.c.bf16 %v1457_v14, %v1456_v24  ;;  %2061 = vst [vmem:[%s2705_s30 + $0x10] sm:$0xff] %v1993_v19   ;;  %v1461_v46 = vmax.f32 %v1429_v34, 0.0  ;;  %v1432_v47 = vadd.f32 %v2816_v44, %v1393_v32  ;;  %v1433_v48 = vadd.f32 %v2816_v44, %v1394_v31  ;;  %v1409_v24 = vld [vmem:[#allocation2 + $0xf0] sm:$0xff]  ;;  %v1410_v25 = vld [vmem:[#allocation2 + $0xf8] sm:$0xff] }
 0x1b8   : > { %v1462_v37 = vmax.f32 %v1430_v35, 0.0  ;;  %v2003_v52 = vpack.c.bf16 %v1459_v40, %v1458_v33  ;;  %v1463_v50 = vmax.f32 %v1431_v42, 0.0  ;;  %v1434_v53 = vadd.f32 %v2816_v44, %v1395_v36  ;;  %v1401_v49 = vld [vmem:[#allocation2 + $0xb0] sm:$0xff]  ;;  %v1408_v13 = vld [vmem:[#allocation2 + $0xe8] sm:$0xff] }
 0x1b9   : > { %2062 = vst [vmem:[%s2705_s30 + $0x18] sm:$0xff] %v1998_v39   ;;  %v1435_v54 = vadd.f32 %v2816_v44, %v1396_v20  ;;  %v2008_v38 = vpack.c.bf16 %v1461_v46, %v1460_v41  ;;  %v1464_v43 = vmax.f32 %v1432_v47, 0.0  ;;  %v1465_v59 = vmax.f32 %v1433_v48, 0.0 }
 0x1ba   : > { %v1436_v56 = vadd.f32 %v2816_v44, %v1397_v45  ;;  %v1402_v60 = vld [vmem:[#allocation2 + $0xb8] sm:$0xff]  ;;  %2063 = vst [vmem:[%s2705_s30 + $0x20] sm:$0xff] %v2003_v52   ;;  %v2013_v61 = vpack.c.bf16 %v1463_v50, %v1462_v37  ;;  %v1466_v55 = vmax.f32 %v1434_v53, 0.0  ;;  %v1437_v63 = vadd.f32 %v2816_v44, %v1398_v51 }
 0x1bb   : > { %v1467_v62 = vmax.f32 %v1435_v54, 0.0  ;;  %2064 = vst [vmem:[%s2705_s30 + $0x28] sm:$0xff] %v2008_v38   ;;  %v2018_v3 = vpack.c.bf16 %v1465_v59, %v1464_v43  ;;  %v1438_v5 = vadd.f32 %v2816_v44, %v1399_v57  ;;  %v1439_v0 = vadd.f32 %v2816_v44, %v1400_v58 }
 0x1bc   : > { %v1468_v4 = vmax.f32 %v1436_v56, 0.0  ;;  %2065 = vst [vmem:[%s2705_s30 + $0x30] sm:$0xff] %v2013_v61   ;;  %v1469_v8 = vmax.f32 %v1437_v63, 0.0  ;;  %v1440_v9 = vadd.f32 %v2816_v44, %v1401_v49  ;;  %v1441_v10 = vadd.f32 %v2816_v44, %v1402_v60 }
 0x1bd   : > { %v2023_v7 = vpack.c.bf16 %v1467_v62, %v1466_v55  ;;  %2066 = vst [vmem:[%s2705_s30 + $0x38] sm:$0xff] %v2018_v3   ;;  %v1470_v15 = vmax.f32 %v1438_v5, 0.0  ;;  %v1471_v16 = vmax.f32 %v1439_v0, 0.0  ;;  %v1442_v17 = vadd.f32 %v2816_v44, %v1403_v1 }
 0x1be   : > { %v1443_v18 = vadd.f32 %v2816_v44, %v1404_v2  ;;  %v2028_v21 = vpack.c.bf16 %v1469_v8, %v1468_v4  ;;  %v1472_v22 = vmax.f32 %v1440_v9, 0.0  ;;  %v1473_v23 = vmax.f32 %v1441_v10, 0.0 }
 0x1bf   : > { %2067 = vst [vmem:[%s2705_s30 + $0x40] sm:$0xff] %v2023_v7   ;;  %v1444_v26 = vadd.f32 %v2816_v44, %v1405_v6  ;;  %v2033_v27 = vpack.c.bf16 %v1471_v16, %v1470_v15  ;;  %v1474_v28 = vmax.f32 %v1442_v17, 0.0  ;;  %v1445_v29 = vadd.f32 %v2816_v44, %v1406_v12 }
 0x1c0   : > { %v1475_v14 = vmax.f32 %v1443_v18, 0.0  ;;  %2068 = vst [vmem:[%s2705_s30 + $0x48] sm:$0xff] %v2028_v21   ;;  %v2038_v30 = vpack.c.bf16 %v1473_v23, %v1472_v22  ;;  %v1446_v31 = vadd.f32 %v2816_v44, %v1407_v11  ;;  %v1447_v19 = vadd.f32 %v2816_v44, %v1408_v13 }
 0x1c1   : > { %v1476_v32 = vmax.f32 %v1444_v26, 0.0  ;;  %2069 = vst [vmem:[%s2705_s30 + $0x50] sm:$0xff] %v2033_v27   ;;  %v1477_v34 = vmax.f32 %v1445_v29, 0.0  ;;  %v1448_v35 = vadd.f32 %v2816_v44, %v1409_v24  ;;  %v1449_v36 = vadd.f32 %v2816_v44, %v1410_v25 }
 0x1c2   : > { %v2043_v33 = vpack.c.bf16 %v1475_v14, %v1474_v28  ;;  %2070 = vst [vmem:[%s2705_s30 + $0x58] sm:$0xff] %v2038_v30   ;;  %v1478_v20 = vmax.f32 %v1446_v31, 0.0  ;;  %v1479_v39 = vmax.f32 %v1447_v19, 0.0 }
 0x1c3   : > { %v2048_v40 = vpack.c.bf16 %v1477_v34, %v1476_v32  ;;  %v1480_v41 = vmax.f32 %v1448_v35, 0.0  ;;  %v1481_v42 = vmax.f32 %v1449_v36, 0.0 }
 0x1c4   : > { %2071 = vst [vmem:[%s2705_s30 + $0x60] sm:$0xff] %v2043_v33   ;;  %v2053_v45 = vpack.c.bf16 %v1479_v39, %v1478_v20 }
 0x1c5   : > { %2072 = vst [vmem:[%s2705_s30 + $0x68] sm:$0xff] %v2048_v40   ;;  %v2058_v46 = vpack.c.bf16 %v1481_v42, %v1480_v41 }
 0x1c6   : > { %2073 = vst [vmem:[%s2705_s30 + $0x70] sm:$0xff] %v2053_v45  }
 0x1c7   : > { %2074 = vst [vmem:[%s2705_s30 + $0x78] sm:$0xff] %v2058_v46  }
 0x1c8 PF: > { %s13_s18 = sadd.s32 1, %s2477_s18   ;;  %s2891_s12 = smov %s2457_s13 }
 0x1c9   : > { %p10_p0 = scmp.ge.s32.totalorder %s13_s18, 10   ;;  %s2892_s13 = smov %s2551_s25 }
 0x1ca   : > { %s2893_s14 = smov %s2469_s16  ;;  %s2894_s15 = smov %s2473_s17 }
 0x1cb   : > { %s2895_s16 = smov %s2898_s19  ;;  %s2896_s17 = smov %s2902_s20 }
 0x1cc   :  { %12 = sbr.rel (!%p10_p0) target bundleno = 4 (0x4), region = 113 }

// kernel: model_forward.12
= control target key start
LH: loop header
LB: loop body
LE: loop exit
PB: predicated region body
PF: predicated region fallthrough
CT: control target
= control target key end

     0   :  { %s2637_s12 = smov 0   ;;  %s2639_s13 = smov 0   ;;  %s3036_s0 = inlined_call_operand.vmem [shape: bf16[128,1792], index: 0, kind: input, shape index: {}]   ;;  %s3037_s1 = inlined_call_operand.vmem [shape: bf16[1792,128], index: 1, kind: input, shape index: {}]   ;;  %s3038_s2 = inlined_call_operand.vmem [shape: f32[1,128], index: 2, kind: input, shape index: {}]   ;;  %s3039_s3 = inlined_call_operand.vmem [shape: bf16[128,128], index: 3, kind: output, shape index: {}]  }
   0x1   :  { %s2641_s14 = smov 0   ;;  %s2643_s15 = smov 0  }
   0x2   :  { %s2645_s16 = smov 0  }
   0x3 LB: > { %s25_s17 = sadd.s32 1, %s2610_s15  ;;  %p48_p1 = scmp.ne.s32.totalorder %s2602_s13, %s2598_s12  ;;  %s2614_s16 = sphi %s2645_s16, %s13_s16   ;;  %s2610_s15 = sphi %s2643_s15, %s3043_s15   ;;  %s2606_s14 = sphi %s2641_s14, %s3042_s14   ;;  %s2602_s13 = sphi %s2639_s13, %s3041_s13   ;;  %s2598_s12 = sphi %s2637_s12, %s3040_s12  }
   0x4   : > { %p26_p0 = scmp.ge.s32.totalorder %s25_s17, 2  ;;  %p49_p2 = scmp.eq.s32.totalorder %s2614_s16, 0 }
   0x5   : > { %s41_s19 = sadd.s32 1, %s2602_s13  ;;  %p1922_p5 = scmp.ge.s32.totalorder %s2614_s16, 2 }
   0x6   : > { %s3045_s17 = smov (%p26_p0, %s25_s17), 0  ;;  %p50_p3 = por %p49_p2, %p48_p1 }
   0x7   : > { %s37_s18 = ssub.s32 %s2610_s15, %s3045_s17  ;;  %162 = sbr.rel (%p1922_p5) target bundleno = 53 (0x35), region = 20 }
   0x8   : > { %p39_p4 = scmp.eq.s32.totalorder %s37_s18, 0 }
   0xa   : > { %s2672_s20 = scalar_select %p39_p4, %s2602_s13, %s41_s19  }
   0xe   : > { %165 = sbr.rel (!%p50_p3) target bundleno = 53 (0x35), region = 24  ;;  %s167_s21 = sand.u32 (%p50_p3), 1, %s2602_s13  }
   0xf   : > { %s2093_s22 = smul.u32 (%p50_p3), 28, %s2610_s15 }
  0x10   : > { %s2397_s23 = smul.u32 (%p50_p3), 448, %s167_s21 }
  0x11   : > { %s2680_s26 = scalar_lea.vmem (%p50_p3), %s3036_s0, %s2093_s22 }
  0x12   : > { %v190_v0 = vld [vmem:[%s2680_s26] sm:$0xff] (%p50_p3)  ;;  %v192_v1 = vld [vmem:[%s2680_s26 + $0x8] sm:$0xff] (%p50_p3)  ;;  %v194_v2 = vld [vmem:[%s2680_s26 + $0x10] sm:$0xff] (%p50_p3)  ;;  %s2685_s27 = scalar_lea.vmem (%p50_p3), [#allocation3], %s2397_s23 }
  0x13   : > { %191 = vst [vmem:[%s2685_s27] sm:$0xff] (%p50_p3), %v190_v0  ;;  %193 = vst [vmem:[%s2685_s27 + $0x8] sm:$0xff] (%p50_p3), %v192_v1  ;;  %v196_v3 = vld [vmem:[%s2680_s26 + $0x38] sm:$0xff] (%p50_p3)  ;;  %v198_v4 = vld [vmem:[%s2680_s26 + $0x40] sm:$0xff] (%p50_p3) }
  0x14   : > { %195 = vst [vmem:[%s2685_s27 + $0x10] sm:$0xff] (%p50_p3), %v194_v2  ;;  %v200_v5 = vld [vmem:[%s2680_s26 + $0x48] sm:$0xff] (%p50_p3)  ;;  %197 = vst [vmem:[%s2685_s27 + $0x1c] sm:$0xff] (%p50_p3), %v196_v3  ;;  %v202_v6 = vld [vmem:[%s2680_s26 + $0x70] sm:$0xff] (%p50_p3) }
  0x15   : > { %199 = vst [vmem:[%s2685_s27 + $0x24] sm:$0xff] %v198_v4  ;;  %201 = vst [vmem:[%s2685_s27 + $0x2c] sm:$0xff] %v200_v5  ;;  %v204_v7 = vld [vmem:[%s2680_s26 + $0x78] sm:$0xff]  ;;  %v206_v8 = vld [vmem:[%s2680_s26 + $0x80] sm:$0xff] }
  0x16   : > { %203 = vst [vmem:[%s2685_s27 + $0x38] sm:$0xff] %v202_v6  ;;  %205 = vst [vmem:[%s2685_s27 + $0x40] sm:$0xff] %v204_v7  ;;  %v208_v9 = vld [vmem:[%s2680_s26 + $0xa8] sm:$0xff]  ;;  %v210_v10 = vld [vmem:[%s2680_s26 + $0xb0] sm:$0xff] }
  0x17   : > { %207 = vst [vmem:[%s2685_s27 + $0x48] sm:$0xff] %v206_v8  ;;  %v212_v11 = vld [vmem:[%s2680_s26 + $0xb8] sm:$0xff]  ;;  %209 = vst [vmem:[%s2685_s27 + $0x54] sm:$0xff] %v208_v9  ;;  %v214_v12 = vld [vmem:[%s2680_s26 + $0xe0] sm:$0xff] }
  0x18   : > { %211 = vst [vmem:[%s2685_s27 + $0x5c] sm:$0xff] %v210_v10  ;;  %213 = vst [vmem:[%s2685_s27 + $0x64] sm:$0xff] %v212_v11  ;;  %v216_v13 = vld [vmem:[%s2680_s26 + $0xe8] sm:$0xff]  ;;  %v218_v14 = vld [vmem:[%s2680_s26 + $0xf0] sm:$0xff] }
  0x19   : > { %215 = vst [vmem:[%s2685_s27 + $0x70] sm:$0xff] %v214_v12  ;;  %217 = vst [vmem:[%s2685_s27 + $0x78] sm:$0xff] %v216_v13  ;;  %v220_v15 = vld [vmem:[%s2680_s26 + $0x118] sm:$0xff]  ;;  %v222_v16 = vld [vmem:[%s2680_s26 + $0x120] sm:$0xff] }
  0x1a   : > { %219 = vst [vmem:[%s2685_s27 + $0x80] sm:$0xff] %v218_v14  ;;  %v224_v17 = vld [vmem:[%s2680_s26 + $0x128] sm:$0xff]  ;;  %221 = vst [vmem:[%s2685_s27 + $0x8c] sm:$0xff] %v220_v15  ;;  %v226_v18 = vld [vmem:[%s2680_s26 + $0x150] sm:$0xff] }
  0x1b   : > { %223 = vst [vmem:[%s2685_s27 + $0x94] sm:$0xff] %v222_v16  ;;  %225 = vst [vmem:[%s2685_s27 + $0x9c] sm:$0xff] %v224_v17  ;;  %v228_v19 = vld [vmem:[%s2680_s26 + $0x158] sm:$0xff]  ;;  %v230_v20 = vld [vmem:[%s2680_s26 + $0x160] sm:$0xff] }
  0x1c   : > { %227 = vst [vmem:[%s2685_s27 + $0xa8] sm:$0xff] %v226_v18  ;;  %229 = vst [vmem:[%s2685_s27 + $0xb0] sm:$0xff] %v228_v19  ;;  %v232_v21 = vld [vmem:[%s2680_s26 + $0x188] sm:$0xff]  ;;  %v234_v22 = vld [vmem:[%s2680_s26 + $0x190] sm:$0xff] }
  0x1d   : > { %231 = vst [vmem:[%s2685_s27 + $0xb8] sm:$0xff] %v230_v20  ;;  %v236_v23 = vld [vmem:[%s2680_s26 + $0x198] sm:$0xff]  ;;  %233 = vst [vmem:[%s2685_s27 + $0xc4] sm:$0xff] %v232_v21  ;;  %v238_v24 = vld [vmem:[%s2680_s26 + $0x1c0] sm:$0xff] }
  0x1e   : > { %235 = vst [vmem:[%s2685_s27 + $0xcc] sm:$0xff] %v234_v22  ;;  %237 = vst [vmem:[%s2685_s27 + $0xd4] sm:$0xff] %v236_v23  ;;  %v240_v25 = vld [vmem:[%s2680_s26 + $0x1c8] sm:$0xff]  ;;  %v242_v26 = vld [vmem:[%s2680_s26 + $0x1d0] sm:$0xff] }
  0x1f   : > { %239 = vst [vmem:[%s2685_s27 + $0xe0] sm:$0xff] %v238_v24  ;;  %241 = vst [vmem:[%s2685_s27 + $0xe8] sm:$0xff] %v240_v25  ;;  %v244_v27 = vld [vmem:[%s2680_s26 + $0x1f8] sm:$0xff]  ;;  %v246_v28 = vld [vmem:[%s2680_s26 + $0x200] sm:$0xff] }
  0x20   : > { %243 = vst [vmem:[%s2685_s27 + $0xf0] sm:$0xff] %v242_v26  ;;  %v248_v29 = vld [vmem:[%s2680_s26 + $0x208] sm:$0xff]  ;;  %245 = vst [vmem:[%s2685_s27 + $0xfc] sm:$0xff] %v244_v27  ;;  %v250_v30 = vld [vmem:[%s2680_s26 + $0x230] sm:$0xff] }
  0x21   : > { %247 = vst [vmem:[%s2685_s27 + $0x104] sm:$0xff] %v246_v28  ;;  %249 = vst [vmem:[%s2685_s27 + $0x10c] sm:$0xff] %v248_v29  ;;  %v252_v31 = vld [vmem:[%s2680_s26 + $0x238] sm:$0xff]  ;;  %v254_v32 = vld [vmem:[%s2680_s26 + $0x240] sm:$0xff] }
  0x22   : > { %251 = vst [vmem:[%s2685_s27 + $0x118] sm:$0xff] %v250_v30  ;;  %253 = vst [vmem:[%s2685_s27 + $0x120] sm:$0xff] %v252_v31  ;;  %v256_v33 = vld [vmem:[%s2680_s26 + $0x268] sm:$0xff]  ;;  %v258_v34 = vld [vmem:[%s2680_s26 + $0x270] sm:$0xff] }
  0x23   : > { %255 = vst [vmem:[%s2685_s27 + $0x128] sm:$0xff] %v254_v32  ;;  %v260_v35 = vld [vmem:[%s2680_s26 + $0x278] sm:$0xff]  ;;  %257 = vst [vmem:[%s2685_s27 + $0x134] sm:$0xff] %v256_v33  ;;  %v262_v36 = vld [vmem:[%s2680_s26 + $0x2a0] sm:$0xff] }
  0x24   : > { %259 = vst [vmem:[%s2685_s27 + $0x13c] sm:$0xff] %v258_v34  ;;  %261 = vst [vmem:[%s2685_s27 + $0x144] sm:$0xff] %v260_v35  ;;  %v264_v37 = vld [vmem:[%s2680_s26 + $0x2a8] sm:$0xff]  ;;  %v266_v38 = vld [vmem:[%s2680_s26 + $0x2b0] sm:$0xff] }
  0x25   : > { %263 = vst [vmem:[%s2685_s27 + $0x150] sm:$0xff] %v262_v36  ;;  %265 = vst [vmem:[%s2685_s27 + $0x158] sm:$0xff] %v264_v37  ;;  %v268_v39 = vld [vmem:[%s2680_s26 + $0x2d8] sm:$0xff]  ;;  %v270_v40 = vld [vmem:[%s2680_s26 + $0x2e0] sm:$0xff] }
  0x26   : > { %267 = vst [vmem:[%s2685_s27 + $0x160] sm:$0xff] %v266_v38  ;;  %v272_v41 = vld [vmem:[%s2680_s26 + $0x2e8] sm:$0xff]  ;;  %269 = vst [vmem:[%s2685_s27 + $0x16c] sm:$0xff] %v268_v39  ;;  %v274_v42 = vld [vmem:[%s2680_s26 + $0x310] sm:$0xff] }
  0x27   : > { %271 = vst [vmem:[%s2685_s27 + $0x174] sm:$0xff] %v270_v40  ;;  %273 = vst [vmem:[%s2685_s27 + $0x17c] sm:$0xff] %v272_v41  ;;  %v276_v43 = vld [vmem:[%s2680_s26 + $0x318] sm:$0xff]  ;;  %v278_v44 = vld [vmem:[%s2680_s26 + $0x320] sm:$0xff] }
  0x28   : > { %275 = vst [vmem:[%s2685_s27 + $0x188] sm:$0xff] %v274_v42  ;;  %277 = vst [vmem:[%s2685_s27 + $0x190] sm:$0xff] %v276_v43  ;;  %v280_v45 = vld [vmem:[%s2680_s26 + $0x348] sm:$0xff]  ;;  %v282_v46 = vld [vmem:[%s2680_s26 + $0x350] sm:$0xff] }
  0x29   : > { %279 = vst [vmem:[%s2685_s27 + $0x198] sm:$0xff] %v278_v44  ;;  %v284_v47 = vld [vmem:[%s2680_s26 + $0x358] sm:$0xff]  ;;  %281 = vst [vmem:[%s2685_s27 + $0x1a4] sm:$0xff] %v280_v45  ;;  %v1926_v49 = vld [vmem:[%s2680_s26 + $0x50] sm:$0xf] }
  0x2a   : > { %283 = vst [vmem:[%s2685_s27 + $0x1ac] sm:$0xff] %v282_v46  ;;  %285 = vst [vmem:[%s2685_s27 + $0x1b4] sm:$0xff] %v284_v47  ;;  %v1924_v48 = vld [vmem:[%s2680_s26 + $0x18] sm:$0xf]  ;;  %v1928_v50 = vld [vmem:[%s2680_s26 + $0x88] sm:$0xf] }
  0x2b   : > { %1925 = vst [vmem:[%s2685_s27 + $0x18] sm:$0xf] %v1924_v48  ;;  %1927 = vst [vmem:[%s2685_s27 + $0x34] sm:$0xf] %v1926_v49  ;;  %v1930_v51 = vld [vmem:[%s2680_s26 + $0xc0] sm:$0xf] }
  0x2c   : > { %1929 = vst [vmem:[%s2685_s27 + $0x50] sm:$0xf] %v1928_v50  ;;  %v1932_v52 = vld [vmem:[%s2680_s26 + $0xf8] sm:$0xf]  ;;  %v1934_v53 = vld [vmem:[%s2680_s26 + $0x130] sm:$0xf] }
  0x2d   : > { %1931 = vst [vmem:[%s2685_s27 + $0x6c] sm:$0xf] %v1930_v51  ;;  %1933 = vst [vmem:[%s2685_s27 + $0x88] sm:$0xf] %v1932_v52  ;;  %v1936_v54 = vld [vmem:[%s2680_s26 + $0x168] sm:$0xf] }
  0x2e   : > { %1935 = vst [vmem:[%s2685_s27 + $0xa4] sm:$0xf] %v1934_v53  ;;  %v1938_v55 = vld [vmem:[%s2680_s26 + $0x1a0] sm:$0xf]  ;;  %v1940_v56 = vld [vmem:[%s2680_s26 + $0x1d8] sm:$0xf] }
  0x2f   : > { %1937 = vst [vmem:[%s2685_s27 + $0xc0] sm:$0xf] %v1936_v54  ;;  %1939 = vst [vmem:[%s2685_s27 + $0xdc] sm:$0xf] %v1938_v55  ;;  %v1942_v57 = vld [vmem:[%s2680_s26 + $0x210] sm:$0xf] }
  0x30   : > { %1941 = vst [vmem:[%s2685_s27 + $0xf8] sm:$0xf] %v1940_v56  ;;  %v1944_v58 = vld [vmem:[%s2680_s26 + $0x248] sm:$0xf]  ;;  %v1946_v59 = vld [vmem:[%s2680_s26 + $0x280] sm:$0xf] }
  0x31   : > { %1943 = vst [vmem:[%s2685_s27 + $0x114] sm:$0xf] %v1942_v57  ;;  %1945 = vst [vmem:[%s2685_s27 + $0x130] sm:$0xf] %v1944_v58  ;;  %v1948_v60 = vld [vmem:[%s2680_s26 + $0x2b8] sm:$0xf] }
  0x32   : > { %1947 = vst [vmem:[%s2685_s27 + $0x14c] sm:$0xf] %v1946_v59  ;;  %v1950_v61 = vld [vmem:[%s2680_s26 + $0x2f0] sm:$0xf]  ;;  %v1952_v62 = vld [vmem:[%s2680_s26 + $0x328] sm:$0xf] }
  0x33   : > { %1949 = vst [vmem:[%s2685_s27 + $0x168] sm:$0xf] %v1948_v60  ;;  %1951 = vst [vmem:[%s2685_s27 + $0x184] sm:$0xf] %v1950_v61  ;;  %v1954_v63 = vld [vmem:[%s2680_s26 + $0x360] sm:$0xf] }
  0x34   : > { %1953 = vst [vmem:[%s2685_s27 + $0x1a0] sm:$0xf] %v1952_v62  ;;  %1955 = vst [vmem:[%s2685_s27 + $0x1bc] sm:$0xf] %v1954_v63 }
  0x35 PF: > { %p1956_p6 = scmp.ge.s32.totalorder %s2614_s16, 1  ;;  %p341_p7 = scmp.lt.s32.totalorder %s2614_s16, 3 }
  0x37   : > { %p342_p8 = pnand %p1956_p6, %p341_p7 }
  0x38   : > { %s348_s28 = sand.u32 (!%p342_p8), 1, %s2598_s12   ;;  %s387_s29 = smul.u32 (!%p342_p8), 112, %s2606_s14 }
  0x39   : > { %345 = sbr.rel (%p342_p8) target bundleno = 466 (0x1d2), region = 54  ;;  %p1958_p10 = scmp.ne.s32.totalorder (!%p342_p8), %s2606_s14, 0 }
  0x3a   : > { %s2398_s30 = smul.u32 (!%p342_p8), 448, %s348_s28  ;;  %p388_p9 = scmp.lt.s32.totalorder (!%p342_p8), %s387_s29, 223 }
  0x3c   : > { %s2821_s8 = scalar_lea.vmem (!%p342_p8), [#allocation3], %s2398_s30 }
  0x40   : > { %s3047_s29 = smov (!%p388_p9, %s387_s29), 223  ;;  %412 = sbr.rel (%p1958_p10) target bundleno = 74 (0x4a), region = 62 }
  0x41   : > { %s1957_s4 = sshll.u32 %s3047_s29, 2  ;;  %v2616_v0 = vmov (!%p1958_p10), 0.0  }
  0x42   : > { %s2819_s7 = scalar_lea.vmem %s3037_s1, %s1957_s4  ;;  %413 = vst [vmem:[#allocation2] sm:$0xff] (!%p1958_p10), %v2616_v0  ;;  %414 = vst [vmem:[#allocation2 + $0x8] sm:$0xff] (!%p1958_p10), %v2616_v0 }
  0x43   : > { %415 = vst [vmem:[#allocation2 + $0x10] sm:$0xff] (!%p1958_p10), %v2616_v0  ;;  %416 = vst [vmem:[#allocation2 + $0x18] sm:$0xff] (!%p1958_p10), %v2616_v0 }
  0x44   : > { %417 = vst [vmem:[#allocation2 + $0x20] sm:$0xff] (!%p1958_p10), %v2616_v0  ;;  %418 = vst [vmem:[#allocation2 + $0x28] sm:$0xff] (!%p1958_p10), %v2616_v0 }
  0x45   : > { %419 = vst [vmem:[#allocation2 + $0x30] sm:$0xff] (!%p1958_p10), %v2616_v0  ;;  %420 = vst [vmem:[#allocation2 + $0x38] sm:$0xff] (!%p1958_p10), %v2616_v0 }
  0x46   : > { %421 = vst [vmem:[#allocation2 + $0x40] sm:$0xff] (!%p1958_p10), %v2616_v0  ;;  %422 = vst [vmem:[#allocation2 + $0x48] sm:$0xff] (!%p1958_p10), %v2616_v0 }
  0x47   : > { %423 = vst [vmem:[#allocation2 + $0x50] sm:$0xff] %v2616_v0  ;;  %424 = vst [vmem:[#allocation2 + $0x58] sm:$0xff] %v2616_v0 }
  0x48   : > { %425 = vst [vmem:[#allocation2 + $0x60] sm:$0xff] %v2616_v0  ;;  %426 = vst [vmem:[#allocation2 + $0x68] sm:$0xff] %v2616_v0 }
  0x49   : > { %427 = vst [vmem:[#allocation2 + $0x70] sm:$0xff] %v2616_v0  ;;  %428 = vst [vmem:[#allocation2 + $0x78] sm:$0xff] %v2616_v0 }
  0x4a PF: > { %v2440_v1 = vld [vmem:[%s2819_s7 + $0x40] sm:$0xff]   ;;  %v2444_v5 = vld [vmem:[%s2819_s7 + $0x48] sm:$0xff]   ;;  %v2448_v9 = vld [vmem:[%s2819_s7 + $0x50] sm:$0xff]   ;;  %p2071_p11 = scmp.ne.s32.totalorder %s2606_s14, 1 }
  0x4b   : > { %v2441_v2 = vld [vmem:[%s2819_s7 + $0xc0] sm:$0xff]   ;;  %2157 = vmatprep.subr.bf16.mxu0 %v2440_v1  ;;  %v2445_v6 = vld [vmem:[%s2819_s7 + $0xc8] sm:$0xff]   ;;  %v2449_v10 = vld [vmem:[%s2819_s7 + $0xd0] sm:$0xff]  }
  0x4c   : > { %v2442_v3 = vld [vmem:[%s2819_s7] sm:$0xff]   ;;  %2221 = vmatprep.subr.bf16.mxu1 %v2441_v2  ;;  %v2446_v7 = vld [vmem:[%s2819_s7 + $0x8] sm:$0xff]   ;;  %v2450_v11 = vld [vmem:[%s2819_s7 + $0x10] sm:$0xff]  }
  0x4d   : > { %v2443_v4 = vld [vmem:[%s2819_s7 + $0x80] sm:$0xff]   ;;  %2158 = vmatpush3.bf16.msra.mxu0 %v2442_v3  ;;  %v2447_v8 = vld [vmem:[%s2819_s7 + $0x88] sm:$0xff]   ;;  %v2451_v12 = vld [vmem:[%s2819_s7 + $0x90] sm:$0xff]  }
  0x4e   : > { %2222 = vmatpush3.bf16.msra.mxu1 %v2443_v4  ;;  %2159 = vmatprep.subr.bf16.mxu0 %v2444_v5  ;;  %v2452_v13 = vld [vmem:[%s2819_s7 + $0x58] sm:$0xff]   ;;  %v2456_v17 = vld [vmem:[%s2819_s7 + $0x60] sm:$0xff]   ;;  %v2460_v21 = vld [vmem:[%s2819_s7 + $0x68] sm:$0xff]  }
  0x4f   : > { %2223 = vmatprep.subr.bf16.mxu1 %v2445_v6  ;;  %v2453_v14 = vld [vmem:[%s2819_s7 + $0xd8] sm:$0xff]   ;;  %v2457_v18 = vld [vmem:[%s2819_s7 + $0xe0] sm:$0xff]   ;;  %v2461_v22 = vld [vmem:[%s2819_s7 + $0xe8] sm:$0xff]  }
  0x50   : > { %v2454_v15 = vld [vmem:[%s2819_s7 + $0x18] sm:$0xff]   ;;  %v2458_v19 = vld [vmem:[%s2819_s7 + $0x20] sm:$0xff]   ;;  %v2462_v23 = vld [vmem:[%s2819_s7 + $0x28] sm:$0xff]  }
  0x51   : > { %2160 = vmatpush3.bf16.msra.mxu0 %v2446_v7  ;;  %v2455_v16 = vld [vmem:[%s2819_s7 + $0x98] sm:$0xff]   ;;  %v2459_v20 = vld [vmem:[%s2819_s7 + $0xa0] sm:$0xff]   ;;  %v2463_v24 = vld [vmem:[%s2819_s7 + $0xa8] sm:$0xff]  }
  0x52   : > { %2224 = vmatpush3.bf16.msra.mxu1 %v2447_v8  ;;  %2161 = vmatprep.subr.bf16.mxu0 %v2448_v9  ;;  %v2464_v25 = vld [vmem:[%s2819_s7 + $0x70] sm:$0xff]   ;;  %v2468_v29 = vld [vmem:[%s2819_s7 + $0x78] sm:$0xff]   ;;  %v2474_v34 = vld [vmem:[%s2821_s8 + $0x4] ss:$28 sps:$4 sm:$0xff]  }
  0x53   : > { %2225 = vmatprep.subr.bf16.mxu1 %v2449_v10  ;;  %v2465_v26 = vld [vmem:[%s2819_s7 + $0xf0] sm:$0xff]   ;;  %v2469_v30 = vld [vmem:[%s2819_s7 + $0xf8] sm:$0xff]   ;;  %v2475_v35 = vld [vmem:[%s2821_s8 + $0x8] ss:$28 sps:$4 sm:$0xff]   ;;  %1277 = vmatprep.mubr.bf16.mxu0 %v2474_v34 }
  0x54   : > { %v2466_v27 = vld [vmem:[%s2819_s7 + $0x30] sm:$0xff]   ;;  %v2470_v31 = vld [vmem:[%s2819_s7 + $0x38] sm:$0xff]   ;;  %v2477_v36 = vld [vmem:[%s2821_s8 + $0xc] ss:$28 sps:$4 sm:$0xff]  }
  0x55   : > { %2162 = vmatpush3.bf16.msra.mxu0 %v2450_v11  ;;  %v2467_v28 = vld [vmem:[%s2819_s7 + $0xb0] sm:$0xff]   ;;  %v2471_v32 = vld [vmem:[%s2819_s7 + $0xb8] sm:$0xff]   ;;  %v2478_v37 = vld [vmem:[%s2819_s7 + $0x140] sm:$0xff]   ;;  %1374 = vmatprep.mubr.bf16.mxu1 %v2477_v36 }
  0x56   : > { %2226 = vmatpush3.bf16.msra.mxu1 %v2451_v12  ;;  %2163 = vmatprep.subr.bf16.mxu0 %v2452_v13  ;;  %v2472_v33 = vld [vmem:[%s2821_s8] ss:$28 sps:$4 sm:$0xff]   ;;  %v2484_v41 = vld [vmem:[%s2821_s8 + $0x38] ss:$28 sps:$4 sm:$0xff]   ;;  %v2486_v43 = vld [vmem:[%s2819_s7 + $0x148] sm:$0xff]  }
  0x57   : > { %2227 = vmatprep.subr.bf16.mxu1 %v2453_v14  ;;  %v2479_v38 = vld [vmem:[%s2819_s7 + $0x100] sm:$0xff]   ;;  %v2480_v39 = vld [vmem:[%s2821_s8 + $0x3c] ss:$28 sps:$4 sm:$0xff]   ;;  %v2487_v44 = vld [vmem:[%s2819_s7 + $0x108] sm:$0xff]  }
  0x58   : > { %v2482_v40 = vld [vmem:[%s2821_s8 + $0x44] ss:$28 sps:$4 sm:$0xff]   ;;  %v2488_v45 = vld [vmem:[%s2821_s8 + $0x74] ss:$28 sps:$4 sm:$0xff]   ;;  %v2490_v46 = vld [vmem:[%s2821_s8 + $0x7c] ss:$28 sps:$4 sm:$0xff]  }
  0x59   : > { %2164 = vmatpush3.bf16.msra.mxu0 %v2454_v15  ;;  %v2485_v42 = vld [vmem:[%s2821_s8 + $0x40] ss:$28 sps:$4 sm:$0xff]   ;;  %v2494_v47 = vld [vmem:[%s2819_s7 + $0x150] sm:$0xff]   ;;  %v2496_v51 = vld [vmem:[%s2821_s8 + $0xac] ss:$28 sps:$4 sm:$0xff]  }
  0x5a   : > { %2228 = vmatpush3.bf16.msra.mxu1 %v2455_v16  ;;  %2165 = vmatprep.subr.bf16.mxu0 %v2456_v17  ;;  %v2495_v48 = vld [vmem:[%s2819_s7 + $0x110] sm:$0xff]   ;;  %v2502_v53 = vld [vmem:[%s2819_s7 + $0x158] sm:$0xff]   ;;  %v2500_v55 = vld [vmem:[%s2821_s8 + $0xa8] ss:$28 sps:$4 sm:$0xff]  }
  0x5b   : > { %2229 = vmatprep.subr.bf16.mxu1 %v2457_v18  ;;  %v2492_v49 = vld [vmem:[%s2821_s8 + $0x70] ss:$28 sps:$4 sm:$0xff]   ;;  %v2493_v50 = vld [vmem:[%s2821_s8 + $0x78] ss:$28 sps:$4 sm:$0xff]   ;;  %v2510_v56 = vld [vmem:[%s2819_s7 + $0x160] sm:$0xff]  }
  0x5c   : > { %v2498_v52 = vld [vmem:[%s2821_s8 + $0xb4] ss:$28 sps:$4 sm:$0xff]   ;;  %v2503_v54 = vld [vmem:[%s2819_s7 + $0x118] sm:$0xff]   ;;  %v2511_v58 = vld [vmem:[%s2819_s7 + $0x120] sm:$0xff]  }
  0x5d   : > { %2166 = vmatpush3.bf16.msra.mxu0 %v2458_v19  ;;  %v2501_v57 = vld [vmem:[%s2821_s8 + $0xb0] ss:$28 sps:$4 sm:$0xff]   ;;  %v2512_v59 = vld [vmem:[%s2819_s7 + $0x180] sm:$0xff]   ;;  %v2513_v4 = vld [vmem:[%s2821_s8 + $0x11c] ss:$28 sps:$4 sm:$0xff]  }
  0x5e   : > { %2230 = vmatpush3.bf16.msra.mxu1 %v2459_v20  ;;  %2167 = vmatprep.subr.bf16.mxu0 %v2460_v21  ;;  %v2504_v60 = vld [vmem:[%s2821_s8 + $0xe4] ss:$28 sps:$4 sm:$0xff]   ;;  %v2506_v61 = vld [vmem:[%s2821_s8 + $0xec] ss:$28 sps:$4 sm:$0xff]   ;;  %v2522_v1 = vld [vmem:[%s2819_s7 + $0x190] sm:$0xff]  }
  0x5f   : > { %2231 = vmatprep.subr.bf16.mxu1 %v2461_v22  ;;  %v2519_v62 = vld [vmem:[%s2819_s7 + $0x168] sm:$0xff]   ;;  %v2508_v2 = vld [vmem:[%s2821_s8 + $0xe0] ss:$28 sps:$4 sm:$0xff]   ;;  %v2529_v6 = vld [vmem:[%s2819_s7 + $0x170] sm:$0xff]  }
  0x60   : > { %v2520_v63 = vld [vmem:[%s2819_s7 + $0x188] sm:$0xff]   ;;  %v2515_v5 = vld [vmem:[%s2821_s8 + $0x124] ss:$28 sps:$4 sm:$0xff]   ;;  %v2530_v7 = vld [vmem:[%s2819_s7 + $0x198] sm:$0xff]  }
  0x61   : > { %2168 = vmatpush3.bf16.msra.mxu0 %v2462_v23  ;;  %v2521_v0 = vld [vmem:[%s2819_s7 + $0x128] sm:$0xff]   ;;  %v2531_v8 = vld [vmem:[%s2819_s7 + $0x130] sm:$0xff]   ;;  %v2532_v9 = vld [vmem:[%s2819_s7 + $0x1a0] sm:$0xff]  }
  0x62   : > { %2232 = vmatpush3.bf16.msra.mxu1 %v2463_v24  ;;  %2169 = vmatprep.subr.bf16.mxu0 %v2464_v25  ;;  %v2509_v3 = vld [vmem:[%s2821_s8 + $0xe8] ss:$28 sps:$4 sm:$0xff]   ;;  %v2517_v10 = vld [vmem:[%s2821_s8 + $0x118] ss:$28 sps:$4 sm:$0xff]   ;;  %v2518_v11 = vld [vmem:[%s2821_s8 + $0x120] ss:$28 sps:$4 sm:$0xff]  }
  0x63   : > { %2233 = vmatprep.subr.bf16.mxu1 %v2465_v26  ;;  %v2523_v12 = vld [vmem:[%s2821_s8 + $0x154] ss:$28 sps:$4 sm:$0xff]   ;;  %v2525_v13 = vld [vmem:[%s2821_s8 + $0x15c] ss:$28 sps:$4 sm:$0xff]   ;;  %v2540_v15 = vld [vmem:[%s2819_s7 + $0x1a8] sm:$0xff]  }
  0x64   : > { %v2539_v14 = vld [vmem:[%s2819_s7 + $0x178] sm:$0xff]   ;;  %v2542_v17 = vld [vmem:[%s2819_s7 + $0x1b0] sm:$0xff]   ;;  %v2533_v20 = vld [vmem:[%s2821_s8 + $0x18c] ss:$28 sps:$4 sm:$0xff]  }
  0x65   : > { %2170 = vmatpush3.bf16.msra.mxu0 %v2466_v27  ;;  %v2541_v16 = vld [vmem:[%s2819_s7 + $0x138] sm:$0xff]   ;;  %v2527_v18 = vld [vmem:[%s2821_s8 + $0x150] ss:$28 sps:$4 sm:$0xff]   ;;  %v2537_v23 = vld [vmem:[%s2821_s8 + $0x188] ss:$28 sps:$4 sm:$0xff]  }
  0x66   : > { %2234 = vmatpush3.bf16.msra.mxu1 %v2467_v28  ;;  %2171 = vmatprep.subr.bf16.mxu0 %v2468_v29  ;;  %v2528_v19 = vld [vmem:[%s2821_s8 + $0x158] ss:$28 sps:$4 sm:$0xff]   ;;  %v2538_v24 = vld [vmem:[%s2821_s8 + $0x190] ss:$28 sps:$4 sm:$0xff]  }
  0x67   : > { %2235 = vmatprep.subr.bf16.mxu1 %v2469_v30  ;;  %v2535_v21 = vld [vmem:[%s2821_s8 + $0x194] ss:$28 sps:$4 sm:$0xff]   ;;  %v2546_v22 = vld [vmem:[%s2819_s7 + $0x1b8] sm:$0xff]   ;;  %v2549_v29 = vld [vmem:[%s2821_s8 + $0x4c] ss:$28 sps:$4 sm:$0xff]  }
  0x68   : > { %v2545_v25 = vld [vmem:[%s2821_s8 + $0x14] ss:$28 sps:$4 sm:$0xff]   ;;  %v2555_v30 = vld [vmem:[%s2821_s8 + $0x88] ss:$28 sps:$4 sm:$0xff]   ;;  %v2557_v36 = vld [vmem:[%s2821_s8 + $0xbc] ss:$28 sps:$4 sm:$0xff]  }
  0x69   : > { %2172 = vmatpush3.bf16.msra.mxu0 %v2470_v31  ;;  %v2547_v26 = vld [vmem:[%s2821_s8 + $0x18] ss:$28 sps:$4 sm:$0xff]   ;;  %v2543_v27 = vld [vmem:[%s2821_s8 + $0x10] ss:$28 sps:$4 sm:$0xff]   ;;  %v2551_v31 = vld [vmem:[%s2821_s8 + $0x48] ss:$28 sps:$4 sm:$0xff]  }
  0x6a   : > { %2236 = vmatpush3.bf16.msra.mxu1 %v2471_v32  ;;  %2285 = vmatprep.subr.bf16.mxu0 %v2478_v37  ;;  %v2548_v28 = vld [vmem:[%s2821_s8 + $0x50] ss:$28 sps:$4 sm:$0xff]   ;;  %v2552_v32 = vld [vmem:[%s2821_s8 + $0x84] ss:$28 sps:$4 sm:$0xff]   ;;  %v2563_v34 = vld [vmem:[%s2821_s8 + $0xf8] ss:$28 sps:$4 sm:$0xff]  }
  0x6b   : > { %2365 = vmatprep.subr.bf16.mxu1 %v2512_v59  ;;  %v2564_v37 = vld [vmem:[%s2821_s8 + $0x130] ss:$28 sps:$4 sm:$0xff]  }
  0x6c   : > { %1278 = vmatmul.mubr.bf16.vlgmr.msra.gmra.mrb[0].mxu0 %v2472_v33  ;;  %v2556_v33 = vld [vmem:[%s2821_s8 + $0xc0] ss:$28 sps:$4 sm:$0xff]  }
  0x6d   : > { %1375 = vmatmul.mubr.bf16.vlgmr.msra.gmra.mrb[0].mxu1 %v2475_v35  ;;  %2286 = vmatpush3.bf16.msra.mxu0 %v2479_v38  ;;  %v2554_v35 = vld [vmem:[%s2821_s8 + $0x80] ss:$28 sps:$4 sm:$0xff]   ;;  %v2571_v38 = vld [vmem:[%s2821_s8 + $0x168] ss:$28 sps:$4 sm:$0xff]  }
  0x6e   : > { %1285 = vmatprep.mubr.bf16.mxu0 %v2480_v39  ;;  %1382 = vmatprep.mubr.bf16.mxu1 %v2482_v40  ;;  %v2559_v39 = vld [vmem:[%s2821_s8 + $0xb8] ss:$28 sps:$4 sm:$0xff]  }
  0x6f   : > { %2287 = vmatprep.subr.bf16.mxu0 %v2486_v43  ;;  %2366 = vmatpush3.bf16.msra.mxu1 %v2512_v59  ;;  %v2560_v40 = vld [vmem:[%s2821_s8 + $0xf4] ss:$28 sps:$4 sm:$0xff]   ;;  %v2565_v43 = vld [vmem:[%s2821_s8 + $0x12c] ss:$28 sps:$4 sm:$0xff]  }
  0x70   : > { %2367 = vmatprep.subr.bf16.mxu1 %v2520_v63 }
  0x71   : > { %2288 = vmatpush3.bf16.msra.mxu0 %v2487_v44  ;;  %v2567_v44 = vld [vmem:[%s2821_s8 + $0x128] ss:$28 sps:$4 sm:$0xff]  }
  0x72   : > { %2289 = vmatprep.subr.bf16.mxu0 %v2494_v47  ;;  %v2573_v47 = vld [vmem:[%s2821_s8 + $0x19c] ss:$28 sps:$4 sm:$0xff]  }
  0x73   : > { %2368 = vmatpush3.bf16.msra.mxu1 %v2520_v63 }
  0x74   : > { %1286 = vmatmul.mubr.bf16.gmra.mrb[4].mxu0 %v2484_v41  ;;  %2369 = vmatprep.subr.bf16.mxu1 %v2522_v1  ;;  %v2572_v41 = vld [vmem:[%s2821_s8 + $0x1a0] ss:$28 sps:$4 sm:$0xff]  }
  0x75   : > { %1383 = vmatmul.mubr.bf16.gmra.mrb[4].mxu1 %v2485_v42  ;;  %1293 = vmatprep.mubr.bf16.mxu0 %v2488_v45  ;;  %v2562_v42 = vld [vmem:[%s2821_s8 + $0xf0] ss:$28 sps:$4 sm:$0xff]   ;;  %v2568_v45 = vld [vmem:[%s2821_s8 + $0x164] ss:$28 sps:$4 sm:$0xff]  }
  0x76   : > { %1390 = vmatprep.mubr.bf16.mxu1 %v2490_v46  ;;  %2290 = vmatpush3.bf16.msra.mxu0 %v2495_v48  ;;  %v2570_v46 = vld [vmem:[%s2821_s8 + $0x160] ss:$28 sps:$4 sm:$0xff]   ;;  %v2575_v48 = vld [vmem:[%s2821_s8 + $0x198] ss:$28 sps:$4 sm:$0xff]  }
  0x77   : > { %2291 = vmatprep.subr.bf16.mxu0 %v2502_v53  ;;  %2370 = vmatpush3.bf16.msra.mxu1 %v2522_v1 }
  0x78   : > { %2371 = vmatprep.subr.bf16.mxu1 %v2530_v7 }
  0x7a   : > { %2292 = vmatpush3.bf16.msra.mxu0 %v2503_v54 }
  0x7b   : > { %2293 = vmatprep.subr.bf16.mxu0 %v2510_v56  ;;  %2372 = vmatpush3.bf16.msra.mxu1 %v2530_v7 }
  0x7c   : > { %1294 = vmatmul.mubr.bf16.gmra.mrb[8].mxu0 %v2492_v49  ;;  %2373 = vmatprep.subr.bf16.mxu1 %v2532_v9 }
  0x7d   : > { %1391 = vmatmul.mubr.bf16.gmra.mrb[8].mxu1 %v2493_v50  ;;  %1301 = vmatprep.mubr.bf16.mxu0 %v2496_v51 }
  0x7e   : > { %1398 = vmatprep.mubr.bf16.mxu1 %v2498_v52  ;;  %2294 = vmatpush3.bf16.msra.mxu0 %v2511_v58 }
  0x7f   : > { %2295 = vmatprep.subr.bf16.mxu0 %v2519_v62  ;;  %2374 = vmatpush3.bf16.msra.mxu1 %v2532_v9 }
  0x80   : > { %2375 = vmatprep.subr.bf16.mxu1 %v2540_v15 }
  0x82   : > { %2296 = vmatpush3.bf16.msra.mxu0 %v2521_v0 }
  0x83   : > { %2297 = vmatprep.subr.bf16.mxu0 %v2529_v6  ;;  %2376 = vmatpush3.bf16.msra.mxu1 %v2540_v15 }
  0x84   : > { %1302 = vmatmul.mubr.bf16.gmra.mrb[12].mxu0 %v2500_v55  ;;  %2377 = vmatprep.subr.bf16.mxu1 %v2542_v17 }
  0x85   : > { %1399 = vmatmul.mubr.bf16.gmra.mrb[12].mxu1 %v2501_v57  ;;  %1309 = vmatprep.mubr.bf16.mxu0 %v2504_v60 }
  0x86   : > { %1406 = vmatprep.mubr.bf16.mxu1 %v2506_v61  ;;  %2298 = vmatpush3.bf16.msra.mxu0 %v2531_v8 }
  0x87   : > { %2299 = vmatprep.subr.bf16.mxu0 %v2539_v14  ;;  %2378 = vmatpush3.bf16.msra.mxu1 %v2542_v17 }
  0x88   : > { %2379 = vmatprep.subr.bf16.mxu1 %v2546_v22 }
  0x8a   : > { %2300 = vmatpush3.bf16.msra.mxu0 %v2541_v16 }
  0x8b   : > { %2380 = vmatpush3.bf16.msra.mxu1 %v2546_v22 }
  0x8c   : > { %1310 = vmatmul.mubr.bf16.gmra.mrb[16].mxu0 %v2508_v2 }
  0x8d   : > { %1407 = vmatmul.mubr.bf16.gmra.mrb[16].mxu1 %v2509_v3  ;;  %1317 = vmatprep.mubr.bf16.mxu0 %v2513_v4 }
  0x8e   : > { %1414 = vmatprep.mubr.bf16.mxu1 %v2515_v5 }
  0x94   : > { %1318 = vmatmul.mubr.bf16.gmra.mrb[20].mxu0 %v2517_v10 }
  0x95   : > { %1415 = vmatmul.mubr.bf16.gmra.mrb[20].mxu1 %v2518_v11  ;;  %1325 = vmatprep.mubr.bf16.mxu0 %v2523_v12 }
  0x96   : > { %1422 = vmatprep.mubr.bf16.mxu1 %v2525_v13 }
  0x9c   : > { %1326 = vmatmul.mubr.bf16.gmra.mrb[24].mxu0 %v2527_v18 }
  0x9d   : > { %1423 = vmatmul.mubr.bf16.gmra.mrb[24].mxu1 %v2528_v19  ;;  %1333 = vmatprep.mubr.bf16.mxu0 %v2533_v20 }
  0x9e   : > { %1430 = vmatprep.mubr.bf16.mxu1 %v2535_v21 }
  0xa4   : > { %1334 = vmatmul.mubr.bf16.gmra.mrb[28].mxu0 %v2537_v23 }
  0xa5   : > { %1431 = vmatmul.mubr.bf16.gmra.mrb[28].mxu1 %v2538_v24  ;;  %1471 = vmatprep.mubr.bf16.mxu0 %v2545_v25 }
  0xa6   : > { %2381 = vmatprep.mubr.bf16.mxu1 %v2547_v26 }
  0xac   : > { %1472 = vmatmul.mubr.bf16.vlgmr.msra.gmra.mrb[32].mxu0 %v2543_v27 }
  0xad   : > { %2382 = vmatmul.mubr.bf16.vlgmr.msra.gmra.mrb[32].mxu1 %v2548_v28  ;;  %1479 = vmatprep.mubr.bf16.mxu0 %v2549_v29 }
  0xae   : > { %2385 = vmatprep.mubr.bf16.mxu1 %v2555_v30 }
  0xb4   : > { %1480 = vmatmul.mubr.bf16.gmra.mrb[36].mxu0 %v2551_v31 }
  0xb5   : > { %1487 = vmatprep.mubr.bf16.mxu0 %v2552_v32  ;;  %2386 = vmatmul.mubr.bf16.gmra.mrb[36].mxu1 %v2556_v33 }
  0xb6   : > { %2389 = vmatprep.mubr.bf16.mxu1 %v2563_v34 }
  0xbc   : > { %1488 = vmatmul.mubr.bf16.gmra.mrb[40].mxu0 %v2554_v35 }
  0xbd   : > { %1495 = vmatprep.mubr.bf16.mxu0 %v2557_v36  ;;  %2390 = vmatmul.mubr.bf16.gmra.mrb[40].mxu1 %v2564_v37 }
  0xbe   : > { %2393 = vmatprep.mubr.bf16.mxu1 %v2571_v38 }
  0xc4   : > { %1496 = vmatmul.mubr.bf16.gmra.mrb[44].mxu0 %v2559_v39 }
  0xc5   : > { %1503 = vmatprep.mubr.bf16.mxu0 %v2560_v40  ;;  %2394 = vmatmul.mubr.bf16.gmra.mrb[44].mxu1 %v2572_v41 }
  0xcc   : > { %1504 = vmatmul.mubr.bf16.gmra.mrb[48].mxu0 %v2562_v42 }
  0xcd   : > { %1511 = vmatprep.mubr.bf16.mxu0 %v2565_v43 }
  0xd4   : > { %1512 = vmatmul.mubr.bf16.gmra.mrb[52].mxu0 %v2567_v44 }
  0xd5   : > { %1519 = vmatprep.mubr.bf16.mxu0 %v2568_v45 }
  0xdc   : > { %1520 = vmatmul.mubr.bf16.gmra.mrb[56].mxu0 %v2570_v46 }
  0xdd   : > { %1527 = vmatprep.mubr.bf16.mxu0 %v2573_v47 }
  0xe4   : > { %1528 = vmatmul.mubr.bf16.gmra.mrb[60].mxu0 %v2575_v48 }
 0x13f   : > { %v2173_v49 = vpop.f32.mrb[0].mxu0 }
 0x140   : > { %v2237_v50 = vpop.f32.mrb[0].mxu1  ;;  %v2174_v51 = vpop.f32.mrb[1].mxu0 }
 0x141   : > { %v2175_v52 = vadd.f32 %v2174_v51, %v2173_v49  ;;  %v2238_v53 = vpop.f32.mrb[1].mxu1  ;;  %v2176_v54 = vpop.f32.mrb[2].mxu0 }
 0x142   : > { %v2239_v55 = vadd.f32 %v2238_v53, %v2237_v50  ;;  %v2240_v56 = vpop.f32.mrb[2].mxu1  ;;  %v2177_v57 = vpop.f32.mrb[3].mxu0 }
 0x143   : > { %v2178_v58 = vadd.f32 %v2177_v57, %v2176_v54  ;;  %v2241_v59 = vpop.f32.mrb[3].mxu1 }
 0x144   : > { %v2936_v60 = vadd.f32 %v2239_v55, %v2175_v52  ;;  %v2242_v61 = vadd.f32 %v2241_v59, %v2240_v56 }
 0x146   : > { %v2938_v62 = vadd.f32 %v2242_v61, %v2178_v58 }
 0x147   : > { %v2179_v63 = vpop.f32.mrb[4].mxu0 }
 0x148   : > { %v2243_v0 = vpop.f32.mrb[4].mxu1  ;;  %v2180_v1 = vpop.f32.mrb[5].mxu0 }
 0x149   : > { %v2181_v2 = vadd.f32 %v2180_v1, %v2179_v63  ;;  %v2244_v3 = vpop.f32.mrb[5].mxu1  ;;  %v2182_v4 = vpop.f32.mrb[6].mxu0 }
 0x14a   : > { %v2245_v5 = vadd.f32 %v2244_v3, %v2243_v0  ;;  %v2246_v6 = vpop.f32.mrb[6].mxu1  ;;  %v2183_v7 = vpop.f32.mrb[7].mxu0 }
 0x14b   : > { %v2184_v8 = vadd.f32 %v2183_v7, %v2182_v4  ;;  %v2247_v9 = vpop.f32.mrb[7].mxu1 }
 0x14c   : > { %v2940_v10 = vadd.f32 %v2245_v5, %v2181_v2  ;;  %v2248_v11 = vadd.f32 %v2247_v9, %v2246_v6 }
 0x14e   : > { %v2942_v12 = vadd.f32 %v2248_v11, %v2184_v8 }
 0x14f   : > { %v2185_v13 = vpop.f32.mrb[8].mxu0 }
 0x150   : > { %v2249_v14 = vpop.f32.mrb[8].mxu1  ;;  %v2186_v15 = vpop.f32.mrb[9].mxu0 }
 0x151   : > { %v2187_v16 = vadd.f32 %v2186_v15, %v2185_v13  ;;  %v2250_v17 = vpop.f32.mrb[9].mxu1  ;;  %v2188_v18 = vpop.f32.mrb[10].mxu0 }
 0x152   : > { %v2251_v19 = vadd.f32 %v2250_v17, %v2249_v14  ;;  %v2252_v20 = vpop.f32.mrb[10].mxu1  ;;  %v2189_v21 = vpop.f32.mrb[11].mxu0 }
 0x153   : > { %v2190_v22 = vadd.f32 %v2189_v21, %v2188_v18  ;;  %v2253_v23 = vpop.f32.mrb[11].mxu1 }
 0x154   : > { %v2944_v24 = vadd.f32 %v2251_v19, %v2187_v16  ;;  %v2254_v25 = vadd.f32 %v2253_v23, %v2252_v20 }
 0x156   : > { %v2946_v26 = vadd.f32 %v2254_v25, %v2190_v22 }
 0x157   : > { %v2191_v27 = vpop.f32.mrb[12].mxu0 }
 0x158   : > { %v2255_v28 = vpop.f32.mrb[12].mxu1  ;;  %v2192_v29 = vpop.f32.mrb[13].mxu0 }
 0x159   : > { %v2193_v30 = vadd.f32 %v2192_v29, %v2191_v27  ;;  %v2256_v31 = vpop.f32.mrb[13].mxu1  ;;  %v2194_v32 = vpop.f32.mrb[14].mxu0 }
 0x15a   : > { %v2257_v33 = vadd.f32 %v2256_v31, %v2255_v28  ;;  %v2258_v34 = vpop.f32.mrb[14].mxu1  ;;  %v2195_v35 = vpop.f32.mrb[15].mxu0 }
 0x15b   : > { %v2196_v36 = vadd.f32 %v2195_v35, %v2194_v32  ;;  %v2259_v37 = vpop.f32.mrb[15].mxu1 }
 0x15c   : > { %v2948_v38 = vadd.f32 %v2257_v33, %v2193_v30  ;;  %v2260_v39 = vadd.f32 %v2259_v37, %v2258_v34 }
 0x15e   : > { %v2950_v40 = vadd.f32 %v2260_v39, %v2196_v36 }
 0x15f   : > { %v2197_v41 = vpop.f32.mrb[16].mxu0 }
 0x160   : > { %v2261_v42 = vpop.f32.mrb[16].mxu1  ;;  %v2198_v43 = vpop.f32.mrb[17].mxu0 }
 0x161   : > { %v2199_v44 = vadd.f32 %v2198_v43, %v2197_v41  ;;  %v2262_v45 = vpop.f32.mrb[17].mxu1  ;;  %v2200_v46 = vpop.f32.mrb[18].mxu0 }
 0x162   : > { %v2263_v47 = vadd.f32 %v2262_v45, %v2261_v42  ;;  %v2264_v48 = vpop.f32.mrb[18].mxu1  ;;  %v2201_v49 = vpop.f32.mrb[19].mxu0 }
 0x163   : > { %v2202_v50 = vadd.f32 %v2201_v49, %v2200_v46  ;;  %v2265_v51 = vpop.f32.mrb[19].mxu1 }
 0x164   : > { %v2952_v52 = vadd.f32 %v2263_v47, %v2199_v44  ;;  %v2266_v53 = vadd.f32 %v2265_v51, %v2264_v48 }
 0x166   : > { %v2954_v54 = vadd.f32 %v2266_v53, %v2202_v50  ;;  %v429_v53 = vld [vmem:[#allocation2] sm:$0xff] }
 0x167   : > { %v2203_v55 = vpop.f32.mrb[20].mxu0 }
 0x168   : > { %v2267_v56 = vpop.f32.mrb[20].mxu1  ;;  %v2204_v57 = vpop.f32.mrb[21].mxu0 }
 0x169   : > { %v2205_v58 = vadd.f32 %v2204_v57, %v2203_v55  ;;  %v2268_v59 = vpop.f32.mrb[21].mxu1  ;;  %v2206_v61 = vpop.f32.mrb[22].mxu0  ;;  %v430_v57 = vld [vmem:[#allocation2 + $0x8] sm:$0xff] }
 0x16a   : > { %v2269_v63 = vadd.f32 %v2268_v59, %v2267_v56  ;;  %v2270_v0 = vpop.f32.mrb[22].mxu1  ;;  %v2207_v1 = vpop.f32.mrb[23].mxu0 }
 0x16b   : > { %v2208_v2 = vadd.f32 %v2207_v1, %v2206_v61  ;;  %v2271_v3 = vpop.f32.mrb[23].mxu1 }
 0x16c   : > { %v2956_v4 = vadd.f32 %v2269_v63, %v2205_v58  ;;  %v2272_v5 = vadd.f32 %v2271_v3, %v2270_v0 }
 0x16e   : > { %v2958_v6 = vadd.f32 %v2272_v5, %v2208_v2 }
 0x16f   : > { %v2209_v7 = vpop.f32.mrb[24].mxu0 }
 0x170   : > { %v2273_v8 = vpop.f32.mrb[24].mxu1  ;;  %v2210_v9 = vpop.f32.mrb[25].mxu0 }
 0x171   : > { %v2211_v11 = vadd.f32 %v2210_v9, %v2209_v7  ;;  %v2274_v13 = vpop.f32.mrb[25].mxu1  ;;  %v2212_v14 = vpop.f32.mrb[26].mxu0 }
 0x172   : > { %v2275_v15 = vadd.f32 %v2274_v13, %v2273_v8  ;;  %v2276_v16 = vpop.f32.mrb[26].mxu1  ;;  %v2213_v17 = vpop.f32.mrb[27].mxu0  ;;  %v431_v13 = vld [vmem:[#allocation2 + $0x10] sm:$0xff] }
 0x173   : > { %v2214_v18 = vadd.f32 %v2213_v17, %v2212_v14  ;;  %v2277_v19 = vpop.f32.mrb[27].mxu1 }
 0x174   : > { %v2960_v20 = vadd.f32 %v2275_v15, %v2211_v11  ;;  %v2278_v21 = vadd.f32 %v2277_v19, %v2276_v16  ;;  %v432_v15 = vld [vmem:[#allocation2 + $0x18] sm:$0xff] }
 0x176   : > { %v2962_v22 = vadd.f32 %v2278_v21, %v2214_v18 }
 0x177   : > { %v2215_v23 = vpop.f32.mrb[28].mxu0 }
 0x178   : > { %v2279_v25 = vpop.f32.mrb[28].mxu1  ;;  %v2216_v27 = vpop.f32.mrb[29].mxu0 }
 0x179   : > { %v2217_v28 = vadd.f32 %v2216_v27, %v2215_v23  ;;  %v2280_v29 = vpop.f32.mrb[29].mxu1  ;;  %v2218_v30 = vpop.f32.mrb[30].mxu0 }
 0x17a   : > { %v2281_v31 = vadd.f32 %v2280_v29, %v2279_v25  ;;  %v2282_v32 = vpop.f32.mrb[30].mxu1  ;;  %v2219_v33 = vpop.f32.mrb[31].mxu0 }
 0x17b   : > { %v2220_v34 = vadd.f32 %v2219_v33, %v2218_v30  ;;  %v2283_v35 = vpop.f32.mrb[31].mxu1 }
 0x17c   : > { %v2964_v36 = vadd.f32 %v2281_v31, %v2217_v28  ;;  %v2284_v37 = vadd.f32 %v2283_v35, %v2282_v32  ;;  %v434_v35 = vld [vmem:[#allocation2 + $0x28] sm:$0xff] }
 0x17e   : > { %v2966_v39 = vadd.f32 %v2284_v37, %v2220_v34 }
 0x17f   : > { %v2301_v41 = vpop.f32.mrb[32].mxu0 }
 0x180   : > { %v2302_v42 = vpop.f32.mrb[33].mxu0  ;;  %v2383_v43 = vpop.f32.mrb[32].mxu1 }
 0x181   : > { %v2303_v44 = vadd.f32 %v2302_v42, %v2301_v41  ;;  %v2304_v45 = vpop.f32.mrb[34].mxu0  ;;  %v1570_v46 = vpop.f32.mrb[33].mxu1 }
 0x182   : > { %v2305_v47 = vpop.f32.mrb[35].mxu0  ;;  %v2384_v48 = vpop.f32.mrb[34].mxu1 }
 0x183   : > { %v2306_v49 = vadd.f32 %v2305_v47, %v2304_v45  ;;  %v1474_v50 = vadd.f32 %v2303_v44, %v2936_v60  ;;  %v1573_v51 = vpop.f32.mrb[35].mxu1 }
 0x185   : > { %v1571_v55 = vadd.f32 %v1570_v46, %v1474_v50  ;;  %v1477_v56 = vadd.f32 %v2306_v49, %v2938_v62 }
 0x187   : > { %v1633_v58 = vadd.f32 %v1571_v55, %v429_v53  ;;  %v1574_v59 = vadd.f32 %v1573_v51, %v1477_v56  ;;  %v2307_v61 = vpop.f32.mrb[36].mxu0  ;;  %v435_v53 = vld [vmem:[#allocation2 + $0x30] sm:$0xff] }
 0x188   : > { %v2308_v63 = vpop.f32.mrb[37].mxu0  ;;  %v2387_v0 = vpop.f32.mrb[36].mxu1 }
 0x189   : > { %1649 = vst [vmem:[#allocation2] sm:$0xff] %v1633_v58  ;;  %v1634_v1 = vadd.f32 %v1574_v59, %v430_v57  ;;  %v2309_v2 = vadd.f32 %v2308_v63, %v2307_v61  ;;  %v2310_v3 = vpop.f32.mrb[38].mxu0  ;;  %v1586_v5 = vpop.f32.mrb[37].mxu1  ;;  %v436_v57 = vld [vmem:[#allocation2 + $0x38] sm:$0xff] }
 0x18a   : > { %v2311_v7 = vpop.f32.mrb[39].mxu0  ;;  %v2388_v8 = vpop.f32.mrb[38].mxu1 }
 0x18b   : > { %1650 = vst [vmem:[#allocation2 + $0x8] sm:$0xff] %v1634_v1  ;;  %v1482_v60 = vadd.f32 %v2309_v2, %v2940_v10  ;;  %v2312_v9 = vadd.f32 %v2311_v7, %v2310_v3  ;;  %v1589_v11 = vpop.f32.mrb[39].mxu1 }
 0x18d   : > { %v1579_v62 = vadd.f32 %v2383_v43, %v1482_v60  ;;  %v1485_v14 = vadd.f32 %v2312_v9, %v2942_v12  ;;  %v433_v12 = vld [vmem:[#allocation2 + $0x20] sm:$0xff] }
 0x18e   : > { %v437_v60 = vld [vmem:[#allocation2 + $0x40] sm:$0xff] }
 0x18f   : > { %v1635_v16 = vadd.f32 %v1579_v62, %v431_v13  ;;  %v1582_v17 = vadd.f32 %v2384_v48, %v1485_v14  ;;  %v2313_v18 = vpop.f32.mrb[40].mxu0 }
 0x190   : > { %v2314_v19 = vpop.f32.mrb[41].mxu0  ;;  %v2972_v21 = vpop.f32.mrb[40].mxu1 }
 0x191   : > { %1651 = vst [vmem:[#allocation2 + $0x10] sm:$0xff] %v1635_v16  ;;  %v1636_v23 = vadd.f32 %v1582_v17, %v432_v15  ;;  %v2315_v25 = vadd.f32 %v2314_v19, %v2313_v18  ;;  %v2316_v27 = vpop.f32.mrb[42].mxu0  ;;  %v1602_v28 = vpop.f32.mrb[41].mxu1 }
 0x192   : > { %v2317_v29 = vpop.f32.mrb[43].mxu0  ;;  %v2392_v10 = vpop.f32.mrb[42].mxu1 }
 0x193   : > { %1652 = vst [vmem:[#allocation2 + $0x18] sm:$0xff] %v1636_v23  ;;  %v2318_v30 = vadd.f32 %v2317_v29, %v2316_v27  ;;  %v1490_v31 = vadd.f32 %v2315_v25, %v2944_v24  ;;  %v1605_v32 = vpop.f32.mrb[43].mxu1  ;;  %v439_v23 = vld [vmem:[#allocation2 + $0x50] sm:$0xff] }
 0x195   : > { %v1587_v33 = vadd.f32 %v1586_v5, %v1490_v31  ;;  %v1493_v34 = vadd.f32 %v2318_v30, %v2946_v26 }
 0x197   : > { %v1637_v37 = vadd.f32 %v1587_v33, %v433_v12  ;;  %v1590_v41 = vadd.f32 %v1589_v11, %v1493_v34  ;;  %v2319_v42 = vpop.f32.mrb[44].mxu0  ;;  %v438_v11 = vld [vmem:[#allocation2 + $0x48] sm:$0xff] }
 0x198   : > { %v2320_v43 = vpop.f32.mrb[45].mxu0  ;;  %v2976_v44 = vpop.f32.mrb[44].mxu1 }
 0x199   : > { %1653 = vst [vmem:[#allocation2 + $0x20] sm:$0xff] %v1637_v37  ;;  %v1638_v45 = vadd.f32 %v1590_v41, %v434_v35  ;;  %v2321_v46 = vadd.f32 %v2320_v43, %v2319_v42  ;;  %v2322_v47 = vpop.f32.mrb[46].mxu0  ;;  %v1618_v48 = vpop.f32.mrb[45].mxu1  ;;  %v441_v35 = vld [vmem:[#allocation2 + $0x60] sm:$0xff]  ;;  %v442_v41 = vld [vmem:[#allocation2 + $0x68] sm:$0xff] }
 0x19a   : > { %v2323_v49 = vpop.f32.mrb[47].mxu0  ;;  %v2978_v50 = vpop.f32.mrb[46].mxu1 }
 0x19b   : > { %1654 = vst [vmem:[#allocation2 + $0x28] sm:$0xff] %v1638_v45  ;;  %v1498_v24 = vadd.f32 %v2321_v46, %v2948_v38  ;;  %v2324_v51 = vadd.f32 %v2323_v49, %v2322_v47  ;;  %v1621_v26 = vpop.f32.mrb[47].mxu1 }
 0x19d   : > { %v1595_v55 = vadd.f32 %v2387_v0, %v1498_v24  ;;  %v1501_v56 = vadd.f32 %v2324_v51, %v2950_v40 }
 0x19f   : > { %v1639_v58 = vadd.f32 %v1595_v55, %v435_v53  ;;  %v1598_v59 = vadd.f32 %v2388_v8, %v1501_v56  ;;  %v2325_v61 = vpop.f32.mrb[48].mxu0  ;;  %v443_v53 = vld [vmem:[#allocation2 + $0x70] sm:$0xff] }
 0x1a0   : > { %v2326_v63 = vpop.f32.mrb[49].mxu0 }
 0x1a1   : > { %1655 = vst [vmem:[#allocation2 + $0x30] sm:$0xff] %v1639_v58  ;;  %v1640_v1 = vadd.f32 %v1598_v59, %v436_v57  ;;  %v2327_v2 = vadd.f32 %v2326_v63, %v2325_v61  ;;  %v2328_v3 = vpop.f32.mrb[50].mxu0  ;;  %v1669_v57 = vld [vmem:[#allocation2] sm:$0xff] (!%p2071_p11)  ;;  %v1670_v58 = vld [vmem:[#allocation2 + $0x8] sm:$0xff] (!%p2071_p11)  ;;  %v1671_v61 = vld [vmem:[#allocation2 + $0x10] sm:$0xff] (!%p2071_p11) }
 0x1a2   : > { %v2329_v5 = vpop.f32.mrb[51].mxu0  ;;  %v1673_v63 = vld [vmem:[#allocation2 + $0x20] sm:$0xff] (!%p2071_p11) }
 0x1a3   : > { %1656 = vst [vmem:[#allocation2 + $0x38] sm:$0xff] %v1640_v1  ;;  %v2330_v7 = vadd.f32 %v2329_v5, %v2328_v3  ;;  %v1506_v38 = vadd.f32 %v2327_v2, %v2952_v52 }
 0x1a5   : > { %v1603_v9 = vadd.f32 %v1602_v28, %v1506_v38  ;;  %v1509_v0 = vadd.f32 %v2330_v7, %v2954_v54  ;;  %v440_v54 = vld [vmem:[#allocation2 + $0x58] sm:$0xff] }
 0x1a7   : > { %v1641_v40 = vadd.f32 %v1603_v9, %v437_v60  ;;  %v1606_v13 = vadd.f32 %v1605_v32, %v1509_v0  ;;  %v2331_v62 = vpop.f32.mrb[52].mxu0 }
 0x1a8   : > { %v2332_v8 = vpop.f32.mrb[53].mxu0  ;;  %v1675_v5 = vld [vmem:[#allocation2 + $0x30] sm:$0xff] (!%p2071_p11) }
 0x1a9   : > { %1657 = vst [vmem:[#allocation2 + $0x40] sm:$0xff] %v1641_v40  ;;  %v1642_v14 = vadd.f32 %v1606_v13, %v438_v11  ;;  %v2333_v15 = vadd.f32 %v2332_v8, %v2331_v62  ;;  %v2334_v16 = vpop.f32.mrb[54].mxu0 }
 0x1aa   : > { %v2335_v17 = vpop.f32.mrb[55].mxu0  ;;  %v1676_v7 = vld [vmem:[#allocation2 + $0x38] sm:$0xff] (!%p2071_p11) }
 0x1ab   : > { %1658 = vst [vmem:[#allocation2 + $0x48] sm:$0xff] %v1642_v14  ;;  %v1514_v18 = vadd.f32 %v2333_v15, %v2956_v4  ;;  %v2336_v19 = vadd.f32 %v2335_v17, %v2334_v16 }
 0x1ad   : > { %v1611_v52 = vadd.f32 %v2972_v21, %v1514_v18  ;;  %v1517_v25 = vadd.f32 %v2336_v19, %v2958_v6 }
 0x1af   : > { %v1643_v27 = vadd.f32 %v1611_v52, %v439_v23  ;;  %v1614_v28 = vadd.f32 %v2392_v10, %v1517_v25  ;;  %v2337_v29 = vpop.f32.mrb[56].mxu0 }
 0x1b0   : > { %v2338_v30 = vpop.f32.mrb[57].mxu0  ;;  %v1677_v11 = vld [vmem:[#allocation2 + $0x40] sm:$0xff] (!%p2071_p11) }
 0x1b1   : > { %1659 = vst [vmem:[#allocation2 + $0x50] sm:$0xff] %v1643_v27  ;;  %v1644_v31 = vadd.f32 %v1614_v28, %v440_v54  ;;  %v2339_v32 = vadd.f32 %v2338_v30, %v2337_v29  ;;  %v2340_v12 = vpop.f32.mrb[58].mxu0 }
 0x1b2   : > { %v2341_v33 = vpop.f32.mrb[59].mxu0  ;;  %v1678_v40 = vld [vmem:[#allocation2 + $0x48] sm:$0xff] (!%p2071_p11) }
 0x1b3   : > { %1660 = vst [vmem:[#allocation2 + $0x58] sm:$0xff] %v1644_v31  ;;  %v2342_v34 = vadd.f32 %v2341_v33, %v2340_v12  ;;  %v1522_v4 = vadd.f32 %v2339_v32, %v2960_v20 }
 0x1b5   : > { %v1619_v37 = vadd.f32 %v1618_v48, %v1522_v4  ;;  %v1525_v21 = vadd.f32 %v2342_v34, %v2962_v22  ;;  %v444_v22 = vld [vmem:[#allocation2 + $0x78] sm:$0xff] }
 0x1b7   : > { %v1645_v6 = vadd.f32 %v1619_v37, %v441_v35  ;;  %v1622_v42 = vadd.f32 %v1621_v26, %v1525_v21  ;;  %v2343_v43 = vpop.f32.mrb[60].mxu0 }
 0x1b8   : > { %v2344_v10 = vpop.f32.mrb[61].mxu0  ;;  %v1679_v13 = vld [vmem:[#allocation2 + $0x50] sm:$0xff] (!%p2071_p11) }
 0x1b9   : > { %1661 = vst [vmem:[#allocation2 + $0x60] sm:$0xff] %v1645_v6  ;;  %v1646_v45 = vadd.f32 %v1622_v42, %v442_v41  ;;  %v2345_v46 = vadd.f32 %v2344_v10, %v2343_v43  ;;  %v2346_v47 = vpop.f32.mrb[62].mxu0 }
 0x1ba   : > { %v2347_v49 = vpop.f32.mrb[63].mxu0  ;;  %v1680_v16 = vld [vmem:[#allocation2 + $0x58] sm:$0xff] (!%p2071_p11) }
 0x1bb   : > { %1662 = vst [vmem:[#allocation2 + $0x68] sm:$0xff] %v1646_v45  ;;  %v1530_v24 = vadd.f32 %v2345_v46, %v2964_v36  ;;  %v2348_v51 = vadd.f32 %v2347_v49, %v2346_v47  ;;  %v2072_v36 = vld [vmem:[%s3038_s2] ss:$0 sm:$0xff] (!%p2071_p11) }
 0x1bc   : > { %v1692_v59 = vadd.f32 (!%p2071_p11), %v2072_v36, %v1669_v57  ;;  %v1694_v1 = vadd.f32 (!%p2071_p11), %v2072_v36, %v1671_v61  ;;  %v1696_v3 = vadd.f32 (!%p2071_p11), %v2072_v36, %v1673_v63  ;;  %v1698_v0 = vadd.f32 (!%p2071_p11), %v2072_v36, %v1675_v5 }
 0x1bd   : > { %v1627_v20 = vadd.f32 %v2976_v44, %v1530_v24  ;;  %v1533_v48 = vadd.f32 %v2348_v51, %v2966_v39  ;;  %1668 = sbr.rel (%p2071_p11) target bundleno = 466 (0x1d2), region = 66  ;;  %v1693_v44 = vadd.f32 (!%p2071_p11), %v2072_v36, %v1670_v58  ;;  %v1672_v39 = vld [vmem:[#allocation2 + $0x18] sm:$0xff] (!%p2071_p11)  ;;  %v1699_v15 = vadd.f32 (!%p2071_p11), %v2072_v36, %v1676_v7 }
 0x1be   : > { %v1695_v2 = vadd.f32 (!%p2071_p11), %v2072_v36, %v1672_v39  ;;  %v1708_v38 = vmax.f32 (!%p2071_p11), %v1692_v59, 0.0  ;;  %v1710_v62 = vmax.f32 (!%p2071_p11), %v1694_v1, 0.0  ;;  %v1712_v14 = vmax.f32 (!%p2071_p11), %v1696_v3, 0.0 }
 0x1bf   : > { %v1647_v55 = vadd.f32 %v1627_v20, %v443_v53  ;;  %v1630_v26 = vadd.f32 %v2978_v50, %v1533_v48  ;;  %v1674_v50 = vld [vmem:[#allocation2 + $0x28] sm:$0xff] (!%p2071_p11)  ;;  %v1709_v60 = vmax.f32 (!%p2071_p11), %v1693_v44, 0.0  ;;  %v1714_v23 = vmax.f32 (!%p2071_p11), %v1698_v0, 0.0 }
 0x1c0   : > { %v1697_v9 = vadd.f32 (!%p2071_p11), %v2072_v36, %v1674_v50  ;;  %v1711_v8 = vmax.f32 (!%p2071_p11), %v1695_v2, 0.0  ;;  %v1681_v17 = vld [vmem:[#allocation2 + $0x60] sm:$0xff] (!%p2071_p11)  ;;  %v1700_v52 = vadd.f32 (!%p2071_p11), %v2072_v36, %v1677_v11  ;;  %v1715_v27 = vmax.f32 (!%p2071_p11), %v1699_v15, 0.0 }
 0x1c1   : > { %1663 = vst [vmem:[#allocation2 + $0x70] sm:$0xff] %v1647_v55  ;;  %v1648_v56 = vadd.f32 %v1630_v26, %v444_v22  ;;  %v2113_v18 = vpack.c.bf16 (!%p2071_p11), %v1709_v60, %v1708_v38  ;;  %v1701_v28 = vadd.f32 (!%p2071_p11), %v2072_v36, %v1678_v40  ;;  %v1702_v29 = vadd.f32 (!%p2071_p11), %v2072_v36, %v1679_v13 }
 0x1c2   : > { %v1713_v19 = vmax.f32 (!%p2071_p11), %v1697_v9, 0.0  ;;  %v1682_v25 = vld [vmem:[#allocation2 + $0x68] sm:$0xff] (!%p2071_p11)  ;;  %v2118_v54 = vpack.c.bf16 (!%p2071_p11), %v1711_v8, %v1710_v62  ;;  %v1716_v12 = vmax.f32 (!%p2071_p11), %v1700_v52, 0.0  ;;  %v1703_v33 = vadd.f32 (!%p2071_p11), %v2072_v36, %v1680_v16 }
 0x1c3   : > { %1664 = vst [vmem:[#allocation2 + $0x78] sm:$0xff] %v1648_v56  ;;  %2114 = vst [vmem:[%s3039_s3] sm:$0xff] (!%p2071_p11), %v2113_v18   ;;  %v1704_v34 = vadd.f32 (!%p2071_p11), %v2072_v36, %v1681_v17  ;;  %v2128_v4 = vpack.c.bf16 (!%p2071_p11), %v1715_v27, %v1714_v23  ;;  %v1717_v35 = vmax.f32 (!%p2071_p11), %v1701_v28, 0.0  ;;  %v1718_v37 = vmax.f32 (!%p2071_p11), %v1702_v29, 0.0 }
 0x1c4   : > { %v2123_v32 = vpack.c.bf16 %v1713_v19, %v1712_v14  ;;  %2150 = vst [vmem:[%s3039_s3 + $0x8] sm:$0xff] %v2118_v54   ;;  %v1705_v21 = vadd.f32 %v2072_v36, %v1682_v25  ;;  %v1719_v41 = vmax.f32 %v1703_v33, 0.0 }
 0x1c5   : > { %v1720_v6 = vmax.f32 %v1704_v34, 0.0  ;;  %2152 = vst [vmem:[%s3039_s3 + $0x18] sm:$0xff] %v2128_v4   ;;  %v2133_v10 = vpack.c.bf16 %v1717_v35, %v1716_v12 }
 0x1c6   : > { %2151 = vst [vmem:[%s3039_s3 + $0x10] sm:$0xff] %v2123_v32   ;;  %v1721_v45 = vmax.f32 %v1705_v21, 0.0  ;;  %v2138_v46 = vpack.c.bf16 %v1719_v41, %v1718_v37 }
 0x1c7   : > { %2153 = vst [vmem:[%s3039_s3 + $0x20] sm:$0xff] %v2133_v10  }
 0x1c8   : > { %v1683_v30 = vld [vmem:[#allocation2 + $0x70] sm:$0xff]  ;;  %v2143_v24 = vpack.c.bf16 %v1721_v45, %v1720_v6  ;;  %2154 = vst [vmem:[%s3039_s3 + $0x28] sm:$0xff] %v2138_v46  }
 0x1c9   : > { %v1706_v42 = vadd.f32 %v2072_v36, %v1683_v30 }
 0x1ca   : > { %v1684_v31 = vld [vmem:[#allocation2 + $0x78] sm:$0xff]  ;;  %2155 = vst [vmem:[%s3039_s3 + $0x30] sm:$0xff] %v2143_v24  }
 0x1cb   : > { %v1707_v43 = vadd.f32 %v2072_v36, %v1684_v31  ;;  %v1722_v47 = vmax.f32 %v1706_v42, 0.0 }
 0x1cd   : > { %v1723_v49 = vmax.f32 %v1707_v43, 0.0 }
 0x1cf   : > { %v2148_v51 = vpack.c.bf16 %v1723_v49, %v1722_v47 }
 0x1d1   : > { %2156 = vst [vmem:[%s3039_s3 + $0x38] sm:$0xff] %v2148_v51  }
 0x1d2 PF: > { %s13_s16 = sadd.s32 1, %s2614_s16   ;;  %s3040_s12 = smov %s2602_s13 }
 0x1d3   : > { %p10_p12 = scmp.ge.s32.totalorder %s13_s16, 4   ;;  %s3041_s13 = smov %s2672_s20 }
 0x1d4   : > { %s3042_s14 = smov %s2610_s15  ;;  %s3043_s15 = smov %s3045_s17 }
 0x1d5   :  { %12 = sbr.rel (!%p10_p12) target bundleno = 3 (0x3), region = 113 }

// kernel: model_forward.13
= control target key start
LH: loop header
LB: loop body
LE: loop exit
PB: predicated region body
PF: predicated region fallthrough
CT: control target
= control target key end

     0   :  { %s2808_s15 = smov 0   ;;  %s2810_s16 = smov 0   ;;  %s3249_s0 = inlined_call_operand.vmem [shape: bf16[128,1792], index: 0, kind: input, shape index: {}]   ;;  %s3250_s1 = inlined_call_operand.vmem [shape: bf16[1792,128], index: 1, kind: input, shape index: {}]   ;;  %s3251_s2 = inlined_call_operand.vmem [shape: f32[1,128], index: 2, kind: input, shape index: {}]   ;;  %s3252_s3 = inlined_call_operand.vmem [shape: bf16[128,128], index: 3, kind: input, shape index: {}]   ;;  %s3253_s4 = inlined_call_operand.vmem [shape: bf16[128,128], index: 4, kind: output, shape index: {}]  }
   0x1   :  { %s2812_s17 = smov 0   ;;  %s2814_s18 = smov 0  }
   0x2   :  { %s2816_s19 = smov 0  }
   0x3 LB: > { %s26_s20 = sadd.s32 1, %s2776_s18  ;;  %p49_p1 = scmp.ne.s32.totalorder %s2768_s16, %s2764_s15  ;;  %s2780_s19 = sphi %s2816_s19, %s14_s19   ;;  %s2776_s18 = sphi %s2814_s18, %s3257_s18   ;;  %s2772_s17 = sphi %s2812_s17, %s3256_s17   ;;  %s2768_s16 = sphi %s2810_s16, %s3255_s16   ;;  %s2764_s15 = sphi %s2808_s15, %s3254_s15  }
   0x4   : > { %p27_p0 = scmp.ge.s32.totalorder %s26_s20, 2  ;;  %p50_p2 = scmp.eq.s32.totalorder %s2780_s19, 0 }
   0x5   : > { %s42_s22 = sadd.s32 1, %s2768_s16  ;;  %p2049_p5 = scmp.ge.s32.totalorder %s2780_s19, 2 }
   0x6   : > { %s3259_s20 = smov (%p27_p0, %s26_s20), 0  ;;  %p51_p3 = por %p50_p2, %p49_p1 }
   0x7   : > { %s38_s21 = ssub.s32 %s2776_s18, %s3259_s20  ;;  %203 = sbr.rel (%p2049_p5) target bundleno = 53 (0x35), region = 24 }
   0x8   : > { %p40_p4 = scmp.eq.s32.totalorder %s38_s21, 0 }
   0xa   : > { %s2843_s23 = scalar_select %p40_p4, %s2768_s16, %s42_s22  }
   0xe   : > { %206 = sbr.rel (!%p51_p3) target bundleno = 53 (0x35), region = 28  ;;  %s208_s24 = sand.u32 (%p51_p3), 1, %s2768_s16  }
   0xf   : > { %s2220_s25 = smul.u32 (%p51_p3), 28, %s2776_s18 }
  0x10   : > { %s2563_s26 = smul.u32 (%p51_p3), 448, %s208_s24 }
  0x11   : > { %s2851_s29 = scalar_lea.vmem (%p51_p3), %s3249_s0, %s2220_s25 }
  0x12   : > { %v231_v0 = vld [vmem:[%s2851_s29] sm:$0xff] (%p51_p3)  ;;  %v233_v1 = vld [vmem:[%s2851_s29 + $0x8] sm:$0xff] (%p51_p3)  ;;  %v235_v2 = vld [vmem:[%s2851_s29 + $0x10] sm:$0xff] (%p51_p3)  ;;  %s2856_s30 = scalar_lea.vmem (%p51_p3), [#allocation3], %s2563_s26 }
  0x13   : > { %232 = vst [vmem:[%s2856_s30] sm:$0xff] (%p51_p3), %v231_v0  ;;  %234 = vst [vmem:[%s2856_s30 + $0x8] sm:$0xff] (%p51_p3), %v233_v1  ;;  %v237_v3 = vld [vmem:[%s2851_s29 + $0x38] sm:$0xff] (%p51_p3)  ;;  %v239_v4 = vld [vmem:[%s2851_s29 + $0x40] sm:$0xff] (%p51_p3) }
  0x14   : > { %236 = vst [vmem:[%s2856_s30 + $0x10] sm:$0xff] (%p51_p3), %v235_v2  ;;  %v241_v5 = vld [vmem:[%s2851_s29 + $0x48] sm:$0xff] (%p51_p3)  ;;  %238 = vst [vmem:[%s2856_s30 + $0x1c] sm:$0xff] (%p51_p3), %v237_v3  ;;  %v243_v6 = vld [vmem:[%s2851_s29 + $0x70] sm:$0xff] (%p51_p3) }
  0x15   : > { %240 = vst [vmem:[%s2856_s30 + $0x24] sm:$0xff] %v239_v4  ;;  %242 = vst [vmem:[%s2856_s30 + $0x2c] sm:$0xff] %v241_v5  ;;  %v245_v7 = vld [vmem:[%s2851_s29 + $0x78] sm:$0xff]  ;;  %v247_v8 = vld [vmem:[%s2851_s29 + $0x80] sm:$0xff] }
  0x16   : > { %244 = vst [vmem:[%s2856_s30 + $0x38] sm:$0xff] %v243_v6  ;;  %246 = vst [vmem:[%s2856_s30 + $0x40] sm:$0xff] %v245_v7  ;;  %v249_v9 = vld [vmem:[%s2851_s29 + $0xa8] sm:$0xff]  ;;  %v251_v10 = vld [vmem:[%s2851_s29 + $0xb0] sm:$0xff] }
  0x17   : > { %248 = vst [vmem:[%s2856_s30 + $0x48] sm:$0xff] %v247_v8  ;;  %v253_v11 = vld [vmem:[%s2851_s29 + $0xb8] sm:$0xff]  ;;  %250 = vst [vmem:[%s2856_s30 + $0x54] sm:$0xff] %v249_v9  ;;  %v255_v12 = vld [vmem:[%s2851_s29 + $0xe0] sm:$0xff] }
  0x18   : > { %252 = vst [vmem:[%s2856_s30 + $0x5c] sm:$0xff] %v251_v10  ;;  %254 = vst [vmem:[%s2856_s30 + $0x64] sm:$0xff] %v253_v11  ;;  %v257_v13 = vld [vmem:[%s2851_s29 + $0xe8] sm:$0xff]  ;;  %v259_v14 = vld [vmem:[%s2851_s29 + $0xf0] sm:$0xff] }
  0x19   : > { %256 = vst [vmem:[%s2856_s30 + $0x70] sm:$0xff] %v255_v12  ;;  %258 = vst [vmem:[%s2856_s30 + $0x78] sm:$0xff] %v257_v13  ;;  %v261_v15 = vld [vmem:[%s2851_s29 + $0x118] sm:$0xff]  ;;  %v263_v16 = vld [vmem:[%s2851_s29 + $0x120] sm:$0xff] }
  0x1a   : > { %260 = vst [vmem:[%s2856_s30 + $0x80] sm:$0xff] %v259_v14  ;;  %v265_v17 = vld [vmem:[%s2851_s29 + $0x128] sm:$0xff]  ;;  %262 = vst [vmem:[%s2856_s30 + $0x8c] sm:$0xff] %v261_v15  ;;  %v267_v18 = vld [vmem:[%s2851_s29 + $0x150] sm:$0xff] }
  0x1b   : > { %264 = vst [vmem:[%s2856_s30 + $0x94] sm:$0xff] %v263_v16  ;;  %266 = vst [vmem:[%s2856_s30 + $0x9c] sm:$0xff] %v265_v17  ;;  %v269_v19 = vld [vmem:[%s2851_s29 + $0x158] sm:$0xff]  ;;  %v271_v20 = vld [vmem:[%s2851_s29 + $0x160] sm:$0xff] }
  0x1c   : > { %268 = vst [vmem:[%s2856_s30 + $0xa8] sm:$0xff] %v267_v18  ;;  %270 = vst [vmem:[%s2856_s30 + $0xb0] sm:$0xff] %v269_v19  ;;  %v273_v21 = vld [vmem:[%s2851_s29 + $0x188] sm:$0xff]  ;;  %v275_v22 = vld [vmem:[%s2851_s29 + $0x190] sm:$0xff] }
  0x1d   : > { %272 = vst [vmem:[%s2856_s30 + $0xb8] sm:$0xff] %v271_v20  ;;  %v277_v23 = vld [vmem:[%s2851_s29 + $0x198] sm:$0xff]  ;;  %274 = vst [vmem:[%s2856_s30 + $0xc4] sm:$0xff] %v273_v21  ;;  %v279_v24 = vld [vmem:[%s2851_s29 + $0x1c0] sm:$0xff] }
  0x1e   : > { %276 = vst [vmem:[%s2856_s30 + $0xcc] sm:$0xff] %v275_v22  ;;  %278 = vst [vmem:[%s2856_s30 + $0xd4] sm:$0xff] %v277_v23  ;;  %v281_v25 = vld [vmem:[%s2851_s29 + $0x1c8] sm:$0xff]  ;;  %v283_v26 = vld [vmem:[%s2851_s29 + $0x1d0] sm:$0xff] }
  0x1f   : > { %280 = vst [vmem:[%s2856_s30 + $0xe0] sm:$0xff] %v279_v24  ;;  %282 = vst [vmem:[%s2856_s30 + $0xe8] sm:$0xff] %v281_v25  ;;  %v285_v27 = vld [vmem:[%s2851_s29 + $0x1f8] sm:$0xff]  ;;  %v287_v28 = vld [vmem:[%s2851_s29 + $0x200] sm:$0xff] }
  0x20   : > { %284 = vst [vmem:[%s2856_s30 + $0xf0] sm:$0xff] %v283_v26  ;;  %v289_v29 = vld [vmem:[%s2851_s29 + $0x208] sm:$0xff]  ;;  %286 = vst [vmem:[%s2856_s30 + $0xfc] sm:$0xff] %v285_v27  ;;  %v291_v30 = vld [vmem:[%s2851_s29 + $0x230] sm:$0xff] }
  0x21   : > { %288 = vst [vmem:[%s2856_s30 + $0x104] sm:$0xff] %v287_v28  ;;  %290 = vst [vmem:[%s2856_s30 + $0x10c] sm:$0xff] %v289_v29  ;;  %v293_v31 = vld [vmem:[%s2851_s29 + $0x238] sm:$0xff]  ;;  %v295_v32 = vld [vmem:[%s2851_s29 + $0x240] sm:$0xff] }
  0x22   : > { %292 = vst [vmem:[%s2856_s30 + $0x118] sm:$0xff] %v291_v30  ;;  %294 = vst [vmem:[%s2856_s30 + $0x120] sm:$0xff] %v293_v31  ;;  %v297_v33 = vld [vmem:[%s2851_s29 + $0x268] sm:$0xff]  ;;  %v299_v34 = vld [vmem:[%s2851_s29 + $0x270] sm:$0xff] }
  0x23   : > { %296 = vst [vmem:[%s2856_s30 + $0x128] sm:$0xff] %v295_v32  ;;  %v301_v35 = vld [vmem:[%s2851_s29 + $0x278] sm:$0xff]  ;;  %298 = vst [vmem:[%s2856_s30 + $0x134] sm:$0xff] %v297_v33  ;;  %v303_v36 = vld [vmem:[%s2851_s29 + $0x2a0] sm:$0xff] }
  0x24   : > { %300 = vst [vmem:[%s2856_s30 + $0x13c] sm:$0xff] %v299_v34  ;;  %302 = vst [vmem:[%s2856_s30 + $0x144] sm:$0xff] %v301_v35  ;;  %v305_v37 = vld [vmem:[%s2851_s29 + $0x2a8] sm:$0xff]  ;;  %v307_v38 = vld [vmem:[%s2851_s29 + $0x2b0] sm:$0xff] }
  0x25   : > { %304 = vst [vmem:[%s2856_s30 + $0x150] sm:$0xff] %v303_v36  ;;  %306 = vst [vmem:[%s2856_s30 + $0x158] sm:$0xff] %v305_v37  ;;  %v309_v39 = vld [vmem:[%s2851_s29 + $0x2d8] sm:$0xff]  ;;  %v311_v40 = vld [vmem:[%s2851_s29 + $0x2e0] sm:$0xff] }
  0x26   : > { %308 = vst [vmem:[%s2856_s30 + $0x160] sm:$0xff] %v307_v38  ;;  %v313_v41 = vld [vmem:[%s2851_s29 + $0x2e8] sm:$0xff]  ;;  %310 = vst [vmem:[%s2856_s30 + $0x16c] sm:$0xff] %v309_v39  ;;  %v315_v42 = vld [vmem:[%s2851_s29 + $0x310] sm:$0xff] }
  0x27   : > { %312 = vst [vmem:[%s2856_s30 + $0x174] sm:$0xff] %v311_v40  ;;  %314 = vst [vmem:[%s2856_s30 + $0x17c] sm:$0xff] %v313_v41  ;;  %v317_v43 = vld [vmem:[%s2851_s29 + $0x318] sm:$0xff]  ;;  %v319_v44 = vld [vmem:[%s2851_s29 + $0x320] sm:$0xff] }
  0x28   : > { %316 = vst [vmem:[%s2856_s30 + $0x188] sm:$0xff] %v315_v42  ;;  %318 = vst [vmem:[%s2856_s30 + $0x190] sm:$0xff] %v317_v43  ;;  %v321_v45 = vld [vmem:[%s2851_s29 + $0x348] sm:$0xff]  ;;  %v323_v46 = vld [vmem:[%s2851_s29 + $0x350] sm:$0xff] }
  0x29   : > { %320 = vst [vmem:[%s2856_s30 + $0x198] sm:$0xff] %v319_v44  ;;  %v325_v47 = vld [vmem:[%s2851_s29 + $0x358] sm:$0xff]  ;;  %322 = vst [vmem:[%s2856_s30 + $0x1a4] sm:$0xff] %v321_v45  ;;  %v2053_v49 = vld [vmem:[%s2851_s29 + $0x50] sm:$0xf] }
  0x2a   : > { %324 = vst [vmem:[%s2856_s30 + $0x1ac] sm:$0xff] %v323_v46  ;;  %326 = vst [vmem:[%s2856_s30 + $0x1b4] sm:$0xff] %v325_v47  ;;  %v2051_v48 = vld [vmem:[%s2851_s29 + $0x18] sm:$0xf]  ;;  %v2055_v50 = vld [vmem:[%s2851_s29 + $0x88] sm:$0xf] }
  0x2b   : > { %2052 = vst [vmem:[%s2856_s30 + $0x18] sm:$0xf] %v2051_v48  ;;  %2054 = vst [vmem:[%s2856_s30 + $0x34] sm:$0xf] %v2053_v49  ;;  %v2057_v51 = vld [vmem:[%s2851_s29 + $0xc0] sm:$0xf] }
  0x2c   : > { %2056 = vst [vmem:[%s2856_s30 + $0x50] sm:$0xf] %v2055_v50  ;;  %v2059_v52 = vld [vmem:[%s2851_s29 + $0xf8] sm:$0xf]  ;;  %v2061_v53 = vld [vmem:[%s2851_s29 + $0x130] sm:$0xf] }
  0x2d   : > { %2058 = vst [vmem:[%s2856_s30 + $0x6c] sm:$0xf] %v2057_v51  ;;  %2060 = vst [vmem:[%s2856_s30 + $0x88] sm:$0xf] %v2059_v52  ;;  %v2063_v54 = vld [vmem:[%s2851_s29 + $0x168] sm:$0xf] }
  0x2e   : > { %2062 = vst [vmem:[%s2856_s30 + $0xa4] sm:$0xf] %v2061_v53  ;;  %v2065_v55 = vld [vmem:[%s2851_s29 + $0x1a0] sm:$0xf]  ;;  %v2067_v56 = vld [vmem:[%s2851_s29 + $0x1d8] sm:$0xf] }
  0x2f   : > { %2064 = vst [vmem:[%s2856_s30 + $0xc0] sm:$0xf] %v2063_v54  ;;  %2066 = vst [vmem:[%s2856_s30 + $0xdc] sm:$0xf] %v2065_v55  ;;  %v2069_v57 = vld [vmem:[%s2851_s29 + $0x210] sm:$0xf] }
  0x30   : > { %2068 = vst [vmem:[%s2856_s30 + $0xf8] sm:$0xf] %v2067_v56  ;;  %v2071_v58 = vld [vmem:[%s2851_s29 + $0x248] sm:$0xf]  ;;  %v2073_v59 = vld [vmem:[%s2851_s29 + $0x280] sm:$0xf] }
  0x31   : > { %2070 = vst [vmem:[%s2856_s30 + $0x114] sm:$0xf] %v2069_v57  ;;  %2072 = vst [vmem:[%s2856_s30 + $0x130] sm:$0xf] %v2071_v58  ;;  %v2075_v60 = vld [vmem:[%s2851_s29 + $0x2b8] sm:$0xf] }
  0x32   : > { %2074 = vst [vmem:[%s2856_s30 + $0x14c] sm:$0xf] %v2073_v59  ;;  %v2077_v61 = vld [vmem:[%s2851_s29 + $0x2f0] sm:$0xf]  ;;  %v2079_v62 = vld [vmem:[%s2851_s29 + $0x328] sm:$0xf] }
  0x33   : > { %2076 = vst [vmem:[%s2856_s30 + $0x168] sm:$0xf] %v2075_v60  ;;  %2078 = vst [vmem:[%s2856_s30 + $0x184] sm:$0xf] %v2077_v61  ;;  %v2081_v63 = vld [vmem:[%s2851_s29 + $0x360] sm:$0xf] }
  0x34   : > { %2080 = vst [vmem:[%s2856_s30 + $0x1a0] sm:$0xf] %v2079_v62  ;;  %2082 = vst [vmem:[%s2856_s30 + $0x1bc] sm:$0xf] %v2081_v63 }
  0x35 PF: > { %p2083_p6 = scmp.ge.s32.totalorder %s2780_s19, 1  ;;  %p382_p7 = scmp.lt.s32.totalorder %s2780_s19, 3 }
  0x37   : > { %p383_p8 = pnand %p2083_p6, %p382_p7 }
  0x38   : > { %s389_s5 = sand.u32 (!%p383_p8), 1, %s2764_s15   ;;  %s438_s6 = smul.u32 (!%p383_p8), 112, %s2772_s17 }
  0x39   : > { %386 = sbr.rel (%p383_p8) target bundleno = 468 (0x1d4), region = 58  ;;  %p2085_p10 = scmp.ne.s32.totalorder (!%p383_p8), %s2772_s17, 0 }
  0x3a   : > { %s2564_s7 = smul.u32 (!%p383_p8), 448, %s389_s5  ;;  %p439_p9 = scmp.lt.s32.totalorder (!%p383_p8), %s438_s6, 223 }
  0x3c   : > { %s2992_s12 = scalar_lea.vmem (!%p383_p8), [#allocation3], %s2564_s7 }
  0x40   : > { %s3261_s6 = smov (!%p439_p9, %s438_s6), 223  ;;  %472 = sbr.rel (%p2085_p10) target bundleno = 74 (0x4a), region = 66 }
  0x41   : > { %s2084_s8 = sshll.u32 %s3261_s6, 2  ;;  %v2782_v0 = vmov (!%p2085_p10), 0.0  }
  0x42   : > { %s2990_s11 = scalar_lea.vmem %s3250_s1, %s2084_s8  ;;  %473 = vst [vmem:[#allocation2] sm:$0xff] (!%p2085_p10), %v2782_v0  ;;  %474 = vst [vmem:[#allocation2 + $0x8] sm:$0xff] (!%p2085_p10), %v2782_v0 }
  0x43   : > { %475 = vst [vmem:[#allocation2 + $0x10] sm:$0xff] (!%p2085_p10), %v2782_v0  ;;  %476 = vst [vmem:[#allocation2 + $0x18] sm:$0xff] (!%p2085_p10), %v2782_v0 }
  0x44   : > { %477 = vst [vmem:[#allocation2 + $0x20] sm:$0xff] (!%p2085_p10), %v2782_v0  ;;  %478 = vst [vmem:[#allocation2 + $0x28] sm:$0xff] (!%p2085_p10), %v2782_v0 }
  0x45   : > { %479 = vst [vmem:[#allocation2 + $0x30] sm:$0xff] (!%p2085_p10), %v2782_v0  ;;  %480 = vst [vmem:[#allocation2 + $0x38] sm:$0xff] (!%p2085_p10), %v2782_v0 }
  0x46   : > { %481 = vst [vmem:[#allocation2 + $0x40] sm:$0xff] (!%p2085_p10), %v2782_v0  ;;  %482 = vst [vmem:[#allocation2 + $0x48] sm:$0xff] (!%p2085_p10), %v2782_v0 }
  0x47   : > { %483 = vst [vmem:[#allocation2 + $0x50] sm:$0xff] %v2782_v0  ;;  %484 = vst [vmem:[#allocation2 + $0x58] sm:$0xff] %v2782_v0 }
  0x48   : > { %485 = vst [vmem:[#allocation2 + $0x60] sm:$0xff] %v2782_v0  ;;  %486 = vst [vmem:[#allocation2 + $0x68] sm:$0xff] %v2782_v0 }
  0x49   : > { %487 = vst [vmem:[#allocation2 + $0x70] sm:$0xff] %v2782_v0  ;;  %488 = vst [vmem:[#allocation2 + $0x78] sm:$0xff] %v2782_v0 }
  0x4a PF: > { %v2606_v1 = vld [vmem:[%s2990_s11 + $0x40] sm:$0xff]   ;;  %v2610_v5 = vld [vmem:[%s2990_s11 + $0x48] sm:$0xff]   ;;  %v2614_v9 = vld [vmem:[%s2990_s11 + $0x50] sm:$0xff]   ;;  %p2198_p11 = scmp.ne.s32.totalorder %s2772_s17, 1 }
  0x4b   : > { %v2607_v2 = vld [vmem:[%s2990_s11 + $0xc0] sm:$0xff]   ;;  %2323 = vmatprep.subr.bf16.mxu0 %v2606_v1  ;;  %v2611_v6 = vld [vmem:[%s2990_s11 + $0xc8] sm:$0xff]   ;;  %v2615_v10 = vld [vmem:[%s2990_s11 + $0xd0] sm:$0xff]  }
  0x4c   : > { %v2608_v3 = vld [vmem:[%s2990_s11] sm:$0xff]   ;;  %2387 = vmatprep.subr.bf16.mxu1 %v2607_v2  ;;  %v2612_v7 = vld [vmem:[%s2990_s11 + $0x8] sm:$0xff]   ;;  %v2616_v11 = vld [vmem:[%s2990_s11 + $0x10] sm:$0xff]  }
  0x4d   : > { %v2609_v4 = vld [vmem:[%s2990_s11 + $0x80] sm:$0xff]   ;;  %2324 = vmatpush3.bf16.msra.mxu0 %v2608_v3  ;;  %v2613_v8 = vld [vmem:[%s2990_s11 + $0x88] sm:$0xff]   ;;  %v2617_v12 = vld [vmem:[%s2990_s11 + $0x90] sm:$0xff]  }
  0x4e   : > { %2388 = vmatpush3.bf16.msra.mxu1 %v2609_v4  ;;  %2325 = vmatprep.subr.bf16.mxu0 %v2610_v5  ;;  %v2618_v13 = vld [vmem:[%s2990_s11 + $0x58] sm:$0xff]   ;;  %v2622_v17 = vld [vmem:[%s2990_s11 + $0x60] sm:$0xff]   ;;  %v2626_v21 = vld [vmem:[%s2990_s11 + $0x68] sm:$0xff]  }
  0x4f   : > { %2389 = vmatprep.subr.bf16.mxu1 %v2611_v6  ;;  %v2619_v14 = vld [vmem:[%s2990_s11 + $0xd8] sm:$0xff]   ;;  %v2623_v18 = vld [vmem:[%s2990_s11 + $0xe0] sm:$0xff]   ;;  %v2627_v22 = vld [vmem:[%s2990_s11 + $0xe8] sm:$0xff]  }
  0x50   : > { %v2620_v15 = vld [vmem:[%s2990_s11 + $0x18] sm:$0xff]   ;;  %v2624_v19 = vld [vmem:[%s2990_s11 + $0x20] sm:$0xff]   ;;  %v2628_v23 = vld [vmem:[%s2990_s11 + $0x28] sm:$0xff]  }
  0x51   : > { %2326 = vmatpush3.bf16.msra.mxu0 %v2612_v7  ;;  %v2621_v16 = vld [vmem:[%s2990_s11 + $0x98] sm:$0xff]   ;;  %v2625_v20 = vld [vmem:[%s2990_s11 + $0xa0] sm:$0xff]   ;;  %v2629_v24 = vld [vmem:[%s2990_s11 + $0xa8] sm:$0xff]  }
  0x52   : > { %2390 = vmatpush3.bf16.msra.mxu1 %v2613_v8  ;;  %2327 = vmatprep.subr.bf16.mxu0 %v2614_v9  ;;  %v2630_v25 = vld [vmem:[%s2990_s11 + $0x70] sm:$0xff]   ;;  %v2634_v29 = vld [vmem:[%s2990_s11 + $0x78] sm:$0xff]   ;;  %v2640_v34 = vld [vmem:[%s2992_s12 + $0x4] ss:$28 sps:$4 sm:$0xff]  }
  0x53   : > { %2391 = vmatprep.subr.bf16.mxu1 %v2615_v10  ;;  %v2631_v26 = vld [vmem:[%s2990_s11 + $0xf0] sm:$0xff]   ;;  %v2635_v30 = vld [vmem:[%s2990_s11 + $0xf8] sm:$0xff]   ;;  %v2641_v35 = vld [vmem:[%s2992_s12 + $0x8] ss:$28 sps:$4 sm:$0xff]   ;;  %1337 = vmatprep.mubr.bf16.mxu0 %v2640_v34 }
  0x54   : > { %v2632_v27 = vld [vmem:[%s2990_s11 + $0x30] sm:$0xff]   ;;  %v2636_v31 = vld [vmem:[%s2990_s11 + $0x38] sm:$0xff]   ;;  %v2643_v36 = vld [vmem:[%s2992_s12 + $0xc] ss:$28 sps:$4 sm:$0xff]  }
  0x55   : > { %2328 = vmatpush3.bf16.msra.mxu0 %v2616_v11  ;;  %v2633_v28 = vld [vmem:[%s2990_s11 + $0xb0] sm:$0xff]   ;;  %v2637_v32 = vld [vmem:[%s2990_s11 + $0xb8] sm:$0xff]   ;;  %v2644_v37 = vld [vmem:[%s2990_s11 + $0x140] sm:$0xff]   ;;  %1434 = vmatprep.mubr.bf16.mxu1 %v2643_v36 }
  0x56   : > { %2392 = vmatpush3.bf16.msra.mxu1 %v2617_v12  ;;  %2329 = vmatprep.subr.bf16.mxu0 %v2618_v13  ;;  %v2638_v33 = vld [vmem:[%s2992_s12] ss:$28 sps:$4 sm:$0xff]   ;;  %v2650_v41 = vld [vmem:[%s2992_s12 + $0x38] ss:$28 sps:$4 sm:$0xff]   ;;  %v2652_v43 = vld [vmem:[%s2990_s11 + $0x148] sm:$0xff]  }
  0x57   : > { %2393 = vmatprep.subr.bf16.mxu1 %v2619_v14  ;;  %v2645_v38 = vld [vmem:[%s2990_s11 + $0x100] sm:$0xff]   ;;  %v2646_v39 = vld [vmem:[%s2992_s12 + $0x3c] ss:$28 sps:$4 sm:$0xff]   ;;  %v2653_v44 = vld [vmem:[%s2990_s11 + $0x108] sm:$0xff]  }
  0x58   : > { %v2648_v40 = vld [vmem:[%s2992_s12 + $0x44] ss:$28 sps:$4 sm:$0xff]   ;;  %v2654_v45 = vld [vmem:[%s2992_s12 + $0x74] ss:$28 sps:$4 sm:$0xff]   ;;  %v2656_v46 = vld [vmem:[%s2992_s12 + $0x7c] ss:$28 sps:$4 sm:$0xff]  }
  0x59   : > { %2330 = vmatpush3.bf16.msra.mxu0 %v2620_v15  ;;  %v2651_v42 = vld [vmem:[%s2992_s12 + $0x40] ss:$28 sps:$4 sm:$0xff]   ;;  %v2660_v47 = vld [vmem:[%s2990_s11 + $0x150] sm:$0xff]   ;;  %v2662_v51 = vld [vmem:[%s2992_s12 + $0xac] ss:$28 sps:$4 sm:$0xff]  }
  0x5a   : > { %2394 = vmatpush3.bf16.msra.mxu1 %v2621_v16  ;;  %2331 = vmatprep.subr.bf16.mxu0 %v2622_v17  ;;  %v2661_v48 = vld [vmem:[%s2990_s11 + $0x110] sm:$0xff]   ;;  %v2668_v53 = vld [vmem:[%s2990_s11 + $0x158] sm:$0xff]   ;;  %v2666_v55 = vld [vmem:[%s2992_s12 + $0xa8] ss:$28 sps:$4 sm:$0xff]  }
  0x5b   : > { %2395 = vmatprep.subr.bf16.mxu1 %v2623_v18  ;;  %v2658_v49 = vld [vmem:[%s2992_s12 + $0x70] ss:$28 sps:$4 sm:$0xff]   ;;  %v2659_v50 = vld [vmem:[%s2992_s12 + $0x78] ss:$28 sps:$4 sm:$0xff]   ;;  %v2676_v56 = vld [vmem:[%s2990_s11 + $0x160] sm:$0xff]  }
  0x5c   : > { %v2664_v52 = vld [vmem:[%s2992_s12 + $0xb4] ss:$28 sps:$4 sm:$0xff]   ;;  %v2669_v54 = vld [vmem:[%s2990_s11 + $0x118] sm:$0xff]   ;;  %v2677_v58 = vld [vmem:[%s2990_s11 + $0x120] sm:$0xff]  }
  0x5d   : > { %2332 = vmatpush3.bf16.msra.mxu0 %v2624_v19  ;;  %v2667_v57 = vld [vmem:[%s2992_s12 + $0xb0] ss:$28 sps:$4 sm:$0xff]   ;;  %v2678_v59 = vld [vmem:[%s2990_s11 + $0x180] sm:$0xff]   ;;  %v2679_v4 = vld [vmem:[%s2992_s12 + $0x11c] ss:$28 sps:$4 sm:$0xff]  }
  0x5e   : > { %2396 = vmatpush3.bf16.msra.mxu1 %v2625_v20  ;;  %2333 = vmatprep.subr.bf16.mxu0 %v2626_v21  ;;  %v2670_v60 = vld [vmem:[%s2992_s12 + $0xe4] ss:$28 sps:$4 sm:$0xff]   ;;  %v2672_v61 = vld [vmem:[%s2992_s12 + $0xec] ss:$28 sps:$4 sm:$0xff]   ;;  %v2688_v1 = vld [vmem:[%s2990_s11 + $0x190] sm:$0xff]  }
  0x5f   : > { %2397 = vmatprep.subr.bf16.mxu1 %v2627_v22  ;;  %v2685_v62 = vld [vmem:[%s2990_s11 + $0x168] sm:$0xff]   ;;  %v2674_v2 = vld [vmem:[%s2992_s12 + $0xe0] ss:$28 sps:$4 sm:$0xff]   ;;  %v2695_v6 = vld [vmem:[%s2990_s11 + $0x170] sm:$0xff]  }
  0x60   : > { %v2686_v63 = vld [vmem:[%s2990_s11 + $0x188] sm:$0xff]   ;;  %v2681_v5 = vld [vmem:[%s2992_s12 + $0x124] ss:$28 sps:$4 sm:$0xff]   ;;  %v2696_v7 = vld [vmem:[%s2990_s11 + $0x198] sm:$0xff]  }
  0x61   : > { %2334 = vmatpush3.bf16.msra.mxu0 %v2628_v23  ;;  %v2687_v0 = vld [vmem:[%s2990_s11 + $0x128] sm:$0xff]   ;;  %v2697_v8 = vld [vmem:[%s2990_s11 + $0x130] sm:$0xff]   ;;  %v2698_v9 = vld [vmem:[%s2990_s11 + $0x1a0] sm:$0xff]  }
  0x62   : > { %2398 = vmatpush3.bf16.msra.mxu1 %v2629_v24  ;;  %2335 = vmatprep.subr.bf16.mxu0 %v2630_v25  ;;  %v2675_v3 = vld [vmem:[%s2992_s12 + $0xe8] ss:$28 sps:$4 sm:$0xff]   ;;  %v2683_v10 = vld [vmem:[%s2992_s12 + $0x118] ss:$28 sps:$4 sm:$0xff]   ;;  %v2684_v11 = vld [vmem:[%s2992_s12 + $0x120] ss:$28 sps:$4 sm:$0xff]  }
  0x63   : > { %2399 = vmatprep.subr.bf16.mxu1 %v2631_v26  ;;  %v2689_v12 = vld [vmem:[%s2992_s12 + $0x154] ss:$28 sps:$4 sm:$0xff]   ;;  %v2691_v13 = vld [vmem:[%s2992_s12 + $0x15c] ss:$28 sps:$4 sm:$0xff]   ;;  %v2706_v15 = vld [vmem:[%s2990_s11 + $0x1a8] sm:$0xff]  }
  0x64   : > { %v2705_v14 = vld [vmem:[%s2990_s11 + $0x178] sm:$0xff]   ;;  %v2708_v17 = vld [vmem:[%s2990_s11 + $0x1b0] sm:$0xff]   ;;  %v2699_v20 = vld [vmem:[%s2992_s12 + $0x18c] ss:$28 sps:$4 sm:$0xff]  }
  0x65   : > { %2336 = vmatpush3.bf16.msra.mxu0 %v2632_v27  ;;  %v2707_v16 = vld [vmem:[%s2990_s11 + $0x138] sm:$0xff]   ;;  %v2693_v18 = vld [vmem:[%s2992_s12 + $0x150] ss:$28 sps:$4 sm:$0xff]   ;;  %v2703_v23 = vld [vmem:[%s2992_s12 + $0x188] ss:$28 sps:$4 sm:$0xff]  }
  0x66   : > { %2400 = vmatpush3.bf16.msra.mxu1 %v2633_v28  ;;  %2337 = vmatprep.subr.bf16.mxu0 %v2634_v29  ;;  %v2694_v19 = vld [vmem:[%s2992_s12 + $0x158] ss:$28 sps:$4 sm:$0xff]   ;;  %v2704_v24 = vld [vmem:[%s2992_s12 + $0x190] ss:$28 sps:$4 sm:$0xff]  }
  0x67   : > { %2401 = vmatprep.subr.bf16.mxu1 %v2635_v30  ;;  %v2701_v21 = vld [vmem:[%s2992_s12 + $0x194] ss:$28 sps:$4 sm:$0xff]   ;;  %v2712_v22 = vld [vmem:[%s2990_s11 + $0x1b8] sm:$0xff]   ;;  %v2715_v29 = vld [vmem:[%s2992_s12 + $0x4c] ss:$28 sps:$4 sm:$0xff]  }
  0x68   : > { %v2711_v25 = vld [vmem:[%s2992_s12 + $0x14] ss:$28 sps:$4 sm:$0xff]   ;;  %v2721_v30 = vld [vmem:[%s2992_s12 + $0x88] ss:$28 sps:$4 sm:$0xff]   ;;  %v2723_v36 = vld [vmem:[%s2992_s12 + $0xbc] ss:$28 sps:$4 sm:$0xff]  }
  0x69   : > { %2338 = vmatpush3.bf16.msra.mxu0 %v2636_v31  ;;  %v2713_v26 = vld [vmem:[%s2992_s12 + $0x18] ss:$28 sps:$4 sm:$0xff]   ;;  %v2709_v27 = vld [vmem:[%s2992_s12 + $0x10] ss:$28 sps:$4 sm:$0xff]   ;;  %v2717_v31 = vld [vmem:[%s2992_s12 + $0x48] ss:$28 sps:$4 sm:$0xff]  }
  0x6a   : > { %2402 = vmatpush3.bf16.msra.mxu1 %v2637_v32  ;;  %2451 = vmatprep.subr.bf16.mxu0 %v2644_v37  ;;  %v2714_v28 = vld [vmem:[%s2992_s12 + $0x50] ss:$28 sps:$4 sm:$0xff]   ;;  %v2718_v32 = vld [vmem:[%s2992_s12 + $0x84] ss:$28 sps:$4 sm:$0xff]   ;;  %v2729_v34 = vld [vmem:[%s2992_s12 + $0xf8] ss:$28 sps:$4 sm:$0xff]  }
  0x6b   : > { %2531 = vmatprep.subr.bf16.mxu1 %v2678_v59  ;;  %v2730_v37 = vld [vmem:[%s2992_s12 + $0x130] ss:$28 sps:$4 sm:$0xff]  }
  0x6c   : > { %1338 = vmatmul.mubr.bf16.vlgmr.msra.gmra.mrb[0].mxu0 %v2638_v33  ;;  %v2722_v33 = vld [vmem:[%s2992_s12 + $0xc0] ss:$28 sps:$4 sm:$0xff]  }
  0x6d   : > { %1435 = vmatmul.mubr.bf16.vlgmr.msra.gmra.mrb[0].mxu1 %v2641_v35  ;;  %2452 = vmatpush3.bf16.msra.mxu0 %v2645_v38  ;;  %v2720_v35 = vld [vmem:[%s2992_s12 + $0x80] ss:$28 sps:$4 sm:$0xff]   ;;  %v2737_v38 = vld [vmem:[%s2992_s12 + $0x168] ss:$28 sps:$4 sm:$0xff]  }
  0x6e   : > { %1345 = vmatprep.mubr.bf16.mxu0 %v2646_v39  ;;  %1442 = vmatprep.mubr.bf16.mxu1 %v2648_v40  ;;  %v2725_v39 = vld [vmem:[%s2992_s12 + $0xb8] ss:$28 sps:$4 sm:$0xff]  }
  0x6f   : > { %2453 = vmatprep.subr.bf16.mxu0 %v2652_v43  ;;  %2532 = vmatpush3.bf16.msra.mxu1 %v2678_v59  ;;  %v2726_v40 = vld [vmem:[%s2992_s12 + $0xf4] ss:$28 sps:$4 sm:$0xff]   ;;  %v2731_v43 = vld [vmem:[%s2992_s12 + $0x12c] ss:$28 sps:$4 sm:$0xff]  }
  0x70   : > { %2533 = vmatprep.subr.bf16.mxu1 %v2686_v63 }
  0x71   : > { %2454 = vmatpush3.bf16.msra.mxu0 %v2653_v44  ;;  %v2733_v44 = vld [vmem:[%s2992_s12 + $0x128] ss:$28 sps:$4 sm:$0xff]  }
  0x72   : > { %2455 = vmatprep.subr.bf16.mxu0 %v2660_v47  ;;  %v2739_v47 = vld [vmem:[%s2992_s12 + $0x19c] ss:$28 sps:$4 sm:$0xff]  }
  0x73   : > { %2534 = vmatpush3.bf16.msra.mxu1 %v2686_v63 }
  0x74   : > { %1346 = vmatmul.mubr.bf16.gmra.mrb[4].mxu0 %v2650_v41  ;;  %2535 = vmatprep.subr.bf16.mxu1 %v2688_v1  ;;  %v2738_v41 = vld [vmem:[%s2992_s12 + $0x1a0] ss:$28 sps:$4 sm:$0xff]  }
  0x75   : > { %1443 = vmatmul.mubr.bf16.gmra.mrb[4].mxu1 %v2651_v42  ;;  %1353 = vmatprep.mubr.bf16.mxu0 %v2654_v45  ;;  %v2728_v42 = vld [vmem:[%s2992_s12 + $0xf0] ss:$28 sps:$4 sm:$0xff]   ;;  %v2734_v45 = vld [vmem:[%s2992_s12 + $0x164] ss:$28 sps:$4 sm:$0xff]  }
  0x76   : > { %1450 = vmatprep.mubr.bf16.mxu1 %v2656_v46  ;;  %2456 = vmatpush3.bf16.msra.mxu0 %v2661_v48  ;;  %v2736_v46 = vld [vmem:[%s2992_s12 + $0x160] ss:$28 sps:$4 sm:$0xff]   ;;  %v2741_v48 = vld [vmem:[%s2992_s12 + $0x198] ss:$28 sps:$4 sm:$0xff]  }
  0x77   : > { %2457 = vmatprep.subr.bf16.mxu0 %v2668_v53  ;;  %2536 = vmatpush3.bf16.msra.mxu1 %v2688_v1 }
  0x78   : > { %2537 = vmatprep.subr.bf16.mxu1 %v2696_v7 }
  0x7a   : > { %2458 = vmatpush3.bf16.msra.mxu0 %v2669_v54 }
  0x7b   : > { %2459 = vmatprep.subr.bf16.mxu0 %v2676_v56  ;;  %2538 = vmatpush3.bf16.msra.mxu1 %v2696_v7 }
  0x7c   : > { %1354 = vmatmul.mubr.bf16.gmra.mrb[8].mxu0 %v2658_v49  ;;  %2539 = vmatprep.subr.bf16.mxu1 %v2698_v9 }
  0x7d   : > { %1451 = vmatmul.mubr.bf16.gmra.mrb[8].mxu1 %v2659_v50  ;;  %1361 = vmatprep.mubr.bf16.mxu0 %v2662_v51 }
  0x7e   : > { %1458 = vmatprep.mubr.bf16.mxu1 %v2664_v52  ;;  %2460 = vmatpush3.bf16.msra.mxu0 %v2677_v58 }
  0x7f   : > { %2461 = vmatprep.subr.bf16.mxu0 %v2685_v62  ;;  %2540 = vmatpush3.bf16.msra.mxu1 %v2698_v9 }
  0x80   : > { %2541 = vmatprep.subr.bf16.mxu1 %v2706_v15 }
  0x82   : > { %2462 = vmatpush3.bf16.msra.mxu0 %v2687_v0 }
  0x83   : > { %2463 = vmatprep.subr.bf16.mxu0 %v2695_v6  ;;  %2542 = vmatpush3.bf16.msra.mxu1 %v2706_v15 }
  0x84   : > { %1362 = vmatmul.mubr.bf16.gmra.mrb[12].mxu0 %v2666_v55  ;;  %2543 = vmatprep.subr.bf16.mxu1 %v2708_v17 }
  0x85   : > { %1459 = vmatmul.mubr.bf16.gmra.mrb[12].mxu1 %v2667_v57  ;;  %1369 = vmatprep.mubr.bf16.mxu0 %v2670_v60 }
  0x86   : > { %1466 = vmatprep.mubr.bf16.mxu1 %v2672_v61  ;;  %2464 = vmatpush3.bf16.msra.mxu0 %v2697_v8 }
  0x87   : > { %2465 = vmatprep.subr.bf16.mxu0 %v2705_v14  ;;  %2544 = vmatpush3.bf16.msra.mxu1 %v2708_v17 }
  0x88   : > { %2545 = vmatprep.subr.bf16.mxu1 %v2712_v22 }
  0x8a   : > { %2466 = vmatpush3.bf16.msra.mxu0 %v2707_v16 }
  0x8b   : > { %2546 = vmatpush3.bf16.msra.mxu1 %v2712_v22 }
  0x8c   : > { %1370 = vmatmul.mubr.bf16.gmra.mrb[16].mxu0 %v2674_v2 }
  0x8d   : > { %1467 = vmatmul.mubr.bf16.gmra.mrb[16].mxu1 %v2675_v3  ;;  %1377 = vmatprep.mubr.bf16.mxu0 %v2679_v4 }
  0x8e   : > { %1474 = vmatprep.mubr.bf16.mxu1 %v2681_v5 }
  0x94   : > { %1378 = vmatmul.mubr.bf16.gmra.mrb[20].mxu0 %v2683_v10 }
  0x95   : > { %1475 = vmatmul.mubr.bf16.gmra.mrb[20].mxu1 %v2684_v11  ;;  %1385 = vmatprep.mubr.bf16.mxu0 %v2689_v12 }
  0x96   : > { %1482 = vmatprep.mubr.bf16.mxu1 %v2691_v13 }
  0x9c   : > { %1386 = vmatmul.mubr.bf16.gmra.mrb[24].mxu0 %v2693_v18 }
  0x9d   : > { %1483 = vmatmul.mubr.bf16.gmra.mrb[24].mxu1 %v2694_v19  ;;  %1393 = vmatprep.mubr.bf16.mxu0 %v2699_v20 }
  0x9e   : > { %1490 = vmatprep.mubr.bf16.mxu1 %v2701_v21 }
  0xa4   : > { %1394 = vmatmul.mubr.bf16.gmra.mrb[28].mxu0 %v2703_v23 }
  0xa5   : > { %1491 = vmatmul.mubr.bf16.gmra.mrb[28].mxu1 %v2704_v24  ;;  %1531 = vmatprep.mubr.bf16.mxu0 %v2711_v25 }
  0xa6   : > { %2547 = vmatprep.mubr.bf16.mxu1 %v2713_v26 }
  0xac   : > { %1532 = vmatmul.mubr.bf16.vlgmr.msra.gmra.mrb[32].mxu0 %v2709_v27 }
  0xad   : > { %2548 = vmatmul.mubr.bf16.vlgmr.msra.gmra.mrb[32].mxu1 %v2714_v28  ;;  %1539 = vmatprep.mubr.bf16.mxu0 %v2715_v29 }
  0xae   : > { %2551 = vmatprep.mubr.bf16.mxu1 %v2721_v30 }
  0xb4   : > { %1540 = vmatmul.mubr.bf16.gmra.mrb[36].mxu0 %v2717_v31 }
  0xb5   : > { %1547 = vmatprep.mubr.bf16.mxu0 %v2718_v32  ;;  %2552 = vmatmul.mubr.bf16.gmra.mrb[36].mxu1 %v2722_v33 }
  0xb6   : > { %2555 = vmatprep.mubr.bf16.mxu1 %v2729_v34 }
  0xbc   : > { %1548 = vmatmul.mubr.bf16.gmra.mrb[40].mxu0 %v2720_v35 }
  0xbd   : > { %1555 = vmatprep.mubr.bf16.mxu0 %v2723_v36  ;;  %2556 = vmatmul.mubr.bf16.gmra.mrb[40].mxu1 %v2730_v37 }
  0xbe   : > { %2559 = vmatprep.mubr.bf16.mxu1 %v2737_v38 }
  0xc4   : > { %1556 = vmatmul.mubr.bf16.gmra.mrb[44].mxu0 %v2725_v39 }
  0xc5   : > { %1563 = vmatprep.mubr.bf16.mxu0 %v2726_v40  ;;  %2560 = vmatmul.mubr.bf16.gmra.mrb[44].mxu1 %v2738_v41 }
  0xcc   : > { %1564 = vmatmul.mubr.bf16.gmra.mrb[48].mxu0 %v2728_v42 }
  0xcd   : > { %1571 = vmatprep.mubr.bf16.mxu0 %v2731_v43 }
  0xd4   : > { %1572 = vmatmul.mubr.bf16.gmra.mrb[52].mxu0 %v2733_v44 }
  0xd5   : > { %1579 = vmatprep.mubr.bf16.mxu0 %v2734_v45 }
  0xdc   : > { %1580 = vmatmul.mubr.bf16.gmra.mrb[56].mxu0 %v2736_v46 }
  0xdd   : > { %1587 = vmatprep.mubr.bf16.mxu0 %v2739_v47 }
  0xe4   : > { %1588 = vmatmul.mubr.bf16.gmra.mrb[60].mxu0 %v2741_v48 }
 0x13f   : > { %v2339_v49 = vpop.f32.mrb[0].mxu0 }
 0x140   : > { %v2403_v50 = vpop.f32.mrb[0].mxu1  ;;  %v2340_v51 = vpop.f32.mrb[1].mxu0 }
 0x141   : > { %v2341_v52 = vadd.f32 %v2340_v51, %v2339_v49  ;;  %v2404_v53 = vpop.f32.mrb[1].mxu1  ;;  %v2342_v54 = vpop.f32.mrb[2].mxu0 }
 0x142   : > { %v2405_v55 = vadd.f32 %v2404_v53, %v2403_v50  ;;  %v2406_v56 = vpop.f32.mrb[2].mxu1  ;;  %v2343_v57 = vpop.f32.mrb[3].mxu0 }
 0x143   : > { %v2344_v58 = vadd.f32 %v2343_v57, %v2342_v54  ;;  %v2407_v59 = vpop.f32.mrb[3].mxu1 }
 0x144   : > { %v3107_v60 = vadd.f32 %v2405_v55, %v2341_v52  ;;  %v2408_v61 = vadd.f32 %v2407_v59, %v2406_v56 }
 0x146   : > { %v3109_v62 = vadd.f32 %v2408_v61, %v2344_v58 }
 0x147   : > { %v2345_v63 = vpop.f32.mrb[4].mxu0 }
 0x148   : > { %v2409_v0 = vpop.f32.mrb[4].mxu1  ;;  %v2346_v1 = vpop.f32.mrb[5].mxu0 }
 0x149   : > { %v2347_v2 = vadd.f32 %v2346_v1, %v2345_v63  ;;  %v2410_v3 = vpop.f32.mrb[5].mxu1  ;;  %v2348_v4 = vpop.f32.mrb[6].mxu0 }
 0x14a   : > { %v2411_v5 = vadd.f32 %v2410_v3, %v2409_v0  ;;  %v2412_v6 = vpop.f32.mrb[6].mxu1  ;;  %v2349_v7 = vpop.f32.mrb[7].mxu0 }
 0x14b   : > { %v2350_v8 = vadd.f32 %v2349_v7, %v2348_v4  ;;  %v2413_v9 = vpop.f32.mrb[7].mxu1 }
 0x14c   : > { %v3111_v10 = vadd.f32 %v2411_v5, %v2347_v2  ;;  %v2414_v11 = vadd.f32 %v2413_v9, %v2412_v6 }
 0x14e   : > { %v3113_v12 = vadd.f32 %v2414_v11, %v2350_v8 }
 0x14f   : > { %v2351_v13 = vpop.f32.mrb[8].mxu0 }
 0x150   : > { %v2415_v14 = vpop.f32.mrb[8].mxu1  ;;  %v2352_v15 = vpop.f32.mrb[9].mxu0 }
 0x151   : > { %v2353_v16 = vadd.f32 %v2352_v15, %v2351_v13  ;;  %v2416_v17 = vpop.f32.mrb[9].mxu1  ;;  %v2354_v18 = vpop.f32.mrb[10].mxu0 }
 0x152   : > { %v2417_v19 = vadd.f32 %v2416_v17, %v2415_v14  ;;  %v2418_v20 = vpop.f32.mrb[10].mxu1  ;;  %v2355_v21 = vpop.f32.mrb[11].mxu0 }
 0x153   : > { %v2356_v22 = vadd.f32 %v2355_v21, %v2354_v18  ;;  %v2419_v23 = vpop.f32.mrb[11].mxu1 }
 0x154   : > { %v3115_v24 = vadd.f32 %v2417_v19, %v2353_v16  ;;  %v2420_v25 = vadd.f32 %v2419_v23, %v2418_v20 }
 0x156   : > { %v3117_v26 = vadd.f32 %v2420_v25, %v2356_v22 }
 0x157   : > { %v2357_v27 = vpop.f32.mrb[12].mxu0 }
 0x158   : > { %v2421_v28 = vpop.f32.mrb[12].mxu1  ;;  %v2358_v29 = vpop.f32.mrb[13].mxu0 }
 0x159   : > { %v2359_v30 = vadd.f32 %v2358_v29, %v2357_v27  ;;  %v2422_v31 = vpop.f32.mrb[13].mxu1  ;;  %v2360_v32 = vpop.f32.mrb[14].mxu0 }
 0x15a   : > { %v2423_v33 = vadd.f32 %v2422_v31, %v2421_v28  ;;  %v2424_v34 = vpop.f32.mrb[14].mxu1  ;;  %v2361_v35 = vpop.f32.mrb[15].mxu0 }
 0x15b   : > { %v2362_v36 = vadd.f32 %v2361_v35, %v2360_v32  ;;  %v2425_v37 = vpop.f32.mrb[15].mxu1 }
 0x15c   : > { %v3119_v38 = vadd.f32 %v2423_v33, %v2359_v30  ;;  %v2426_v39 = vadd.f32 %v2425_v37, %v2424_v34 }
 0x15e   : > { %v3121_v40 = vadd.f32 %v2426_v39, %v2362_v36 }
 0x15f   : > { %v2363_v41 = vpop.f32.mrb[16].mxu0 }
 0x160   : > { %v2427_v42 = vpop.f32.mrb[16].mxu1  ;;  %v2364_v43 = vpop.f32.mrb[17].mxu0 }
 0x161   : > { %v2365_v44 = vadd.f32 %v2364_v43, %v2363_v41  ;;  %v2428_v45 = vpop.f32.mrb[17].mxu1  ;;  %v2366_v46 = vpop.f32.mrb[18].mxu0 }
 0x162   : > { %v2429_v47 = vadd.f32 %v2428_v45, %v2427_v42  ;;  %v2430_v48 = vpop.f32.mrb[18].mxu1  ;;  %v2367_v49 = vpop.f32.mrb[19].mxu0 }
 0x163   : > { %v2368_v50 = vadd.f32 %v2367_v49, %v2366_v46  ;;  %v2431_v51 = vpop.f32.mrb[19].mxu1 }
 0x164   : > { %v3123_v52 = vadd.f32 %v2429_v47, %v2365_v44  ;;  %v2432_v53 = vadd.f32 %v2431_v51, %v2430_v48 }
 0x166   : > { %v3125_v54 = vadd.f32 %v2432_v53, %v2368_v50  ;;  %v489_v53 = vld [vmem:[#allocation2] sm:$0xff] }
 0x167   : > { %v2369_v55 = vpop.f32.mrb[20].mxu0 }
 0x168   : > { %v2433_v56 = vpop.f32.mrb[20].mxu1  ;;  %v2370_v57 = vpop.f32.mrb[21].mxu0 }
 0x169   : > { %v2371_v58 = vadd.f32 %v2370_v57, %v2369_v55  ;;  %v2434_v59 = vpop.f32.mrb[21].mxu1  ;;  %v2372_v61 = vpop.f32.mrb[22].mxu0  ;;  %v490_v57 = vld [vmem:[#allocation2 + $0x8] sm:$0xff] }
 0x16a   : > { %v2435_v63 = vadd.f32 %v2434_v59, %v2433_v56  ;;  %v2436_v0 = vpop.f32.mrb[22].mxu1  ;;  %v2373_v1 = vpop.f32.mrb[23].mxu0 }
 0x16b   : > { %v2374_v2 = vadd.f32 %v2373_v1, %v2372_v61  ;;  %v2437_v3 = vpop.f32.mrb[23].mxu1 }
 0x16c   : > { %v3127_v4 = vadd.f32 %v2435_v63, %v2371_v58  ;;  %v2438_v5 = vadd.f32 %v2437_v3, %v2436_v0 }
 0x16e   : > { %v3129_v6 = vadd.f32 %v2438_v5, %v2374_v2 }
 0x16f   : > { %v2375_v7 = vpop.f32.mrb[24].mxu0 }
 0x170   : > { %v2439_v8 = vpop.f32.mrb[24].mxu1  ;;  %v2376_v9 = vpop.f32.mrb[25].mxu0 }
 0x171   : > { %v2377_v11 = vadd.f32 %v2376_v9, %v2375_v7  ;;  %v2440_v13 = vpop.f32.mrb[25].mxu1  ;;  %v2378_v14 = vpop.f32.mrb[26].mxu0 }
 0x172   : > { %v2441_v15 = vadd.f32 %v2440_v13, %v2439_v8  ;;  %v2442_v16 = vpop.f32.mrb[26].mxu1  ;;  %v2379_v17 = vpop.f32.mrb[27].mxu0  ;;  %v491_v13 = vld [vmem:[#allocation2 + $0x10] sm:$0xff] }
 0x173   : > { %v2380_v18 = vadd.f32 %v2379_v17, %v2378_v14  ;;  %v2443_v19 = vpop.f32.mrb[27].mxu1 }
 0x174   : > { %v3131_v20 = vadd.f32 %v2441_v15, %v2377_v11  ;;  %v2444_v21 = vadd.f32 %v2443_v19, %v2442_v16  ;;  %v492_v15 = vld [vmem:[#allocation2 + $0x18] sm:$0xff] }
 0x176   : > { %v3133_v22 = vadd.f32 %v2444_v21, %v2380_v18 }
 0x177   : > { %v2381_v23 = vpop.f32.mrb[28].mxu0 }
 0x178   : > { %v2445_v25 = vpop.f32.mrb[28].mxu1  ;;  %v2382_v27 = vpop.f32.mrb[29].mxu0 }
 0x179   : > { %v2383_v28 = vadd.f32 %v2382_v27, %v2381_v23  ;;  %v2446_v29 = vpop.f32.mrb[29].mxu1  ;;  %v2384_v30 = vpop.f32.mrb[30].mxu0 }
 0x17a   : > { %v2447_v31 = vadd.f32 %v2446_v29, %v2445_v25  ;;  %v2448_v32 = vpop.f32.mrb[30].mxu1  ;;  %v2385_v33 = vpop.f32.mrb[31].mxu0 }
 0x17b   : > { %v2386_v34 = vadd.f32 %v2385_v33, %v2384_v30  ;;  %v2449_v35 = vpop.f32.mrb[31].mxu1 }
 0x17c   : > { %v3135_v36 = vadd.f32 %v2447_v31, %v2383_v28  ;;  %v2450_v37 = vadd.f32 %v2449_v35, %v2448_v32  ;;  %v494_v35 = vld [vmem:[#allocation2 + $0x28] sm:$0xff] }
 0x17e   : > { %v3137_v39 = vadd.f32 %v2450_v37, %v2386_v34 }
 0x17f   : > { %v2467_v41 = vpop.f32.mrb[32].mxu0 }
 0x180   : > { %v2468_v42 = vpop.f32.mrb[33].mxu0  ;;  %v2549_v43 = vpop.f32.mrb[32].mxu1 }
 0x181   : > { %v2469_v44 = vadd.f32 %v2468_v42, %v2467_v41  ;;  %v2470_v45 = vpop.f32.mrb[34].mxu0  ;;  %v1630_v46 = vpop.f32.mrb[33].mxu1 }
 0x182   : > { %v2471_v47 = vpop.f32.mrb[35].mxu0  ;;  %v2550_v48 = vpop.f32.mrb[34].mxu1 }
 0x183   : > { %v2472_v49 = vadd.f32 %v2471_v47, %v2470_v45  ;;  %v1534_v50 = vadd.f32 %v2469_v44, %v3107_v60  ;;  %v1633_v51 = vpop.f32.mrb[35].mxu1 }
 0x185   : > { %v1631_v55 = vadd.f32 %v1630_v46, %v1534_v50  ;;  %v1537_v56 = vadd.f32 %v2472_v49, %v3109_v62 }
 0x187   : > { %v1693_v58 = vadd.f32 %v1631_v55, %v489_v53  ;;  %v1634_v59 = vadd.f32 %v1633_v51, %v1537_v56  ;;  %v2473_v61 = vpop.f32.mrb[36].mxu0  ;;  %v495_v53 = vld [vmem:[#allocation2 + $0x30] sm:$0xff] }
 0x188   : > { %v2474_v63 = vpop.f32.mrb[37].mxu0  ;;  %v2553_v0 = vpop.f32.mrb[36].mxu1 }
 0x189   : > { %1709 = vst [vmem:[#allocation2] sm:$0xff] %v1693_v58  ;;  %v1694_v1 = vadd.f32 %v1634_v59, %v490_v57  ;;  %v2475_v2 = vadd.f32 %v2474_v63, %v2473_v61  ;;  %v2476_v3 = vpop.f32.mrb[38].mxu0  ;;  %v1646_v5 = vpop.f32.mrb[37].mxu1  ;;  %v496_v57 = vld [vmem:[#allocation2 + $0x38] sm:$0xff] }
 0x18a   : > { %v2477_v7 = vpop.f32.mrb[39].mxu0  ;;  %v2554_v8 = vpop.f32.mrb[38].mxu1 }
 0x18b   : > { %1710 = vst [vmem:[#allocation2 + $0x8] sm:$0xff] %v1694_v1  ;;  %v1542_v60 = vadd.f32 %v2475_v2, %v3111_v10  ;;  %v2478_v9 = vadd.f32 %v2477_v7, %v2476_v3  ;;  %v1649_v11 = vpop.f32.mrb[39].mxu1 }
 0x18d   : > { %v1639_v62 = vadd.f32 %v2549_v43, %v1542_v60  ;;  %v1545_v14 = vadd.f32 %v2478_v9, %v3113_v12  ;;  %v493_v12 = vld [vmem:[#allocation2 + $0x20] sm:$0xff] }
 0x18e   : > { %v497_v60 = vld [vmem:[#allocation2 + $0x40] sm:$0xff] }
 0x18f   : > { %v1695_v16 = vadd.f32 %v1639_v62, %v491_v13  ;;  %v1642_v17 = vadd.f32 %v2550_v48, %v1545_v14  ;;  %v2479_v18 = vpop.f32.mrb[40].mxu0 }
 0x190   : > { %v2480_v19 = vpop.f32.mrb[41].mxu0  ;;  %v3143_v21 = vpop.f32.mrb[40].mxu1 }
 0x191   : > { %1711 = vst [vmem:[#allocation2 + $0x10] sm:$0xff] %v1695_v16  ;;  %v1696_v23 = vadd.f32 %v1642_v17, %v492_v15  ;;  %v2481_v25 = vadd.f32 %v2480_v19, %v2479_v18  ;;  %v2482_v27 = vpop.f32.mrb[42].mxu0  ;;  %v1662_v28 = vpop.f32.mrb[41].mxu1 }
 0x192   : > { %v2483_v29 = vpop.f32.mrb[43].mxu0  ;;  %v2558_v10 = vpop.f32.mrb[42].mxu1 }
 0x193   : > { %1712 = vst [vmem:[#allocation2 + $0x18] sm:$0xff] %v1696_v23  ;;  %v2484_v30 = vadd.f32 %v2483_v29, %v2482_v27  ;;  %v1550_v31 = vadd.f32 %v2481_v25, %v3115_v24  ;;  %v1665_v32 = vpop.f32.mrb[43].mxu1  ;;  %v499_v23 = vld [vmem:[#allocation2 + $0x50] sm:$0xff] }
 0x195   : > { %v1647_v33 = vadd.f32 %v1646_v5, %v1550_v31  ;;  %v1553_v34 = vadd.f32 %v2484_v30, %v3117_v26 }
 0x197   : > { %v1697_v37 = vadd.f32 %v1647_v33, %v493_v12  ;;  %v1650_v41 = vadd.f32 %v1649_v11, %v1553_v34  ;;  %v2485_v42 = vpop.f32.mrb[44].mxu0  ;;  %v498_v11 = vld [vmem:[#allocation2 + $0x48] sm:$0xff] }
 0x198   : > { %v2486_v43 = vpop.f32.mrb[45].mxu0  ;;  %v3147_v44 = vpop.f32.mrb[44].mxu1 }
 0x199   : > { %1713 = vst [vmem:[#allocation2 + $0x20] sm:$0xff] %v1697_v37  ;;  %v1698_v45 = vadd.f32 %v1650_v41, %v494_v35  ;;  %v2487_v46 = vadd.f32 %v2486_v43, %v2485_v42  ;;  %v2488_v47 = vpop.f32.mrb[46].mxu0  ;;  %v1678_v48 = vpop.f32.mrb[45].mxu1  ;;  %v501_v35 = vld [vmem:[#allocation2 + $0x60] sm:$0xff]  ;;  %v502_v41 = vld [vmem:[#allocation2 + $0x68] sm:$0xff] }
 0x19a   : > { %v2489_v49 = vpop.f32.mrb[47].mxu0  ;;  %v3149_v50 = vpop.f32.mrb[46].mxu1 }
 0x19b   : > { %1714 = vst [vmem:[#allocation2 + $0x28] sm:$0xff] %v1698_v45  ;;  %v1558_v24 = vadd.f32 %v2487_v46, %v3119_v38  ;;  %v2490_v51 = vadd.f32 %v2489_v49, %v2488_v47  ;;  %v1681_v26 = vpop.f32.mrb[47].mxu1 }
 0x19d   : > { %v1655_v55 = vadd.f32 %v2553_v0, %v1558_v24  ;;  %v1561_v56 = vadd.f32 %v2490_v51, %v3121_v40 }
 0x19f   : > { %v1699_v58 = vadd.f32 %v1655_v55, %v495_v53  ;;  %v1658_v59 = vadd.f32 %v2554_v8, %v1561_v56  ;;  %v2491_v61 = vpop.f32.mrb[48].mxu0  ;;  %v503_v53 = vld [vmem:[#allocation2 + $0x70] sm:$0xff] }
 0x1a0   : > { %v2492_v63 = vpop.f32.mrb[49].mxu0 }
 0x1a1   : > { %1715 = vst [vmem:[#allocation2 + $0x30] sm:$0xff] %v1699_v58  ;;  %v1700_v1 = vadd.f32 %v1658_v59, %v496_v57  ;;  %v2493_v2 = vadd.f32 %v2492_v63, %v2491_v61  ;;  %v2494_v3 = vpop.f32.mrb[50].mxu0  ;;  %v1729_v57 = vld [vmem:[#allocation2] sm:$0xff] (!%p2198_p11)  ;;  %v1730_v58 = vld [vmem:[#allocation2 + $0x8] sm:$0xff] (!%p2198_p11)  ;;  %v1731_v59 = vld [vmem:[#allocation2 + $0x10] sm:$0xff] (!%p2198_p11) }
 0x1a2   : > { %v2495_v5 = vpop.f32.mrb[51].mxu0  ;;  %v1732_v61 = vld [vmem:[#allocation2 + $0x18] sm:$0xff] (!%p2198_p11) }
 0x1a3   : > { %1716 = vst [vmem:[#allocation2 + $0x38] sm:$0xff] %v1700_v1  ;;  %v2496_v7 = vadd.f32 %v2495_v5, %v2494_v3  ;;  %v1566_v38 = vadd.f32 %v2493_v2, %v3123_v52  ;;  %v2309_v5 = vld [vmem:[%s3252_s3 + $0x8] sm:$0xff] (!%p2198_p11)  }
 0x1a5   : > { %v1663_v9 = vadd.f32 %v1662_v28, %v1566_v38  ;;  %v1569_v0 = vadd.f32 %v2496_v7, %v3125_v54  ;;  %v500_v54 = vld [vmem:[#allocation2 + $0x58] sm:$0xff]  ;;  %v1733_v7 = vld [vmem:[#allocation2 + $0x20] sm:$0xff] (!%p2198_p11)  ;;  %v1734_v38 = vld [vmem:[#allocation2 + $0x28] sm:$0xff] (!%p2198_p11) }
 0x1a7   : > { %v1701_v40 = vadd.f32 %v1663_v9, %v497_v60  ;;  %v1666_v13 = vadd.f32 %v1665_v32, %v1569_v0  ;;  %v2497_v62 = vpop.f32.mrb[52].mxu0  ;;  %v2243_v60 = vunpack.c.l.bf16 (!%p2198_p11), %v2309_v5  ;;  %v2244_v9 = vunpack.c.h.bf16 (!%p2198_p11), %v2309_v5 }
 0x1a8   : > { %v2498_v8 = vpop.f32.mrb[53].mxu0 }
 0x1a9   : > { %1717 = vst [vmem:[#allocation2 + $0x40] sm:$0xff] %v1701_v40  ;;  %v1702_v14 = vadd.f32 %v1666_v13, %v498_v11  ;;  %v2499_v15 = vadd.f32 %v2498_v8, %v2497_v62  ;;  %v2500_v16 = vpop.f32.mrb[54].mxu0  ;;  %v2310_v40 = vld [vmem:[%s3252_s3 + $0x10] sm:$0xff] (!%p2198_p11)  }
 0x1aa   : > { %v2501_v17 = vpop.f32.mrb[55].mxu0  ;;  %v1735_v13 = vld [vmem:[#allocation2 + $0x30] sm:$0xff] (!%p2198_p11)  ;;  %v1736_v62 = vld [vmem:[#allocation2 + $0x38] sm:$0xff] (!%p2198_p11) }
 0x1ab   : > { %1718 = vst [vmem:[#allocation2 + $0x48] sm:$0xff] %v1702_v14  ;;  %v1574_v18 = vadd.f32 %v2499_v15, %v3127_v4  ;;  %v2502_v19 = vadd.f32 %v2501_v17, %v2500_v16  ;;  %v2247_v15 = vunpack.c.l.bf16 (!%p2198_p11), %v2310_v40  ;;  %v2248_v16 = vunpack.c.h.bf16 (!%p2198_p11), %v2310_v40  ;;  %v2311_v17 = vld [vmem:[%s3252_s3 + $0x18] sm:$0xff] (!%p2198_p11)  }
 0x1ad   : > { %v1671_v52 = vadd.f32 %v3143_v21, %v1574_v18  ;;  %v1577_v25 = vadd.f32 %v2502_v19, %v3129_v6 }
 0x1af   : > { %v1703_v27 = vadd.f32 %v1671_v52, %v499_v23  ;;  %v1674_v28 = vadd.f32 %v2558_v10, %v1577_v25  ;;  %v2503_v29 = vpop.f32.mrb[56].mxu0 }
 0x1b0   : > { %v2504_v30 = vpop.f32.mrb[57].mxu0  ;;  %v1737_v25 = vld [vmem:[#allocation2 + $0x40] sm:$0xff] (!%p2198_p11) }
 0x1b1   : > { %1719 = vst [vmem:[#allocation2 + $0x50] sm:$0xff] %v1703_v27  ;;  %v1704_v31 = vadd.f32 %v1674_v28, %v500_v54  ;;  %v2505_v32 = vadd.f32 %v2504_v30, %v2503_v29  ;;  %v2506_v12 = vpop.f32.mrb[58].mxu0 }
 0x1b2   : > { %v2507_v33 = vpop.f32.mrb[59].mxu0  ;;  %v1738_v30 = vld [vmem:[#allocation2 + $0x48] sm:$0xff] (!%p2198_p11) }
 0x1b3   : > { %1720 = vst [vmem:[#allocation2 + $0x58] sm:$0xff] %v1704_v31  ;;  %v2508_v34 = vadd.f32 %v2507_v33, %v2506_v12  ;;  %v1582_v4 = vadd.f32 %v2505_v32, %v3131_v20  ;;  %v2251_v12 = vunpack.c.l.bf16 (!%p2198_p11), %v2311_v17  ;;  %v2252_v33 = vunpack.c.h.bf16 (!%p2198_p11), %v2311_v17 }
 0x1b5   : > { %v1679_v37 = vadd.f32 %v1678_v48, %v1582_v4  ;;  %v1585_v21 = vadd.f32 %v2508_v34, %v3133_v22  ;;  %v504_v22 = vld [vmem:[#allocation2 + $0x78] sm:$0xff]  ;;  %v2312_v34 = vld [vmem:[%s3252_s3 + $0x20] sm:$0xff] (!%p2198_p11)  }
 0x1b7   : > { %v1705_v6 = vadd.f32 %v1679_v37, %v501_v35  ;;  %v1682_v42 = vadd.f32 %v1681_v26, %v1585_v21  ;;  %v2509_v43 = vpop.f32.mrb[60].mxu0 }
 0x1b8   : > { %v2510_v10 = vpop.f32.mrb[61].mxu0  ;;  %v1739_v4 = vld [vmem:[#allocation2 + $0x50] sm:$0xff] (!%p2198_p11) }
 0x1b9   : > { %1721 = vst [vmem:[#allocation2 + $0x60] sm:$0xff] %v1705_v6  ;;  %v1706_v45 = vadd.f32 %v1682_v42, %v502_v41  ;;  %v2511_v46 = vadd.f32 %v2510_v10, %v2509_v43  ;;  %v2512_v47 = vpop.f32.mrb[62].mxu0  ;;  %v2313_v42 = vld [vmem:[%s3252_s3 + $0x28] sm:$0xff] (!%p2198_p11)  }
 0x1ba   : > { %v2513_v49 = vpop.f32.mrb[63].mxu0  ;;  %v1740_v6 = vld [vmem:[#allocation2 + $0x58] sm:$0xff] (!%p2198_p11) }
 0x1bb   : > { %1722 = vst [vmem:[#allocation2 + $0x68] sm:$0xff] %v1706_v45  ;;  %v1590_v24 = vadd.f32 %v2511_v46, %v3135_v36  ;;  %v2514_v51 = vadd.f32 %v2513_v49, %v2512_v47  ;;  %v3168_v36 = vld [vmem:[%s3251_s2] ss:$0 sm:$0xff] (!%p2198_p11) }
 0x1bc   : > { %v1754_v2 = vadd.f32 (!%p2198_p11), %v3168_v36, %v1731_v59  ;;  %v1755_v3 = vadd.f32 (!%p2198_p11), %v3168_v36, %v1732_v61  ;;  %v1756_v0 = vadd.f32 (!%p2198_p11), %v3168_v36, %v1733_v7  ;;  %v1757_v11 = vadd.f32 (!%p2198_p11), %v3168_v36, %v1734_v38 }
 0x1bd   : > { %v1687_v20 = vadd.f32 %v3147_v44, %v1590_v24  ;;  %v1593_v48 = vadd.f32 %v2514_v51, %v3137_v39  ;;  %1728 = sbr.rel (%p2198_p11) target bundleno = 468 (0x1d4), region = 70  ;;  %v1752_v44 = vadd.f32 (!%p2198_p11), %v3168_v36, %v1729_v57  ;;  %v1753_v39 = vadd.f32 (!%p2198_p11), %v3168_v36, %v1730_v58 }
 0x1be   : > { %v1802_v18 = vadd.f32 (!%p2198_p11), %v2243_v60, %v1754_v2  ;;  %v1803_v19 = vadd.f32 (!%p2198_p11), %v2244_v9, %v1755_v3  ;;  %v1758_v23 = vadd.f32 (!%p2198_p11), %v3168_v36, %v1735_v13  ;;  %v1759_v52 = vadd.f32 (!%p2198_p11), %v3168_v36, %v1736_v62  ;;  %v2315_v3 = vld [vmem:[%s3252_s3 + $0x38] sm:$0xff] (!%p2198_p11)  }
 0x1bf   : > { %v1707_v55 = vadd.f32 %v1687_v20, %v503_v53  ;;  %v1690_v26 = vadd.f32 %v3149_v50, %v1593_v48  ;;  %v2238_v50 = vld [vmem:[%s3252_s3] sm:$0xff] (!%p2198_p11)   ;;  %v1804_v28 = vadd.f32 (!%p2198_p11), %v2247_v15, %v1756_v0  ;;  %v1805_v29 = vadd.f32 (!%p2198_p11), %v2248_v16, %v1757_v11  ;;  %v2314_v48 = vld [vmem:[%s3252_s3 + $0x30] sm:$0xff] (!%p2198_p11)  }
 0x1c0   : > { %v2239_v63 = vunpack.c.l.bf16 (!%p2198_p11), %v2238_v50  ;;  %v2240_v1 = vunpack.c.h.bf16 (!%p2198_p11), %v2238_v50  ;;  %v1818_v31 = vmax.f32 (!%p2198_p11), %v1802_v18, 0.0  ;;  %v1819_v32 = vmax.f32 (!%p2198_p11), %v1803_v19, 0.0  ;;  %v1741_v47 = vld [vmem:[#allocation2 + $0x60] sm:$0xff] (!%p2198_p11) }
 0x1c1   : > { %1723 = vst [vmem:[#allocation2 + $0x70] sm:$0xff] %v1707_v55  ;;  %v1708_v56 = vadd.f32 %v1690_v26, %v504_v22  ;;  %v1820_v37 = vmax.f32 (!%p2198_p11), %v1804_v28, 0.0  ;;  %v1821_v21 = vmax.f32 (!%p2198_p11), %v1805_v29, 0.0  ;;  %v1760_v41 = vadd.f32 (!%p2198_p11), %v3168_v36, %v1737_v25 }
 0x1c2   : > { %v1800_v8 = vadd.f32 (!%p2198_p11), %v2239_v63, %v1752_v44  ;;  %v1801_v14 = vadd.f32 (!%p2198_p11), %v2240_v1, %v1753_v39  ;;  %v2277_v43 = vpack.c.bf16 (!%p2198_p11), %v1819_v32, %v1818_v31  ;;  %v1806_v10 = vadd.f32 (!%p2198_p11), %v2251_v12, %v1758_v23  ;;  %v1742_v20 = vld [vmem:[#allocation2 + $0x68] sm:$0xff] (!%p2198_p11) }
 0x1c3   : > { %1724 = vst [vmem:[#allocation2 + $0x78] sm:$0xff] %v1708_v56  ;;  %v1807_v45 = vadd.f32 (!%p2198_p11), %v2252_v33, %v1759_v52  ;;  %v1761_v46 = vadd.f32 (!%p2198_p11), %v3168_v36, %v1738_v30  ;;  %v2282_v49 = vpack.c.bf16 (!%p2198_p11), %v1821_v21, %v1820_v37  ;;  %v2255_v24 = vunpack.c.l.bf16 (!%p2198_p11), %v2312_v34 }
 0x1c4   : > { %v1816_v54 = vmax.f32 %v1800_v8, 0.0  ;;  %v1817_v27 = vmax.f32 %v1801_v14, 0.0  ;;  %v2256_v51 = vunpack.c.h.bf16 %v2312_v34  ;;  %v1762_v53 = vadd.f32 %v3168_v36, %v1739_v4  ;;  %2316 = vst [vmem:[%s3253_s4 + $0x8] sm:$0xff] %v2277_v43  }
 0x1c5   : > { %v1822_v22 = vmax.f32 %v1806_v10, 0.0  ;;  %v1823_v55 = vmax.f32 %v1807_v45, 0.0  ;;  %v1763_v26 = vadd.f32 %v3168_v36, %v1740_v6  ;;  %v2259_v56 = vunpack.c.l.bf16 %v2313_v42  ;;  %2317 = vst [vmem:[%s3253_s4 + $0x10] sm:$0xff] %v2282_v49  }
 0x1c6   : > { %v2272_v35 = vpack.c.bf16 %v1817_v27, %v1816_v54  ;;  %v1808_v57 = vadd.f32 %v2255_v24, %v1760_v41  ;;  %v1809_v58 = vadd.f32 %v2256_v51, %v1761_v46  ;;  %v2260_v44 = vunpack.c.h.bf16 %v2313_v42 }
 0x1c7   : > { %v1764_v39 = vadd.f32 %v3168_v36, %v1741_v47  ;;  %v2287_v61 = vpack.c.bf16 %v1823_v55, %v1822_v22  ;;  %v1810_v63 = vadd.f32 %v2259_v56, %v1762_v53  ;;  %v1765_v1 = vadd.f32 %v3168_v36, %v1742_v20 }
 0x1c8   : > { %2273 = vst [vmem:[%s3253_s4] sm:$0xff] %v2272_v35   ;;  %v1743_v50 = vld [vmem:[#allocation2 + $0x70] sm:$0xff]  ;;  %v2263_v2 = vunpack.c.l.bf16 %v2314_v48  ;;  %v1824_v5 = vmax.f32 %v1808_v57, 0.0  ;;  %v1825_v7 = vmax.f32 %v1809_v58, 0.0  ;;  %v1811_v38 = vadd.f32 %v2260_v44, %v1763_v26 }
 0x1c9   : > { %v2264_v60 = vunpack.c.h.bf16 %v2314_v48  ;;  %2318 = vst [vmem:[%s3253_s4 + $0x18] sm:$0xff] %v2287_v61   ;;  %v1826_v9 = vmax.f32 %v1810_v63, 0.0  ;;  %v1766_v11 = vadd.f32 %v3168_v36, %v1743_v50  ;;  %v2267_v14 = vunpack.c.l.bf16 %v2315_v3 }
 0x1ca   : > { %v1744_v59 = vld [vmem:[#allocation2 + $0x78] sm:$0xff]  ;;  %v1812_v0 = vadd.f32 %v2263_v2, %v1764_v39  ;;  %v2292_v13 = vpack.c.bf16 %v1825_v7, %v1824_v5  ;;  %v1827_v62 = vmax.f32 %v1811_v38, 0.0  ;;  %v2268_v16 = vunpack.c.h.bf16 %v2315_v3 }
 0x1cb   : > { %v1767_v40 = vadd.f32 %v3168_v36, %v1744_v59  ;;  %v1813_v8 = vadd.f32 %v2264_v60, %v1765_v1  ;;  %v1814_v19 = vadd.f32 %v2267_v14, %v1766_v11 }
 0x1cc   : > { %v1828_v15 = vmax.f32 %v1812_v0, 0.0  ;;  %2319 = vst [vmem:[%s3253_s4 + $0x20] sm:$0xff] %v2292_v13   ;;  %v2297_v17 = vpack.c.bf16 %v1827_v62, %v1826_v9 }
 0x1cd   : > { %v1829_v18 = vmax.f32 %v1813_v8, 0.0  ;;  %v1815_v23 = vadd.f32 %v2268_v16, %v1767_v40  ;;  %v1830_v36 = vmax.f32 %v1814_v19, 0.0 }
 0x1ce   : > { %2320 = vst [vmem:[%s3253_s4 + $0x28] sm:$0xff] %v2297_v17  }
 0x1cf   : > { %v2302_v52 = vpack.c.bf16 %v1829_v18, %v1828_v15  ;;  %v1831_v25 = vmax.f32 %v1815_v23, 0.0 }
 0x1d1   : > { %2321 = vst [vmem:[%s3253_s4 + $0x30] sm:$0xff] %v2302_v52   ;;  %v2307_v54 = vpack.c.bf16 %v1831_v25, %v1830_v36 }
 0x1d3   : > { %2322 = vst [vmem:[%s3253_s4 + $0x38] sm:$0xff] %v2307_v54  }
 0x1d4 PF: > { %s14_s19 = sadd.s32 1, %s2780_s19   ;;  %s3254_s15 = smov %s2768_s16 }
 0x1d5   : > { %p11_p12 = scmp.ge.s32.totalorder %s14_s19, 4   ;;  %s3255_s16 = smov %s2843_s23 }
 0x1d6   : > { %s3256_s17 = smov %s2776_s18  ;;  %s3257_s18 = smov %s3259_s20 }
 0x1d7   :  { %13 = sbr.rel (!%p11_p12) target bundleno = 3 (0x3), region = 120 }

// kernel: model_forward.14
= control target key start
LH: loop header
LB: loop body
LE: loop exit
PB: predicated region body
PF: predicated region fallthrough
CT: control target
= control target key end

     0   :  { %s1467_s12 = smov 0   ;;  %s1469_s13 = smov 0   ;;  %s1607_s0 = inlined_call_operand.vmem [shape: bf16[16,1792], index: 0, kind: input, shape index: {}]   ;;  %s1608_s1 = inlined_call_operand.vmem [shape: bf16[1792,128], index: 1, kind: input, shape index: {}]   ;;  %s1609_s2 = inlined_call_operand.vmem [shape: f32[1,128], index: 2, kind: input, shape index: {}]   ;;  %s1610_s3 = inlined_call_operand.vmem [shape: bf16[16,128], index: 3, kind: output, shape index: {}]  }
   0x1   :  { %s1471_s14 = smov 0   ;;  %s1473_s15 = smov 0  }
   0x2   :  { %s1475_s16 = smov 0  }
   0x3 LB: > { %s25_s17 = sadd.s32 1, %s1438_s15  ;;  %p48_p1 = scmp.ne.s32.totalorder %s1430_s13, %s1426_s12  ;;  %s1442_s16 = sphi %s1475_s16, %s13_s16   ;;  %s1438_s15 = sphi %s1473_s15, %s1614_s15   ;;  %s1434_s14 = sphi %s1471_s14, %s1613_s14   ;;  %s1430_s13 = sphi %s1469_s13, %s1612_s13   ;;  %s1426_s12 = sphi %s1467_s12, %s1611_s12  }
   0x4   : > { %p26_p0 = scmp.ge.s32.totalorder %s25_s17, 2  ;;  %p49_p2 = scmp.eq.s32.totalorder %s1442_s16, 0 }
   0x5   : > { %s41_s19 = sadd.s32 1, %s1430_s13  ;;  %p1110_p5 = scmp.ge.s32.totalorder %s1442_s16, 2 }
   0x6   : > { %s1616_s17 = smov (%p26_p0, %s25_s17), 0  ;;  %p50_p3 = por %p49_p2, %p48_p1 }
   0x7   : > { %s37_s18 = ssub.s32 %s1438_s15, %s1616_s17  ;;  %162 = sbr.rel (%p1110_p5) target bundleno = 23 (0x17), region = 20 }
   0x8   : > { %p39_p4 = scmp.eq.s32.totalorder %s37_s18, 0 }
   0xa   : > { %s1502_s20 = scalar_select %p39_p4, %s1430_s13, %s41_s19  }
   0xe   : > { %165 = sbr.rel (!%p50_p3) target bundleno = 23 (0x17), region = 24  ;;  %s167_s21 = sand.u32 (%p50_p3), 1, %s1430_s13  }
   0xf   : > { %s1190_s22 = smul.u32 (%p50_p3), 28, %s1438_s15 }
  0x10   : > { %s1293_s23 = smul.u32 (%p50_p3), 56, %s167_s21 }
  0x11   : > { %s175_s26 = scalar_lea.vmem (%p50_p3), %s1607_s0, %s1190_s22 }
  0x12   : > { %v190_v0 = vld [vmem:[%s175_s26] sm:$0xff] (%p50_p3)  ;;  %v192_v1 = vld [vmem:[%s175_s26 + $0x8] sm:$0xff] (%p50_p3)  ;;  %v194_v2 = vld [vmem:[%s175_s26 + $0x10] sm:$0xff] (%p50_p3)  ;;  %s169_s27 = scalar_lea.vmem (%p50_p3), [#allocation3], %s1293_s23 }
  0x13   : > { %191 = vst [vmem:[%s169_s27] sm:$0xff] (%p50_p3), %v190_v0  ;;  %193 = vst [vmem:[%s169_s27 + $0x8] sm:$0xff] (%p50_p3), %v192_v1  ;;  %v196_v3 = vld [vmem:[%s175_s26 + $0x38] sm:$0xff] (%p50_p3)  ;;  %v198_v4 = vld [vmem:[%s175_s26 + $0x40] sm:$0xff] (%p50_p3) }
  0x14   : > { %195 = vst [vmem:[%s169_s27 + $0x10] sm:$0xff] (%p50_p3), %v194_v2  ;;  %v200_v5 = vld [vmem:[%s175_s26 + $0x48] sm:$0xff] (%p50_p3)  ;;  %197 = vst [vmem:[%s169_s27 + $0x1c] sm:$0xff] (%p50_p3), %v196_v3  ;;  %v1112_v6 = vld [vmem:[%s175_s26 + $0x18] sm:$0xf] (%p50_p3) }
  0x15   : > { %199 = vst [vmem:[%s169_s27 + $0x24] sm:$0xff] %v198_v4  ;;  %201 = vst [vmem:[%s169_s27 + $0x2c] sm:$0xff] %v200_v5  ;;  %v1114_v7 = vld [vmem:[%s175_s26 + $0x50] sm:$0xf] }
  0x16   : > { %1113 = vst [vmem:[%s169_s27 + $0x18] sm:$0xf] %v1112_v6  ;;  %1115 = vst [vmem:[%s169_s27 + $0x34] sm:$0xf] %v1114_v7 }
  0x17 PF: > { %p1116_p6 = scmp.ge.s32.totalorder %s1442_s16, 1  ;;  %p229_p7 = scmp.lt.s32.totalorder %s1442_s16, 3 }
  0x19   : > { %p230_p8 = pnand %p1116_p6, %p229_p7 }
  0x1a   : > { %s236_s28 = sand.u32 (!%p230_p8), 1, %s1426_s12   ;;  %s275_s29 = smul.u32 (!%p230_p8), 112, %s1434_s14 }
  0x1b   : > { %233 = sbr.rel (%p230_p8) target bundleno = 345 (0x159), region = 54  ;;  %p1118_p10 = scmp.ne.s32.totalorder (!%p230_p8), %s1434_s14, 0 }
  0x1c   : > { %s1294_s30 = smul.u32 (!%p230_p8), 56, %s236_s28  ;;  %p276_p9 = scmp.lt.s32.totalorder (!%p230_p8), %s275_s29, 223 }
  0x1e   : > { %s1519_s8 = scalar_lea.vmem (!%p230_p8), [#allocation3], %s1294_s30 }
  0x22   : > { %s1618_s29 = smov (!%p276_p9, %s275_s29), 223  ;;  %300 = sbr.rel (%p1118_p10) target bundleno = 41 (0x29), region = 62 }
  0x23   : > { %s1117_s4 = sshll.u32 %s1618_s29, 2  ;;  %v1444_v8 = vmov (!%p1118_p10), 0.0  }
  0x24   : > { %s1517_s7 = scalar_lea.vmem %s1608_s1, %s1117_s4  ;;  %301 = vst [vmem:[#allocation2] sm:$0xff] (!%p1118_p10), %v1444_v8  ;;  %302 = vst [vmem:[#allocation2 + $0x8] sm:$0xff] (!%p1118_p10), %v1444_v8 }
  0x29 PF: > { %v1338_v9 = vld [vmem:[%s1517_s7 + $0x40] sm:$0xff]   ;;  %v1342_v13 = vld [vmem:[%s1517_s7 + $0x48] sm:$0xff]   ;;  %v1346_v17 = vld [vmem:[%s1517_s7 + $0x50] sm:$0xff]   ;;  %v1445_v45 = vmov 0.0   ;;  %vm1446_vm0 = vmmov 0   ;;  %p1182_p11 = scmp.ne.s32.totalorder %s1434_s14, 1 }
  0x2a   : > { %v1339_v10 = vld [vmem:[%s1517_s7 + $0xc0] sm:$0xff]   ;;  %1198 = vmatprep.subr.bf16.mxu0 %v1338_v9  ;;  %v1343_v14 = vld [vmem:[%s1517_s7 + $0xc8] sm:$0xff]   ;;  %v1347_v18 = vld [vmem:[%s1517_s7 + $0xd0] sm:$0xff]  }
  0x2b   : > { %v1340_v11 = vld [vmem:[%s1517_s7] sm:$0xff]   ;;  %1220 = vmatprep.subr.bf16.mxu1 %v1339_v10  ;;  %v1344_v15 = vld [vmem:[%s1517_s7 + $0x8] sm:$0xff]   ;;  %v1348_v19 = vld [vmem:[%s1517_s7 + $0x10] sm:$0xff]  }
  0x2c   : > { %v1341_v12 = vld [vmem:[%s1517_s7 + $0x80] sm:$0xff]   ;;  %1199 = vmatpush3.bf16.msra.mxu0 %v1340_v11  ;;  %v1345_v16 = vld [vmem:[%s1517_s7 + $0x88] sm:$0xff]   ;;  %v1349_v20 = vld [vmem:[%s1517_s7 + $0x90] sm:$0xff]  }
  0x2d   : > { %1221 = vmatpush3.bf16.msra.mxu1 %v1341_v12  ;;  %1200 = vmatprep.subr.bf16.mxu0 %v1342_v13  ;;  %v1350_v21 = vld [vmem:[%s1517_s7 + $0x58] sm:$0xff]   ;;  %v1354_v25 = vld [vmem:[%s1517_s7 + $0x60] sm:$0xff]   ;;  %v1358_v29 = vld [vmem:[%s1517_s7 + $0x68] sm:$0xff]  }
  0x2e   : > { %1222 = vmatprep.subr.bf16.mxu1 %v1343_v14  ;;  %v1351_v22 = vld [vmem:[%s1517_s7 + $0xd8] sm:$0xff]   ;;  %v1355_v26 = vld [vmem:[%s1517_s7 + $0xe0] sm:$0xff]   ;;  %v1359_v30 = vld [vmem:[%s1517_s7 + $0xe8] sm:$0xff]  }
  0x2f   : > { %v1352_v23 = vld [vmem:[%s1517_s7 + $0x18] sm:$0xff]   ;;  %v1356_v27 = vld [vmem:[%s1517_s7 + $0x20] sm:$0xff]   ;;  %v1360_v31 = vld [vmem:[%s1517_s7 + $0x28] sm:$0xff]  }
  0x30   : > { %1201 = vmatpush3.bf16.msra.mxu0 %v1344_v15  ;;  %v1353_v24 = vld [vmem:[%s1517_s7 + $0x98] sm:$0xff]   ;;  %v1357_v28 = vld [vmem:[%s1517_s7 + $0xa0] sm:$0xff]   ;;  %v1361_v32 = vld [vmem:[%s1517_s7 + $0xa8] sm:$0xff]  }
  0x31   : > { %1223 = vmatpush3.bf16.msra.mxu1 %v1345_v16  ;;  %1202 = vmatprep.subr.bf16.mxu0 %v1346_v17  ;;  %v1362_v33 = vld [vmem:[%s1517_s7 + $0x70] sm:$0xff]   ;;  %v1366_v37 = vld [vmem:[%s1517_s7 + $0x78] sm:$0xff]   ;;  %v1376_v46 = vld [vmem:[%s1517_s7 + $0x140] sm:$0xff]  }
  0x32   : > { %1224 = vmatprep.subr.bf16.mxu1 %v1347_v18  ;;  %v1363_v34 = vld [vmem:[%s1517_s7 + $0xf0] sm:$0xff]   ;;  %v1367_v38 = vld [vmem:[%s1517_s7 + $0xf8] sm:$0xff]   ;;  %v1377_v47 = vld [vmem:[%s1517_s7 + $0x100] sm:$0xff]  }
  0x33   : > { %v1364_v35 = vld [vmem:[%s1517_s7 + $0x30] sm:$0xff]   ;;  %v1368_v39 = vld [vmem:[%s1517_s7 + $0x38] sm:$0xff]   ;;  %v1378_v48 = vld [vmem:[%s1517_s7 + $0x180] sm:$0xff]  }
  0x34   : > { %1203 = vmatpush3.bf16.msra.mxu0 %v1348_v19  ;;  %v1365_v36 = vld [vmem:[%s1517_s7 + $0xb0] sm:$0xff]   ;;  %v1369_v40 = vld [vmem:[%s1517_s7 + $0xb8] sm:$0xff]   ;;  %v1379_v49 = vld [vmem:[%s1517_s7 + $0x148] sm:$0xff]  }
  0x35   : > { %1225 = vmatpush3.bf16.msra.mxu1 %v1349_v20  ;;  %1204 = vmatprep.subr.bf16.mxu0 %v1350_v21  ;;  %v1370_v41 = vld [vmem:[%s1519_s8] ss:$28 sps:$4 sm:$0xff]   ;;  %v1373_v43 = vld [vmem:[%s1519_s8 + $0x8] ss:$28 sps:$4 sm:$0xff]   ;;  %v1401_v3 = vld [vmem:[%s1519_s8 + $0x14] ss:$28 sps:$4 sm:$0xff]  }
  0x36   : > { %1226 = vmatprep.subr.bf16.mxu1 %v1351_v22  ;;  %v1372_v42 = vld [vmem:[%s1519_s8 + $0x4] ss:$28 sps:$4 sm:$0xff]   ;;  %v1375_v44 = vld [vmem:[%s1519_s8 + $0xc] ss:$28 sps:$4 sm:$0xff]   ;;  %v1388_v58 = vld [vmem:[%s1517_s7 + $0x160] sm:$0xff]  }
  0x37   : > { %829 = vmatprep.mubr.bf16.mxu0 %v1372_v42  ;;  %870 = vmatprep.mubr.bf16.mxu1 %v1375_v44  ;;  %v1380_v50 = vld [vmem:[%s1517_s7 + $0x108] sm:$0xff]   ;;  %v1382_v52 = vld [vmem:[%s1517_s7 + $0x150] sm:$0xff]   ;;  %v1385_v55 = vld [vmem:[%s1517_s7 + $0x158] sm:$0xff]  }
  0x38   : > { %1205 = vmatpush3.bf16.msra.mxu0 %v1352_v23  ;;  %v1381_v51 = vld [vmem:[%s1517_s7 + $0x188] sm:$0xff]   ;;  %v1383_v53 = vld [vmem:[%s1517_s7 + $0x110] sm:$0xff]   ;;  %v1386_v56 = vld [vmem:[%s1517_s7 + $0x118] sm:$0xff]  }
  0x39   : > { %1227 = vmatpush3.bf16.msra.mxu1 %v1353_v24  ;;  %1206 = vmatprep.subr.bf16.mxu0 %v1354_v25  ;;  %v1384_v54 = vld [vmem:[%s1517_s7 + $0x190] sm:$0xff]   ;;  %v1387_v57 = vld [vmem:[%s1517_s7 + $0x198] sm:$0xff]   ;;  %v1389_v59 = vld [vmem:[%s1517_s7 + $0x120] sm:$0xff]  }
  0x3a   : > { %1228 = vmatprep.subr.bf16.mxu1 %v1355_v26  ;;  %v1390_v60 = vld [vmem:[%s1517_s7 + $0x1a0] sm:$0xff]   ;;  %v1391_v61 = vld [vmem:[%s1517_s7 + $0x168] sm:$0xff]   ;;  %v1394_v0 = vld [vmem:[%s1517_s7 + $0x170] sm:$0xff]  }
  0x3b   : > { %v1392_v62 = vld [vmem:[%s1517_s7 + $0x128] sm:$0xff]   ;;  %v1395_v1 = vld [vmem:[%s1517_s7 + $0x130] sm:$0xff]   ;;  %v1397_v4 = vld [vmem:[%s1517_s7 + $0x178] sm:$0xff]  }
  0x3c   : > { %1207 = vmatpush3.bf16.msra.mxu0 %v1356_v27  ;;  %v1393_v63 = vld [vmem:[%s1517_s7 + $0x1a8] sm:$0xff]   ;;  %v1396_v2 = vld [vmem:[%s1517_s7 + $0x1b0] sm:$0xff]   ;;  %v1398_v5 = vld [vmem:[%s1517_s7 + $0x138] sm:$0xff]  }
  0x3d   : > { %1229 = vmatpush3.bf16.msra.mxu1 %v1357_v28  ;;  %1208 = vmatprep.subr.bf16.mxu0 %v1358_v29  ;;  %v1402_v6 = vld [vmem:[%s1517_s7 + $0x1b8] sm:$0xff]  }
  0x3e   : > { %1230 = vmatprep.subr.bf16.mxu1 %v1359_v30  ;;  %v1399_v7 = vld [vmem:[%s1519_s8 + $0x10] ss:$28 sps:$4 sm:$0xff]   ;;  %v1403_v8 = vld [vmem:[%s1519_s8 + $0x18] ss:$28 sps:$4 sm:$0xff]  }
  0x40   : > { %1209 = vmatpush3.bf16.msra.mxu0 %v1360_v31 }
  0x41   : > { %1231 = vmatpush3.bf16.msra.mxu1 %v1361_v32  ;;  %1210 = vmatprep.subr.bf16.mxu0 %v1362_v33 }
  0x42   : > { %1232 = vmatprep.subr.bf16.mxu1 %v1363_v34  ;;  %v303_v34 = vld [vmem:[#allocation2] sm:$0xff] }
  0x44   : > { %1211 = vmatpush3.bf16.msra.mxu0 %v1364_v35 }
  0x45   : > { %1233 = vmatpush3.bf16.msra.mxu1 %v1365_v36  ;;  %1212 = vmatprep.subr.bf16.mxu0 %v1366_v37  ;;  %v304_v37 = vld [vmem:[#allocation2 + $0x8] sm:$0xff] }
  0x46   : > { %1234 = vmatprep.subr.bf16.mxu1 %v1367_v38 }
  0x48   : > { %1213 = vmatpush3.bf16.msra.mxu0 %v1368_v39 }
  0x49   : > { %1235 = vmatpush3.bf16.msra.mxu1 %v1369_v40  ;;  %1242 = vmatprep.subr.bf16.mxu0 %v1376_v46 }
  0x4a   : > { %1273 = vmatprep.subr.bf16.mxu1 %v1445_v45 }
  0x4b   : > { %830 = vmatmul.mubr.bf16.vlgmr.msra.gmra.mrb[0].mxu0 %v1370_v41 }
  0x4c   : > { %871 = vmatmul.mubr.bf16.vlgmr.msra.gmra.mrb[0].mxu1 %v1373_v43  ;;  %1243 = vmatpush3.bf16.msra.mxu0 %v1377_v47  ;;  %v1183_v43 = vld [vmem:[%s1609_s2] ss:$0 sm:$0xff] (!%p1182_p11) }
  0x4d   : > { %1289 = vmatprep.mubr.msk.bf16.mxu1 %vm1446_vm0, %v1445_v45  ;;  %1274 = vmatpush3.bf16.msra.mxu1 %v1378_v48 }
  0x4e   : > { %1244 = vmatprep.subr.bf16.mxu0 %v1379_v49  ;;  %1275 = vmatprep.subr.bf16.mxu1 %v1445_v45 }
  0x4f   : > { %911 = vmatprep.mubr.bf16.mxu0 %v1401_v3 }
  0x50   : > { %1245 = vmatpush3.bf16.msra.mxu0 %v1380_v50 }
  0x51   : > { %1276 = vmatpush3.bf16.msra.mxu1 %v1381_v51  ;;  %1246 = vmatprep.subr.bf16.mxu0 %v1382_v52 }
  0x52   : > { %1277 = vmatprep.subr.bf16.mxu1 %v1445_v45 }
  0x54   : > { %1247 = vmatpush3.bf16.msra.mxu0 %v1383_v53 }
  0x55   : > { %1278 = vmatpush3.bf16.msra.mxu1 %v1384_v54  ;;  %1248 = vmatprep.subr.bf16.mxu0 %v1385_v55 }
  0x56   : > { %1279 = vmatprep.subr.bf16.mxu1 %v1445_v45 }
  0x58   : > { %1249 = vmatpush3.bf16.msra.mxu0 %v1386_v56 }
  0x59   : > { %1280 = vmatpush3.bf16.msra.mxu1 %v1387_v57  ;;  %1250 = vmatprep.subr.bf16.mxu0 %v1388_v58 }
  0x5a   : > { %1281 = vmatprep.subr.bf16.mxu1 %v1445_v45 }
  0x5c   : > { %1251 = vmatpush3.bf16.msra.mxu0 %v1389_v59 }
  0x5d   : > { %1282 = vmatpush3.bf16.msra.mxu1 %v1390_v60  ;;  %1252 = vmatprep.subr.bf16.mxu0 %v1391_v61 }
  0x5e   : > { %1283 = vmatprep.subr.bf16.mxu1 %v1445_v45 }
  0x60   : > { %1253 = vmatpush3.bf16.msra.mxu0 %v1392_v62 }
  0x61   : > { %1284 = vmatpush3.bf16.msra.mxu1 %v1393_v63  ;;  %1254 = vmatprep.subr.bf16.mxu0 %v1394_v0 }
  0x62   : > { %1285 = vmatprep.subr.bf16.mxu1 %v1445_v45 }
  0x64   : > { %1255 = vmatpush3.bf16.msra.mxu0 %v1395_v1 }
  0x65   : > { %1286 = vmatpush3.bf16.msra.mxu1 %v1396_v2  ;;  %1256 = vmatprep.subr.bf16.mxu0 %v1397_v4 }
  0x66   : > { %1287 = vmatprep.subr.bf16.mxu1 %v1445_v45 }
  0x68   : > { %1257 = vmatpush3.bf16.msra.mxu0 %v1398_v5 }
  0x69   : > { %1288 = vmatpush3.bf16.msra.mxu1 %v1402_v6 }
  0x6b   : > { %912 = vmatmul.mubr.bf16.vlgmr.msra.gmra.mrb[4].mxu0 %v1399_v7 }
  0x6c   : > { %1290 = vmatmul.mubr.bf16.vlgmr.msra.gmra.mrb[4].mxu1 %v1403_v8 }
 0x11e   : > { %v1214_v9 = vpop.f32.mrb[0].mxu0 }
 0x11f   : > { %v1236_v10 = vpop.f32.mrb[0].mxu1  ;;  %v1215_v11 = vpop.f32.mrb[1].mxu0 }
 0x120   : > { %v1216_v12 = vadd.f32 %v1215_v11, %v1214_v9  ;;  %v1237_v13 = vpop.f32.mrb[1].mxu1  ;;  %v1217_v14 = vpop.f32.mrb[2].mxu0 }
 0x121   : > { %v1238_v15 = vadd.f32 %v1237_v13, %v1236_v10  ;;  %v1239_v16 = vpop.f32.mrb[2].mxu1  ;;  %v1218_v17 = vpop.f32.mrb[3].mxu0 }
 0x122   : > { %v1219_v18 = vadd.f32 %v1218_v17, %v1217_v14  ;;  %v1240_v19 = vpop.f32.mrb[3].mxu1 }
 0x123   : > { %v873_v20 = vadd.f32 %v1238_v15, %v1216_v12  ;;  %v1241_v21 = vadd.f32 %v1240_v19, %v1239_v16 }
 0x125   : > { %v876_v22 = vadd.f32 %v1241_v21, %v1219_v18 }
 0x13e   : > { %v1258_v23 = vpop.f32.mrb[4].mxu0 }
 0x13f   : > { %v1259_v24 = vpop.f32.mrb[5].mxu0  ;;  %v954_v25 = vpop.f32.mrb[4].mxu1 }
 0x140   : > { %v1260_v26 = vadd.f32 %v1259_v24, %v1258_v23  ;;  %v1261_v27 = vpop.f32.mrb[6].mxu0  ;;  %v1291_v28 = vpop.f32.mrb[5].mxu1 }
 0x141   : > { %v1262_v29 = vpop.f32.mrb[7].mxu0  ;;  %v957_v30 = vpop.f32.mrb[6].mxu1 }
 0x142   : > { %v914_v31 = vadd.f32 %v1260_v26, %v873_v20  ;;  %v1263_v32 = vadd.f32 %v1262_v29, %v1261_v27  ;;  %v1292_v33 = vpop.f32.mrb[7].mxu1 }
 0x144   : > { %v955_v35 = vadd.f32 %v954_v25, %v914_v31  ;;  %v917_v36 = vadd.f32 %v1263_v32, %v876_v22  ;;  %968 = sbr.rel (%p1182_p11) target bundleno = 345 (0x159), region = 66 }
 0x146   : > { %v961_v38 = vadd.f32 %v955_v35, %v303_v34  ;;  %v958_v39 = vadd.f32 %v957_v30, %v917_v36 }
 0x148   : > { %963 = vst [vmem:[#allocation2] sm:$0xff] %v961_v38  ;;  %v962_v40 = vadd.f32 %v958_v39, %v304_v37 }
 0x14a   : > { %964 = vst [vmem:[#allocation2 + $0x8] sm:$0xff] %v962_v40 }
 0x14f   : > { %v969_v41 = vld [vmem:[#allocation2] sm:$0xff] }
 0x150   : > { %v978_v44 = vadd.f32 %v1183_v43, %v969_v41 }
 0x151   : > { %v970_v42 = vld [vmem:[#allocation2 + $0x8] sm:$0xff] }
 0x152   : > { %v979_v45 = vadd.f32 %v1183_v43, %v970_v42  ;;  %v980_v46 = vmax.f32 %v978_v44, 0.0 }
 0x154   : > { %v981_v47 = vmax.f32 %v979_v45, 0.0 }
 0x156   : > { %v1196_v48 = vpack.c.bf16 %v981_v47, %v980_v46 }
 0x158   : > { %1197 = vst [vmem:[%s1610_s3] sm:$0xff] %v1196_v48  }
 0x159 PF: > { %s13_s16 = sadd.s32 1, %s1442_s16   ;;  %s1611_s12 = smov %s1430_s13 }
 0x15a   : > { %p10_p12 = scmp.ge.s32.totalorder %s13_s16, 4   ;;  %s1612_s13 = smov %s1502_s20 }
 0x15b   : > { %s1613_s14 = smov %s1438_s15  ;;  %s1614_s15 = smov %s1616_s17 }
 0x15c   :  { %12 = sbr.rel (!%p10_p12) target bundleno = 3 (0x3), region = 113 }

// kernel: model_forward.17
= control target key start
LH: loop header
LB: loop body
LE: loop exit
PB: predicated region body
PF: predicated region fallthrough
CT: control target
= control target key end

     0   :  { %s1201_s12 = smov 0   ;;  %s1203_s13 = smov 0   ;;  %s1417_s0 = inlined_call_operand.vmem [shape: bf16[16,384], index: 0, kind: input, shape index: {}]   ;;  %s1418_s1 = inlined_call_operand.vmem [shape: bf16[384,256], index: 1, kind: input, shape index: {}]   ;;  %s1419_s2 = inlined_call_operand.vmem [shape: f32[1,256], index: 2, kind: input, shape index: {}]   ;;  %s1420_s3 = inlined_call_operand.vmem [shape: bf16[16,256], index: 3, kind: output, shape index: {}]  }
   0x1   :  { %s1205_s14 = smov 0   ;;  %s1207_s15 = smov 0  }
   0x2   :  { %s1209_s16 = smov 0  }
   0x3 LB: > { %s28_s17 = sadd.s32 1, %s1173_s15  ;;  %s967_s18 = sadd.s32 4294967295, %s1177_s16   ;;  %s1177_s16 = sphi %s1209_s16, %s13_s16   ;;  %s1173_s15 = sphi %s1207_s15, %s1425_s15   ;;  %s1169_s14 = sphi %s1205_s14, %s1424_s14   ;;  %s1165_s13 = sphi %s1203_s13, %s1423_s13   ;;  %s1161_s12 = sphi %s1201_s12, %s1422_s12  }
   0x4   : > { %p30_p0 = scmp.ge.s32.totalorder %s28_s17, 2  ;;  %p76_p1 = scmp.ne.s32.totalorder %s1165_s13, %s1161_s12 }
   0x5   : > { %p77_p2 = scmp.eq.s32.totalorder %s1177_s16, 0  ;;  %p134_p4 = scmp.eq.s32.totalorder %s967_s18, 1 }
   0x6   : > { %s1427_s17 = smov (%p30_p0, %s28_s17), 0  ;;  %s69_s20 = sadd.s32 1, %s1165_s13 }
   0x7   : > { %p78_p3 = por %p77_p2, %p76_p1  ;;  %s65_s19 = ssub.s32 %s1173_s15, %s1427_s17 }
   0x8   : > { %p67_p5 = scmp.eq.s32.totalorder %s65_s19, 0  ;;  %p1236_p6 = por %p134_p4, %p76_p1 }
   0x9   : > { %p971_p7 = scmp.ge.s32.totalorder %s1177_s16, 2 }
   0xa   : > { %s1241_s22 = scalar_select %p67_p5, %s1165_s13, %s69_s20  }
   0xb   : > { %171 = sbr.rel (%p971_p7) target bundleno = 54 (0x36), region = 20 }
  0x12   : > { %174 = sbr.rel (!%p78_p3) target bundleno = 54 (0x36), region = 24  ;;  %s176_s23 = sand.u32 (%p78_p3), 1, %s1165_s13  }
  0x13   : > { %s972_s24 = sshll.u32 (%p78_p3), %s1173_s15, 2  ;;  %s1067_s25 = smul.u32 (%p78_p3), 192, %s176_s23 }
  0x14   : > { %s1249_s28 = scalar_lea.vmem (%p78_p3), %s1418_s1, %s972_s24 }
  0x15   : > { %v199_v0 = vld [vmem:[%s1249_s28] sm:$0xf] (%p78_p3)  ;;  %v201_v1 = vld [vmem:[%s1249_s28 + $0x8] sm:$0xf] (%p78_p3)  ;;  %v203_v2 = vld [vmem:[%s1249_s28 + $0x10] sm:$0xf] (%p78_p3) }
  0x16   : > { %v205_v3 = vld [vmem:[%s1249_s28 + $0x18] sm:$0xf] (%p78_p3)  ;;  %v207_v4 = vld [vmem:[%s1249_s28 + $0x20] sm:$0xf] (%p78_p3)  ;;  %s1256_s29 = scalar_lea.vmem (%p78_p3), [#allocation3], %s1067_s25 }
  0x17   : > { %200 = vst [vmem:[%s1256_s29] sm:$0xf] (%p78_p3), %v199_v0  ;;  %202 = vst [vmem:[%s1256_s29 + $0x4] sm:$0xf] (%p78_p3), %v201_v1  ;;  %v209_v5 = vld [vmem:[%s1249_s28 + $0x28] sm:$0xf] (%p78_p3) }
  0x18   : > { %204 = vst [vmem:[%s1256_s29 + $0x8] sm:$0xf] (%p78_p3), %v203_v2  ;;  %206 = vst [vmem:[%s1256_s29 + $0xc] sm:$0xf] (%p78_p3), %v205_v3  ;;  %v211_v6 = vld [vmem:[%s1249_s28 + $0x30] sm:$0xf] (%p78_p3) }
  0x19   : > { %208 = vst [vmem:[%s1256_s29 + $0x10] sm:$0xf] %v207_v4  ;;  %v213_v7 = vld [vmem:[%s1249_s28 + $0x38] sm:$0xf]  ;;  %210 = vst [vmem:[%s1256_s29 + $0x14] sm:$0xf] %v209_v5 }
  0x1a   : > { %212 = vst [vmem:[%s1256_s29 + $0x18] sm:$0xf] %v211_v6  ;;  %214 = vst [vmem:[%s1256_s29 + $0x1c] sm:$0xf] %v213_v7  ;;  %v215_v8 = vld [vmem:[%s1249_s28 + $0x40] sm:$0xf] }
  0x1b   : > { %v217_v9 = vld [vmem:[%s1249_s28 + $0x48] sm:$0xf]  ;;  %v219_v10 = vld [vmem:[%s1249_s28 + $0x50] sm:$0xf]  ;;  %216 = vst [vmem:[%s1256_s29 + $0x20] sm:$0xf] %v215_v8 }
  0x1c   : > { %218 = vst [vmem:[%s1256_s29 + $0x24] sm:$0xf] %v217_v9  ;;  %220 = vst [vmem:[%s1256_s29 + $0x28] sm:$0xf] %v219_v10  ;;  %v221_v11 = vld [vmem:[%s1249_s28 + $0x58] sm:$0xf] }
  0x1d   : > { %v223_v12 = vld [vmem:[%s1249_s28 + $0x60] sm:$0xf]  ;;  %v225_v13 = vld [vmem:[%s1249_s28 + $0x68] sm:$0xf]  ;;  %222 = vst [vmem:[%s1256_s29 + $0x2c] sm:$0xf] %v221_v11 }
  0x1e   : > { %224 = vst [vmem:[%s1256_s29 + $0x30] sm:$0xf] %v223_v12  ;;  %226 = vst [vmem:[%s1256_s29 + $0x34] sm:$0xf] %v225_v13  ;;  %v227_v14 = vld [vmem:[%s1249_s28 + $0x70] sm:$0xf] }
  0x1f   : > { %v229_v15 = vld [vmem:[%s1249_s28 + $0x78] sm:$0xf]  ;;  %v231_v16 = vld [vmem:[%s1249_s28 + $0x80] sm:$0xf]  ;;  %228 = vst [vmem:[%s1256_s29 + $0x38] sm:$0xf] %v227_v14 }
  0x20   : > { %230 = vst [vmem:[%s1256_s29 + $0x3c] sm:$0xf] %v229_v15  ;;  %232 = vst [vmem:[%s1256_s29 + $0x40] sm:$0xf] %v231_v16  ;;  %v233_v17 = vld [vmem:[%s1249_s28 + $0x88] sm:$0xf] }
  0x21   : > { %v235_v18 = vld [vmem:[%s1249_s28 + $0x90] sm:$0xf]  ;;  %v237_v19 = vld [vmem:[%s1249_s28 + $0x98] sm:$0xf]  ;;  %234 = vst [vmem:[%s1256_s29 + $0x44] sm:$0xf] %v233_v17 }
  0x22   : > { %236 = vst [vmem:[%s1256_s29 + $0x48] sm:$0xf] %v235_v18  ;;  %238 = vst [vmem:[%s1256_s29 + $0x4c] sm:$0xf] %v237_v19  ;;  %v239_v20 = vld [vmem:[%s1249_s28 + $0xa0] sm:$0xf] }
  0x23   : > { %v241_v21 = vld [vmem:[%s1249_s28 + $0xa8] sm:$0xf]  ;;  %v243_v22 = vld [vmem:[%s1249_s28 + $0xb0] sm:$0xf]  ;;  %240 = vst [vmem:[%s1256_s29 + $0x50] sm:$0xf] %v239_v20 }
  0x24   : > { %242 = vst [vmem:[%s1256_s29 + $0x54] sm:$0xf] %v241_v21  ;;  %244 = vst [vmem:[%s1256_s29 + $0x58] sm:$0xf] %v243_v22  ;;  %v245_v23 = vld [vmem:[%s1249_s28 + $0xb8] sm:$0xf] }
  0x25   : > { %v247_v24 = vld [vmem:[%s1249_s28 + $0xc0] sm:$0xf]  ;;  %v249_v25 = vld [vmem:[%s1249_s28 + $0xc8] sm:$0xf]  ;;  %246 = vst [vmem:[%s1256_s29 + $0x5c] sm:$0xf] %v245_v23 }
  0x26   : > { %248 = vst [vmem:[%s1256_s29 + $0x60] sm:$0xf] %v247_v24  ;;  %250 = vst [vmem:[%s1256_s29 + $0x64] sm:$0xf] %v249_v25  ;;  %v251_v26 = vld [vmem:[%s1249_s28 + $0xd0] sm:$0xf] }
  0x27   : > { %v253_v27 = vld [vmem:[%s1249_s28 + $0xd8] sm:$0xf]  ;;  %v255_v28 = vld [vmem:[%s1249_s28 + $0xe0] sm:$0xf]  ;;  %252 = vst [vmem:[%s1256_s29 + $0x68] sm:$0xf] %v251_v26 }
  0x28   : > { %254 = vst [vmem:[%s1256_s29 + $0x6c] sm:$0xf] %v253_v27  ;;  %256 = vst [vmem:[%s1256_s29 + $0x70] sm:$0xf] %v255_v28  ;;  %v257_v29 = vld [vmem:[%s1249_s28 + $0xe8] sm:$0xf] }
  0x29   : > { %v259_v30 = vld [vmem:[%s1249_s28 + $0xf0] sm:$0xf]  ;;  %v261_v31 = vld [vmem:[%s1249_s28 + $0xf8] sm:$0xf]  ;;  %258 = vst [vmem:[%s1256_s29 + $0x74] sm:$0xf] %v257_v29 }
  0x2a   : > { %260 = vst [vmem:[%s1256_s29 + $0x78] sm:$0xf] %v259_v30  ;;  %262 = vst [vmem:[%s1256_s29 + $0x7c] sm:$0xf] %v261_v31  ;;  %v263_v32 = vld [vmem:[%s1249_s28 + $0x100] sm:$0xf] }
  0x2b   : > { %v265_v33 = vld [vmem:[%s1249_s28 + $0x108] sm:$0xf]  ;;  %v267_v34 = vld [vmem:[%s1249_s28 + $0x110] sm:$0xf]  ;;  %264 = vst [vmem:[%s1256_s29 + $0x80] sm:$0xf] %v263_v32 }
  0x2c   : > { %266 = vst [vmem:[%s1256_s29 + $0x84] sm:$0xf] %v265_v33  ;;  %268 = vst [vmem:[%s1256_s29 + $0x88] sm:$0xf] %v267_v34  ;;  %v269_v35 = vld [vmem:[%s1249_s28 + $0x118] sm:$0xf] }
  0x2d   : > { %v271_v36 = vld [vmem:[%s1249_s28 + $0x120] sm:$0xf]  ;;  %v273_v37 = vld [vmem:[%s1249_s28 + $0x128] sm:$0xf]  ;;  %270 = vst [vmem:[%s1256_s29 + $0x8c] sm:$0xf] %v269_v35 }
  0x2e   : > { %272 = vst [vmem:[%s1256_s29 + $0x90] sm:$0xf] %v271_v36  ;;  %274 = vst [vmem:[%s1256_s29 + $0x94] sm:$0xf] %v273_v37  ;;  %v275_v38 = vld [vmem:[%s1249_s28 + $0x130] sm:$0xf] }
  0x2f   : > { %v277_v39 = vld [vmem:[%s1249_s28 + $0x138] sm:$0xf]  ;;  %v279_v40 = vld [vmem:[%s1249_s28 + $0x140] sm:$0xf]  ;;  %276 = vst [vmem:[%s1256_s29 + $0x98] sm:$0xf] %v275_v38 }
  0x30   : > { %278 = vst [vmem:[%s1256_s29 + $0x9c] sm:$0xf] %v277_v39  ;;  %280 = vst [vmem:[%s1256_s29 + $0xa0] sm:$0xf] %v279_v40  ;;  %v281_v41 = vld [vmem:[%s1249_s28 + $0x148] sm:$0xf] }
  0x31   : > { %v283_v42 = vld [vmem:[%s1249_s28 + $0x150] sm:$0xf]  ;;  %v285_v43 = vld [vmem:[%s1249_s28 + $0x158] sm:$0xf]  ;;  %282 = vst [vmem:[%s1256_s29 + $0xa4] sm:$0xf] %v281_v41 }
  0x32   : > { %284 = vst [vmem:[%s1256_s29 + $0xa8] sm:$0xf] %v283_v42  ;;  %286 = vst [vmem:[%s1256_s29 + $0xac] sm:$0xf] %v285_v43  ;;  %v287_v44 = vld [vmem:[%s1249_s28 + $0x160] sm:$0xf] }
  0x33   : > { %v289_v45 = vld [vmem:[%s1249_s28 + $0x168] sm:$0xf]  ;;  %v291_v46 = vld [vmem:[%s1249_s28 + $0x170] sm:$0xf]  ;;  %288 = vst [vmem:[%s1256_s29 + $0xb0] sm:$0xf] %v287_v44 }
  0x34   : > { %290 = vst [vmem:[%s1256_s29 + $0xb4] sm:$0xf] %v289_v45  ;;  %292 = vst [vmem:[%s1256_s29 + $0xb8] sm:$0xf] %v291_v46  ;;  %v293_v47 = vld [vmem:[%s1249_s28 + $0x178] sm:$0xf] }
  0x35   : > { %294 = vst [vmem:[%s1256_s29 + $0xbc] sm:$0xf] %v293_v47 }
  0x36 PF: > { %p973_p8 = scmp.ge.s32.totalorder %s1177_s16, 1  ;;  %p418_p9 = scmp.lt.s32.totalorder %s1177_s16, 3 }
  0x38   : > { %p419_p10 = pnand %p973_p8, %p418_p9 }
  0x39   : > { %s425_s30 = sand.u32 (!%p419_p10), 1, %s1161_s12   ;;  %v1179_v48 = vmov (!%p419_p10), 0.0   ;;  %v1137_v49 = vld [vmem:[%s1417_s0 + $0x4] ss:$12 sps:$4 sm:$0xff] (!%p419_p10)   ;;  %vm1180_vm0 = vmmov (!%p419_p10), 0   ;;  %p473_p11 = scmp.lt.s32.totalorder (!%p419_p10), %s1169_s14, 1 }
  0x3a   : > { %422 = sbr.rel (%p419_p10) target bundleno = 329 (0x149), region = 69  ;;  %1047 = vmatprep.subr.bf16.mxu1 (!%p419_p10), %v1179_v48  ;;  %1063 = vmatprep.mubr.msk.bf16.mxu1 (!%p419_p10), %vm1180_vm0, %v1179_v48  ;;  %v1135_v10 = vld [vmem:[%s1417_s0] ss:$12 sps:$4 sm:$0xff] (!%p419_p10)   ;;  %v1138_v11 = vld [vmem:[%s1417_s0 + $0x8] ss:$12 sps:$4 sm:$0xff] (!%p419_p10)   ;;  %s974_s24 = sshll.u32 (!%p419_p10), %s425_s30, 3 }
  0x3b   : > { %s1068_s4 = smul.u32 (!%p419_p10), 192, %s425_s30  ;;  %730 = vmatprep.mubr.bf16.mxu0 (!%p419_p10), %v1137_v49  ;;  %s459_s25 = scalar_lea.vmem (!%p419_p10), [#allocation4], %s974_s24 }
  0x3d   : > { %s1357_s7 = scalar_lea.vmem (!%p419_p10), [#allocation3], %s1068_s4 }
  0x3e   : > { %v1111_v50 = vld [vmem:[%s1357_s7 + $0x40] sm:$0xff] (!%p419_p10)   ;;  %v1114_v53 = vld [vmem:[%s1357_s7 + $0x48] sm:$0xff] (!%p419_p10)   ;;  %v1117_v56 = vld [vmem:[%s1357_s7 + $0x50] sm:$0xff] (!%p419_p10)  }
  0x3f   : > { %v1112_v51 = vld [vmem:[%s1357_s7] sm:$0xff] (!%p419_p10)   ;;  %1016 = vmatprep.subr.bf16.mxu0 (!%p419_p10), %v1111_v50  ;;  %v1115_v54 = vld [vmem:[%s1357_s7 + $0x8] sm:$0xff] (!%p419_p10)   ;;  %v1118_v57 = vld [vmem:[%s1357_s7 + $0x10] sm:$0xff] (!%p419_p10)  }
  0x40   : > { %v1113_v52 = vld [vmem:[%s1357_s7 + $0x80] sm:$0xff] (!%p419_p10)   ;;  %1017 = vmatpush3.bf16.msra.mxu0 (!%p419_p10), %v1112_v51  ;;  %v1116_v55 = vld [vmem:[%s1357_s7 + $0x88] sm:$0xff] (!%p419_p10)   ;;  %v1119_v58 = vld [vmem:[%s1357_s7 + $0x90] sm:$0xff] (!%p419_p10)  }
  0x41   : > { %1048 = vmatpush3.bf16.msra.mxu1 %v1113_v52  ;;  %1018 = vmatprep.subr.bf16.mxu0 %v1114_v53  ;;  %v1120_v59 = vld [vmem:[%s1357_s7 + $0x58] sm:$0xff]   ;;  %v1123_v62 = vld [vmem:[%s1357_s7 + $0x60] sm:$0xff]   ;;  %v1126_v1 = vld [vmem:[%s1357_s7 + $0x68] sm:$0xff]   ;;  %s474_s18 = scalar_select %p473_p11, %s1169_s14, 1 }
  0x42   : > { %1049 = vmatprep.subr.bf16.mxu1 %v1179_v48  ;;  %v1121_v60 = vld [vmem:[%s1357_s7 + $0x18] sm:$0xff]   ;;  %v1124_v63 = vld [vmem:[%s1357_s7 + $0x20] sm:$0xff]   ;;  %v1127_v2 = vld [vmem:[%s1357_s7 + $0x28] sm:$0xff]   ;;  %s1006_s26 = sshll.u32 (%p1236_p6), %s1169_s14, 2 }
  0x43   : > { %v1122_v61 = vld [vmem:[%s1357_s7 + $0x98] sm:$0xff]   ;;  %v1125_v0 = vld [vmem:[%s1357_s7 + $0xa0] sm:$0xff]   ;;  %v1128_v3 = vld [vmem:[%s1357_s7 + $0xa8] sm:$0xff]   ;;  %s475_s23 = scalar_lea.vmem %s1419_s2, %s474_s18  ;;  %s821_s29 = scalar_lea.vmem (%p1236_p6), %s1420_s3, %s1006_s26 }
  0x44   : > { %1019 = vmatpush3.bf16.msra.mxu0 %v1115_v54  ;;  %v1129_v4 = vld [vmem:[%s1357_s7 + $0x70] sm:$0xff]   ;;  %v1132_v7 = vld [vmem:[%s1357_s7 + $0x78] sm:$0xff]   ;;  %v1002_v18 = vld [vmem:[%s475_s23] ss:$0 sm:$0xff] }
  0x45   : > { %1050 = vmatpush3.bf16.msra.mxu1 %v1116_v55  ;;  %1020 = vmatprep.subr.bf16.mxu0 %v1117_v56  ;;  %v1130_v5 = vld [vmem:[%s1357_s7 + $0x30] sm:$0xff]   ;;  %v1133_v8 = vld [vmem:[%s1357_s7 + $0x38] sm:$0xff]  }
  0x46   : > { %1051 = vmatprep.subr.bf16.mxu1 %v1179_v48  ;;  %v1131_v6 = vld [vmem:[%s1357_s7 + $0xb0] sm:$0xff]   ;;  %v1134_v9 = vld [vmem:[%s1357_s7 + $0xb8] sm:$0xff]  }
  0x48   : > { %1021 = vmatpush3.bf16.msra.mxu0 %v1118_v57 }
  0x49   : > { %1052 = vmatpush3.bf16.msra.mxu1 %v1119_v58  ;;  %1022 = vmatprep.subr.bf16.mxu0 %v1120_v59 }
  0x4a   : > { %1053 = vmatprep.subr.bf16.mxu1 %v1179_v48 }
  0x4c   : > { %1023 = vmatpush3.bf16.msra.mxu0 %v1121_v60 }
  0x4d   : > { %1054 = vmatpush3.bf16.msra.mxu1 %v1122_v61  ;;  %1024 = vmatprep.subr.bf16.mxu0 %v1123_v62 }
  0x4e   : > { %1055 = vmatprep.subr.bf16.mxu1 %v1179_v48 }
  0x50   : > { %1025 = vmatpush3.bf16.msra.mxu0 %v1124_v63 }
  0x51   : > { %1056 = vmatpush3.bf16.msra.mxu1 %v1125_v0  ;;  %1026 = vmatprep.subr.bf16.mxu0 %v1126_v1 }
  0x52   : > { %1057 = vmatprep.subr.bf16.mxu1 %v1179_v48 }
  0x54   : > { %1027 = vmatpush3.bf16.msra.mxu0 %v1127_v2 }
  0x55   : > { %1058 = vmatpush3.bf16.msra.mxu1 %v1128_v3  ;;  %1028 = vmatprep.subr.bf16.mxu0 %v1129_v4 }
  0x56   : > { %1059 = vmatprep.subr.bf16.mxu1 %v1179_v48 }
  0x58   : > { %1029 = vmatpush3.bf16.msra.mxu0 %v1130_v5 }
  0x59   : > { %1060 = vmatpush3.bf16.msra.mxu1 %v1131_v6  ;;  %1030 = vmatprep.subr.bf16.mxu0 %v1132_v7 }
  0x5a   : > { %1061 = vmatprep.subr.bf16.mxu1 %v1179_v48 }
  0x5c   : > { %1031 = vmatpush3.bf16.msra.mxu0 %v1133_v8 }
  0x5d   : > { %1062 = vmatpush3.bf16.msra.mxu1 %v1134_v9 }
  0x5f   : > { %731 = vmatmul.mubr.bf16.vlgmr.msra.gmra.mrb[0].mxu0 %v1135_v10 }
  0x60   : > { %1064 = vmatmul.mubr.bf16.vlgmr.msra.gmra.mrb[0].mxu1 %v1138_v11 }
 0x132   : > { %v1032_v12 = vpop.f32.mrb[0].mxu0 }
 0x133   : > { %v773_v13 = vpop.f32.mrb[0].mxu1  ;;  %v1033_v14 = vpop.f32.mrb[1].mxu0 }
 0x134   : > { %v1034_v15 = vadd.f32 %v1033_v14, %v1032_v12  ;;  %v1065_v16 = vpop.f32.mrb[1].mxu1  ;;  %v1035_v17 = vpop.f32.mrb[2].mxu0 }
 0x135   : > { %v776_v19 = vpop.f32.mrb[2].mxu1  ;;  %v1036_v20 = vpop.f32.mrb[3].mxu0 }
 0x136   : > { %v774_v21 = vadd.f32 %v1034_v15, %v773_v13  ;;  %v1037_v22 = vadd.f32 %v1036_v20, %v1035_v17  ;;  %v1066_v23 = vpop.f32.mrb[3].mxu1 }
 0x138   : > { %v796_v24 = vadd.f32 %v1002_v18, %v774_v21  ;;  %v777_v25 = vadd.f32 %v1037_v22, %v776_v19 }
 0x13a   : > { %v797_v26 = vadd.f32 %v1002_v18, %v777_v25  ;;  %v798_v27 = vmax.f32 %v796_v24, 0.0  ;;  %816 = sbr.rel (!%p1236_p6) target bundleno = 329 (0x149), region = 85 }
 0x13c   : > { %v799_v28 = vmax.f32 %v797_v26, 0.0 }
 0x13e   : > { %v1014_v29 = vpack.c.bf16 %v799_v28, %v798_v27 }
 0x140   : > { %1015 = vst [vmem:[%s459_s25] sm:$0xff] %v1014_v29  }
 0x147   : > { %v837_v30 = vld [vmem:[%s459_s25] sm:$0xf]  ;;  %v839_v31 = vld [vmem:[%s459_s25 + $0x4] sm:$0xf] }
 0x148   : > { %838 = vst [vmem:[%s821_s29] sm:$0xf] %v837_v30  ;;  %840 = vst [vmem:[%s821_s29 + $0x8] sm:$0xf] %v839_v31 }
 0x149 PF: > { %s13_s16 = sadd.s32 1, %s1177_s16   ;;  %s1422_s12 = smov %s1165_s13 }
 0x14a   : > { %p10_p12 = scmp.ge.s32.totalorder %s13_s16, 4   ;;  %s1423_s13 = smov %s1241_s22 }
 0x14b   : > { %s1424_s14 = smov %s1173_s15  ;;  %s1425_s15 = smov %s1427_s17 }
 0x14c   :  { %12 = sbr.rel (!%p10_p12) target bundleno = 3 (0x3), region = 163 }

// kernel: model_forward.16
= control target key start
LH: loop header
LB: loop body
LE: loop exit
PB: predicated region body
PF: predicated region fallthrough
CT: control target
= control target key end

     0   :  { %s822_s12 = smov 0   ;;  %s824_s13 = smov 0   ;;  %s924_s0 = inlined_call_operand.vmem [shape: bf16[16,128], index: 0, kind: input, shape index: {}]   ;;  %s925_s1 = inlined_call_operand.vmem [shape: bf16[128,256], index: 1, kind: input, shape index: {}]   ;;  %s926_s2 = inlined_call_operand.vmem [shape: f32[1,256], index: 2, kind: input, shape index: {}]   ;;  %s927_s3 = inlined_call_operand.vmem [shape: bf16[16,256], index: 3, kind: output, shape index: {}]  }
   0x1   :  { %s826_s14 = smov 0   ;;  %s828_s15 = smov 0  }
   0x2   :  { %s830_s16 = smov 0  }
   0x3 LB: > { %s28_s17 = sadd.s32 1, %s794_s15  ;;  %s647_s18 = sadd.s32 4294967295, %s798_s16   ;;  %s798_s16 = sphi %s830_s16, %s13_s16   ;;  %s794_s15 = sphi %s828_s15, %s932_s15   ;;  %s790_s14 = sphi %s826_s14, %s931_s14   ;;  %s786_s13 = sphi %s824_s13, %s930_s13   ;;  %s782_s12 = sphi %s822_s12, %s929_s12  }
   0x4   : > { %p30_p0 = scmp.ge.s32.totalorder %s28_s17, 2  ;;  %p76_p1 = scmp.ne.s32.totalorder %s786_s13, %s782_s12 }
   0x5   : > { %p77_p2 = scmp.eq.s32.totalorder %s798_s16, 0  ;;  %p134_p4 = scmp.eq.s32.totalorder %s647_s18, 1 }
   0x6   : > { %s934_s17 = smov (%p30_p0, %s28_s17), 0  ;;  %s69_s20 = sadd.s32 1, %s786_s13 }
   0x7   : > { %p78_p3 = por %p77_p2, %p76_p1  ;;  %s65_s19 = ssub.s32 %s794_s15, %s934_s17 }
   0x8   : > { %p67_p5 = scmp.eq.s32.totalorder %s65_s19, 0  ;;  %p857_p6 = por %p134_p4, %p76_p1 }
   0x9   : > { %p651_p7 = scmp.ge.s32.totalorder %s798_s16, 2 }
   0xa   : > { %s862_s22 = scalar_select %p67_p5, %s786_s13, %s69_s20  }
   0xb   : > { %168 = sbr.rel (%p651_p7) target bundleno = 32 (0x20), region = 20 }
  0x12   : > { %171 = sbr.rel (!%p78_p3) target bundleno = 32 (0x20), region = 24  ;;  %s173_s23 = sand.u32 (%p78_p3), 1, %s786_s13  }
  0x13   : > { %s653_s24 = sshll.u32 (%p78_p3), %s794_s15, 2  ;;  %s652_s25 = sshll.u32 (%p78_p3), %s173_s23, 6 }
  0x14   : > { %s870_s28 = scalar_lea.vmem (%p78_p3), %s925_s1, %s653_s24  ;;  %s175_s29 = scalar_lea.vmem (%p78_p3), [#allocation3], %s652_s25 }
  0x15   : > { %v196_v0 = vld [vmem:[%s870_s28] sm:$0xf] (%p78_p3)  ;;  %v198_v1 = vld [vmem:[%s870_s28 + $0x8] sm:$0xf] (%p78_p3)  ;;  %v200_v2 = vld [vmem:[%s870_s28 + $0x10] sm:$0xf] (%p78_p3) }
  0x16   : > { %197 = vst [vmem:[%s175_s29] sm:$0xf] (%p78_p3), %v196_v0  ;;  %199 = vst [vmem:[%s175_s29 + $0x4] sm:$0xf] (%p78_p3), %v198_v1  ;;  %v202_v3 = vld [vmem:[%s870_s28 + $0x18] sm:$0xf] (%p78_p3) }
  0x17   : > { %v204_v4 = vld [vmem:[%s870_s28 + $0x20] sm:$0xf] (%p78_p3)  ;;  %201 = vst [vmem:[%s175_s29 + $0x8] sm:$0xf] (%p78_p3), %v200_v2  ;;  %203 = vst [vmem:[%s175_s29 + $0xc] sm:$0xf] (%p78_p3), %v202_v3 }
  0x18   : > { %205 = vst [vmem:[%s175_s29 + $0x10] sm:$0xf] (%p78_p3), %v204_v4  ;;  %v206_v5 = vld [vmem:[%s870_s28 + $0x28] sm:$0xf] (%p78_p3)  ;;  %v208_v6 = vld [vmem:[%s870_s28 + $0x30] sm:$0xf] (%p78_p3) }
  0x19   : > { %v210_v7 = vld [vmem:[%s870_s28 + $0x38] sm:$0xf]  ;;  %207 = vst [vmem:[%s175_s29 + $0x14] sm:$0xf] %v206_v5  ;;  %209 = vst [vmem:[%s175_s29 + $0x18] sm:$0xf] %v208_v6 }
  0x1a   : > { %211 = vst [vmem:[%s175_s29 + $0x1c] sm:$0xf] %v210_v7  ;;  %v212_v8 = vld [vmem:[%s870_s28 + $0x40] sm:$0xf]  ;;  %v214_v9 = vld [vmem:[%s870_s28 + $0x48] sm:$0xf] }
  0x1b   : > { %v216_v10 = vld [vmem:[%s870_s28 + $0x50] sm:$0xf]  ;;  %213 = vst [vmem:[%s175_s29 + $0x20] sm:$0xf] %v212_v8  ;;  %215 = vst [vmem:[%s175_s29 + $0x24] sm:$0xf] %v214_v9 }
  0x1c   : > { %217 = vst [vmem:[%s175_s29 + $0x28] sm:$0xf] %v216_v10  ;;  %v218_v11 = vld [vmem:[%s870_s28 + $0x58] sm:$0xf]  ;;  %v220_v12 = vld [vmem:[%s870_s28 + $0x60] sm:$0xf] }
  0x1d   : > { %v222_v13 = vld [vmem:[%s870_s28 + $0x68] sm:$0xf]  ;;  %219 = vst [vmem:[%s175_s29 + $0x2c] sm:$0xf] %v218_v11  ;;  %221 = vst [vmem:[%s175_s29 + $0x30] sm:$0xf] %v220_v12 }
  0x1e   : > { %223 = vst [vmem:[%s175_s29 + $0x34] sm:$0xf] %v222_v13  ;;  %v224_v14 = vld [vmem:[%s870_s28 + $0x70] sm:$0xf]  ;;  %v226_v15 = vld [vmem:[%s870_s28 + $0x78] sm:$0xf] }
  0x1f   : > { %225 = vst [vmem:[%s175_s29 + $0x38] sm:$0xf] %v224_v14  ;;  %227 = vst [vmem:[%s175_s29 + $0x3c] sm:$0xf] %v226_v15 }
  0x20 PF: > { %p654_p8 = scmp.ge.s32.totalorder %s798_s16, 1  ;;  %p287_p9 = scmp.lt.s32.totalorder %s798_s16, 3 }
  0x22   : > { %p288_p10 = pnand %p654_p8, %p287_p9 }
  0x23   : > { %s294_s30 = sand.u32 (!%p288_p10), 1, %s782_s12   ;;  %v800_v16 = vmov (!%p288_p10), 0.0   ;;  %vm801_vm0 = vmmov (!%p288_p10), 0   ;;  %v759_v25 = vld [vmem:[%s924_s0] sm:$0xff] (!%p288_p10)   ;;  %p337_p11 = scmp.lt.s32.totalorder (!%p288_p10), %s790_s14, 1 }
  0x24   : > { %291 = sbr.rel (%p288_p10) target bundleno = 299 (0x12b), region = 69  ;;  %689 = vmatprep.subr.bf16.mxu0 (!%p288_p10), %v800_v16  ;;  %s655_s4 = sshll.u32 (!%p288_p10), %s294_s30, 6  ;;  %705 = vmatprep.mubr.msk.bf16.mxu0 (!%p288_p10), %vm801_vm0, %v800_v16 }
  0x25   : > { %s296_s5 = scalar_lea.vmem (!%p288_p10), [#allocation3], %s655_s4  ;;  %s656_s18 = sshll.u32 (!%p288_p10), %s294_s30, 3 }
  0x26   : > { %v751_v17 = vld [vmem:[%s296_s5] sm:$0xff] (!%p288_p10)   ;;  %v752_v18 = vld [vmem:[%s296_s5 + $0x8] sm:$0xff] (!%p288_p10)   ;;  %v753_v19 = vld [vmem:[%s296_s5 + $0x10] sm:$0xff] (!%p288_p10)   ;;  %s326_s19 = scalar_lea.vmem (!%p288_p10), [#allocation4], %s656_s18 }
  0x27   : > { %690 = vmatpush3.bf16.msra.mxu0 (!%p288_p10), %v751_v17  ;;  %v754_v20 = vld [vmem:[%s296_s5 + $0x18] sm:$0xff] (!%p288_p10)   ;;  %v755_v21 = vld [vmem:[%s296_s5 + $0x20] sm:$0xff] (!%p288_p10)   ;;  %v756_v22 = vld [vmem:[%s296_s5 + $0x28] sm:$0xff] (!%p288_p10)  }
  0x28   : > { %691 = vmatprep.subr.bf16.mxu0 (!%p288_p10), %v800_v16  ;;  %v757_v23 = vld [vmem:[%s296_s5 + $0x30] sm:$0xff] (!%p288_p10)   ;;  %v758_v24 = vld [vmem:[%s296_s5 + $0x38] sm:$0xff] (!%p288_p10)  }
  0x2b   : > { %692 = vmatpush3.bf16.msra.mxu0 %v752_v18  ;;  %s338_s8 = scalar_select %p337_p11, %s790_s14, 1 }
  0x2c   : > { %693 = vmatprep.subr.bf16.mxu0 %v800_v16  ;;  %s670_s20 = sshll.u32 (%p857_p6), %s790_s14, 2 }
  0x2d   : > { %s339_s11 = scalar_lea.vmem %s926_s2, %s338_s8  ;;  %s504_s25 = scalar_lea.vmem (%p857_p6), %s927_s3, %s670_s20 }
  0x2e   : > { %v666_v26 = vld [vmem:[%s339_s11] ss:$0 sm:$0xff] }
  0x2f   : > { %694 = vmatpush3.bf16.msra.mxu0 %v753_v19 }
  0x30   : > { %695 = vmatprep.subr.bf16.mxu0 %v800_v16 }
  0x33   : > { %696 = vmatpush3.bf16.msra.mxu0 %v754_v20 }
  0x34   : > { %697 = vmatprep.subr.bf16.mxu0 %v800_v16 }
  0x37   : > { %698 = vmatpush3.bf16.msra.mxu0 %v755_v21 }
  0x38   : > { %699 = vmatprep.subr.bf16.mxu0 %v800_v16 }
  0x3b   : > { %700 = vmatpush3.bf16.msra.mxu0 %v756_v22 }
  0x3c   : > { %701 = vmatprep.subr.bf16.mxu0 %v800_v16 }
  0x3f   : > { %702 = vmatpush3.bf16.msra.mxu0 %v757_v23 }
  0x40   : > { %703 = vmatprep.subr.bf16.mxu0 %v800_v16 }
  0x43   : > { %704 = vmatpush3.bf16.msra.mxu0 %v758_v24 }
  0x46   : > { %706 = vmatmul.mubr.bf16.vlgmr.msra.gmra.mrb[0].mxu0 %v759_v25 }
 0x119   : > { %v456_v27 = vpop.f32.mrb[0].mxu0 }
 0x11a   : > { %v479_v28 = vadd.f32 %v666_v26, %v456_v27  ;;  %v707_v29 = vpop.f32.mrb[1].mxu0 }
 0x11b   : > { %v459_v30 = vpop.f32.mrb[2].mxu0 }
 0x11c   : > { %v480_v31 = vadd.f32 %v666_v26, %v459_v30  ;;  %v708_v32 = vpop.f32.mrb[3].mxu0  ;;  %v481_v33 = vmax.f32 %v479_v28, 0.0  ;;  %499 = sbr.rel (!%p857_p6) target bundleno = 299 (0x12b), region = 85 }
 0x11e   : > { %v482_v34 = vmax.f32 %v480_v31, 0.0 }
 0x120   : > { %v678_v35 = vpack.c.bf16 %v482_v34, %v481_v33 }
 0x122   : > { %679 = vst [vmem:[%s326_s19] sm:$0xff] %v678_v35  }
 0x129   : > { %v520_v36 = vld [vmem:[%s326_s19] sm:$0xf]  ;;  %v522_v37 = vld [vmem:[%s326_s19 + $0x4] sm:$0xf] }
 0x12a   : > { %521 = vst [vmem:[%s504_s25] sm:$0xf] %v520_v36  ;;  %523 = vst [vmem:[%s504_s25 + $0x8] sm:$0xf] %v522_v37 }
 0x12b PF: > { %s13_s16 = sadd.s32 1, %s798_s16   ;;  %s929_s12 = smov %s786_s13 }
 0x12c   : > { %p10_p12 = scmp.ge.s32.totalorder %s13_s16, 4   ;;  %s930_s13 = smov %s862_s22 }
 0x12d   : > { %s931_s14 = smov %s794_s15  ;;  %s932_s15 = smov %s934_s17 }
 0x12e   :  { %12 = sbr.rel (!%p10_p12) target bundleno = 3 (0x3), region = 163 }

// kernel: model_forward.15
= control target key start
LH: loop header
LB: loop body
LE: loop exit
PB: predicated region body
PF: predicated region fallthrough
CT: control target
= control target key end

     0   :  { %s2258_s12 = smov 0   ;;  %s2260_s13 = smov 0   ;;  %s2461_s0 = inlined_call_operand.vmem [shape: bf16[16,3584], index: 0, kind: input, shape index: {}]   ;;  %s2462_s1 = inlined_call_operand.vmem [shape: bf16[3584,128], index: 1, kind: input, shape index: {}]   ;;  %s2463_s2 = inlined_call_operand.vmem [shape: f32[1,128], index: 2, kind: input, shape index: {}]   ;;  %s2464_s3 = inlined_call_operand.vmem [shape: bf16[16,128], index: 3, kind: output, shape index: {}]  }
   0x1   :  { %s2262_s14 = smov 0   ;;  %s2264_s15 = smov 0  }
   0x2   :  { %s2266_s16 = smov 0  }
   0x3 LB: > { %s25_s17 = sadd.s32 1, %s2231_s15  ;;  %p48_p1 = scmp.ne.s32.totalorder %s2223_s13, %s2219_s12  ;;  %s2235_s16 = sphi %s2266_s16, %s13_s16   ;;  %s2231_s15 = sphi %s2264_s15, %s2468_s15   ;;  %s2227_s14 = sphi %s2262_s14, %s2467_s14   ;;  %s2223_s13 = sphi %s2260_s13, %s2466_s13   ;;  %s2219_s12 = sphi %s2258_s12, %s2465_s12  }
   0x4   : > { %p26_p0 = scmp.ge.s32.totalorder %s25_s17, 2  ;;  %p49_p2 = scmp.eq.s32.totalorder %s2235_s16, 0 }
   0x5   : > { %s41_s19 = sadd.s32 1, %s2223_s13  ;;  %p1720_p5 = scmp.ge.s32.totalorder %s2235_s16, 2 }
   0x6   : > { %s2470_s17 = smov (%p26_p0, %s25_s17), 0  ;;  %p50_p3 = por %p49_p2, %p48_p1 }
   0x7   : > { %s37_s18 = ssub.s32 %s2231_s15, %s2470_s17  ;;  %162 = sbr.rel (%p1720_p5) target bundleno = 26 (0x1a), region = 20 }
   0x8   : > { %p39_p4 = scmp.eq.s32.totalorder %s37_s18, 0 }
   0xa   : > { %s2293_s20 = scalar_select %p39_p4, %s2223_s13, %s41_s19  }
   0xe   : > { %165 = sbr.rel (!%p50_p3) target bundleno = 26 (0x1a), region = 24  ;;  %s167_s21 = sand.u32 (%p50_p3), 1, %s2223_s13  }
   0xf   : > { %s1859_s22 = smul.u32 (%p50_p3), 56, %s2231_s15 }
  0x10   : > { %s2021_s23 = smul.u32 (%p50_p3), 112, %s167_s21 }
  0x11   : > { %s175_s26 = scalar_lea.vmem (%p50_p3), %s2461_s0, %s1859_s22 }
  0x12   : > { %v188_v0 = vld [vmem:[%s175_s26] sm:$0xff] (%p50_p3)  ;;  %v190_v1 = vld [vmem:[%s175_s26 + $0x8] sm:$0xff] (%p50_p3)  ;;  %v192_v2 = vld [vmem:[%s175_s26 + $0x10] sm:$0xff] (%p50_p3)  ;;  %s169_s27 = scalar_lea.vmem (%p50_p3), [#allocation3], %s2021_s23 }
  0x13   : > { %189 = vst [vmem:[%s169_s27] sm:$0xff] (%p50_p3), %v188_v0  ;;  %191 = vst [vmem:[%s169_s27 + $0x8] sm:$0xff] (%p50_p3), %v190_v1  ;;  %v194_v3 = vld [vmem:[%s175_s26 + $0x18] sm:$0xff] (%p50_p3)  ;;  %v196_v4 = vld [vmem:[%s175_s26 + $0x20] sm:$0xff] (%p50_p3) }
  0x14   : > { %193 = vst [vmem:[%s169_s27 + $0x10] sm:$0xff] (%p50_p3), %v192_v2  ;;  %v198_v5 = vld [vmem:[%s175_s26 + $0x28] sm:$0xff] (%p50_p3)  ;;  %195 = vst [vmem:[%s169_s27 + $0x18] sm:$0xff] (%p50_p3), %v194_v3  ;;  %v200_v6 = vld [vmem:[%s175_s26 + $0x30] sm:$0xff] (%p50_p3) }
  0x15   : > { %197 = vst [vmem:[%s169_s27 + $0x20] sm:$0xff] %v196_v4  ;;  %199 = vst [vmem:[%s169_s27 + $0x28] sm:$0xff] %v198_v5  ;;  %v202_v7 = vld [vmem:[%s175_s26 + $0x70] sm:$0xff]  ;;  %v204_v8 = vld [vmem:[%s175_s26 + $0x78] sm:$0xff] }
  0x16   : > { %201 = vst [vmem:[%s169_s27 + $0x30] sm:$0xff] %v200_v6  ;;  %203 = vst [vmem:[%s169_s27 + $0x38] sm:$0xff] %v202_v7  ;;  %v206_v9 = vld [vmem:[%s175_s26 + $0x80] sm:$0xff]  ;;  %v208_v10 = vld [vmem:[%s175_s26 + $0x88] sm:$0xff] }
  0x17   : > { %205 = vst [vmem:[%s169_s27 + $0x40] sm:$0xff] %v204_v8  ;;  %v210_v11 = vld [vmem:[%s175_s26 + $0x90] sm:$0xff]  ;;  %207 = vst [vmem:[%s169_s27 + $0x48] sm:$0xff] %v206_v9  ;;  %v212_v12 = vld [vmem:[%s175_s26 + $0x98] sm:$0xff] }
  0x18   : > { %209 = vst [vmem:[%s169_s27 + $0x50] sm:$0xff] %v208_v10  ;;  %211 = vst [vmem:[%s169_s27 + $0x58] sm:$0xff] %v210_v11  ;;  %v214_v13 = vld [vmem:[%s175_s26 + $0xa0] sm:$0xff] }
  0x19   : > { %213 = vst [vmem:[%s169_s27 + $0x60] sm:$0xff] %v212_v12  ;;  %215 = vst [vmem:[%s169_s27 + $0x68] sm:$0xff] %v214_v13 }
  0x1a PF: > { %p1722_p6 = scmp.ge.s32.totalorder %s2235_s16, 1  ;;  %p232_p7 = scmp.lt.s32.totalorder %s2235_s16, 3 }
  0x1c   : > { %p233_p8 = pnand %p1722_p6, %p232_p7 }
  0x1d   : > { %s239_s28 = sand.u32 (!%p233_p8), 1, %s2219_s12   ;;  %s278_s29 = smul.u32 (!%p233_p8), 224, %s2227_s14 }
  0x1e   : > { %236 = sbr.rel (%p233_p8) target bundleno = 410 (0x19a), region = 51  ;;  %p1724_p10 = scmp.ne.s32.totalorder (!%p233_p8), %s2227_s14, 0 }
  0x1f   : > { %s2022_s30 = smul.u32 (!%p233_p8), 112, %s239_s28  ;;  %p279_p9 = scmp.lt.s32.totalorder (!%p233_p8), %s278_s29, 447 }
  0x21   : > { %s2310_s8 = scalar_lea.vmem (!%p233_p8), [#allocation3], %s2022_s30 }
  0x25   : > { %s2472_s29 = smov (!%p279_p9, %s278_s29), 447  ;;  %303 = sbr.rel (%p1724_p10) target bundleno = 44 (0x2c), region = 59 }
  0x26   : > { %s1723_s4 = sshll.u32 %s2472_s29, 2  ;;  %v2237_v14 = vmov (!%p1724_p10), 0.0  }
  0x27   : > { %s2308_s7 = scalar_lea.vmem %s2462_s1, %s1723_s4  ;;  %304 = vst [vmem:[#allocation2] sm:$0xff] (!%p1724_p10), %v2237_v14  ;;  %305 = vst [vmem:[#allocation2 + $0x8] sm:$0xff] (!%p1724_p10), %v2237_v14 }
  0x2c PF: > { %v2064_v15 = vld [vmem:[%s2308_s7 + $0x40] sm:$0xff]   ;;  %v2068_v19 = vld [vmem:[%s2308_s7 + $0x48] sm:$0xff]   ;;  %v2072_v23 = vld [vmem:[%s2308_s7 + $0x50] sm:$0xff]   ;;  %p1851_p11 = scmp.ne.s32.totalorder %s2227_s14, 1 }
  0x2d   : > { %v2065_v16 = vld [vmem:[%s2308_s7 + $0xc0] sm:$0xff]   ;;  %1867 = vmatprep.subr.bf16.mxu0 %v2064_v15  ;;  %v2069_v20 = vld [vmem:[%s2308_s7 + $0xc8] sm:$0xff]   ;;  %v2073_v24 = vld [vmem:[%s2308_s7 + $0xd0] sm:$0xff]  }
  0x2e   : > { %v2066_v17 = vld [vmem:[%s2308_s7] sm:$0xff]   ;;  %1889 = vmatprep.subr.bf16.mxu1 %v2065_v16  ;;  %v2070_v21 = vld [vmem:[%s2308_s7 + $0x8] sm:$0xff]   ;;  %v2074_v25 = vld [vmem:[%s2308_s7 + $0x10] sm:$0xff]  }
  0x2f   : > { %v2067_v18 = vld [vmem:[%s2308_s7 + $0x80] sm:$0xff]   ;;  %1868 = vmatpush3.bf16.msra.mxu0 %v2066_v17  ;;  %v2071_v22 = vld [vmem:[%s2308_s7 + $0x88] sm:$0xff]   ;;  %v2075_v26 = vld [vmem:[%s2308_s7 + $0x90] sm:$0xff]  }
  0x30   : > { %1890 = vmatpush3.bf16.msra.mxu1 %v2067_v18  ;;  %1869 = vmatprep.subr.bf16.mxu0 %v2068_v19  ;;  %v2076_v27 = vld [vmem:[%s2308_s7 + $0x58] sm:$0xff]   ;;  %v2080_v31 = vld [vmem:[%s2308_s7 + $0x60] sm:$0xff]   ;;  %v2084_v35 = vld [vmem:[%s2308_s7 + $0x68] sm:$0xff]  }
  0x31   : > { %1891 = vmatprep.subr.bf16.mxu1 %v2069_v20  ;;  %v2077_v28 = vld [vmem:[%s2308_s7 + $0xd8] sm:$0xff]   ;;  %v2081_v32 = vld [vmem:[%s2308_s7 + $0xe0] sm:$0xff]   ;;  %v2085_v36 = vld [vmem:[%s2308_s7 + $0xe8] sm:$0xff]  }
  0x32   : > { %v2078_v29 = vld [vmem:[%s2308_s7 + $0x18] sm:$0xff]   ;;  %v2082_v33 = vld [vmem:[%s2308_s7 + $0x20] sm:$0xff]   ;;  %v2086_v37 = vld [vmem:[%s2308_s7 + $0x28] sm:$0xff]  }
  0x33   : > { %1870 = vmatpush3.bf16.msra.mxu0 %v2070_v21  ;;  %v2079_v30 = vld [vmem:[%s2308_s7 + $0x98] sm:$0xff]   ;;  %v2083_v34 = vld [vmem:[%s2308_s7 + $0xa0] sm:$0xff]   ;;  %v2087_v38 = vld [vmem:[%s2308_s7 + $0xa8] sm:$0xff]  }
  0x34   : > { %1892 = vmatpush3.bf16.msra.mxu1 %v2071_v22  ;;  %1871 = vmatprep.subr.bf16.mxu0 %v2072_v23  ;;  %v2088_v39 = vld [vmem:[%s2308_s7 + $0x70] sm:$0xff]   ;;  %v2092_v43 = vld [vmem:[%s2308_s7 + $0x78] sm:$0xff]   ;;  %v2102_v51 = vld [vmem:[%s2308_s7 + $0x140] sm:$0xff]  }
  0x35   : > { %1893 = vmatprep.subr.bf16.mxu1 %v2073_v24  ;;  %v2089_v40 = vld [vmem:[%s2308_s7 + $0xf0] sm:$0xff]   ;;  %v2093_v44 = vld [vmem:[%s2308_s7 + $0xf8] sm:$0xff]   ;;  %v2103_v52 = vld [vmem:[%s2308_s7 + $0x100] sm:$0xff]  }
  0x36   : > { %v2090_v41 = vld [vmem:[%s2308_s7 + $0x30] sm:$0xff]   ;;  %v2094_v45 = vld [vmem:[%s2308_s7 + $0x38] sm:$0xff]   ;;  %v2104_v53 = vld [vmem:[%s2308_s7 + $0x1c0] sm:$0xff]  }
  0x37   : > { %1872 = vmatpush3.bf16.msra.mxu0 %v2074_v25  ;;  %v2091_v42 = vld [vmem:[%s2308_s7 + $0xb0] sm:$0xff]   ;;  %v2095_v46 = vld [vmem:[%s2308_s7 + $0xb8] sm:$0xff]   ;;  %v2105_v54 = vld [vmem:[%s2308_s7 + $0x180] sm:$0xff]  }
  0x38   : > { %1894 = vmatpush3.bf16.msra.mxu1 %v2075_v26  ;;  %1873 = vmatprep.subr.bf16.mxu0 %v2076_v27  ;;  %v2096_v47 = vld [vmem:[%s2310_s8] ss:$56 sps:$4 sm:$0xff]   ;;  %v2098_v48 = vld [vmem:[%s2310_s8 + $0x4] ss:$56 sps:$4 sm:$0xff]   ;;  %v2133_v18 = vld [vmem:[%s2310_s8 + $0x10] ss:$56 sps:$4 sm:$0xff]  }
  0x39   : > { %1895 = vmatprep.subr.bf16.mxu1 %v2077_v28  ;;  %v2099_v49 = vld [vmem:[%s2310_s8 + $0x8] ss:$56 sps:$4 sm:$0xff]   ;;  %v2101_v50 = vld [vmem:[%s2310_s8 + $0xc] ss:$56 sps:$4 sm:$0xff]   ;;  %1320 = vmatprep.mubr.bf16.mxu0 %v2098_v48  ;;  %v2138_v22 = vld [vmem:[%s2310_s8 + $0x18] ss:$56 sps:$4 sm:$0xff]  }
  0x3a   : > { %1361 = vmatprep.mubr.bf16.mxu1 %v2101_v50  ;;  %v2106_v55 = vld [vmem:[%s2308_s7 + $0x148] sm:$0xff]   ;;  %v2110_v59 = vld [vmem:[%s2308_s7 + $0x150] sm:$0xff]   ;;  %v2114_v63 = vld [vmem:[%s2308_s7 + $0x158] sm:$0xff]  }
  0x3b   : > { %1874 = vmatpush3.bf16.msra.mxu0 %v2078_v29  ;;  %v2107_v56 = vld [vmem:[%s2308_s7 + $0x108] sm:$0xff]   ;;  %v2111_v60 = vld [vmem:[%s2308_s7 + $0x110] sm:$0xff]   ;;  %v2115_v0 = vld [vmem:[%s2308_s7 + $0x118] sm:$0xff]  }
  0x3c   : > { %1896 = vmatpush3.bf16.msra.mxu1 %v2079_v30  ;;  %1875 = vmatprep.subr.bf16.mxu0 %v2080_v31  ;;  %v2108_v57 = vld [vmem:[%s2308_s7 + $0x1c8] sm:$0xff]   ;;  %v2112_v61 = vld [vmem:[%s2308_s7 + $0x1d0] sm:$0xff]   ;;  %v2116_v1 = vld [vmem:[%s2308_s7 + $0x1d8] sm:$0xff]  }
  0x3d   : > { %1897 = vmatprep.subr.bf16.mxu1 %v2081_v32  ;;  %v2109_v58 = vld [vmem:[%s2308_s7 + $0x188] sm:$0xff]   ;;  %v2113_v62 = vld [vmem:[%s2308_s7 + $0x190] sm:$0xff]   ;;  %v2117_v2 = vld [vmem:[%s2308_s7 + $0x198] sm:$0xff]  }
  0x3e   : > { %v2118_v3 = vld [vmem:[%s2308_s7 + $0x160] sm:$0xff]   ;;  %v2122_v7 = vld [vmem:[%s2308_s7 + $0x168] sm:$0xff]   ;;  %v2126_v11 = vld [vmem:[%s2308_s7 + $0x170] sm:$0xff]  }
  0x3f   : > { %1876 = vmatpush3.bf16.msra.mxu0 %v2082_v33  ;;  %v2119_v4 = vld [vmem:[%s2308_s7 + $0x120] sm:$0xff]   ;;  %v2123_v8 = vld [vmem:[%s2308_s7 + $0x128] sm:$0xff]   ;;  %v2127_v12 = vld [vmem:[%s2308_s7 + $0x130] sm:$0xff]  }
  0x40   : > { %1898 = vmatpush3.bf16.msra.mxu1 %v2083_v34  ;;  %1877 = vmatprep.subr.bf16.mxu0 %v2084_v35  ;;  %v2120_v5 = vld [vmem:[%s2308_s7 + $0x1e0] sm:$0xff]   ;;  %v2124_v9 = vld [vmem:[%s2308_s7 + $0x1e8] sm:$0xff]   ;;  %v2128_v13 = vld [vmem:[%s2308_s7 + $0x1f0] sm:$0xff]  }
  0x41   : > { %1899 = vmatprep.subr.bf16.mxu1 %v2085_v36  ;;  %v2121_v6 = vld [vmem:[%s2308_s7 + $0x1a0] sm:$0xff]   ;;  %v2125_v10 = vld [vmem:[%s2308_s7 + $0x1a8] sm:$0xff]   ;;  %v2129_v14 = vld [vmem:[%s2308_s7 + $0x1b0] sm:$0xff]  }
  0x42   : > { %v2130_v15 = vld [vmem:[%s2308_s7 + $0x178] sm:$0xff]   ;;  %v2137_v21 = vld [vmem:[%s2308_s7 + $0x240] sm:$0xff]   ;;  %v2144_v27 = vld [vmem:[%s2308_s7 + $0x248] sm:$0xff]  }
  0x43   : > { %1878 = vmatpush3.bf16.msra.mxu0 %v2086_v37  ;;  %v2131_v16 = vld [vmem:[%s2308_s7 + $0x138] sm:$0xff]   ;;  %v2141_v24 = vld [vmem:[%s2308_s7 + $0x200] sm:$0xff]   ;;  %v2145_v28 = vld [vmem:[%s2308_s7 + $0x208] sm:$0xff]  }
  0x44   : > { %1900 = vmatpush3.bf16.msra.mxu1 %v2087_v38  ;;  %1879 = vmatprep.subr.bf16.mxu0 %v2088_v39  ;;  %v2132_v17 = vld [vmem:[%s2308_s7 + $0x1f8] sm:$0xff]   ;;  %v2142_v25 = vld [vmem:[%s2308_s7 + $0x2c0] sm:$0xff]   ;;  %v2146_v29 = vld [vmem:[%s2308_s7 + $0x2c8] sm:$0xff]  }
  0x45   : > { %1901 = vmatprep.subr.bf16.mxu1 %v2089_v40  ;;  %v2135_v19 = vld [vmem:[%s2310_s8 + $0x14] ss:$56 sps:$4 sm:$0xff]  }
  0x46   : > { %v2136_v20 = vld [vmem:[%s2308_s7 + $0x1b8] sm:$0xff]   ;;  %v2143_v26 = vld [vmem:[%s2308_s7 + $0x280] sm:$0xff]   ;;  %v2147_v30 = vld [vmem:[%s2308_s7 + $0x288] sm:$0xff]  }
  0x47   : > { %1880 = vmatpush3.bf16.msra.mxu0 %v2090_v41  ;;  %v2140_v23 = vld [vmem:[%s2310_s8 + $0x1c] ss:$56 sps:$4 sm:$0xff]  }
  0x48   : > { %1902 = vmatpush3.bf16.msra.mxu1 %v2091_v42  ;;  %1881 = vmatprep.subr.bf16.mxu0 %v2092_v43  ;;  %v2148_v31 = vld [vmem:[%s2308_s7 + $0x250] sm:$0xff]   ;;  %v2152_v35 = vld [vmem:[%s2308_s7 + $0x258] sm:$0xff]   ;;  %v2156_v39 = vld [vmem:[%s2308_s7 + $0x260] sm:$0xff]  }
  0x49   : > { %1903 = vmatprep.subr.bf16.mxu1 %v2093_v44  ;;  %v2149_v32 = vld [vmem:[%s2308_s7 + $0x210] sm:$0xff]   ;;  %v2153_v36 = vld [vmem:[%s2308_s7 + $0x218] sm:$0xff]   ;;  %v2157_v40 = vld [vmem:[%s2308_s7 + $0x220] sm:$0xff]  }
  0x4a   : > { %v2150_v33 = vld [vmem:[%s2308_s7 + $0x2d0] sm:$0xff]   ;;  %v2154_v37 = vld [vmem:[%s2308_s7 + $0x2d8] sm:$0xff]   ;;  %v2158_v41 = vld [vmem:[%s2308_s7 + $0x2e0] sm:$0xff]  }
  0x4b   : > { %1882 = vmatpush3.bf16.msra.mxu0 %v2094_v45  ;;  %v2151_v34 = vld [vmem:[%s2308_s7 + $0x290] sm:$0xff]   ;;  %v2155_v38 = vld [vmem:[%s2308_s7 + $0x298] sm:$0xff]   ;;  %v2159_v42 = vld [vmem:[%s2308_s7 + $0x2a0] sm:$0xff]  }
  0x4c   : > { %1904 = vmatpush3.bf16.msra.mxu1 %v2095_v46  ;;  %1911 = vmatprep.subr.bf16.mxu0 %v2102_v51  ;;  %v2160_v43 = vld [vmem:[%s2308_s7 + $0x268] sm:$0xff]   ;;  %v2165_v48 = vld [vmem:[%s2308_s7 + $0x230] sm:$0xff]   ;;  %v2168_v51 = vld [vmem:[%s2308_s7 + $0x278] sm:$0xff]  }
  0x4d   : > { %1933 = vmatprep.subr.bf16.mxu1 %v2104_v53  ;;  %v2161_v44 = vld [vmem:[%s2308_s7 + $0x228] sm:$0xff]   ;;  %v2167_v50 = vld [vmem:[%s2308_s7 + $0x2b0] sm:$0xff]   ;;  %v2170_v53 = vld [vmem:[%s2308_s7 + $0x2f8] sm:$0xff]  }
  0x4e   : > { %1321 = vmatmul.mubr.bf16.vlgmr.msra.gmra.mrb[0].mxu0 %v2096_v47  ;;  %v2162_v45 = vld [vmem:[%s2308_s7 + $0x2e8] sm:$0xff]   ;;  %v2164_v47 = vld [vmem:[%s2308_s7 + $0x270] sm:$0xff]  }
  0x4f   : > { %1362 = vmatmul.mubr.bf16.vlgmr.msra.gmra.mrb[0].mxu1 %v2099_v49  ;;  %1912 = vmatpush3.bf16.msra.mxu0 %v2103_v52  ;;  %v2163_v46 = vld [vmem:[%s2308_s7 + $0x2a8] sm:$0xff]   ;;  %v2166_v49 = vld [vmem:[%s2308_s7 + $0x2f0] sm:$0xff]   ;;  %v2169_v52 = vld [vmem:[%s2308_s7 + $0x238] sm:$0xff]  }
  0x50   : > { %1934 = vmatpush3.bf16.msra.mxu1 %v2105_v54  ;;  %1913 = vmatprep.subr.bf16.mxu0 %v2106_v55  ;;  %v2171_v54 = vld [vmem:[%s2310_s8 + $0x20] ss:$56 sps:$4 sm:$0xff]   ;;  %v2173_v55 = vld [vmem:[%s2310_s8 + $0x24] ss:$56 sps:$4 sm:$0xff]  }
  0x51   : > { %1935 = vmatprep.subr.bf16.mxu1 %v2108_v57  ;;  %1402 = vmatprep.mubr.bf16.mxu0 %v2135_v19  ;;  %v2175_v57 = vld [vmem:[%s2308_s7 + $0x340] sm:$0xff]  }
  0x52   : > { %1443 = vmatprep.mubr.bf16.mxu1 %v2140_v23 }
  0x53   : > { %1914 = vmatpush3.bf16.msra.mxu0 %v2107_v56  ;;  %v2174_v56 = vld [vmem:[%s2308_s7 + $0x2b8] sm:$0xff]  }
  0x54   : > { %1936 = vmatpush3.bf16.msra.mxu1 %v2109_v58  ;;  %1915 = vmatprep.subr.bf16.mxu0 %v2110_v59  ;;  %v2176_v58 = vld [vmem:[%s2310_s8 + $0x28] ss:$56 sps:$4 sm:$0xff]   ;;  %v2178_v59 = vld [vmem:[%s2310_s8 + $0x2c] ss:$56 sps:$4 sm:$0xff]  }
  0x55   : > { %1937 = vmatprep.subr.bf16.mxu1 %v2112_v61  ;;  %v2180_v61 = vld [vmem:[%s2308_s7 + $0x348] sm:$0xff]  }
  0x57   : > { %1916 = vmatpush3.bf16.msra.mxu0 %v2111_v60  ;;  %v2179_v60 = vld [vmem:[%s2308_s7 + $0x300] sm:$0xff]  }
  0x58   : > { %1938 = vmatpush3.bf16.msra.mxu1 %v2113_v62  ;;  %1917 = vmatprep.subr.bf16.mxu0 %v2114_v63  ;;  %v2181_v62 = vld [vmem:[%s2308_s7 + $0x308] sm:$0xff]   ;;  %v2182_v63 = vld [vmem:[%s2308_s7 + $0x350] sm:$0xff]  }
  0x59   : > { %1939 = vmatprep.subr.bf16.mxu1 %v2116_v1  ;;  %v2184_v1 = vld [vmem:[%s2308_s7 + $0x358] sm:$0xff]  }
  0x5b   : > { %1918 = vmatpush3.bf16.msra.mxu0 %v2115_v0  ;;  %v2183_v0 = vld [vmem:[%s2308_s7 + $0x310] sm:$0xff]  }
  0x5c   : > { %1940 = vmatpush3.bf16.msra.mxu1 %v2117_v2  ;;  %1919 = vmatprep.subr.bf16.mxu0 %v2118_v3  ;;  %v2185_v2 = vld [vmem:[%s2308_s7 + $0x318] sm:$0xff]   ;;  %v2186_v3 = vld [vmem:[%s2308_s7 + $0x360] sm:$0xff]  }
  0x5d   : > { %1941 = vmatprep.subr.bf16.mxu1 %v2120_v5  ;;  %v2188_v5 = vld [vmem:[%s2308_s7 + $0x368] sm:$0xff]  }
  0x5f   : > { %1920 = vmatpush3.bf16.msra.mxu0 %v2119_v4  ;;  %v2187_v4 = vld [vmem:[%s2308_s7 + $0x320] sm:$0xff]  }
  0x60   : > { %1942 = vmatpush3.bf16.msra.mxu1 %v2121_v6  ;;  %1921 = vmatprep.subr.bf16.mxu0 %v2122_v7  ;;  %v2196_v6 = vld [vmem:[%s2310_s8 + $0x34] ss:$56 sps:$4 sm:$0xff]  }
  0x61   : > { %1943 = vmatprep.subr.bf16.mxu1 %v2124_v9  ;;  %v2189_v7 = vld [vmem:[%s2308_s7 + $0x328] sm:$0xff]   ;;  %v2191_v9 = vld [vmem:[%s2308_s7 + $0x330] sm:$0xff]  }
  0x63   : > { %1922 = vmatpush3.bf16.msra.mxu0 %v2123_v8  ;;  %v2190_v8 = vld [vmem:[%s2308_s7 + $0x370] sm:$0xff]  }
  0x64   : > { %1944 = vmatpush3.bf16.msra.mxu1 %v2125_v10  ;;  %1923 = vmatprep.subr.bf16.mxu0 %v2126_v11  ;;  %v2192_v10 = vld [vmem:[%s2308_s7 + $0x378] sm:$0xff]  }
  0x65   : > { %1945 = vmatprep.subr.bf16.mxu1 %v2128_v13  ;;  %v2193_v11 = vld [vmem:[%s2308_s7 + $0x338] sm:$0xff]  }
  0x67   : > { %1924 = vmatpush3.bf16.msra.mxu0 %v2127_v12  ;;  %v2194_v12 = vld [vmem:[%s2310_s8 + $0x30] ss:$56 sps:$4 sm:$0xff]  }
  0x68   : > { %1946 = vmatpush3.bf16.msra.mxu1 %v2129_v14  ;;  %1925 = vmatprep.subr.bf16.mxu0 %v2130_v15 }
  0x69   : > { %1947 = vmatprep.subr.bf16.mxu1 %v2132_v17 }
  0x6b   : > { %1926 = vmatpush3.bf16.msra.mxu0 %v2131_v16 }
  0x6c   : > { %1948 = vmatpush3.bf16.msra.mxu1 %v2136_v20  ;;  %1955 = vmatprep.subr.bf16.mxu0 %v2137_v21 }
  0x6d   : > { %1977 = vmatprep.subr.bf16.mxu1 %v2142_v25 }
  0x6e   : > { %1403 = vmatmul.mubr.bf16.vlgmr.msra.gmra.mrb[4].mxu0 %v2133_v18 }
  0x6f   : > { %1956 = vmatpush3.bf16.msra.mxu0 %v2141_v24  ;;  %1444 = vmatmul.mubr.bf16.vlgmr.msra.gmra.mrb[4].mxu1 %v2138_v22 }
  0x70   : > { %1978 = vmatpush3.bf16.msra.mxu1 %v2143_v26  ;;  %1957 = vmatprep.subr.bf16.mxu0 %v2144_v27 }
  0x71   : > { %1979 = vmatprep.subr.bf16.mxu1 %v2146_v29  ;;  %1484 = vmatprep.mubr.bf16.mxu0 %v2173_v55 }
  0x72   : > { %1525 = vmatprep.mubr.bf16.mxu1 %v2178_v59 }
  0x73   : > { %1958 = vmatpush3.bf16.msra.mxu0 %v2145_v28 }
  0x74   : > { %1980 = vmatpush3.bf16.msra.mxu1 %v2147_v30  ;;  %1959 = vmatprep.subr.bf16.mxu0 %v2148_v31 }
  0x75   : > { %1981 = vmatprep.subr.bf16.mxu1 %v2150_v33 }
  0x77   : > { %1960 = vmatpush3.bf16.msra.mxu0 %v2149_v32 }
  0x78   : > { %1982 = vmatpush3.bf16.msra.mxu1 %v2151_v34  ;;  %1961 = vmatprep.subr.bf16.mxu0 %v2152_v35 }
  0x79   : > { %1983 = vmatprep.subr.bf16.mxu1 %v2154_v37 }
  0x7b   : > { %1962 = vmatpush3.bf16.msra.mxu0 %v2153_v36 }
  0x7c   : > { %1984 = vmatpush3.bf16.msra.mxu1 %v2155_v38  ;;  %1963 = vmatprep.subr.bf16.mxu0 %v2156_v39 }
  0x7d   : > { %1985 = vmatprep.subr.bf16.mxu1 %v2158_v41 }
  0x7f   : > { %1964 = vmatpush3.bf16.msra.mxu0 %v2157_v40 }
  0x80   : > { %1986 = vmatpush3.bf16.msra.mxu1 %v2159_v42  ;;  %1965 = vmatprep.subr.bf16.mxu0 %v2160_v43 }
  0x81   : > { %1987 = vmatprep.subr.bf16.mxu1 %v2162_v45 }
  0x83   : > { %1966 = vmatpush3.bf16.msra.mxu0 %v2161_v44 }
  0x84   : > { %1988 = vmatpush3.bf16.msra.mxu1 %v2163_v46  ;;  %1967 = vmatprep.subr.bf16.mxu0 %v2164_v47 }
  0x85   : > { %1989 = vmatprep.subr.bf16.mxu1 %v2166_v49 }
  0x87   : > { %1968 = vmatpush3.bf16.msra.mxu0 %v2165_v48 }
  0x88   : > { %1990 = vmatpush3.bf16.msra.mxu1 %v2167_v50  ;;  %1969 = vmatprep.subr.bf16.mxu0 %v2168_v51 }
  0x89   : > { %1991 = vmatprep.subr.bf16.mxu1 %v2170_v53 }
  0x8b   : > { %1970 = vmatpush3.bf16.msra.mxu0 %v2169_v52 }
  0x8c   : > { %1992 = vmatpush3.bf16.msra.mxu1 %v2174_v56  ;;  %1999 = vmatprep.subr.bf16.mxu0 %v2175_v57 }
  0x8e   : > { %1485 = vmatmul.mubr.bf16.vlgmr.msra.gmra.mrb[8].mxu0 %v2171_v54 }
  0x8f   : > { %2000 = vmatpush3.bf16.msra.mxu0 %v2179_v60  ;;  %1526 = vmatmul.mubr.bf16.vlgmr.msra.gmra.mrb[8].mxu1 %v2176_v58 }
  0x90   : > { %2001 = vmatprep.subr.bf16.mxu0 %v2180_v61  ;;  %1566 = vmatprep.mubr.bf16.mxu0 %v2196_v6 }
  0x93   : > { %2002 = vmatpush3.bf16.msra.mxu0 %v2181_v62 }
  0x94   : > { %2003 = vmatprep.subr.bf16.mxu0 %v2182_v63  ;;  %v306_v63 = vld [vmem:[#allocation2] sm:$0xff] }
  0x97   : > { %2004 = vmatpush3.bf16.msra.mxu0 %v2183_v0 }
  0x98   : > { %2005 = vmatprep.subr.bf16.mxu0 %v2184_v1 }
  0x9b   : > { %2006 = vmatpush3.bf16.msra.mxu0 %v2185_v2 }
  0x9c   : > { %2007 = vmatprep.subr.bf16.mxu0 %v2186_v3  ;;  %v307_v3 = vld [vmem:[#allocation2 + $0x8] sm:$0xff] }
  0x9f   : > { %2008 = vmatpush3.bf16.msra.mxu0 %v2187_v4 }
  0xa0   : > { %2009 = vmatprep.subr.bf16.mxu0 %v2188_v5 }
  0xa3   : > { %2010 = vmatpush3.bf16.msra.mxu0 %v2189_v7 }
  0xa4   : > { %2011 = vmatprep.subr.bf16.mxu0 %v2190_v8 }
  0xa7   : > { %2012 = vmatpush3.bf16.msra.mxu0 %v2191_v9  ;;  %v1852_v9 = vld [vmem:[%s2463_s2] ss:$0 sm:$0xff] (!%p1851_p11) }
  0xa8   : > { %2013 = vmatprep.subr.bf16.mxu0 %v2192_v10 }
  0xab   : > { %2014 = vmatpush3.bf16.msra.mxu0 %v2193_v11 }
  0xae   : > { %1567 = vmatmul.mubr.bf16.vlgmr.msra.gmra.mrb[12].mxu0 %v2194_v12 }
 0x121   : > { %v1883_v13 = vpop.f32.mrb[0].mxu0 }
 0x122   : > { %v1905_v14 = vpop.f32.mrb[0].mxu1  ;;  %v1884_v15 = vpop.f32.mrb[1].mxu0 }
 0x123   : > { %v1885_v16 = vadd.f32 %v1884_v15, %v1883_v13  ;;  %v1906_v17 = vpop.f32.mrb[1].mxu1  ;;  %v1886_v18 = vpop.f32.mrb[2].mxu0 }
 0x124   : > { %v1907_v19 = vadd.f32 %v1906_v17, %v1905_v14  ;;  %v1908_v20 = vpop.f32.mrb[2].mxu1  ;;  %v1887_v21 = vpop.f32.mrb[3].mxu0 }
 0x125   : > { %v1888_v22 = vadd.f32 %v1887_v21, %v1886_v18  ;;  %v1909_v23 = vpop.f32.mrb[3].mxu1 }
 0x126   : > { %v1364_v24 = vadd.f32 %v1907_v19, %v1885_v16  ;;  %v1910_v25 = vadd.f32 %v1909_v23, %v1908_v20 }
 0x128   : > { %v1367_v26 = vadd.f32 %v1910_v25, %v1888_v22 }
 0x141   : > { %v1927_v27 = vpop.f32.mrb[4].mxu0 }
 0x142   : > { %v1928_v28 = vpop.f32.mrb[5].mxu0  ;;  %v1949_v33 = vpop.f32.mrb[4].mxu1 }
 0x143   : > { %v1929_v29 = vadd.f32 %v1928_v28, %v1927_v27  ;;  %v1930_v30 = vpop.f32.mrb[6].mxu0  ;;  %v1950_v35 = vpop.f32.mrb[5].mxu1 }
 0x144   : > { %v1931_v31 = vpop.f32.mrb[7].mxu0  ;;  %v1951_v37 = vadd.f32 %v1950_v35, %v1949_v33  ;;  %v1952_v38 = vpop.f32.mrb[6].mxu1 }
 0x145   : > { %v1405_v32 = vadd.f32 %v1929_v29, %v1364_v24  ;;  %v1932_v34 = vadd.f32 %v1931_v31, %v1930_v30  ;;  %v1953_v39 = vpop.f32.mrb[7].mxu1 }
 0x146   : > { %v1954_v41 = vadd.f32 %v1953_v39, %v1952_v38 }
 0x147   : > { %v1408_v36 = vadd.f32 %v1932_v34, %v1367_v26  ;;  %v1446_v40 = vadd.f32 %v1951_v37, %v1405_v32 }
 0x149   : > { %v1449_v42 = vadd.f32 %v1954_v41, %v1408_v36 }
 0x161   : > { %v1971_v43 = vpop.f32.mrb[8].mxu0 }
 0x162   : > { %v1972_v44 = vpop.f32.mrb[9].mxu0  ;;  %v1993_v47 = vpop.f32.mrb[8].mxu1 }
 0x163   : > { %v1973_v45 = vadd.f32 %v1972_v44, %v1971_v43  ;;  %v1974_v46 = vpop.f32.mrb[10].mxu0  ;;  %v1994_v51 = vpop.f32.mrb[9].mxu1 }
 0x164   : > { %v1975_v48 = vpop.f32.mrb[11].mxu0  ;;  %v1995_v52 = vadd.f32 %v1994_v51, %v1993_v47  ;;  %v1996_v53 = vpop.f32.mrb[10].mxu1 }
 0x165   : > { %v1487_v49 = vadd.f32 %v1973_v45, %v1446_v40  ;;  %v1976_v50 = vadd.f32 %v1975_v48, %v1974_v46  ;;  %v1997_v55 = vpop.f32.mrb[11].mxu1 }
 0x166   : > { %v1998_v57 = vadd.f32 %v1997_v55, %v1996_v53 }
 0x167   : > { %v1490_v54 = vadd.f32 %v1976_v50, %v1449_v42  ;;  %v1528_v56 = vadd.f32 %v1995_v52, %v1487_v49 }
 0x169   : > { %v1531_v58 = vadd.f32 %v1998_v57, %v1490_v54 }
 0x181   : > { %v2015_v59 = vpop.f32.mrb[12].mxu0 }
 0x182   : > { %v2016_v60 = vpop.f32.mrb[13].mxu0 }
 0x183   : > { %v2017_v61 = vadd.f32 %v2016_v60, %v2015_v59  ;;  %v2018_v62 = vpop.f32.mrb[14].mxu0 }
 0x184   : > { %v2019_v0 = vpop.f32.mrb[15].mxu0 }
 0x185   : > { %v1569_v1 = vadd.f32 %v2017_v61, %v1528_v56  ;;  %v2020_v2 = vadd.f32 %v2019_v0, %v2018_v62  ;;  %1582 = sbr.rel (%p1851_p11) target bundleno = 410 (0x19a), region = 63 }
 0x187   : > { %v1575_v4 = vadd.f32 %v1569_v1, %v306_v63  ;;  %v1572_v5 = vadd.f32 %v2020_v2, %v1531_v58 }
 0x189   : > { %1577 = vst [vmem:[#allocation2] sm:$0xff] %v1575_v4  ;;  %v1576_v6 = vadd.f32 %v1572_v5, %v307_v3 }
 0x18b   : > { %1578 = vst [vmem:[#allocation2 + $0x8] sm:$0xff] %v1576_v6 }
 0x190   : > { %v1583_v7 = vld [vmem:[#allocation2] sm:$0xff] }
 0x191   : > { %v1592_v10 = vadd.f32 %v1852_v9, %v1583_v7 }
 0x192   : > { %v1584_v8 = vld [vmem:[#allocation2 + $0x8] sm:$0xff] }
 0x193   : > { %v1593_v11 = vadd.f32 %v1852_v9, %v1584_v8  ;;  %v1594_v12 = vmax.f32 %v1592_v10, 0.0 }
 0x195   : > { %v1595_v13 = vmax.f32 %v1593_v11, 0.0 }
 0x197   : > { %v1865_v14 = vpack.c.bf16 %v1595_v13, %v1594_v12 }
 0x199   : > { %1866 = vst [vmem:[%s2464_s3] sm:$0xff] %v1865_v14  }
 0x19a PF: > { %s13_s16 = sadd.s32 1, %s2235_s16   ;;  %s2465_s12 = smov %s2223_s13 }
 0x19b   : > { %p10_p12 = scmp.ge.s32.totalorder %s13_s16, 4   ;;  %s2466_s13 = smov %s2293_s20 }
 0x19c   : > { %s2467_s14 = smov %s2231_s15  ;;  %s2468_s15 = smov %s2470_s17 }
 0x19d   :  { %12 = sbr.rel (!%p10_p12) target bundleno = 3 (0x3), region = 104 }

// kernel: model_forward.18
= control target key start
LH: loop header
LB: loop body
LE: loop exit
PB: predicated region body
PF: predicated region fallthrough
CT: control target
= control target key end

     0   :  { %s973_s12 = smov 0   ;;  %s975_s13 = smov 0   ;;  %s1146_s0 = inlined_call_operand.vmem [shape: bf16[16,256], index: 0, kind: input, shape index: {}]   ;;  %s1147_s1 = inlined_call_operand.vmem [shape: bf16[256,256], index: 1, kind: input, shape index: {}]   ;;  %s1148_s2 = inlined_call_operand.vmem [shape: f32[1,256], index: 2, kind: input, shape index: {}]   ;;  %s1149_s3 = inlined_call_operand.vmem [shape: bf16[16,256], index: 3, kind: output, shape index: {}]  }
   0x1   :  { %s977_s14 = smov 0   ;;  %s979_s15 = smov 0  }
   0x2   :  { %s981_s16 = smov 0  }
   0x3 LB: > { %s28_s17 = sadd.s32 1, %s947_s15  ;;  %s790_s18 = sadd.s32 4294967295, %s951_s16   ;;  %s951_s16 = sphi %s981_s16, %s13_s16   ;;  %s947_s15 = sphi %s979_s15, %s1154_s15   ;;  %s943_s14 = sphi %s977_s14, %s1153_s14   ;;  %s939_s13 = sphi %s975_s13, %s1152_s13   ;;  %s935_s12 = sphi %s973_s12, %s1151_s12  }
   0x4   : > { %p30_p0 = scmp.ge.s32.totalorder %s28_s17, 2  ;;  %p76_p1 = scmp.ne.s32.totalorder %s939_s13, %s935_s12 }
   0x5   : > { %p77_p2 = scmp.eq.s32.totalorder %s951_s16, 0  ;;  %p134_p4 = scmp.eq.s32.totalorder %s790_s18, 1 }
   0x6   : > { %s1156_s17 = smov (%p30_p0, %s28_s17), 0  ;;  %s69_s20 = sadd.s32 1, %s939_s13 }
   0x7   : > { %p78_p3 = por %p77_p2, %p76_p1  ;;  %s65_s19 = ssub.s32 %s947_s15, %s1156_s17 }
   0x8   : > { %p67_p5 = scmp.eq.s32.totalorder %s65_s19, 0  ;;  %p1008_p6 = por %p134_p4, %p76_p1 }
   0x9   : > { %p794_p7 = scmp.ge.s32.totalorder %s951_s16, 2 }
   0xa   : > { %s1013_s22 = scalar_select %p67_p5, %s939_s13, %s69_s20  }
   0xb   : > { %171 = sbr.rel (%p794_p7) target bundleno = 43 (0x2b), region = 20 }
  0x12   : > { %174 = sbr.rel (!%p78_p3) target bundleno = 43 (0x2b), region = 24  ;;  %s176_s23 = sand.u32 (%p78_p3), 1, %s939_s13  }
  0x13   : > { %s796_s24 = sshll.u32 (%p78_p3), %s947_s15, 2  ;;  %s795_s25 = sshll.u32 (%p78_p3), %s176_s23, 7 }
  0x14   : > { %s1021_s28 = scalar_lea.vmem (%p78_p3), %s1147_s1, %s796_s24  ;;  %s1025_s29 = scalar_lea.vmem (%p78_p3), [#allocation3], %s795_s25 }
  0x15   : > { %v199_v0 = vld [vmem:[%s1021_s28] sm:$0xf] (%p78_p3)  ;;  %v201_v1 = vld [vmem:[%s1021_s28 + $0x8] sm:$0xf] (%p78_p3)  ;;  %v203_v2 = vld [vmem:[%s1021_s28 + $0x10] sm:$0xf] (%p78_p3) }
  0x16   : > { %200 = vst [vmem:[%s1025_s29] sm:$0xf] (%p78_p3), %v199_v0  ;;  %202 = vst [vmem:[%s1025_s29 + $0x4] sm:$0xf] (%p78_p3), %v201_v1  ;;  %v205_v3 = vld [vmem:[%s1021_s28 + $0x18] sm:$0xf] (%p78_p3) }
  0x17   : > { %v207_v4 = vld [vmem:[%s1021_s28 + $0x20] sm:$0xf] (%p78_p3)  ;;  %204 = vst [vmem:[%s1025_s29 + $0x8] sm:$0xf] (%p78_p3), %v203_v2  ;;  %206 = vst [vmem:[%s1025_s29 + $0xc] sm:$0xf] (%p78_p3), %v205_v3 }
  0x18   : > { %208 = vst [vmem:[%s1025_s29 + $0x10] sm:$0xf] (%p78_p3), %v207_v4  ;;  %v209_v5 = vld [vmem:[%s1021_s28 + $0x28] sm:$0xf] (%p78_p3)  ;;  %v211_v6 = vld [vmem:[%s1021_s28 + $0x30] sm:$0xf] (%p78_p3) }
  0x19   : > { %v213_v7 = vld [vmem:[%s1021_s28 + $0x38] sm:$0xf]  ;;  %210 = vst [vmem:[%s1025_s29 + $0x14] sm:$0xf] %v209_v5  ;;  %212 = vst [vmem:[%s1025_s29 + $0x18] sm:$0xf] %v211_v6 }
  0x1a   : > { %214 = vst [vmem:[%s1025_s29 + $0x1c] sm:$0xf] %v213_v7  ;;  %v215_v8 = vld [vmem:[%s1021_s28 + $0x40] sm:$0xf]  ;;  %v217_v9 = vld [vmem:[%s1021_s28 + $0x48] sm:$0xf] }
  0x1b   : > { %v219_v10 = vld [vmem:[%s1021_s28 + $0x50] sm:$0xf]  ;;  %216 = vst [vmem:[%s1025_s29 + $0x20] sm:$0xf] %v215_v8  ;;  %218 = vst [vmem:[%s1025_s29 + $0x24] sm:$0xf] %v217_v9 }
  0x1c   : > { %220 = vst [vmem:[%s1025_s29 + $0x28] sm:$0xf] %v219_v10  ;;  %v221_v11 = vld [vmem:[%s1021_s28 + $0x58] sm:$0xf]  ;;  %v223_v12 = vld [vmem:[%s1021_s28 + $0x60] sm:$0xf] }
  0x1d   : > { %v225_v13 = vld [vmem:[%s1021_s28 + $0x68] sm:$0xf]  ;;  %222 = vst [vmem:[%s1025_s29 + $0x2c] sm:$0xf] %v221_v11  ;;  %224 = vst [vmem:[%s1025_s29 + $0x30] sm:$0xf] %v223_v12 }
  0x1e   : > { %226 = vst [vmem:[%s1025_s29 + $0x34] sm:$0xf] %v225_v13  ;;  %v227_v14 = vld [vmem:[%s1021_s28 + $0x70] sm:$0xf]  ;;  %v229_v15 = vld [vmem:[%s1021_s28 + $0x78] sm:$0xf] }
  0x1f   : > { %v231_v16 = vld [vmem:[%s1021_s28 + $0x80] sm:$0xf]  ;;  %228 = vst [vmem:[%s1025_s29 + $0x38] sm:$0xf] %v227_v14  ;;  %230 = vst [vmem:[%s1025_s29 + $0x3c] sm:$0xf] %v229_v15 }
  0x20   : > { %232 = vst [vmem:[%s1025_s29 + $0x40] sm:$0xf] %v231_v16  ;;  %v233_v17 = vld [vmem:[%s1021_s28 + $0x88] sm:$0xf]  ;;  %v235_v18 = vld [vmem:[%s1021_s28 + $0x90] sm:$0xf] }
  0x21   : > { %v237_v19 = vld [vmem:[%s1021_s28 + $0x98] sm:$0xf]  ;;  %234 = vst [vmem:[%s1025_s29 + $0x44] sm:$0xf] %v233_v17  ;;  %236 = vst [vmem:[%s1025_s29 + $0x48] sm:$0xf] %v235_v18 }
  0x22   : > { %238 = vst [vmem:[%s1025_s29 + $0x4c] sm:$0xf] %v237_v19  ;;  %v239_v20 = vld [vmem:[%s1021_s28 + $0xa0] sm:$0xf]  ;;  %v241_v21 = vld [vmem:[%s1021_s28 + $0xa8] sm:$0xf] }
  0x23   : > { %v243_v22 = vld [vmem:[%s1021_s28 + $0xb0] sm:$0xf]  ;;  %240 = vst [vmem:[%s1025_s29 + $0x50] sm:$0xf] %v239_v20  ;;  %242 = vst [vmem:[%s1025_s29 + $0x54] sm:$0xf] %v241_v21 }
  0x24   : > { %244 = vst [vmem:[%s1025_s29 + $0x58] sm:$0xf] %v243_v22  ;;  %v245_v23 = vld [vmem:[%s1021_s28 + $0xb8] sm:$0xf]  ;;  %v247_v24 = vld [vmem:[%s1021_s28 + $0xc0] sm:$0xf] }
  0x25   : > { %v249_v25 = vld [vmem:[%s1021_s28 + $0xc8] sm:$0xf]  ;;  %246 = vst [vmem:[%s1025_s29 + $0x5c] sm:$0xf] %v245_v23  ;;  %248 = vst [vmem:[%s1025_s29 + $0x60] sm:$0xf] %v247_v24 }
  0x26   : > { %250 = vst [vmem:[%s1025_s29 + $0x64] sm:$0xf] %v249_v25  ;;  %v251_v26 = vld [vmem:[%s1021_s28 + $0xd0] sm:$0xf]  ;;  %v253_v27 = vld [vmem:[%s1021_s28 + $0xd8] sm:$0xf] }
  0x27   : > { %v255_v28 = vld [vmem:[%s1021_s28 + $0xe0] sm:$0xf]  ;;  %252 = vst [vmem:[%s1025_s29 + $0x68] sm:$0xf] %v251_v26  ;;  %254 = vst [vmem:[%s1025_s29 + $0x6c] sm:$0xf] %v253_v27 }
  0x28   : > { %256 = vst [vmem:[%s1025_s29 + $0x70] sm:$0xf] %v255_v28  ;;  %v257_v29 = vld [vmem:[%s1021_s28 + $0xe8] sm:$0xf]  ;;  %v259_v30 = vld [vmem:[%s1021_s28 + $0xf0] sm:$0xf] }
  0x29   : > { %v261_v31 = vld [vmem:[%s1021_s28 + $0xf8] sm:$0xf]  ;;  %258 = vst [vmem:[%s1025_s29 + $0x74] sm:$0xf] %v257_v29  ;;  %260 = vst [vmem:[%s1025_s29 + $0x78] sm:$0xf] %v259_v30 }
  0x2a   : > { %262 = vst [vmem:[%s1025_s29 + $0x7c] sm:$0xf] %v261_v31 }
  0x2b PF: > { %p797_p8 = scmp.ge.s32.totalorder %s951_s16, 1  ;;  %p354_p9 = scmp.lt.s32.totalorder %s951_s16, 3 }
  0x2d   : > { %p355_p10 = pnand %p797_p8, %p354_p9 }
  0x2e   : > { %s361_s30 = sand.u32 (!%p355_p10), 1, %s935_s12   ;;  %v912_v32 = vld [vmem:[%s1146_s0 + $0x4] ss:$8 sps:$4 sm:$0xff] (!%p355_p10)   ;;  %v910_v49 = vld [vmem:[%s1146_s0] ss:$8 sps:$4 sm:$0xff] (!%p355_p10)   ;;  %p409_p11 = scmp.lt.s32.totalorder (!%p355_p10), %s943_s14, 1 }
  0x2f   : > { %358 = sbr.rel (%p355_p10) target bundleno = 314 (0x13a), region = 69  ;;  %s798_s4 = sshll.u32 (!%p355_p10), %s361_s30, 7  ;;  %594 = vmatprep.mubr.bf16.mxu0 (!%p355_p10), %v912_v32 }
  0x30   : > { %s1097_s7 = scalar_lea.vmem (!%p355_p10), [#allocation3], %s798_s4  ;;  %s799_s20 = sshll.u32 (!%p355_p10), %s361_s30, 3 }
  0x31   : > { %v894_v33 = vld [vmem:[%s1097_s7 + $0x40] sm:$0xff] (!%p355_p10)   ;;  %v896_v35 = vld [vmem:[%s1097_s7 + $0x48] sm:$0xff] (!%p355_p10)   ;;  %v898_v37 = vld [vmem:[%s1097_s7 + $0x50] sm:$0xff] (!%p355_p10)   ;;  %s395_s23 = scalar_lea.vmem (!%p355_p10), [#allocation4], %s799_s20 }
  0x32   : > { %v895_v34 = vld [vmem:[%s1097_s7] sm:$0xff] (!%p355_p10)   ;;  %832 = vmatprep.subr.bf16.mxu0 (!%p355_p10), %v894_v33  ;;  %v897_v36 = vld [vmem:[%s1097_s7 + $0x8] sm:$0xff] (!%p355_p10)   ;;  %v899_v38 = vld [vmem:[%s1097_s7 + $0x10] sm:$0xff] (!%p355_p10)  }
  0x33   : > { %833 = vmatpush3.bf16.msra.mxu0 (!%p355_p10), %v895_v34  ;;  %v900_v39 = vld [vmem:[%s1097_s7 + $0x58] sm:$0xff] (!%p355_p10)   ;;  %v902_v41 = vld [vmem:[%s1097_s7 + $0x60] sm:$0xff] (!%p355_p10)   ;;  %v904_v43 = vld [vmem:[%s1097_s7 + $0x68] sm:$0xff] (!%p355_p10)  }
  0x34   : > { %834 = vmatprep.subr.bf16.mxu0 (!%p355_p10), %v896_v35  ;;  %v901_v40 = vld [vmem:[%s1097_s7 + $0x18] sm:$0xff] (!%p355_p10)   ;;  %v903_v42 = vld [vmem:[%s1097_s7 + $0x20] sm:$0xff] (!%p355_p10)   ;;  %v905_v44 = vld [vmem:[%s1097_s7 + $0x28] sm:$0xff] (!%p355_p10)  }
  0x35   : > { %v906_v45 = vld [vmem:[%s1097_s7 + $0x70] sm:$0xff] (!%p355_p10)   ;;  %v908_v47 = vld [vmem:[%s1097_s7 + $0x78] sm:$0xff] (!%p355_p10)  }
  0x36   : > { %v907_v46 = vld [vmem:[%s1097_s7 + $0x30] sm:$0xff]   ;;  %v909_v48 = vld [vmem:[%s1097_s7 + $0x38] sm:$0xff]   ;;  %s410_s10 = scalar_select %p409_p11, %s943_s14, 1 }
  0x37   : > { %835 = vmatpush3.bf16.msra.mxu0 %v897_v36  ;;  %s822_s24 = sshll.u32 (%p1008_p6), %s943_s14, 2 }
  0x38   : > { %836 = vmatprep.subr.bf16.mxu0 %v898_v37  ;;  %s411_s19 = scalar_lea.vmem %s1148_s2, %s410_s10  ;;  %s644_s27 = scalar_lea.vmem (%p1008_p6), %s1149_s3, %s822_s24 }
  0x39   : > { %v818_v52 = vld [vmem:[%s411_s19] ss:$0 sm:$0xff] }
  0x3b   : > { %837 = vmatpush3.bf16.msra.mxu0 %v899_v38 }
  0x3c   : > { %838 = vmatprep.subr.bf16.mxu0 %v900_v39 }
  0x3f   : > { %839 = vmatpush3.bf16.msra.mxu0 %v901_v40 }
  0x40   : > { %840 = vmatprep.subr.bf16.mxu0 %v902_v41 }
  0x43   : > { %841 = vmatpush3.bf16.msra.mxu0 %v903_v42 }
  0x44   : > { %842 = vmatprep.subr.bf16.mxu0 %v904_v43 }
  0x47   : > { %843 = vmatpush3.bf16.msra.mxu0 %v905_v44 }
  0x48   : > { %844 = vmatprep.subr.bf16.mxu0 %v906_v45 }
  0x4b   : > { %845 = vmatpush3.bf16.msra.mxu0 %v907_v46 }
  0x4c   : > { %846 = vmatprep.subr.bf16.mxu0 %v908_v47 }
  0x4f   : > { %847 = vmatpush3.bf16.msra.mxu0 %v909_v48 }
  0x52   : > { %595 = vmatmul.mubr.bf16.vlgmr.msra.gmra.mrb[0].mxu0 %v910_v49 }
 0x125   : > { %v848_v50 = vpop.f32.mrb[0].mxu0 }
 0x126   : > { %v849_v51 = vpop.f32.mrb[1].mxu0 }
 0x127   : > { %v850_v53 = vadd.f32 %v849_v51, %v848_v50  ;;  %v851_v54 = vpop.f32.mrb[2].mxu0 }
 0x128   : > { %v852_v55 = vpop.f32.mrb[3].mxu0 }
 0x129   : > { %v619_v56 = vadd.f32 %v850_v53, %v818_v52  ;;  %v853_v57 = vadd.f32 %v852_v55, %v851_v54 }
 0x12b   : > { %v620_v58 = vadd.f32 %v853_v57, %v818_v52  ;;  %v621_v59 = vmax.f32 %v619_v56, 0.0  ;;  %639 = sbr.rel (!%p1008_p6) target bundleno = 314 (0x13a), region = 85 }
 0x12d   : > { %v622_v60 = vmax.f32 %v620_v58, 0.0 }
 0x12f   : > { %v830_v61 = vpack.c.bf16 %v622_v60, %v621_v59 }
 0x131   : > { %831 = vst [vmem:[%s395_s23] sm:$0xff] %v830_v61  }
 0x138   : > { %v660_v62 = vld [vmem:[%s395_s23] sm:$0xf]  ;;  %v662_v63 = vld [vmem:[%s395_s23 + $0x4] sm:$0xf] }
 0x139   : > { %661 = vst [vmem:[%s644_s27] sm:$0xf] %v660_v62  ;;  %663 = vst [vmem:[%s644_s27 + $0x8] sm:$0xf] %v662_v63 }
 0x13a PF: > { %s13_s16 = sadd.s32 1, %s951_s16   ;;  %s1151_s12 = smov %s939_s13 }
 0x13b   : > { %p10_p12 = scmp.ge.s32.totalorder %s13_s16, 4   ;;  %s1152_s13 = smov %s1013_s22 }
 0x13c   : > { %s1153_s14 = smov %s947_s15  ;;  %s1154_s15 = smov %s1156_s17 }
 0x13d   :  { %12 = sbr.rel (!%p10_p12) target bundleno = 3 (0x3), region = 163 }

// kernel: model_forward.19
= control target key start
LH: loop header
LB: loop body
LE: loop exit
PB: predicated region body
PF: predicated region fallthrough
CT: control target
= control target key end

     0   :  { %s1109_s15 = smov 0   ;;  %s1111_s16 = smov 0   ;;  %s1295_s0 = inlined_call_operand.vmem [shape: bf16[16,256], index: 0, kind: input, shape index: {}]   ;;  %s1296_s1 = inlined_call_operand.vmem [shape: bf16[256,256], index: 1, kind: input, shape index: {}]   ;;  %s1297_s2 = inlined_call_operand.vmem [shape: f32[1,256], index: 2, kind: input, shape index: {}]   ;;  %s1298_s3 = inlined_call_operand.vmem [shape: bf16[16,256], index: 3, kind: input, shape index: {}]   ;;  %s1299_s4 = inlined_call_operand.vmem [shape: bf16[16,256], index: 4, kind: output, shape index: {}]  }
   0x1   :  { %s1113_s17 = smov 0   ;;  %s1115_s18 = smov 0  }
   0x2   :  { %s1117_s19 = smov 0  }
   0x3 LB: > { %s29_s20 = sadd.s32 1, %s1078_s18  ;;  %s914_s21 = sadd.s32 4294967295, %s1082_s19   ;;  %s1082_s19 = sphi %s1117_s19, %s14_s19   ;;  %s1078_s18 = sphi %s1115_s18, %s1305_s18   ;;  %s1074_s17 = sphi %s1113_s17, %s1304_s17   ;;  %s1070_s16 = sphi %s1111_s16, %s1303_s16   ;;  %s1066_s15 = sphi %s1109_s15, %s1302_s15  }
   0x4   : > { %p31_p0 = scmp.ge.s32.totalorder %s29_s20, 2  ;;  %p77_p1 = scmp.ne.s32.totalorder %s1070_s16, %s1066_s15 }
   0x5   : > { %p78_p2 = scmp.eq.s32.totalorder %s1082_s19, 0  ;;  %p163_p4 = scmp.eq.s32.totalorder %s914_s21, 1 }
   0x6   : > { %s1307_s20 = smov (%p31_p0, %s29_s20), 0  ;;  %s70_s24 = sadd.s32 1, %s1070_s16 }
   0x7   : > { %p1141_p3 = por %p78_p2, %p77_p1  ;;  %s66_s23 = ssub.s32 %s1078_s18, %s1307_s20 }
   0x8   : > { %p68_p5 = scmp.eq.s32.totalorder %s66_s23, 0  ;;  %p1148_p6 = por %p163_p4, %p77_p1 }
   0x9   : > { %p918_p7 = scmp.ge.s32.totalorder %s1082_s19, 2 }
   0xa   : > { %s1153_s26 = scalar_select %p68_p5, %s1070_s16, %s70_s24  }
   0xb   : > { %200 = sbr.rel (%p918_p7) target bundleno = 50 (0x32), region = 20 }
  0x12   : > { %203 = sbr.rel (!%p1141_p3) target bundleno = 43 (0x2b), region = 24  ;;  %s205_s27 = sand.u32 (%p1141_p3), 1, %s1070_s16  }
  0x13   : > { %s920_s28 = sshll.u32 (%p1141_p3), %s1078_s18, 2  ;;  %s919_s29 = sshll.u32 (%p1141_p3), %s205_s27, 7 }
  0x14   : > { %s1163_s6 = scalar_lea.vmem (%p1141_p3), %s1296_s1, %s920_s28  ;;  %s1167_s7 = scalar_lea.vmem (%p1141_p3), [#allocation3], %s919_s29 }
  0x15   : > { %v228_v0 = vld [vmem:[%s1163_s6] sm:$0xf] (%p1141_p3)  ;;  %v230_v1 = vld [vmem:[%s1163_s6 + $0x8] sm:$0xf] (%p1141_p3)  ;;  %v232_v2 = vld [vmem:[%s1163_s6 + $0x10] sm:$0xf] (%p1141_p3) }
  0x16   : > { %229 = vst [vmem:[%s1167_s7] sm:$0xf] (%p1141_p3), %v228_v0  ;;  %231 = vst [vmem:[%s1167_s7 + $0x4] sm:$0xf] (%p1141_p3), %v230_v1  ;;  %v234_v3 = vld [vmem:[%s1163_s6 + $0x18] sm:$0xf] (%p1141_p3) }
  0x17   : > { %v236_v4 = vld [vmem:[%s1163_s6 + $0x20] sm:$0xf] (%p1141_p3)  ;;  %233 = vst [vmem:[%s1167_s7 + $0x8] sm:$0xf] (%p1141_p3), %v232_v2  ;;  %235 = vst [vmem:[%s1167_s7 + $0xc] sm:$0xf] (%p1141_p3), %v234_v3 }
  0x18   : > { %237 = vst [vmem:[%s1167_s7 + $0x10] sm:$0xf] (%p1141_p3), %v236_v4  ;;  %v238_v5 = vld [vmem:[%s1163_s6 + $0x28] sm:$0xf] (%p1141_p3)  ;;  %v240_v6 = vld [vmem:[%s1163_s6 + $0x30] sm:$0xf] (%p1141_p3) }
  0x19   : > { %v242_v7 = vld [vmem:[%s1163_s6 + $0x38] sm:$0xf]  ;;  %239 = vst [vmem:[%s1167_s7 + $0x14] sm:$0xf] %v238_v5  ;;  %241 = vst [vmem:[%s1167_s7 + $0x18] sm:$0xf] %v240_v6 }
  0x1a   : > { %243 = vst [vmem:[%s1167_s7 + $0x1c] sm:$0xf] %v242_v7  ;;  %v244_v8 = vld [vmem:[%s1163_s6 + $0x40] sm:$0xf]  ;;  %v246_v9 = vld [vmem:[%s1163_s6 + $0x48] sm:$0xf] }
  0x1b   : > { %v248_v10 = vld [vmem:[%s1163_s6 + $0x50] sm:$0xf]  ;;  %245 = vst [vmem:[%s1167_s7 + $0x20] sm:$0xf] %v244_v8  ;;  %247 = vst [vmem:[%s1167_s7 + $0x24] sm:$0xf] %v246_v9 }
  0x1c   : > { %249 = vst [vmem:[%s1167_s7 + $0x28] sm:$0xf] %v248_v10  ;;  %v250_v11 = vld [vmem:[%s1163_s6 + $0x58] sm:$0xf]  ;;  %v252_v12 = vld [vmem:[%s1163_s6 + $0x60] sm:$0xf] }
  0x1d   : > { %v254_v13 = vld [vmem:[%s1163_s6 + $0x68] sm:$0xf]  ;;  %251 = vst [vmem:[%s1167_s7 + $0x2c] sm:$0xf] %v250_v11  ;;  %253 = vst [vmem:[%s1167_s7 + $0x30] sm:$0xf] %v252_v12 }
  0x1e   : > { %255 = vst [vmem:[%s1167_s7 + $0x34] sm:$0xf] %v254_v13  ;;  %v256_v14 = vld [vmem:[%s1163_s6 + $0x70] sm:$0xf]  ;;  %v258_v15 = vld [vmem:[%s1163_s6 + $0x78] sm:$0xf] }
  0x1f   : > { %v260_v16 = vld [vmem:[%s1163_s6 + $0x80] sm:$0xf]  ;;  %257 = vst [vmem:[%s1167_s7 + $0x38] sm:$0xf] %v256_v14  ;;  %259 = vst [vmem:[%s1167_s7 + $0x3c] sm:$0xf] %v258_v15 }
  0x20   : > { %261 = vst [vmem:[%s1167_s7 + $0x40] sm:$0xf] %v260_v16  ;;  %v262_v17 = vld [vmem:[%s1163_s6 + $0x88] sm:$0xf]  ;;  %v264_v18 = vld [vmem:[%s1163_s6 + $0x90] sm:$0xf] }
  0x21   : > { %v266_v19 = vld [vmem:[%s1163_s6 + $0x98] sm:$0xf]  ;;  %263 = vst [vmem:[%s1167_s7 + $0x44] sm:$0xf] %v262_v17  ;;  %265 = vst [vmem:[%s1167_s7 + $0x48] sm:$0xf] %v264_v18 }
  0x22   : > { %267 = vst [vmem:[%s1167_s7 + $0x4c] sm:$0xf] %v266_v19  ;;  %v268_v20 = vld [vmem:[%s1163_s6 + $0xa0] sm:$0xf]  ;;  %v270_v21 = vld [vmem:[%s1163_s6 + $0xa8] sm:$0xf] }
  0x23   : > { %v272_v22 = vld [vmem:[%s1163_s6 + $0xb0] sm:$0xf]  ;;  %269 = vst [vmem:[%s1167_s7 + $0x50] sm:$0xf] %v268_v20  ;;  %271 = vst [vmem:[%s1167_s7 + $0x54] sm:$0xf] %v270_v21 }
  0x24   : > { %273 = vst [vmem:[%s1167_s7 + $0x58] sm:$0xf] %v272_v22  ;;  %v274_v23 = vld [vmem:[%s1163_s6 + $0xb8] sm:$0xf]  ;;  %v276_v24 = vld [vmem:[%s1163_s6 + $0xc0] sm:$0xf] }
  0x25   : > { %v278_v25 = vld [vmem:[%s1163_s6 + $0xc8] sm:$0xf]  ;;  %275 = vst [vmem:[%s1167_s7 + $0x5c] sm:$0xf] %v274_v23  ;;  %277 = vst [vmem:[%s1167_s7 + $0x60] sm:$0xf] %v276_v24 }
  0x26   : > { %279 = vst [vmem:[%s1167_s7 + $0x64] sm:$0xf] %v278_v25  ;;  %v280_v26 = vld [vmem:[%s1163_s6 + $0xd0] sm:$0xf]  ;;  %v282_v27 = vld [vmem:[%s1163_s6 + $0xd8] sm:$0xf] }
  0x27   : > { %v284_v28 = vld [vmem:[%s1163_s6 + $0xe0] sm:$0xf]  ;;  %281 = vst [vmem:[%s1167_s7 + $0x68] sm:$0xf] %v280_v26  ;;  %283 = vst [vmem:[%s1167_s7 + $0x6c] sm:$0xf] %v282_v27 }
  0x28   : > { %285 = vst [vmem:[%s1167_s7 + $0x70] sm:$0xf] %v284_v28  ;;  %v286_v29 = vld [vmem:[%s1163_s6 + $0xe8] sm:$0xf]  ;;  %v288_v30 = vld [vmem:[%s1163_s6 + $0xf0] sm:$0xf] }
  0x29   : > { %v290_v31 = vld [vmem:[%s1163_s6 + $0xf8] sm:$0xf]  ;;  %287 = vst [vmem:[%s1167_s7 + $0x74] sm:$0xf] %v286_v29  ;;  %289 = vst [vmem:[%s1167_s7 + $0x78] sm:$0xf] %v288_v30 }
  0x2a   : > { %291 = vst [vmem:[%s1167_s7 + $0x7c] sm:$0xf] %v290_v31 }
  0x2b PF: > { %384 = sbr.rel (!%p1141_p3) target bundleno = 50 (0x32), region = 69  ;;  %s386_s8 = sand.u32 (%p1141_p3), 1, %s1070_s16  }
  0x2c   : > { %s922_s9 = sshll.u32 (%p1141_p3), %s1078_s18, 2  ;;  %s921_s10 = sshll.u32 (%p1141_p3), %s386_s8, 3 }
  0x2d   : > { %s393_s13 = scalar_lea.vmem (%p1141_p3), %s1298_s3, %s922_s9  ;;  %s388_s14 = scalar_lea.vmem (%p1141_p3), [#allocation4], %s921_s10 }
  0x2e   : > { %v409_v32 = vld [vmem:[%s393_s13] sm:$0xf] (%p1141_p3)  ;;  %v411_v33 = vld [vmem:[%s393_s13 + $0x8] sm:$0xf] (%p1141_p3) }
  0x2f   : > { %410 = vst [vmem:[%s388_s14] sm:$0xf] (%p1141_p3), %v409_v32  ;;  %412 = vst [vmem:[%s388_s14 + $0x4] sm:$0xf] (%p1141_p3), %v411_v33 }
  0x32 PF: > { %p923_p8 = scmp.ge.s32.totalorder %s1082_s19, 1  ;;  %p438_p9 = scmp.lt.s32.totalorder %s1082_s19, 3 }
  0x34   : > { %p439_p10 = pnand %p923_p8, %p438_p9 }
  0x35   : > { %s445_s21 = sand.u32 (!%p439_p10), 1, %s1066_s15   ;;  %v1043_v34 = vld [vmem:[%s1295_s0 + $0x4] ss:$8 sps:$4 sm:$0xff] (!%p439_p10)   ;;  %v1041_v51 = vld [vmem:[%s1295_s0] ss:$8 sps:$4 sm:$0xff] (!%p439_p10)   ;;  %p506_p11 = scmp.lt.s32.totalorder (!%p439_p10), %s1074_s17, 1 }
  0x36   : > { %442 = sbr.rel (%p439_p10) target bundleno = 323 (0x143), region = 110  ;;  %s924_s22 = sshll.u32 (!%p439_p10), %s445_s21, 7  ;;  %692 = vmatprep.mubr.bf16.mxu0 (!%p439_p10), %v1043_v34 }
  0x37   : > { %s1246_s27 = scalar_lea.vmem (!%p439_p10), [#allocation3], %s924_s22  ;;  %s925_s30 = sshll.u32 (!%p439_p10), %s445_s21, 3 }
  0x38   : > { %v1025_v35 = vld [vmem:[%s1246_s27 + $0x40] sm:$0xff] (!%p439_p10)   ;;  %v1027_v37 = vld [vmem:[%s1246_s27 + $0x48] sm:$0xff] (!%p439_p10)   ;;  %v1029_v39 = vld [vmem:[%s1246_s27 + $0x50] sm:$0xff] (!%p439_p10)   ;;  %s454_s9 = scalar_lea.vmem (!%p439_p10), [#allocation4], %s925_s30  ;;  %s492_s15 = scalar_lea.vmem (!%p439_p10), [#allocation5], %s925_s30 }
  0x39   : > { %v1026_v36 = vld [vmem:[%s1246_s27] sm:$0xff] (!%p439_p10)   ;;  %963 = vmatprep.subr.bf16.mxu0 (!%p439_p10), %v1025_v35  ;;  %v1028_v38 = vld [vmem:[%s1246_s27 + $0x8] sm:$0xff] (!%p439_p10)   ;;  %v1030_v40 = vld [vmem:[%s1246_s27 + $0x10] sm:$0xff] (!%p439_p10)  }
  0x3a   : > { %964 = vmatpush3.bf16.msra.mxu0 (!%p439_p10), %v1026_v36  ;;  %v1031_v41 = vld [vmem:[%s1246_s27 + $0x58] sm:$0xff] (!%p439_p10)   ;;  %v1033_v43 = vld [vmem:[%s1246_s27 + $0x60] sm:$0xff] (!%p439_p10)   ;;  %v1035_v45 = vld [vmem:[%s1246_s27 + $0x68] sm:$0xff] (!%p439_p10)  }
  0x3b   : > { %965 = vmatprep.subr.bf16.mxu0 (!%p439_p10), %v1027_v37  ;;  %v1032_v42 = vld [vmem:[%s1246_s27 + $0x18] sm:$0xff] (!%p439_p10)   ;;  %v1034_v44 = vld [vmem:[%s1246_s27 + $0x20] sm:$0xff] (!%p439_p10)   ;;  %v1036_v46 = vld [vmem:[%s1246_s27 + $0x28] sm:$0xff] (!%p439_p10)  }
  0x3c   : > { %v1037_v47 = vld [vmem:[%s1246_s27 + $0x70] sm:$0xff] (!%p439_p10)   ;;  %v1039_v49 = vld [vmem:[%s1246_s27 + $0x78] sm:$0xff] (!%p439_p10)   ;;  %v955_v52 = vld [vmem:[%s454_s9] sm:$0xff] (!%p439_p10)  }
  0x3d   : > { %v1038_v48 = vld [vmem:[%s1246_s27 + $0x30] sm:$0xff]   ;;  %v1040_v50 = vld [vmem:[%s1246_s27 + $0x38] sm:$0xff]   ;;  %s507_s5 = scalar_select %p506_p11, %s1074_s17, 1  ;;  %v956_v57 = vunpack.c.l.bf16 %v955_v52  ;;  %v957_v62 = vunpack.c.h.bf16 %v955_v52 }
  0x3e   : > { %966 = vmatpush3.bf16.msra.mxu0 %v1028_v38  ;;  %s949_s10 = sshll.u32 (%p1148_p6), %s1074_s17, 2 }
  0x3f   : > { %967 = vmatprep.subr.bf16.mxu0 %v1029_v39  ;;  %s508_s8 = scalar_lea.vmem %s1297_s2, %s507_s5  ;;  %s748_s13 = scalar_lea.vmem (%p1148_p6), %s1299_s4, %s949_s10 }
  0x40   : > { %v945_v55 = vld [vmem:[%s508_s8] ss:$0 sm:$0xff] }
  0x42   : > { %968 = vmatpush3.bf16.msra.mxu0 %v1030_v40 }
  0x43   : > { %969 = vmatprep.subr.bf16.mxu0 %v1031_v41 }
  0x46   : > { %970 = vmatpush3.bf16.msra.mxu0 %v1032_v42 }
  0x47   : > { %971 = vmatprep.subr.bf16.mxu0 %v1033_v43 }
  0x4a   : > { %972 = vmatpush3.bf16.msra.mxu0 %v1034_v44 }
  0x4b   : > { %973 = vmatprep.subr.bf16.mxu0 %v1035_v45 }
  0x4e   : > { %974 = vmatpush3.bf16.msra.mxu0 %v1036_v46 }
  0x4f   : > { %975 = vmatprep.subr.bf16.mxu0 %v1037_v47 }
  0x52   : > { %976 = vmatpush3.bf16.msra.mxu0 %v1038_v48 }
  0x53   : > { %977 = vmatprep.subr.bf16.mxu0 %v1039_v49 }
  0x56   : > { %978 = vmatpush3.bf16.msra.mxu0 %v1040_v50 }
  0x59   : > { %693 = vmatmul.mubr.bf16.vlgmr.msra.gmra.mrb[0].mxu0 %v1041_v51 }
 0x12c   : > { %v979_v53 = vpop.f32.mrb[0].mxu0 }
 0x12d   : > { %v980_v54 = vpop.f32.mrb[1].mxu0 }
 0x12e   : > { %v981_v56 = vadd.f32 %v980_v54, %v979_v53  ;;  %v982_v58 = vpop.f32.mrb[2].mxu0 }
 0x12f   : > { %v983_v59 = vpop.f32.mrb[3].mxu0 }
 0x130   : > { %v717_v60 = vadd.f32 %v981_v56, %v945_v55  ;;  %v984_v61 = vadd.f32 %v983_v59, %v982_v58 }
 0x132   : > { %v723_v63 = vadd.f32 %v956_v57, %v717_v60  ;;  %v718_v0 = vadd.f32 %v984_v61, %v945_v55 }
 0x134   : > { %v724_v1 = vadd.f32 %v957_v62, %v718_v0  ;;  %v725_v2 = vmax.f32 %v723_v63, 0.0  ;;  %743 = sbr.rel (!%p1148_p6) target bundleno = 323 (0x143), region = 130 }
 0x136   : > { %v726_v3 = vmax.f32 %v724_v1, 0.0 }
 0x138   : > { %v961_v4 = vpack.c.bf16 %v726_v3, %v725_v2 }
 0x13a   : > { %962 = vst [vmem:[%s492_s15] sm:$0xff] %v961_v4  }
 0x141   : > { %v764_v5 = vld [vmem:[%s492_s15] sm:$0xf]  ;;  %v766_v6 = vld [vmem:[%s492_s15 + $0x4] sm:$0xf] }
 0x142   : > { %765 = vst [vmem:[%s748_s13] sm:$0xf] %v764_v5  ;;  %767 = vst [vmem:[%s748_s13 + $0x8] sm:$0xf] %v766_v6 }
 0x143 PF: > { %s14_s19 = sadd.s32 1, %s1082_s19   ;;  %s1302_s15 = smov %s1070_s16 }
 0x144   : > { %p11_p12 = scmp.ge.s32.totalorder %s14_s19, 4   ;;  %s1303_s16 = smov %s1153_s26 }
 0x145   : > { %s1304_s17 = smov %s1078_s18  ;;  %s1305_s18 = smov %s1307_s20 }
 0x146   :  { %13 = sbr.rel (!%p11_p12) target bundleno = 3 (0x3), region = 216 }

// kernel: model_forward.20
= control target key start
LH: loop header
LB: loop body
LE: loop exit
PB: predicated region body
PF: predicated region fallthrough
CT: control target
= control target key end

     0   :  { %s1083_s12 = smov 0   ;;  %s1085_s13 = smov 0   ;;  %s1271_s0 = inlined_call_operand.vmem [shape: bf16[16,256], index: 0, kind: input, shape index: {}]   ;;  %s1272_s1 = inlined_call_operand.vmem [shape: bf16[256,512], index: 1, kind: input, shape index: {}]   ;;  %s1273_s2 = inlined_call_operand.vmem [shape: f32[1,512], index: 2, kind: input, shape index: {}]   ;;  %s1274_s3 = inlined_call_operand.vmem [shape: bf16[16,512], index: 3, kind: output, shape index: {}]  }
   0x1   :  { %s1087_s14 = smov 0   ;;  %s1089_s15 = smov 0  }
   0x2   :  { %s1091_s16 = smov 0  }
   0x3 LB: > { %s28_s17 = sadd.s32 1, %s1057_s15  ;;  %s875_s18 = sadd.s32 4294967295, %s1061_s16   ;;  %s1061_s16 = sphi %s1091_s16, %s13_s16   ;;  %s1057_s15 = sphi %s1089_s15, %s1279_s15   ;;  %s1053_s14 = sphi %s1087_s14, %s1278_s14   ;;  %s1049_s13 = sphi %s1085_s13, %s1277_s13   ;;  %s1045_s12 = sphi %s1083_s12, %s1276_s12  }
   0x4   : > { %p30_p0 = scmp.ge.s32.totalorder %s28_s17, 2  ;;  %p76_p1 = scmp.ne.s32.totalorder %s1049_s13, %s1045_s12 }
   0x5   : > { %p77_p2 = scmp.eq.s32.totalorder %s1061_s16, 0  ;;  %p134_p4 = scmp.eq.s32.totalorder %s875_s18, 1 }
   0x6   : > { %s1281_s17 = smov (%p30_p0, %s28_s17), 0  ;;  %s69_s20 = sadd.s32 1, %s1049_s13 }
   0x7   : > { %p78_p3 = por %p77_p2, %p76_p1  ;;  %s65_s19 = ssub.s32 %s1057_s15, %s1281_s17 }
   0x8   : > { %p67_p5 = scmp.eq.s32.totalorder %s65_s19, 0  ;;  %p1118_p6 = por %p134_p4, %p76_p1 }
   0x9   : > { %p879_p7 = scmp.ge.s32.totalorder %s1061_s16, 2 }
   0xa   : > { %s1123_s22 = scalar_select %p67_p5, %s1049_s13, %s69_s20  }
   0xb   : > { %171 = sbr.rel (%p879_p7) target bundleno = 38 (0x26), region = 20 }
  0x12   : > { %174 = sbr.rel (!%p78_p3) target bundleno = 38 (0x26), region = 24  ;;  %s176_s23 = sand.u32 (%p78_p3), 1, %s1049_s13  }
  0x13   : > { %s928_s24 = sshll.u32 (%p78_p3), %s1057_s15, 3  ;;  %s880_s25 = sshll.u32 (%p78_p3), %s176_s23, 8 }
  0x14   : > { %s1131_s28 = scalar_lea.vmem (%p78_p3), %s1272_s1, %s928_s24  ;;  %s1136_s29 = scalar_lea.vmem (%p78_p3), [#allocation3], %s880_s25 }
  0x15   : > { %v274_v0 = vld [vmem:[%s1131_s28] sm:$0xff] (%p78_p3)  ;;  %v276_v1 = vld [vmem:[%s1131_s28 + $0x10] sm:$0xff] (%p78_p3) }
  0x16   : > { %v278_v2 = vld [vmem:[%s1131_s28 + $0x20] sm:$0xff] (%p78_p3)  ;;  %275 = vst [vmem:[%s1136_s29] sm:$0xff] (%p78_p3), %v274_v0  ;;  %277 = vst [vmem:[%s1136_s29 + $0x8] sm:$0xff] (%p78_p3), %v276_v1  ;;  %v280_v3 = vld [vmem:[%s1131_s28 + $0x30] sm:$0xff] (%p78_p3) }
  0x17   : > { %279 = vst [vmem:[%s1136_s29 + $0x10] sm:$0xff] (%p78_p3), %v278_v2  ;;  %v282_v4 = vld [vmem:[%s1131_s28 + $0x40] sm:$0xff] (%p78_p3)  ;;  %v284_v5 = vld [vmem:[%s1131_s28 + $0x50] sm:$0xff] (%p78_p3)  ;;  %281 = vst [vmem:[%s1136_s29 + $0x18] sm:$0xff] (%p78_p3), %v280_v3 }
  0x18   : > { %283 = vst [vmem:[%s1136_s29 + $0x20] sm:$0xff] (%p78_p3), %v282_v4  ;;  %285 = vst [vmem:[%s1136_s29 + $0x28] sm:$0xff] (%p78_p3), %v284_v5  ;;  %v286_v6 = vld [vmem:[%s1131_s28 + $0x60] sm:$0xff] (%p78_p3)  ;;  %v288_v7 = vld [vmem:[%s1131_s28 + $0x70] sm:$0xff] (%p78_p3) }
  0x19   : > { %v290_v8 = vld [vmem:[%s1131_s28 + $0x80] sm:$0xff]  ;;  %287 = vst [vmem:[%s1136_s29 + $0x30] sm:$0xff] %v286_v6  ;;  %289 = vst [vmem:[%s1136_s29 + $0x38] sm:$0xff] %v288_v7  ;;  %v292_v9 = vld [vmem:[%s1131_s28 + $0x90] sm:$0xff] }
  0x1a   : > { %291 = vst [vmem:[%s1136_s29 + $0x40] sm:$0xff] %v290_v8  ;;  %v294_v10 = vld [vmem:[%s1131_s28 + $0xa0] sm:$0xff]  ;;  %v296_v11 = vld [vmem:[%s1131_s28 + $0xb0] sm:$0xff]  ;;  %293 = vst [vmem:[%s1136_s29 + $0x48] sm:$0xff] %v292_v9 }
  0x1b   : > { %295 = vst [vmem:[%s1136_s29 + $0x50] sm:$0xff] %v294_v10  ;;  %297 = vst [vmem:[%s1136_s29 + $0x58] sm:$0xff] %v296_v11  ;;  %v298_v12 = vld [vmem:[%s1131_s28 + $0xc0] sm:$0xff]  ;;  %v300_v13 = vld [vmem:[%s1131_s28 + $0xd0] sm:$0xff] }
  0x1c   : > { %v302_v14 = vld [vmem:[%s1131_s28 + $0xe0] sm:$0xff]  ;;  %299 = vst [vmem:[%s1136_s29 + $0x60] sm:$0xff] %v298_v12  ;;  %301 = vst [vmem:[%s1136_s29 + $0x68] sm:$0xff] %v300_v13  ;;  %v304_v15 = vld [vmem:[%s1131_s28 + $0xf0] sm:$0xff] }
  0x1d   : > { %303 = vst [vmem:[%s1136_s29 + $0x70] sm:$0xff] %v302_v14  ;;  %v306_v16 = vld [vmem:[%s1131_s28 + $0x100] sm:$0xff]  ;;  %v308_v17 = vld [vmem:[%s1131_s28 + $0x110] sm:$0xff]  ;;  %305 = vst [vmem:[%s1136_s29 + $0x78] sm:$0xff] %v304_v15 }
  0x1e   : > { %307 = vst [vmem:[%s1136_s29 + $0x80] sm:$0xff] %v306_v16  ;;  %309 = vst [vmem:[%s1136_s29 + $0x88] sm:$0xff] %v308_v17  ;;  %v310_v18 = vld [vmem:[%s1131_s28 + $0x120] sm:$0xff]  ;;  %v312_v19 = vld [vmem:[%s1131_s28 + $0x130] sm:$0xff] }
  0x1f   : > { %v314_v20 = vld [vmem:[%s1131_s28 + $0x140] sm:$0xff]  ;;  %311 = vst [vmem:[%s1136_s29 + $0x90] sm:$0xff] %v310_v18  ;;  %313 = vst [vmem:[%s1136_s29 + $0x98] sm:$0xff] %v312_v19  ;;  %v316_v21 = vld [vmem:[%s1131_s28 + $0x150] sm:$0xff] }
  0x20   : > { %315 = vst [vmem:[%s1136_s29 + $0xa0] sm:$0xff] %v314_v20  ;;  %v318_v22 = vld [vmem:[%s1131_s28 + $0x160] sm:$0xff]  ;;  %v320_v23 = vld [vmem:[%s1131_s28 + $0x170] sm:$0xff]  ;;  %317 = vst [vmem:[%s1136_s29 + $0xa8] sm:$0xff] %v316_v21 }
  0x21   : > { %319 = vst [vmem:[%s1136_s29 + $0xb0] sm:$0xff] %v318_v22  ;;  %321 = vst [vmem:[%s1136_s29 + $0xb8] sm:$0xff] %v320_v23  ;;  %v322_v24 = vld [vmem:[%s1131_s28 + $0x180] sm:$0xff]  ;;  %v324_v25 = vld [vmem:[%s1131_s28 + $0x190] sm:$0xff] }
  0x22   : > { %v326_v26 = vld [vmem:[%s1131_s28 + $0x1a0] sm:$0xff]  ;;  %323 = vst [vmem:[%s1136_s29 + $0xc0] sm:$0xff] %v322_v24  ;;  %325 = vst [vmem:[%s1136_s29 + $0xc8] sm:$0xff] %v324_v25  ;;  %v328_v27 = vld [vmem:[%s1131_s28 + $0x1b0] sm:$0xff] }
  0x23   : > { %327 = vst [vmem:[%s1136_s29 + $0xd0] sm:$0xff] %v326_v26  ;;  %v330_v28 = vld [vmem:[%s1131_s28 + $0x1c0] sm:$0xff]  ;;  %v332_v29 = vld [vmem:[%s1131_s28 + $0x1d0] sm:$0xff]  ;;  %329 = vst [vmem:[%s1136_s29 + $0xd8] sm:$0xff] %v328_v27 }
  0x24   : > { %331 = vst [vmem:[%s1136_s29 + $0xe0] sm:$0xff] %v330_v28  ;;  %333 = vst [vmem:[%s1136_s29 + $0xe8] sm:$0xff] %v332_v29  ;;  %v334_v30 = vld [vmem:[%s1131_s28 + $0x1e0] sm:$0xff]  ;;  %v336_v31 = vld [vmem:[%s1131_s28 + $0x1f0] sm:$0xff] }
  0x25   : > { %335 = vst [vmem:[%s1136_s29 + $0xf0] sm:$0xff] %v334_v30  ;;  %337 = vst [vmem:[%s1136_s29 + $0xf8] sm:$0xff] %v336_v31 }
  0x26 PF: > { %p883_p8 = scmp.ge.s32.totalorder %s1061_s16, 1  ;;  %p350_p9 = scmp.lt.s32.totalorder %s1061_s16, 3 }
  0x28   : > { %p351_p10 = pnand %p883_p8, %p350_p9 }
  0x29   : > { %s357_s30 = sand.u32 (!%p351_p10), 1, %s1045_s12   ;;  %v1022_v32 = vld [vmem:[%s1271_s0 + $0x4] ss:$8 sps:$4 sm:$0xff] (!%p351_p10)   ;;  %v1020_v1 = vld [vmem:[%s1271_s0] ss:$8 sps:$4 sm:$0xff] (!%p351_p10)   ;;  %s886_s10 = sshll.u32 (!%p351_p10), %s1053_s14, 1  ;;  %v690_v2 = vlaneseq (!%p351_p10) }
  0x2a   : > { %354 = sbr.rel (%p351_p10) target bundleno = 339 (0x153), region = 66  ;;  %s884_s4 = sshll.u32 (!%p351_p10), %s357_s30, 8  ;;  %662 = vmatprep.mubr.bf16.mxu0 (!%p351_p10), %v1022_v32 }
  0x2b   : > { %s1207_s7 = scalar_lea.vmem (!%p351_p10), [#allocation3], %s884_s4  ;;  %p408_p11 = scmp.lt.s32.totalorder (!%p351_p10), %s886_s10, 3  ;;  %v691_v3 = vshrl.u32 (!%p351_p10), %v690_v2, 7 }
  0x2c   : > { %v972_v33 = vld [vmem:[%s1207_s7 + $0x4] ss:$8 sps:$4 sm:$0xff] (!%p351_p10)   ;;  %v974_v34 = vld [vmem:[%s1207_s7] ss:$8 sps:$4 sm:$0xff] (!%p351_p10)   ;;  %v975_v35 = vld [vmem:[%s1207_s7 + $0x14] ss:$8 sps:$4 sm:$0xff] (!%p351_p10)  }
  0x2d   : > { %630 = vmatprep.subr.bf16.mxu0 (!%p351_p10), %v972_v33  ;;  %v977_v36 = vld [vmem:[%s1207_s7 + $0x10] ss:$8 sps:$4 sm:$0xff] (!%p351_p10)   ;;  %v978_v37 = vld [vmem:[%s1207_s7 + $0x24] ss:$8 sps:$4 sm:$0xff] (!%p351_p10)   ;;  %v980_v38 = vld [vmem:[%s1207_s7 + $0x20] ss:$8 sps:$4 sm:$0xff] (!%p351_p10)  }
  0x2e   : > { %631 = vmatpush1.bf16.msra.mxu0 (!%p351_p10), %v974_v34  ;;  %v981_v39 = vld [vmem:[%s1207_s7 + $0x34] ss:$8 sps:$4 sm:$0xff] (!%p351_p10)   ;;  %v983_v40 = vld [vmem:[%s1207_s7 + $0x30] ss:$8 sps:$4 sm:$0xff] (!%p351_p10)   ;;  %v984_v41 = vld [vmem:[%s1207_s7 + $0x44] ss:$8 sps:$4 sm:$0xff] (!%p351_p10)  }
  0x2f   : > { %632 = vmatprep.subr.bf16.mxu0 (!%p351_p10), %v975_v35  ;;  %v986_v42 = vld [vmem:[%s1207_s7 + $0x40] ss:$8 sps:$4 sm:$0xff] (!%p351_p10)   ;;  %v987_v43 = vld [vmem:[%s1207_s7 + $0x54] ss:$8 sps:$4 sm:$0xff] (!%p351_p10)   ;;  %v989_v44 = vld [vmem:[%s1207_s7 + $0x50] ss:$8 sps:$4 sm:$0xff] (!%p351_p10)  }
  0x30   : > { %v990_v45 = vld [vmem:[%s1207_s7 + $0x64] ss:$8 sps:$4 sm:$0xff] (!%p351_p10)   ;;  %v992_v46 = vld [vmem:[%s1207_s7 + $0x60] ss:$8 sps:$4 sm:$0xff] (!%p351_p10)   ;;  %v993_v47 = vld [vmem:[%s1207_s7 + $0x74] ss:$8 sps:$4 sm:$0xff] (!%p351_p10)  }
  0x31   : > { %v995_v48 = vld [vmem:[%s1207_s7 + $0x70] ss:$8 sps:$4 sm:$0xff]   ;;  %v996_v49 = vld [vmem:[%s1207_s7 + $0x84] ss:$8 sps:$4 sm:$0xff]   ;;  %v998_v50 = vld [vmem:[%s1207_s7 + $0x80] ss:$8 sps:$4 sm:$0xff]  }
  0x32   : > { %633 = vmatpush1.bf16.msra.mxu0 %v977_v36  ;;  %v999_v51 = vld [vmem:[%s1207_s7 + $0x94] ss:$8 sps:$4 sm:$0xff]   ;;  %v1001_v52 = vld [vmem:[%s1207_s7 + $0x90] ss:$8 sps:$4 sm:$0xff]   ;;  %v1002_v53 = vld [vmem:[%s1207_s7 + $0xa4] ss:$8 sps:$4 sm:$0xff]  }
  0x33   : > { %634 = vmatprep.subr.bf16.mxu0 %v978_v37  ;;  %v1004_v54 = vld [vmem:[%s1207_s7 + $0xa0] ss:$8 sps:$4 sm:$0xff]   ;;  %v1005_v55 = vld [vmem:[%s1207_s7 + $0xb4] ss:$8 sps:$4 sm:$0xff]   ;;  %v1007_v56 = vld [vmem:[%s1207_s7 + $0xb0] ss:$8 sps:$4 sm:$0xff]  }
  0x34   : > { %v1008_v57 = vld [vmem:[%s1207_s7 + $0xc4] ss:$8 sps:$4 sm:$0xff]   ;;  %v1010_v58 = vld [vmem:[%s1207_s7 + $0xc0] ss:$8 sps:$4 sm:$0xff]   ;;  %v1011_v59 = vld [vmem:[%s1207_s7 + $0xd4] ss:$8 sps:$4 sm:$0xff]  }
  0x35   : > { %v1013_v60 = vld [vmem:[%s1207_s7 + $0xd0] ss:$8 sps:$4 sm:$0xff]   ;;  %v1014_v61 = vld [vmem:[%s1207_s7 + $0xe4] ss:$8 sps:$4 sm:$0xff]   ;;  %v1016_v62 = vld [vmem:[%s1207_s7 + $0xe0] ss:$8 sps:$4 sm:$0xff]  }
  0x36   : > { %635 = vmatpush1.bf16.msra.mxu0 %v980_v38  ;;  %v1017_v63 = vld [vmem:[%s1207_s7 + $0xf4] ss:$8 sps:$4 sm:$0xff]   ;;  %v1019_v0 = vld [vmem:[%s1207_s7 + $0xf0] ss:$8 sps:$4 sm:$0xff]   ;;  %s1283_s10 = smov (!%p408_p11, %s886_s10), 3  ;;  %v692_v4 = vsub.s32 0, %v691_v3 }
  0x37   : > { %636 = vmatprep.subr.bf16.mxu0 %v981_v39  ;;  %s410_s19 = scalar_lea.vmem %s1273_s2, %s1283_s10  ;;  %v696_v6 = vsub.s32 1, %v691_v3  ;;  %s885_s20 = sshll.u32 %s357_s30, 4 }
  0x38   : > { %v688_v5 = vld [vmem:[%s410_s19] sm:$0x3]  ;;  %s392_s23 = scalar_lea.vmem [#allocation4], %s885_s20  ;;  %s931_s12 = sshll.u32 (%p1118_p6), %s1053_s14, 3 }
  0x39   : > { %v693_v7 = vrot.slane %v688_v5, %v692_v4  ;;  %v697_v8 = vrot.slane %v688_v5, %v696_v6  ;;  %s734_s26 = scalar_lea.vmem (%p1118_p6), %s1274_s3, %s931_s12 }
  0x3a   : > { %637 = vmatpush1.bf16.msra.mxu0 %v983_v40 }
  0x3b   : > { %638 = vmatprep.subr.bf16.mxu0 %v984_v41 }
  0x3e   : > { %639 = vmatpush1.bf16.msra.mxu0 %v986_v42 }
  0x3f   : > { %640 = vmatprep.subr.bf16.mxu0 %v987_v43 }
  0x42   : > { %641 = vmatpush1.bf16.msra.mxu0 %v989_v44 }
  0x43   : > { %642 = vmatprep.subr.bf16.mxu0 %v990_v45 }
  0x46   : > { %643 = vmatpush1.bf16.msra.mxu0 %v992_v46 }
  0x47   : > { %644 = vmatprep.subr.bf16.mxu0 %v993_v47 }
  0x4a   : > { %645 = vmatpush1.bf16.msra.mxu0 %v995_v48 }
  0x4b   : > { %646 = vmatprep.subr.bf16.mxu0 %v996_v49 }
  0x4e   : > { %647 = vmatpush1.bf16.msra.mxu0 %v998_v50 }
  0x4f   : > { %648 = vmatprep.subr.bf16.mxu0 %v999_v51 }
  0x52   : > { %649 = vmatpush1.bf16.msra.mxu0 %v1001_v52 }
  0x53   : > { %650 = vmatprep.subr.bf16.mxu0 %v1002_v53 }
  0x56   : > { %651 = vmatpush1.bf16.msra.mxu0 %v1004_v54 }
  0x57   : > { %652 = vmatprep.subr.bf16.mxu0 %v1005_v55 }
  0x5a   : > { %653 = vmatpush1.bf16.msra.mxu0 %v1007_v56 }
  0x5b   : > { %654 = vmatprep.subr.bf16.mxu0 %v1008_v57 }
  0x5e   : > { %655 = vmatpush1.bf16.msra.mxu0 %v1010_v58 }
  0x5f   : > { %656 = vmatprep.subr.bf16.mxu0 %v1011_v59 }
  0x62   : > { %657 = vmatpush1.bf16.msra.mxu0 %v1013_v60 }
  0x63   : > { %658 = vmatprep.subr.bf16.mxu0 %v1014_v61 }
  0x66   : > { %659 = vmatpush1.bf16.msra.mxu0 %v1016_v62 }
  0x67   : > { %660 = vmatprep.subr.bf16.mxu0 %v1017_v63 }
  0x6a   : > { %661 = vmatpush1.bf16.msra.mxu0 %v1019_v0 }
  0x6d   : > { %663 = vmatmul.mubr.bf16.vlgmr.msra.gmra.mrb[0].mxu0 %v1020_v1 }
 0x140   : > { %v664_v9 = vpop.f32.mrb[0].mxu0 }
 0x141   : > { %v700_v10 = vadd.f32 %v693_v7, %v664_v9  ;;  %v666_v11 = vpop.f32.mrb[1].mxu0 }
 0x142   : > { %v701_v12 = vadd.f32 %v697_v8, %v666_v11  ;;  %v668_v13 = vpop.f32.mrb[2].mxu0 }
 0x143   : > { %v704_v14 = vmax.f32 %v700_v10, 0.0  ;;  %v702_v15 = vadd.f32 %v693_v7, %v668_v13  ;;  %v670_v16 = vpop.f32.mrb[3].mxu0 }
 0x144   : > { %v705_v17 = vmax.f32 %v701_v12, 0.0  ;;  %v703_v18 = vadd.f32 %v697_v8, %v670_v16  ;;  %728 = sbr.rel (!%p1118_p6) target bundleno = 339 (0x153), region = 82 }
 0x145   : > { %v706_v19 = vmax.f32 %v702_v15, 0.0 }
 0x146   : > { %v929_v20 = vpack.c.bf16 %v705_v17, %v704_v14  ;;  %v707_v21 = vmax.f32 %v703_v18, 0.0 }
 0x148   : > { %720 = vst [vmem:[%s392_s23] sm:$0xff] %v929_v20  ;;  %v930_v22 = vpack.c.bf16 %v707_v21, %v706_v19 }
 0x14a   : > { %721 = vst [vmem:[%s392_s23 + $0x8] sm:$0xff] %v930_v22 }
 0x14f   : > { %v764_v23 = vld [vmem:[%s392_s23] sm:$0xff] }
 0x150   : > { %765 = vst [vmem:[%s734_s26] sm:$0xff] %v764_v23 }
 0x151   : > { %v766_v24 = vld [vmem:[%s392_s23 + $0x8] sm:$0xff] }
 0x152   : > { %767 = vst [vmem:[%s734_s26 + $0x10] sm:$0xff] %v766_v24 }
 0x153 PF: > { %s13_s16 = sadd.s32 1, %s1061_s16   ;;  %s1276_s12 = smov %s1049_s13 }
 0x154   : > { %p10_p12 = scmp.ge.s32.totalorder %s13_s16, 4   ;;  %s1277_s13 = smov %s1123_s22 }
 0x155   : > { %s1278_s14 = smov %s1057_s15  ;;  %s1279_s15 = smov %s1281_s17 }
 0x156   :  { %12 = sbr.rel (!%p10_p12) target bundleno = 3 (0x3), region = 157 }

// kernel: model_forward.21
= control target key start
LH: loop header
LB: loop body
LE: loop exit
PB: predicated region body
PF: predicated region fallthrough
CT: control target
= control target key end

     0   :  { %s1813_s0 = inlined_call_operand.vmem [shape: bf16[16,768], index: 0, kind: input, shape index: {}]   ;;  %s1814_s1 = inlined_call_operand.vmem [shape: bf16[768,512], index: 1, kind: input, shape index: {}]   ;;  %s1815_s2 = inlined_call_operand.vmem [shape: f32[1,512], index: 2, kind: input, shape index: {}]   ;;  %s1816_s3 = inlined_call_operand.vmem [shape: bf16[16,512], index: 3, kind: output, shape index: {}]  }
   0x1   :  { %1818 = sst [smem:[#allocation7_spill]] %s1813_s0 }
   0x2   :  { %1819 = sst [smem:[#allocation8_spill]] %s1814_s1 }
   0x3   :  { %s1480_s12 = smov 0   ;;  %s1482_s13 = smov 0  }
   0x4   :  { %s1484_s14 = smov 0   ;;  %s1486_s15 = smov 0  }
   0x5   :  { %s1488_s16 = smov 0   ;;  %s1490_s17 = smov 0  }
   0x6   :  { %s1492_s18 = smov 0   ;;  %s1494_s19 = smov 0  }
   0x7   :  { %s1496_s20 = smov 0   ;;  %s1498_s21 = smov 0  }
   0x8   :  { %s1500_s22 = smov 0  }
   0x9 LB: > { %s1116_s23 = sadd.s32 4294967295, %s1456_s22   ;;  %s25_s24 = sadd.s32 1, %s1448_s20  ;;  %s1456_s22 = sphi %s1500_s22, %s13_s22   ;;  %s1452_s21 = sphi %s1498_s21, %s1836_s21   ;;  %s1448_s20 = sphi %s1496_s20, %s1835_s20   ;;  %s1444_s19 = sphi %s1494_s19, %s1834_s19   ;;  %s1440_s18 = sphi %s1492_s18, %s1833_s18   ;;  %s1436_s17 = sphi %s1490_s17, %s1832_s17   ;;  %s1432_s16 = sphi %s1488_s16, %s1831_s16   ;;  %s1428_s15 = sphi %s1486_s15, %s1830_s15   ;;  %s1424_s14 = sphi %s1484_s14, %s1829_s14   ;;  %s1420_s13 = sphi %s1482_s13, %s1828_s13   ;;  %s1416_s12 = sphi %s1480_s12, %s1827_s12  }
   0xa   : > { %p26_p0 = scmp.ge.s32.totalorder %s25_s24, 2  ;;  %s28_s25 = sadd.s32 1, %s1452_s21 }
   0xb   : > { %s41_s26 = sadd.s32 1, %s1436_s17  ;;  %p48_p1 = scmp.ne.s32.totalorder %s1436_s17, %s1432_s16 }
   0xc   : > { %s1838_s24 = smov (%p26_p0, %s25_s24), 0  ;;  %s1840_s25 = smov (!%p26_p0, %s28_s25), %s1452_s21 }
   0xd   : > { %s37_s27 = ssub.s32 %s1448_s20, %s1838_s24  ;;  %p49_p2 = scmp.eq.s32.totalorder %s1456_s22, 0 }
   0xe   : > { %p30_p3 = scmp.ge.s32.totalorder %s1840_s25, 2  ;;  %p39_p4 = scmp.eq.s32.totalorder %s37_s27, 0 }
   0xf   : > { %p1547_p5 = por %p49_p2, %p48_p1  ;;  %s69_s29 = sadd.s32 1, %s1428_s15 }
  0x10   : > { %s1842_s25 = smov (%p30_p3, %s1840_s25), 0  ;;  %p76_p6 = scmp.ne.s32.totalorder %s1428_s15, %s1424_s14 }
  0x11   : > { %1821 = sst [smem:[#allocation6_spill]] %s1842_s25  ;;  %s65_s4 = ssub.s32 %s1452_s21, %s1842_s25 }
  0x12   : > { %s1555_s30 = scalar_select %p39_p4, %s1436_s17, %s41_s26  }
  0x13   : > { %s66_s5 = sor.u32 %s65_s4, %s37_s27  ;;  %p121_p7 = scmp.eq.s32.totalorder %s65_s4, 0 }
  0x14   : > { %p67_p8 = scmp.eq.s32.totalorder %s66_s5, 0  ;;  %p1561_p9 = por %p76_p6, %p49_p2 }
  0x15   : > { %s123_s7 = sadd.s32 1, %s1420_s13  ;;  %p133_p10 = scmp.ne.s32.totalorder %s1420_s13, %s1416_s12 }
  0x16   : > { %s1569_s8 = scalar_select %p67_p8, %s1428_s15, %s69_s29  }
  0x17   : > { %s1572_s9 = scalar_select %p121_p7, %s1420_s13, %s123_s7  }
  0x18   : > { %p134_p11 = scmp.eq.s32.totalorder %s1116_s23, 3  ;;  %p1119_p13 = scmp.ge.s32.totalorder %s1456_s22, 4 }
  0x1a   : > { %p1574_p12 = por %p134_p11, %p133_p10  ;;  %156 = sbr.rel (%p1119_p13) target bundleno = 78 (0x4e), region = 16 }
  0x21   : > { %159 = sbr.rel (!%p1547_p5) target bundleno = 44 (0x2c), region = 20  ;;  %s161_s11 = sand.u32 (%p1547_p5), 1, %s1436_s17  }
  0x22   : > { %s1191_s26 = smul.u32 (%p1547_p5), 12, %s1448_s20  ;;  %s1824_s0 = sld [smem:[#allocation7_spill]] (%p1547_p5) }
  0x23   : > { %s1200_s27 = smul.u32 (%p1547_p5), 24, %s161_s11 }
  0x25   : > { %s163_s23 = scalar_lea.vmem (%p1547_p5), [#allocation3], %s1200_s27 }
  0x28   : > { %s169_s5 = scalar_lea.vmem %s1824_s0, %s1191_s26 }
  0x29   : > { %v184_v0 = vld [vmem:[%s169_s5] sm:$0xff]  ;;  %v186_v1 = vld [vmem:[%s169_s5 + $0x18] sm:$0xff]  ;;  %v1121_v2 = vld [vmem:[%s169_s5 + $0x8] sm:$0xf] }
  0x2a   : > { %185 = vst [vmem:[%s163_s23] sm:$0xff] %v184_v0  ;;  %187 = vst [vmem:[%s163_s23 + $0xc] sm:$0xff] %v186_v1  ;;  %v1123_v3 = vld [vmem:[%s169_s5 + $0x20] sm:$0xf] }
  0x2b   : > { %1122 = vst [vmem:[%s163_s23 + $0x8] sm:$0xf] %v1121_v2  ;;  %1124 = vst [vmem:[%s163_s23 + $0x14] sm:$0xf] %v1123_v3 }
  0x2c PF: > { %204 = sbr.rel (!%p1561_p9) target bundleno = 78 (0x4e), region = 46  ;;  %s206_s28 = sand.u32 (%p1561_p9), 1, %s1428_s15  }
  0x2d   : > { %s1201_s7 = smul.u32 (%p1561_p9), 384, %s206_s28  ;;  %s1125_s11 = sshll.u32 (%p1561_p9), %s1452_s21, 1 }
  0x2e   : > { %s1192_s26 = smul.u32 (%p1561_p9), 192, %s1448_s20  ;;  %s1825_s1 = sld [smem:[#allocation8_spill]] (%p1561_p9) }
  0x2f   : > { %s1599_s6 = scalar_lea.vmem (%p1561_p9), [#allocation4], %s1201_s7 }
  0x30   : > { %s212_s29 = sadd.s32 (%p1561_p9), %s1192_s26, %s1125_s11 }
  0x31   : > { %s1127_s4 = sshll.u32 (%p1561_p9), %s212_s29, 2 }
  0x34   : > { %s1594_s25 = scalar_lea.vmem %s1825_s1, %s1127_s4 }
  0x35   : > { %v336_v4 = vld [vmem:[%s1594_s25] sm:$0xff]  ;;  %v338_v5 = vld [vmem:[%s1594_s25 + $0x10] sm:$0xff] }
  0x36   : > { %v340_v6 = vld [vmem:[%s1594_s25 + $0x20] sm:$0xff]  ;;  %337 = vst [vmem:[%s1599_s6] sm:$0xff] %v336_v4  ;;  %339 = vst [vmem:[%s1599_s6 + $0x8] sm:$0xff] %v338_v5  ;;  %v342_v7 = vld [vmem:[%s1594_s25 + $0x30] sm:$0xff] }
  0x37   : > { %341 = vst [vmem:[%s1599_s6 + $0x10] sm:$0xff] %v340_v6  ;;  %v344_v8 = vld [vmem:[%s1594_s25 + $0x40] sm:$0xff]  ;;  %v346_v9 = vld [vmem:[%s1594_s25 + $0x50] sm:$0xff]  ;;  %343 = vst [vmem:[%s1599_s6 + $0x18] sm:$0xff] %v342_v7 }
  0x38   : > { %345 = vst [vmem:[%s1599_s6 + $0x20] sm:$0xff] %v344_v8  ;;  %347 = vst [vmem:[%s1599_s6 + $0x28] sm:$0xff] %v346_v9  ;;  %v348_v10 = vld [vmem:[%s1594_s25 + $0x60] sm:$0xff]  ;;  %v350_v11 = vld [vmem:[%s1594_s25 + $0x70] sm:$0xff] }
  0x39   : > { %v352_v12 = vld [vmem:[%s1594_s25 + $0x80] sm:$0xff]  ;;  %349 = vst [vmem:[%s1599_s6 + $0x30] sm:$0xff] %v348_v10  ;;  %351 = vst [vmem:[%s1599_s6 + $0x38] sm:$0xff] %v350_v11  ;;  %v354_v13 = vld [vmem:[%s1594_s25 + $0x90] sm:$0xff] }
  0x3a   : > { %353 = vst [vmem:[%s1599_s6 + $0x40] sm:$0xff] %v352_v12  ;;  %v356_v14 = vld [vmem:[%s1594_s25 + $0xa0] sm:$0xff]  ;;  %v358_v15 = vld [vmem:[%s1594_s25 + $0xb0] sm:$0xff]  ;;  %355 = vst [vmem:[%s1599_s6 + $0x48] sm:$0xff] %v354_v13 }
  0x3b   : > { %357 = vst [vmem:[%s1599_s6 + $0x50] sm:$0xff] %v356_v14  ;;  %359 = vst [vmem:[%s1599_s6 + $0x58] sm:$0xff] %v358_v15  ;;  %v360_v16 = vld [vmem:[%s1594_s25 + $0xc0] sm:$0xff]  ;;  %v362_v17 = vld [vmem:[%s1594_s25 + $0xd0] sm:$0xff] }
  0x3c   : > { %v364_v18 = vld [vmem:[%s1594_s25 + $0xe0] sm:$0xff]  ;;  %361 = vst [vmem:[%s1599_s6 + $0x60] sm:$0xff] %v360_v16  ;;  %363 = vst [vmem:[%s1599_s6 + $0x68] sm:$0xff] %v362_v17  ;;  %v366_v19 = vld [vmem:[%s1594_s25 + $0xf0] sm:$0xff] }
  0x3d   : > { %365 = vst [vmem:[%s1599_s6 + $0x70] sm:$0xff] %v364_v18  ;;  %v368_v20 = vld [vmem:[%s1594_s25 + $0x100] sm:$0xff]  ;;  %v370_v21 = vld [vmem:[%s1594_s25 + $0x110] sm:$0xff]  ;;  %367 = vst [vmem:[%s1599_s6 + $0x78] sm:$0xff] %v366_v19 }
  0x3e   : > { %369 = vst [vmem:[%s1599_s6 + $0x80] sm:$0xff] %v368_v20  ;;  %371 = vst [vmem:[%s1599_s6 + $0x88] sm:$0xff] %v370_v21  ;;  %v372_v22 = vld [vmem:[%s1594_s25 + $0x120] sm:$0xff]  ;;  %v374_v23 = vld [vmem:[%s1594_s25 + $0x130] sm:$0xff] }
  0x3f   : > { %v376_v24 = vld [vmem:[%s1594_s25 + $0x140] sm:$0xff]  ;;  %373 = vst [vmem:[%s1599_s6 + $0x90] sm:$0xff] %v372_v22  ;;  %375 = vst [vmem:[%s1599_s6 + $0x98] sm:$0xff] %v374_v23  ;;  %v378_v25 = vld [vmem:[%s1594_s25 + $0x150] sm:$0xff] }
  0x40   : > { %377 = vst [vmem:[%s1599_s6 + $0xa0] sm:$0xff] %v376_v24  ;;  %v380_v26 = vld [vmem:[%s1594_s25 + $0x160] sm:$0xff]  ;;  %v382_v27 = vld [vmem:[%s1594_s25 + $0x170] sm:$0xff]  ;;  %379 = vst [vmem:[%s1599_s6 + $0xa8] sm:$0xff] %v378_v25 }
  0x41   : > { %381 = vst [vmem:[%s1599_s6 + $0xb0] sm:$0xff] %v380_v26  ;;  %383 = vst [vmem:[%s1599_s6 + $0xb8] sm:$0xff] %v382_v27  ;;  %v384_v28 = vld [vmem:[%s1594_s25 + $0x180] sm:$0xff]  ;;  %v386_v29 = vld [vmem:[%s1594_s25 + $0x190] sm:$0xff] }
  0x42   : > { %v388_v30 = vld [vmem:[%s1594_s25 + $0x1a0] sm:$0xff]  ;;  %385 = vst [vmem:[%s1599_s6 + $0xc0] sm:$0xff] %v384_v28  ;;  %387 = vst [vmem:[%s1599_s6 + $0xc8] sm:$0xff] %v386_v29  ;;  %v390_v31 = vld [vmem:[%s1594_s25 + $0x1b0] sm:$0xff] }
  0x43   : > { %389 = vst [vmem:[%s1599_s6 + $0xd0] sm:$0xff] %v388_v30  ;;  %v392_v32 = vld [vmem:[%s1594_s25 + $0x1c0] sm:$0xff]  ;;  %v394_v33 = vld [vmem:[%s1594_s25 + $0x1d0] sm:$0xff]  ;;  %391 = vst [vmem:[%s1599_s6 + $0xd8] sm:$0xff] %v390_v31 }
  0x44   : > { %393 = vst [vmem:[%s1599_s6 + $0xe0] sm:$0xff] %v392_v32  ;;  %395 = vst [vmem:[%s1599_s6 + $0xe8] sm:$0xff] %v394_v33  ;;  %v396_v34 = vld [vmem:[%s1594_s25 + $0x1e0] sm:$0xff]  ;;  %v398_v35 = vld [vmem:[%s1594_s25 + $0x1f0] sm:$0xff] }
  0x45   : > { %v400_v36 = vld [vmem:[%s1594_s25 + $0x200] sm:$0xff]  ;;  %397 = vst [vmem:[%s1599_s6 + $0xf0] sm:$0xff] %v396_v34  ;;  %399 = vst [vmem:[%s1599_s6 + $0xf8] sm:$0xff] %v398_v35  ;;  %v402_v37 = vld [vmem:[%s1594_s25 + $0x210] sm:$0xff] }
  0x46   : > { %401 = vst [vmem:[%s1599_s6 + $0x100] sm:$0xff] %v400_v36  ;;  %v404_v38 = vld [vmem:[%s1594_s25 + $0x220] sm:$0xff]  ;;  %v406_v39 = vld [vmem:[%s1594_s25 + $0x230] sm:$0xff]  ;;  %403 = vst [vmem:[%s1599_s6 + $0x108] sm:$0xff] %v402_v37 }
  0x47   : > { %405 = vst [vmem:[%s1599_s6 + $0x110] sm:$0xff] %v404_v38  ;;  %407 = vst [vmem:[%s1599_s6 + $0x118] sm:$0xff] %v406_v39  ;;  %v408_v40 = vld [vmem:[%s1594_s25 + $0x240] sm:$0xff]  ;;  %v410_v41 = vld [vmem:[%s1594_s25 + $0x250] sm:$0xff] }
  0x48   : > { %v412_v42 = vld [vmem:[%s1594_s25 + $0x260] sm:$0xff]  ;;  %409 = vst [vmem:[%s1599_s6 + $0x120] sm:$0xff] %v408_v40  ;;  %411 = vst [vmem:[%s1599_s6 + $0x128] sm:$0xff] %v410_v41  ;;  %v414_v43 = vld [vmem:[%s1594_s25 + $0x270] sm:$0xff] }
  0x49   : > { %413 = vst [vmem:[%s1599_s6 + $0x130] sm:$0xff] %v412_v42  ;;  %v416_v44 = vld [vmem:[%s1594_s25 + $0x280] sm:$0xff]  ;;  %v418_v45 = vld [vmem:[%s1594_s25 + $0x290] sm:$0xff]  ;;  %415 = vst [vmem:[%s1599_s6 + $0x138] sm:$0xff] %v414_v43 }
  0x4a   : > { %417 = vst [vmem:[%s1599_s6 + $0x140] sm:$0xff] %v416_v44  ;;  %419 = vst [vmem:[%s1599_s6 + $0x148] sm:$0xff] %v418_v45  ;;  %v420_v46 = vld [vmem:[%s1594_s25 + $0x2a0] sm:$0xff]  ;;  %v422_v47 = vld [vmem:[%s1594_s25 + $0x2b0] sm:$0xff] }
  0x4b   : > { %v424_v48 = vld [vmem:[%s1594_s25 + $0x2c0] sm:$0xff]  ;;  %421 = vst [vmem:[%s1599_s6 + $0x150] sm:$0xff] %v420_v46  ;;  %423 = vst [vmem:[%s1599_s6 + $0x158] sm:$0xff] %v422_v47  ;;  %v426_v49 = vld [vmem:[%s1594_s25 + $0x2d0] sm:$0xff] }
  0x4c   : > { %425 = vst [vmem:[%s1599_s6 + $0x160] sm:$0xff] %v424_v48  ;;  %v428_v50 = vld [vmem:[%s1594_s25 + $0x2e0] sm:$0xff]  ;;  %v430_v51 = vld [vmem:[%s1594_s25 + $0x2f0] sm:$0xff]  ;;  %427 = vst [vmem:[%s1599_s6 + $0x168] sm:$0xff] %v426_v49 }
  0x4d   : > { %429 = vst [vmem:[%s1599_s6 + $0x170] sm:$0xff] %v428_v50  ;;  %431 = vst [vmem:[%s1599_s6 + $0x178] sm:$0xff] %v430_v51 }
  0x4e PF: > { %p1128_p0 = scmp.ge.s32.totalorder %s1456_s22, 1  ;;  %p444_p1 = scmp.lt.s32.totalorder %s1456_s22, 5 }
  0x50   : > { %p445_p2 = pnand %p1128_p0, %p444_p1 }
  0x51   : > { %s451_s0 = sand.u32 (!%p445_p2), 1, %s1432_s16   ;;  %s458_s5 = sand.u32 (!%p445_p2), 1, %s1424_s14  }
  0x52   : > { %448 = sbr.rel (%p445_p2) target bundleno = 403 (0x193), region = 88  ;;  %s485_s28 = sand.u32 (!%p445_p2), 1, %s1416_s12  }
  0x53   : > { %s1202_s23 = smul.u32 (!%p445_p2), 24, %s451_s0  ;;  %s1129_s7 = sshll.u32 (!%p445_p2), %s485_s28, 4 }
  0x54   : > { %s1203_s25 = smul.u32 (!%p445_p2), 384, %s458_s5  ;;  %s1130_s11 = sshll.u32 (!%p445_p2), %s1444_s19, 1 }
  0x55   : > { %p493_p3 = scmp.lt.s32.totalorder (!%p445_p2), %s1130_s11, 3  ;;  %s1706_s27 = scalar_lea.vmem (!%p445_p2), [#allocation3], %s1202_s23 }
  0x56   : > { %s1708_s6 = scalar_lea.vmem (!%p445_p2), [#allocation4], %s1203_s25  ;;  %s1710_s1 = scalar_lea.vmem (!%p445_p2), [#allocation5], %s1129_s7 }
  0x57   : > { %p1131_p4 = scmp.ne.s32.totalorder (!%p445_p2), %s1440_s18, 0 }
  0x59   : > { %s1844_s11 = smov (!%p493_p3, %s1130_s11), 3  ;;  %503 = sbr.rel (%p1131_p4) target bundleno = 96 (0x60), region = 100 }
  0x5a   : > { %s495_s4 = scalar_lea.vmem %s1815_s2, %s1844_s11  ;;  %v1458_v52 = vmov (!%p1131_p4), 0.0  }
  0x5b   : > { %504 = vst [vmem:[#allocation2] sm:$0xff] (!%p1131_p4), %v1458_v52  ;;  %505 = vst [vmem:[#allocation2 + $0x8] sm:$0xff] (!%p1131_p4), %v1458_v52 }
  0x5c   : > { %506 = vst [vmem:[#allocation2 + $0x10] sm:$0xff] (!%p1131_p4), %v1458_v52  ;;  %507 = vst [vmem:[#allocation2 + $0x18] sm:$0xff] (!%p1131_p4), %v1458_v52 }
  0x60 PF: > { %v1294_v53 = vld [vmem:[%s1708_s6 + $0x4] ss:$8 sps:$4 sm:$0xff]   ;;  %v1296_v54 = vld [vmem:[%s1708_s6] ss:$8 sps:$4 sm:$0xff]   ;;  %v1459_v55 = vmov 0   ;;  %p1183_p5 = scmp.ne.s32.totalorder %s1440_s18, 1 }
  0x61   : > { %895 = vmatprep.mubr.bf16.mxu0 %v1459_v55  ;;  %820 = vmatprep.subr.bf16.mxu1 %v1294_v53  ;;  %v1297_v56 = vld [vmem:[%s1708_s6 + $0x14] ss:$8 sps:$4 sm:$0xff]   ;;  %v1299_v57 = vld [vmem:[%s1708_s6 + $0x10] ss:$8 sps:$4 sm:$0xff]   ;;  %v1300_v58 = vld [vmem:[%s1708_s6 + $0x24] ss:$8 sps:$4 sm:$0xff]  }
  0x62   : > { %821 = vmatpush1.bf16.msra.mxu1 %v1296_v54  ;;  %v1302_v59 = vld [vmem:[%s1708_s6 + $0x20] ss:$8 sps:$4 sm:$0xff]   ;;  %v1303_v60 = vld [vmem:[%s1708_s6 + $0x34] ss:$8 sps:$4 sm:$0xff]   ;;  %v1305_v61 = vld [vmem:[%s1708_s6 + $0x30] ss:$8 sps:$4 sm:$0xff]  }
  0x63   : > { %822 = vmatprep.subr.bf16.mxu1 %v1297_v56  ;;  %v1318_v62 = vld [vmem:[%s1708_s6 + $0x104] ss:$8 sps:$4 sm:$0xff]   ;;  %v1320_v63 = vld [vmem:[%s1708_s6 + $0x100] ss:$8 sps:$4 sm:$0xff]   ;;  %v1324_v1 = vld [vmem:[%s1708_s6 + $0x114] ss:$8 sps:$4 sm:$0xff]  }
  0x64   : > { %v1306_v0 = vld [vmem:[%s1708_s6 + $0x44] ss:$8 sps:$4 sm:$0xff]   ;;  %863 = vmatprep.subr.bf16.mxu0 %v1318_v62  ;;  %v1326_v2 = vld [vmem:[%s1708_s6 + $0x110] ss:$8 sps:$4 sm:$0xff]   ;;  %v1308_v3 = vld [vmem:[%s1708_s6 + $0x40] ss:$8 sps:$4 sm:$0xff]  }
  0x65   : > { %864 = vmatpush1.bf16.msra.mxu0 %v1320_v63  ;;  %v1309_v4 = vld [vmem:[%s1708_s6 + $0x54] ss:$8 sps:$4 sm:$0xff]   ;;  %v1330_v5 = vld [vmem:[%s1708_s6 + $0x124] ss:$8 sps:$4 sm:$0xff]   ;;  %v1332_v6 = vld [vmem:[%s1708_s6 + $0x120] ss:$8 sps:$4 sm:$0xff]  }
  0x66   : > { %823 = vmatpush1.bf16.msra.mxu1 %v1299_v57  ;;  %865 = vmatprep.subr.bf16.mxu0 %v1324_v1  ;;  %v1311_v7 = vld [vmem:[%s1708_s6 + $0x50] ss:$8 sps:$4 sm:$0xff]   ;;  %v1336_v8 = vld [vmem:[%s1708_s6 + $0x134] ss:$8 sps:$4 sm:$0xff]   ;;  %v1312_v9 = vld [vmem:[%s1708_s6 + $0x64] ss:$8 sps:$4 sm:$0xff]  }
  0x67   : > { %824 = vmatprep.subr.bf16.mxu1 %v1300_v58  ;;  %v1338_v10 = vld [vmem:[%s1708_s6 + $0x130] ss:$8 sps:$4 sm:$0xff]   ;;  %v1314_v11 = vld [vmem:[%s1708_s6 + $0x60] ss:$8 sps:$4 sm:$0xff]   ;;  %v1342_v12 = vld [vmem:[%s1708_s6 + $0x144] ss:$8 sps:$4 sm:$0xff]  }
  0x68   : > { %v1315_v13 = vld [vmem:[%s1708_s6 + $0x74] ss:$8 sps:$4 sm:$0xff]   ;;  %v1344_v14 = vld [vmem:[%s1708_s6 + $0x140] ss:$8 sps:$4 sm:$0xff]   ;;  %v1317_v15 = vld [vmem:[%s1708_s6 + $0x70] ss:$8 sps:$4 sm:$0xff]  }
  0x69   : > { %866 = vmatpush1.bf16.msra.mxu0 %v1326_v2  ;;  %v1348_v16 = vld [vmem:[%s1708_s6 + $0x154] ss:$8 sps:$4 sm:$0xff]   ;;  %v1321_v17 = vld [vmem:[%s1708_s6 + $0x84] ss:$8 sps:$4 sm:$0xff]   ;;  %v1350_v18 = vld [vmem:[%s1708_s6 + $0x150] ss:$8 sps:$4 sm:$0xff]  }
  0x6a   : > { %825 = vmatpush1.bf16.msra.mxu1 %v1302_v59  ;;  %867 = vmatprep.subr.bf16.mxu0 %v1330_v5  ;;  %v1323_v19 = vld [vmem:[%s1708_s6 + $0x80] ss:$8 sps:$4 sm:$0xff]   ;;  %v1354_v20 = vld [vmem:[%s1708_s6 + $0x164] ss:$8 sps:$4 sm:$0xff]   ;;  %v1327_v21 = vld [vmem:[%s1708_s6 + $0x94] ss:$8 sps:$4 sm:$0xff]  }
  0x6b   : > { %826 = vmatprep.subr.bf16.mxu1 %v1303_v60  ;;  %v1356_v22 = vld [vmem:[%s1708_s6 + $0x160] ss:$8 sps:$4 sm:$0xff]   ;;  %v1329_v24 = vld [vmem:[%s1708_s6 + $0x90] ss:$8 sps:$4 sm:$0xff]   ;;  %v1360_v25 = vld [vmem:[%s1708_s6 + $0x174] ss:$8 sps:$4 sm:$0xff]  }
  0x6c   : > { %v1369_v23 = vld [vmem:[%s1706_s27 + $0x4] ss:$12 sps:$4 sm:$0xff]   ;;  %v1366_v30 = vld [vmem:[%s1706_s27 + $0x8] ss:$12 sps:$4 sm:$0xff]   ;;  %v1367_v40 = vld [vmem:[%s1706_s27] ss:$12 sps:$4 sm:$0xff]  }
  0x6d   : > { %868 = vmatpush1.bf16.msra.mxu0 %v1332_v6  ;;  %v1333_v26 = vld [vmem:[%s1708_s6 + $0xa4] ss:$8 sps:$4 sm:$0xff]   ;;  %852 = vmatprep.mubr.bf16.mxu1 %v1369_v23  ;;  %v1362_v27 = vld [vmem:[%s1708_s6 + $0x170] ss:$8 sps:$4 sm:$0xff]   ;;  %v1335_v28 = vld [vmem:[%s1708_s6 + $0xa0] ss:$8 sps:$4 sm:$0xff]  }
  0x6e   : > { %827 = vmatpush1.bf16.msra.mxu1 %v1305_v61  ;;  %869 = vmatprep.subr.bf16.mxu0 %v1336_v8  ;;  %v1339_v29 = vld [vmem:[%s1708_s6 + $0xb4] ss:$8 sps:$4 sm:$0xff]   ;;  %v1341_v31 = vld [vmem:[%s1708_s6 + $0xb0] ss:$8 sps:$4 sm:$0xff]   ;;  %v1345_v32 = vld [vmem:[%s1708_s6 + $0xc4] ss:$8 sps:$4 sm:$0xff]   ;;  %v924_v61 = vlaneseq (!%p1183_p5) }
  0x6f   : > { %828 = vmatprep.subr.bf16.mxu1 %v1306_v0  ;;  %v1347_v33 = vld [vmem:[%s1708_s6 + $0xc0] ss:$8 sps:$4 sm:$0xff]   ;;  %v1351_v34 = vld [vmem:[%s1708_s6 + $0xd4] ss:$8 sps:$4 sm:$0xff]   ;;  %v1353_v35 = vld [vmem:[%s1708_s6 + $0xd0] ss:$8 sps:$4 sm:$0xff]  }
  0x70   : > { %v1357_v36 = vld [vmem:[%s1708_s6 + $0xe4] ss:$8 sps:$4 sm:$0xff]   ;;  %v1359_v37 = vld [vmem:[%s1708_s6 + $0xe0] ss:$8 sps:$4 sm:$0xff]   ;;  %v1363_v38 = vld [vmem:[%s1708_s6 + $0xf4] ss:$8 sps:$4 sm:$0xff]  }
  0x71   : > { %870 = vmatpush1.bf16.msra.mxu0 %v1338_v10  ;;  %v1365_v39 = vld [vmem:[%s1708_s6 + $0xf0] ss:$8 sps:$4 sm:$0xff]   ;;  %v510_v51 = vld [vmem:[#allocation2 + $0x10] sm:$0xff]  ;;  %v511_v55 = vld [vmem:[#allocation2 + $0x18] sm:$0xff]  ;;  %v925_v62 = vshrl.u32 (!%p1183_p5), %v924_v61, 7 }
  0x72   : > { %829 = vmatpush1.bf16.msra.mxu1 %v1308_v3  ;;  %871 = vmatprep.subr.bf16.mxu0 %v1342_v12  ;;  %v508_v45 = vld [vmem:[#allocation2] sm:$0xff]  ;;  %v509_v48 = vld [vmem:[#allocation2 + $0x8] sm:$0xff] }
  0x73   : > { %830 = vmatprep.subr.bf16.mxu1 %v1309_v4  ;;  %v922_v63 = vld [vmem:[%s495_s4] sm:$0x3] (!%p1183_p5)  ;;  %v926_v1 = vsub.s32 (!%p1183_p5), 0, %v925_v62  ;;  %v930_v2 = vsub.s32 (!%p1183_p5), 1, %v925_v62 }
  0x75   : > { %872 = vmatpush1.bf16.msra.mxu0 %v1344_v14  ;;  %v927_v6 = vrot.slane (!%p1183_p5), %v922_v63, %v926_v1 }
  0x76   : > { %831 = vmatpush1.bf16.msra.mxu1 %v1311_v7  ;;  %873 = vmatprep.subr.bf16.mxu0 %v1348_v16  ;;  %v931_v7 = vrot.slane (!%p1183_p5), %v922_v63, %v930_v2 }
  0x77   : > { %832 = vmatprep.subr.bf16.mxu1 %v1312_v9 }
  0x79   : > { %874 = vmatpush1.bf16.msra.mxu0 %v1350_v18 }
  0x7a   : > { %833 = vmatpush1.bf16.msra.mxu1 %v1314_v11  ;;  %875 = vmatprep.subr.bf16.mxu0 %v1354_v20 }
  0x7b   : > { %834 = vmatprep.subr.bf16.mxu1 %v1315_v13 }
  0x7d   : > { %876 = vmatpush1.bf16.msra.mxu0 %v1356_v22 }
  0x7e   : > { %835 = vmatpush1.bf16.msra.mxu1 %v1317_v15  ;;  %877 = vmatprep.subr.bf16.mxu0 %v1360_v25 }
  0x7f   : > { %836 = vmatprep.subr.bf16.mxu1 %v1321_v17 }
  0x81   : > { %878 = vmatpush1.bf16.msra.mxu0 %v1362_v27 }
  0x82   : > { %837 = vmatpush1.bf16.msra.mxu1 %v1323_v19 }
  0x83   : > { %838 = vmatprep.subr.bf16.mxu1 %v1327_v21 }
  0x84   : > { %896 = vmatmul.mubr.bf16.vlgmr.msra.gmra.mrb[0].mxu0 %v1366_v30 }
  0x86   : > { %839 = vmatpush1.bf16.msra.mxu1 %v1329_v24 }
  0x87   : > { %840 = vmatprep.subr.bf16.mxu1 %v1333_v26 }
  0x8a   : > { %841 = vmatpush1.bf16.msra.mxu1 %v1335_v28 }
  0x8b   : > { %842 = vmatprep.subr.bf16.mxu1 %v1339_v29 }
  0x8e   : > { %843 = vmatpush1.bf16.msra.mxu1 %v1341_v31 }
  0x8f   : > { %844 = vmatprep.subr.bf16.mxu1 %v1345_v32 }
  0x92   : > { %845 = vmatpush1.bf16.msra.mxu1 %v1347_v33 }
  0x93   : > { %846 = vmatprep.subr.bf16.mxu1 %v1351_v34 }
  0x96   : > { %847 = vmatpush1.bf16.msra.mxu1 %v1353_v35 }
  0x97   : > { %848 = vmatprep.subr.bf16.mxu1 %v1357_v36 }
  0x9a   : > { %849 = vmatpush1.bf16.msra.mxu1 %v1359_v37 }
  0x9b   : > { %850 = vmatprep.subr.bf16.mxu1 %v1363_v38 }
  0x9e   : > { %851 = vmatpush1.bf16.msra.mxu1 %v1365_v39 }
  0xa1   : > { %853 = vmatmul.mubr.bf16.vlgmr.msra.gmra.mrb[0].mxu1 %v1367_v40 }
 0x157   : > { %v897_v41 = vpop.f32.mrb[0].mxu0 }
 0x158   : > { %v899_v42 = vpop.f32.mrb[1].mxu0 }
 0x159   : > { %v901_v43 = vpop.f32.mrb[2].mxu0 }
 0x15a   : > { %v903_v44 = vpop.f32.mrb[3].mxu0 }
 0x174   : > { %v854_v46 = vpop.f32.mrb[0].mxu1 }
 0x175   : > { %v898_v47 = vadd.f32 %v897_v41, %v854_v46  ;;  %v856_v49 = vpop.f32.mrb[1].mxu1 }
 0x176   : > { %v900_v50 = vadd.f32 %v899_v42, %v856_v49  ;;  %v858_v52 = vpop.f32.mrb[2].mxu1  ;;  %917 = sbr.rel (%p1183_p5) target bundleno = 395 (0x18b), region = 104 }
 0x177   : > { %v906_v53 = vadd.f32 %v898_v47, %v508_v45  ;;  %v902_v54 = vadd.f32 %v901_v43, %v858_v52  ;;  %v860_v56 = vpop.f32.mrb[3].mxu1 }
 0x178   : > { %v907_v57 = vadd.f32 %v900_v50, %v509_v48  ;;  %v904_v58 = vadd.f32 %v903_v44, %v860_v56 }
 0x179   : > { %910 = vst [vmem:[#allocation2] sm:$0xff] %v906_v53  ;;  %v908_v59 = vadd.f32 %v902_v54, %v510_v51 }
 0x17a   : > { %911 = vst [vmem:[#allocation2 + $0x8] sm:$0xff] %v907_v57  ;;  %v909_v60 = vadd.f32 %v904_v58, %v511_v55 }
 0x17b   : > { %912 = vst [vmem:[#allocation2 + $0x10] sm:$0xff] %v908_v59 }
 0x17c   : > { %913 = vst [vmem:[#allocation2 + $0x18] sm:$0xff] %v909_v60 }
 0x180   : > { %v918_v0 = vld [vmem:[#allocation2] sm:$0xff] }
 0x181   : > { %v919_v3 = vld [vmem:[#allocation2 + $0x8] sm:$0xff]  ;;  %v934_v8 = vadd.f32 %v927_v6, %v918_v0 }
 0x182   : > { %v920_v4 = vld [vmem:[#allocation2 + $0x10] sm:$0xff]  ;;  %v935_v9 = vadd.f32 %v931_v7, %v919_v3 }
 0x183   : > { %v921_v5 = vld [vmem:[#allocation2 + $0x18] sm:$0xff]  ;;  %v936_v10 = vadd.f32 %v927_v6, %v920_v4  ;;  %v938_v12 = vmax.f32 %v934_v8, 0.0 }
 0x184   : > { %v937_v11 = vadd.f32 %v931_v7, %v921_v5  ;;  %v939_v13 = vmax.f32 %v935_v9, 0.0 }
 0x185   : > { %v940_v14 = vmax.f32 %v936_v10, 0.0 }
 0x186   : > { %v941_v15 = vmax.f32 %v937_v11, 0.0  ;;  %v1193_v16 = vpack.c.bf16 %v939_v13, %v938_v12 }
 0x188   : > { %v1194_v17 = vpack.c.bf16 %v941_v15, %v940_v14  ;;  %954 = vst [vmem:[%s1710_s1] sm:$0xff] %v1193_v16 }
 0x18a   : > { %955 = vst [vmem:[%s1710_s1 + $0x8] sm:$0xff] %v1194_v17 }
 0x18b PF: > { %962 = sbr.rel (!%p1574_p12) target bundleno = 403 (0x193), region = 108  ;;  %s1195_s16 = sshll.u32 (%p1574_p12), %s1444_s19, 3 }
 0x18c   : > { %s968_s5 = scalar_lea.vmem (%p1574_p12), %s1816_s3, %s1195_s16 }
 0x18f   : > { %v998_v18 = vld [vmem:[%s1710_s1] sm:$0xff] (%p1574_p12) }
 0x190   : > { %999 = vst [vmem:[%s968_s5] sm:$0xff] (%p1574_p12), %v998_v18 }
 0x191   : > { %v1000_v19 = vld [vmem:[%s1710_s1 + $0x8] sm:$0xff] (%p1574_p12) }
 0x192   : > { %1001 = vst [vmem:[%s968_s5 + $0x10] sm:$0xff] %v1000_v19 }
 0x193 PF: > { %s13_s22 = sadd.s32 1, %s1456_s22   ;;  %s1826_s1 = sld [smem:[#allocation6_spill]] }
 0x194   : > { %p10_p6 = scmp.ge.s32.totalorder %s13_s22, 6   ;;  %s1827_s12 = smov %s1420_s13 }
 0x195   : > { %s1828_s13 = smov %s1572_s9  ;;  %s1829_s14 = smov %s1428_s15 }
 0x196   : > { %s1830_s15 = smov %s1569_s8  ;;  %s1831_s16 = smov %s1436_s17 }
 0x197   : > { %s1832_s17 = smov %s1555_s30  ;;  %s1833_s18 = smov %s1448_s20 }
 0x198   : > { %s1834_s19 = smov %s1452_s21  ;;  %s1835_s20 = smov %s1838_s24 }
 0x199   : > { %s1836_s21 = smov %s1826_s1  ;;  %12 = sbr.rel (!%p10_p6) target bundleno = 9 (0x9), region = 194 }

</bundles_post_ra>
